<compile_context>
chip_gen: v7x
topology: tpu7x:2x2x1
jax: 0.10.0
libtpu: 0.0.40
codegen_flags: <defaults>
</compile_context>

<pallas_src>
import jax
import jax.numpy as jnp
from jax.experimental import pallas as pl
from jax.experimental.pallas import tpu as pltpu

D_IN, H1, H2, D_OUT = 1280, 256, 128, 1


def mlp_kernel(x_ref, w1_ref, b1_ref, w2_ref, b2_ref, w3_ref, b3_ref, o_ref):
    # In-kernel cast f32 -> bf16 for the MXU (f32 accumulation).  Keeps HBM
    # traffic on x at 4 B/elem instead of 8 B/elem via a wrapper-side cast.
    x = x_ref[...].astype(w1_ref.dtype)

    # fc1 + relu (MXU + VPU)
    h1 = jnp.dot(x, w1_ref[...], preferred_element_type=jnp.float32)
    h1 = jnp.maximum(h1 + b1_ref[...], 0.0)
    # dropout1: identity in eval/inference mode.
    # TODO(synk): training-mode dropout (stateful PRNG masking) not implemented.

    # fc2 + relu
    h2 = jnp.dot(h1.astype(w2_ref.dtype), w2_ref[...],
                 preferred_element_type=jnp.float32)
    h2 = jnp.maximum(h2 + b2_ref[...], 0.0)
    # dropout2: identity in eval/inference mode.

    # fc3 in NT form: (1, H2) . (block_b, H2)^T -> (1, block_b).  D_OUT == 1,
    # so the result lands lane-dense (batch along lanes) -> unmasked stores.
    logits = jax.lax.dot_general(
        w3_ref[...], h2,
        dimension_numbers=(((1,), (1,)), ((), ())),
        preferred_element_type=jnp.float32)
    logits = logits + b3_ref[0, 0]                       # scalar bias from SMEM

    # Exact sigmoid (EUP exp + divide).  Kernel is HBM-bound; approx buys nothing.
    o_ref[...] = 1.0 / (1.0 + jnp.exp(-logits))


def net_forward(x, params, *, block_b=1024, use_bf16=True):
    """Forward pass of Net.  x: (B, 1280) float32.  Returns (B, 1) float32."""
    w1, b1, w2, b2, w3, b3 = params
    B = x.shape[0]

    compute_dtype = jnp.bfloat16 if use_bf16 else jnp.float32
    # One-time layout plumbing (weights stored (in, out) so kernel does x@W+b).
    w1k = w1.astype(compute_dtype)                       # (D_IN, H1)
    w2k = w2.astype(compute_dtype)                       # (H1, H2)
    b1k = b1.reshape(1, H1).astype(jnp.float32)
    b2k = b2.reshape(1, H2).astype(jnp.float32)
    w3k = w3.reshape(1, H2).astype(jnp.float32)          # row layout, NT matmul
    b3k = b3.reshape(1, 1).astype(jnp.float32)           # scalar -> SMEM

    num_blocks = pl.cdiv(B, block_b)                     # ragged edge block masked

    flops = 2 * B * (D_IN * H1 + H1 * H2 + H2 * D_OUT)
    bytes_accessed = (B * D_IN * 4                       # x (f32, read in-kernel)
                      + D_IN * H1 * 2 + H1 * H2 * 2      # bf16 weights
                      + (H1 + H2 + H2 + 1) * 4           # biases + w3 row
                      + B * 4)                           # output

    out = pl.pallas_call(
        mlp_kernel,
        out_shape=jax.ShapeDtypeStruct((1, B), jnp.float32),   # lane-dense
        grid_spec=pltpu.PrefetchScalarGridSpec(
            num_scalar_prefetch=0,
            grid=(num_blocks,),
            in_specs=[
                pl.BlockSpec((block_b, D_IN), lambda i: (i, 0)),   # x tile (f32)
                pl.BlockSpec((D_IN, H1), lambda i: (0, 0)),        # W1 (resident)
                pl.BlockSpec((1, H1), lambda i: (0, 0)),           # b1
                pl.BlockSpec((H1, H2), lambda i: (0, 0)),          # W2 (resident)
                pl.BlockSpec((1, H2), lambda i: (0, 0)),           # b2
                pl.BlockSpec((1, H2), lambda i: (0, 0)),           # W3 row
                pl.BlockSpec(memory_space=pltpu.MemorySpace.SMEM), # b3 scalar
            ],
            out_specs=pl.BlockSpec((1, block_b), lambda i: (0, i)),
        ),
        compiler_params=pltpu.CompilerParams(
            # Batch tiles are independent -> megacore sharding on v7x.
            dimension_semantics=("parallel",),
            # ~13 MB live at block_b=1024; raise above v5e's 16 MiB scoped
            # default, stay well under v7x's 64 MiB physical VMEM.
            vmem_limit_bytes=32 * 1024 * 1024,
        ),
        cost_estimate=pl.CostEstimate(
            flops=flops, transcendentals=B, bytes_accessed=bytes_accessed),
    )(x.astype(jnp.float32), w1k, b1k, w2k, b2k, w3k, b3k)

    return out.reshape(B, D_OUT)


def init_params(key):
    """Deterministic init mimicking PyTorch's default Linear init
    (uniform in +/- 1/sqrt(fan_in)).  Weights stored as (in, out)."""
    ks = jax.random.split(key, 6)

    def linear(kw, kb, fan_in, fan_out):
        bound = 1.0 / jnp.sqrt(fan_in)
        w = jax.random.uniform(kw, (fan_in, fan_out), jnp.float32, -bound, bound)
        b = jax.random.uniform(kb, (1, fan_out), jnp.float32, -bound, bound)
        return w, b

    w1, b1 = linear(ks[0], ks[1], D_IN, H1)
    w2, b2 = linear(ks[2], ks[3], H1, H2)
    w3, b3 = linear(ks[4], ks[5], H2, D_OUT)
    return (w1, b1, w2, b2, w3, b3)


def _reference(x, params):
    w1, b1, w2, b2, w3, b3 = params
    h = jnp.maximum(x @ w1 + b1, 0.0)
    h = jnp.maximum(h @ w2 + b2, 0.0)
    return jax.nn.sigmoid(h @ w3 + b3)


if __name__ == "__main__":
    key = jax.random.PRNGKey(0)
    k_params, k_x = jax.random.split(key)
    params = init_params(k_params)

    # (B, block_b) cases:
    #   (4, 1024)  -> single partial block (ragged, no padding in the wrapper)
    #   (300, 128) -> grid of 3 with a ragged 44-row edge block (multi-block)
    for B, blk in ((4, 1024), (300, 128)):
        x = jax.random.normal(jax.random.fold_in(k_x, B), (B, D_IN), jnp.float32)
        out = jax.block_until_ready(net_forward(x, params, block_b=blk))
        ref = _reference(x, params)
        assert out.shape == (B, D_OUT)
        # bf16 matmul operands (f32 accumulation) -> loosened tolerance.
        err = jnp.max(jnp.abs(out - ref))
        assert jnp.allclose(out, ref, atol=2e-2, rtol=2e-2), (
            f"mismatch at B={B}, block_b={blk}: max abs err {err}")

    print("KERNEL_OK")
</pallas_src>

<mosaic_0001>
module attributes {stable_mosaic.version = 11 : i64} {
  func.func @mlp_kernel(%arg0: i32, %arg1: memref<1024x1280xf32, #tpu.memory_space<vmem>>, %arg2: memref<1280x256xbf16, #tpu.memory_space<vmem>>, %arg3: memref<1x256xf32, #tpu.memory_space<vmem>>, %arg4: memref<256x128xbf16, #tpu.memory_space<vmem>>, %arg5: memref<1x128xf32, #tpu.memory_space<vmem>>, %arg6: memref<1x128xf32, #tpu.memory_space<vmem>>, %arg7: memref<1x1xf32, #tpu.memory_space<smem>>, %arg8: memref<1x1024xf32, #tpu.memory_space<vmem>>) attributes {dimension_semantics = [#tpu.dimension_semantics<parallel>], iteration_bounds = array<i64: 1>, scalar_prefetch = 0 : i64, scratch_operands = 0 : i64, tpu.core_type = #tpu.core_type<tc>, window_params = [{transform_indices = @transform_0, window_bounds = array<i64: 1024, 1280>}, {pipeline_mode = #tpu.pipeline_mode<synchronous>, transform_indices = @transform_1, window_bounds = array<i64: 1280, 256>}, {pipeline_mode = #tpu.pipeline_mode<synchronous>, transform_indices = @transform_2, window_bounds = array<i64: 1, 256>}, {pipeline_mode = #tpu.pipeline_mode<synchronous>, transform_indices = @transform_3, window_bounds = array<i64: 256, 128>}, {pipeline_mode = #tpu.pipeline_mode<synchronous>, transform_indices = @transform_4, window_bounds = array<i64: 1, 128>}, {pipeline_mode = #tpu.pipeline_mode<synchronous>, transform_indices = @transform_5, window_bounds = array<i64: 1, 128>}, {transform_indices = @transform_6, window_bounds = array<i64: 1, 1>}, {transform_indices = @transform_7, window_bounds = array<i64: 1, 1024>}]} {
    %c0 = arith.constant 0 : index
    %c0_0 = arith.constant 0 : index
    %0 = vector.load %arg1[%c0, %c0_0] : memref<1024x1280xf32, #tpu.memory_space<vmem>>, vector<1024x1280xf32>
    %1 = arith.truncf %0 : vector<1024x1280xf32> to vector<1024x1280xbf16>
    %c0_1 = arith.constant 0 : index
    %c0_2 = arith.constant 0 : index
    %2 = vector.load %arg2[%c0_1, %c0_2] : memref<1280x256xbf16, #tpu.memory_space<vmem>>, vector<1280x256xbf16>
    %cst = arith.constant dense<0.000000e+00> : vector<1024x256xf32>
    %3 = tpu.matmul %1, %2, %cst {dimension_numbers = #tpu.dot_dimension_numbers<[1], [0], [0], [1], [0, 0, 1, 1], [], []>} : vector<1024x1280xbf16>, vector<1280x256xbf16>, vector<1024x256xf32> -> vector<1024x256xf32>
    %c0_3 = arith.constant 0 : index
    %c0_4 = arith.constant 0 : index
    %4 = vector.load %arg3[%c0_3, %c0_4] : memref<1x256xf32, #tpu.memory_space<vmem>>, vector<1x256xf32>
    %5 = vector.broadcast %4 : vector<1x256xf32> to vector<1024x256xf32>
    %6 = arith.addf %3, %5 : vector<1024x256xf32>
    %cst_5 = arith.constant 0.000000e+00 : f32
    %7 = vector.broadcast %cst_5 : f32 to vector<1024x256xf32>
    %8 = arith.maximumf %6, %7 : vector<1024x256xf32>
    %9 = arith.truncf %8 : vector<1024x256xf32> to vector<1024x256xbf16>
    %c0_6 = arith.constant 0 : index
    %c0_7 = arith.constant 0 : index
    %10 = vector.load %arg4[%c0_6, %c0_7] : memref<256x128xbf16, #tpu.memory_space<vmem>>, vector<256x128xbf16>
    %cst_8 = arith.constant dense<0.000000e+00> : vector<1024x128xf32>
    %11 = tpu.matmul %9, %10, %cst_8 {dimension_numbers = #tpu.dot_dimension_numbers<[1], [0], [0], [1], [0, 0, 1, 1], [], []>} : vector<1024x256xbf16>, vector<256x128xbf16>, vector<1024x128xf32> -> vector<1024x128xf32>
    %c0_9 = arith.constant 0 : index
    %c0_10 = arith.constant 0 : index
    %12 = vector.load %arg5[%c0_9, %c0_10] : memref<1x128xf32, #tpu.memory_space<vmem>>, vector<1x128xf32>
    %13 = vector.broadcast %12 : vector<1x128xf32> to vector<1024x128xf32>
    %14 = arith.addf %11, %13 : vector<1024x128xf32>
    %cst_11 = arith.constant 0.000000e+00 : f32
    %15 = vector.broadcast %cst_11 : f32 to vector<1024x128xf32>
    %16 = arith.maximumf %14, %15 : vector<1024x128xf32>
    %c0_12 = arith.constant 0 : index
    %c0_13 = arith.constant 0 : index
    %17 = vector.load %arg6[%c0_12, %c0_13] : memref<1x128xf32, #tpu.memory_space<vmem>>, vector<1x128xf32>
    %cst_14 = arith.constant dense<0.000000e+00> : vector<1x1024xf32>
    %18 = tpu.matmul %17, %16, %cst_14 {dimension_numbers = #tpu.dot_dimension_numbers<[1], [1], [0], [0], [0, 0, 1, 0], [], []>} : vector<1x128xf32>, vector<1024x128xf32>, vector<1x1024xf32> -> vector<1x1024xf32>
    %c0_15 = arith.constant 0 : index
    %c0_16 = arith.constant 0 : index
    %19 = memref.load %arg7[%c0_15, %c0_16] : memref<1x1xf32, #tpu.memory_space<smem>>
    %20 = vector.broadcast %19 : f32 to vector<1x1024xf32>
    %21 = arith.addf %18, %20 : vector<1x1024xf32>
    %cst_17 = arith.constant 0.000000e+00 : f32
    %22 = vector.broadcast %cst_17 : f32 to vector<1x1024xf32>
    %23 = arith.subf %22, %21 : vector<1x1024xf32>
    %24 = math.exp %23 : vector<1x1024xf32>
    %cst_18 = arith.constant 1.000000e+00 : f32
    %25 = vector.broadcast %cst_18 : f32 to vector<1x1024xf32>
    %26 = arith.addf %25, %24 : vector<1x1024xf32>
    %cst_19 = arith.constant 1.000000e+00 : f32
    %27 = vector.broadcast %cst_19 : f32 to vector<1x1024xf32>
    %28 = arith.divf %27, %26 : vector<1x1024xf32>
    %c0_20 = arith.constant 0 : index
    %c0_21 = arith.constant 0 : index
    %29 = vector.load %arg8[%c0_20, %c0_21] : memref<1x1024xf32, #tpu.memory_space<vmem>>, vector<1x1024xf32>
    tpu.vector_store %arg8[%c0_20, %c0_21], %28 {strides = array<i32>} : memref<1x1024xf32, #tpu.memory_space<vmem>>, vector<1x1024xf32>,
    return
  }
  func.func @transform_0(%arg0: i32) -> (i32, i32) {
    %c0_i32 = arith.constant 0 : i32
    %c0_i32_0 = arith.constant 0 : i32
    return %arg0, %c0_i32 : i32, i32
  }
  func.func @transform_1(%arg0: i32) -> (i32, i32) {
    %c0_i32 = arith.constant 0 : i32
    %c0_i32_0 = arith.constant 0 : i32
    %c0_i32_1 = arith.constant 0 : i32
    return %c0_i32, %c0_i32_0 : i32, i32
  }
  func.func @transform_2(%arg0: i32) -> (i32, i32) {
    %c0_i32 = arith.constant 0 : i32
    %c0_i32_0 = arith.constant 0 : i32
    %c0_i32_1 = arith.constant 0 : i32
    return %c0_i32, %c0_i32_0 : i32, i32
  }
  func.func @transform_3(%arg0: i32) -> (i32, i32) {
    %c0_i32 = arith.constant 0 : i32
    %c0_i32_0 = arith.constant 0 : i32
    %c0_i32_1 = arith.constant 0 : i32
    return %c0_i32, %c0_i32_0 : i32, i32
  }
  func.func @transform_4(%arg0: i32) -> (i32, i32) {
    %c0_i32 = arith.constant 0 : i32
    %c0_i32_0 = arith.constant 0 : i32
    %c0_i32_1 = arith.constant 0 : i32
    return %c0_i32, %c0_i32_0 : i32, i32
  }
  func.func @transform_5(%arg0: i32) -> (i32, i32) {
    %c0_i32 = arith.constant 0 : i32
    %c0_i32_0 = arith.constant 0 : i32
    %c0_i32_1 = arith.constant 0 : i32
    return %c0_i32, %c0_i32_0 : i32, i32
  }
  func.func @transform_6(%arg0: i32) -> (i32, i32) {
    %c0_i32 = arith.constant 0 : i32
    %c0_i32_0 = arith.constant 0 : i32
    %c0_i32_1 = arith.constant 0 : i32
    return %c0_i32, %c0_i32_0 : i32, i32
  }
  func.func @transform_7(%arg0: i32) -> (i32, i32) {
    %c0_i32 = arith.constant 0 : i32
    %c0_i32_0 = arith.constant 0 : i32
    return %c0_i32, %arg0 : i32, i32
  }
}

</mosaic_0001>

<bundles_post_ra>
// kernel: tpu_custom_call.1
= control target key start
LH: loop header
LB: loop body
LE: loop exit
PB: predicated region body
PF: predicated region fallthrough
CT: control target
= control target key end

     0   :  { %13 = vsyncpa [#allocation4], 0  ;;  %s17404_s0 = inlined_call_operand.hbm [shape: f32[4,1280], index: 0, kind: input, shape index: {}]   ;;  %s17405_s1 = inlined_call_operand.hbm [shape: bf16[1280,256], index: 1, kind: input, shape index: {}]   ;;  %s17406_s2 = inlined_call_operand.vmem [shape: f32[1,256], index: 2, kind: input, shape index: {}]   ;;  %s17407_s3 = inlined_call_operand.hbm [shape: bf16[256,128], index: 3, kind: input, shape index: {}]   ;;  %s17408_s4 = inlined_call_operand.vmem [shape: f32[1,128], index: 4, kind: input, shape index: {}]   ;;  %s17409_s5 = inlined_call_operand.vmem [shape: f32[1,128], index: 5, kind: input, shape index: {}]   ;;  %s17410_s6 = inlined_call_operand.<no memory space> [shape: f32[1,1], index: 6, kind: input, shape index: {}]   ;;  %s17411_s7 = inlined_call_operand.hbm [shape: f32[1,4], index: 7, kind: output, shape index: {}]  }
   0x1   :  { %14 = vsyncpa [#allocation7], 0 }
   0x2   :  { %15 = vsyncpa [#allocation5], 0 }
   0x3   :  { %20 = vsyncadd [#allocation4], 163200  ;;  %s15838_s24 = smov [#allocation6]   ;;  %s15744_s28 = scalar_lea.hbm %s17405_s1, 20480 }
   0x4   :  { %s33_s25 = sshll.u32 %s15838_s24, 4  ;;  %p15745_p0 = scmp.ne.s32.totalorder %s17405_s1, %s15744_s28  ;;  %s34_s25 = int_to_ptr.vmem [resolvable:$true] %s33_s25 }
   0x5   :  { %p15748_p1 = scmp.lt.u32.totalorder %s15744_s28, %s17405_s1 }
   0x7   :  { %p15750_p2 = pnand %p15748_p1, %p15745_p0 }
   0x9   :  { %15753 = shalt.err (!%p15750_p2)
}
   0xa   :  { %s15754_s10 = scalar_lea.vmem %s34_s25, 20480  ;;  %p15759_p4 = scmp.lt.s32.totalorder %s34_s25, %s34_s25 }
   0xb   :  { %p15755_p3 = scmp.ne.s32.totalorder %s34_s25, %s15754_s10  ;;  %p15760_p5 = scmp.lt.s32.totalorder %s15754_s10, %s15754_s10 }
   0xd   :  { %p15761_p6 = por %p15760_p5, %p15759_p4 }
   0xf   :  { %p15762_p7 = pnand %p15761_p6, %p15755_p3 }
  0x11   :  { %15765 = shalt.err (!%p15762_p7)
}
  0x12   :  { %s15839_s11 = smov 128   ;;  %s15840_s12 = smov 8  }
  0x13   :  { %39 = dma.hbm_to_vmem [thread:$0]  %s17405_s1, 20480, %s34_s25, [#allocation7], %s15839_s11, %s15839_s11, %s15840_s12  }
  0x14   :  { %s15841_s15 = smov [#allocation3]   ;;  %s15766_s19 = scalar_lea.hbm %s17404_s0, 640 }
  0x15   :  { %s21_s16 = sshll.u32 %s15841_s15, 4  ;;  %p15767_p8 = scmp.ne.s32.totalorder %s17404_s0, %s15766_s19  ;;  %s22_s16 = int_to_ptr.vmem [resolvable:$true] %s21_s16 }
  0x16   :  { %p15770_p9 = scmp.lt.u32.totalorder %s15766_s19, %s17404_s0 }
  0x18   :  { %p15772_p10 = pnand %p15770_p9, %p15767_p8 }
  0x1a   :  { %15775 = shalt.err (!%p15772_p10)
}
  0x1b   :  { %s15776_s24 = scalar_lea.vmem %s22_s16, 640  ;;  %s15780_s1 = scalar_lea.vmem %s22_s16, 163840 }
  0x1c   :  { %p15777_p11 = scmp.ne.s32.totalorder %s22_s16, %s15776_s24  ;;  %p15781_p12 = scmp.lt.s32.totalorder %s22_s16, %s22_s16 }
  0x1d   :  { %p15782_p13 = scmp.lt.s32.totalorder %s15780_s1, %s15776_s24 }
  0x1f   :  { %p15783_p0 = por %p15782_p13, %p15781_p12 }
  0x21   :  { %p15784_p1 = pnand %p15783_p0, %p15777_p11 }
  0x23   :  { %15787 = shalt.err (!%p15784_p1)
}
  0x24   :  { %s15842_s25 = smov 640   ;;  %s15843_s26 = smov 40  }
  0x25   :  { %27 = dma.hbm_to_vmem [thread:$0]  %s17404_s0, 640, %s22_s16, [#allocation4], %s15842_s25, %s15842_s25, %s15843_s26  }
  0x26   :  { %s15844_s29 = smov [#allocation8]   ;;  %s15788_s10 = scalar_lea.hbm %s17407_s3, 2048 }
  0x27   :  { %s47_s30 = sshll.u32 %s15844_s29, 4  ;;  %p15789_p2 = scmp.ne.s32.totalorder %s17407_s3, %s15788_s10  ;;  %s48_s30 = int_to_ptr.vmem [resolvable:$true] %s47_s30 }
  0x28   :  { %p15792_p3 = scmp.lt.u32.totalorder %s15788_s10, %s17407_s3 }
  0x2a   :  { %p15794_p4 = pnand %p15792_p3, %p15789_p2 }
  0x2c   :  { %15797 = shalt.err (!%p15794_p4)
}
  0x2d   :  { %s15798_s15 = scalar_lea.vmem %s48_s30, 2048  ;;  %p15803_p6 = scmp.lt.s32.totalorder %s48_s30, %s48_s30 }
  0x2e   :  { %p15799_p5 = scmp.ne.s32.totalorder %s48_s30, %s15798_s15  ;;  %p15804_p7 = scmp.lt.s32.totalorder %s15798_s15, %s15798_s15 }
  0x30   :  { %p15805_p8 = por %p15804_p7, %p15803_p6 }
  0x32   :  { %p15806_p9 = pnand %p15805_p8, %p15799_p5 }
  0x34   :  { %15809 = shalt.err (!%p15806_p9)
}
  0x35   :  { %s15845_s0 = smov 64   ;;  %s15846_s16 = smov 4  }
  0x36   :  { %53 = dma.hbm_to_vmem [thread:$0]  %s17407_s3, 2048, %s48_s30, [#allocation7], %s15845_s0, %s15845_s0, %s15846_s16  }
  0x37   :  { %15832 = dma.done.wait [#allocation4], 163840  }
  0x38   :  { %15833 = vsyncadd [#allocation4], 4294803456 }
  0x39   :  { %15834 = dma.done.wait [#allocation7], 22528  }
  0x3a   :  { %15835 = vsyncadd [#allocation7], 4294944768  ;;  %v15926_v0 = vld [vmem:[#allocation6 + $0x104] ss:$8 sps:$4 sm:$0xff]   ;;  %v15928_v1 = vld [vmem:[#allocation6 + $0x100] ss:$8 sps:$4 sm:$0xff]  }
  0x3b   :  { %7475 = vmatprep.subr.bf16.mxu0 %v15926_v0  ;;  %v15931_v2 = vld [vmem:[#allocation6 + $0x114] ss:$8 sps:$4 sm:$0xff]   ;;  %v15934_v3 = vld [vmem:[#allocation6 + $0x110] ss:$8 sps:$4 sm:$0xff]   ;;  %v15937_v4 = vld [vmem:[#allocation6 + $0x124] ss:$8 sps:$4 sm:$0xff]  }
  0x3c   :  { %7476 = vmatpush1.bf16.msra.mxu0 %v15928_v1  ;;  %v15939_v5 = vld [vmem:[#allocation6 + $0x120] ss:$8 sps:$4 sm:$0xff]   ;;  %v13549_v6 = vld [vmem:[#allocation6 + $0x4] ss:$8 sps:$4 sm:$0xff]   ;;  %v15943_v8 = vld [vmem:[#allocation6 + $0x134] ss:$8 sps:$4 sm:$0xff]  }
  0x3d   :  { %7477 = vmatprep.subr.bf16.mxu0 %v15931_v2  ;;  %v13551_v7 = vld [vmem:[#allocation6] ss:$8 sps:$4 sm:$0xff]   ;;  %6802 = vmatprep.subr.bf16.mxu1 %v13549_v6  ;;  %v13555_v9 = vld [vmem:[#allocation6 + $0x14] ss:$8 sps:$4 sm:$0xff]   ;;  %v13557_v10 = vld [vmem:[#allocation6 + $0x10] ss:$8 sps:$4 sm:$0xff]  }
  0x3e   :  { %6803 = vmatpush1.bf16.msra.mxu1 %v13551_v7  ;;  %v15946_v11 = vld [vmem:[#allocation6 + $0x130] ss:$8 sps:$4 sm:$0xff]   ;;  %v15948_v12 = vld [vmem:[#allocation6 + $0x144] ss:$8 sps:$4 sm:$0xff]   ;;  %v13563_v14 = vld [vmem:[#allocation6 + $0x20] ss:$8 sps:$4 sm:$0xff]  }
  0x3f   :  { %6804 = vmatprep.subr.bf16.mxu1 %v13555_v9  ;;  %v13561_v13 = vld [vmem:[#allocation6 + $0x24] ss:$8 sps:$4 sm:$0xff]   ;;  %v15952_v15 = vld [vmem:[#allocation6 + $0x140] ss:$8 sps:$4 sm:$0xff]   ;;  %v13567_v16 = vld [vmem:[#allocation6 + $0x34] ss:$8 sps:$4 sm:$0xff]  }
  0x40   :  { %7478 = vmatpush1.bf16.msra.mxu0 %v15934_v3  ;;  %v15955_v17 = vld [vmem:[#allocation6 + $0x154] ss:$8 sps:$4 sm:$0xff]   ;;  %v13569_v18 = vld [vmem:[#allocation6 + $0x30] ss:$8 sps:$4 sm:$0xff]   ;;  %v13573_v20 = vld [vmem:[#allocation6 + $0x44] ss:$8 sps:$4 sm:$0xff]  }
  0x41   :  { %7479 = vmatprep.subr.bf16.mxu0 %v15937_v4  ;;  %v15958_v19 = vld [vmem:[#allocation6 + $0x150] ss:$8 sps:$4 sm:$0xff]   ;;  %v15961_v21 = vld [vmem:[#allocation6 + $0x164] ss:$8 sps:$4 sm:$0xff]   ;;  %v13575_v22 = vld [vmem:[#allocation6 + $0x40] ss:$8 sps:$4 sm:$0xff]  }
  0x42   :  { %6805 = vmatpush1.bf16.msra.mxu1 %v13557_v10  ;;  %v15964_v23 = vld [vmem:[#allocation6 + $0x160] ss:$8 sps:$4 sm:$0xff]   ;;  %v13579_v24 = vld [vmem:[#allocation6 + $0x54] ss:$8 sps:$4 sm:$0xff]   ;;  %v13581_v26 = vld [vmem:[#allocation6 + $0x50] ss:$8 sps:$4 sm:$0xff]  }
  0x43   :  { %6806 = vmatprep.subr.bf16.mxu1 %v13561_v13  ;;  %v15967_v25 = vld [vmem:[#allocation6 + $0x174] ss:$8 sps:$4 sm:$0xff]   ;;  %v15970_v27 = vld [vmem:[#allocation6 + $0x170] ss:$8 sps:$4 sm:$0xff]   ;;  %v13585_v28 = vld [vmem:[#allocation6 + $0x64] ss:$8 sps:$4 sm:$0xff]  }
  0x44   :  { %7480 = vmatpush1.bf16.msra.mxu0 %v15939_v5  ;;  %v15973_v29 = vld [vmem:[#allocation6 + $0x184] ss:$8 sps:$4 sm:$0xff]   ;;  %v13587_v30 = vld [vmem:[#allocation6 + $0x60] ss:$8 sps:$4 sm:$0xff]   ;;  %v13591_v32 = vld [vmem:[#allocation6 + $0x74] ss:$8 sps:$4 sm:$0xff]  }
  0x45   :  { %7481 = vmatprep.subr.bf16.mxu0 %v15943_v8  ;;  %v15976_v31 = vld [vmem:[#allocation6 + $0x180] ss:$8 sps:$4 sm:$0xff]   ;;  %v15979_v33 = vld [vmem:[#allocation6 + $0x194] ss:$8 sps:$4 sm:$0xff]   ;;  %v13593_v34 = vld [vmem:[#allocation6 + $0x70] ss:$8 sps:$4 sm:$0xff]  }
  0x46   :  { %6807 = vmatpush1.bf16.msra.mxu1 %v13563_v14  ;;  %v15982_v35 = vld [vmem:[#allocation6 + $0x190] ss:$8 sps:$4 sm:$0xff]   ;;  %v13597_v36 = vld [vmem:[#allocation6 + $0x84] ss:$8 sps:$4 sm:$0xff]   ;;  %v13599_v38 = vld [vmem:[#allocation6 + $0x80] ss:$8 sps:$4 sm:$0xff]  }
  0x47   :  { %6808 = vmatprep.subr.bf16.mxu1 %v13567_v16  ;;  %v15985_v37 = vld [vmem:[#allocation6 + $0x1a4] ss:$8 sps:$4 sm:$0xff]   ;;  %v15988_v40 = vld [vmem:[#allocation6 + $0x1a0] ss:$8 sps:$4 sm:$0xff]   ;;  %v13603_v41 = vld [vmem:[#allocation6 + $0x94] ss:$8 sps:$4 sm:$0xff]  }
  0x48   :  { %7482 = vmatpush1.bf16.msra.mxu0 %v15946_v11  ;;  %v13619_v39 = vld [vmem:[#allocation3 + $0xc] ss:$40 sps:$4 sm:$0xff]   ;;  %v13622_v42 = vld [vmem:[#allocation3 + $0x5c] ss:$40 sps:$4 sm:$0xff]   ;;  %v15993_v44 = vld [vmem:[#allocation6 + $0x1b0] ss:$8 sps:$4 sm:$0xff]  }
  0x49   :  { %7483 = vmatprep.subr.bf16.mxu0 %v15948_v12  ;;  %v15991_v43 = vld [vmem:[#allocation6 + $0x1b4] ss:$8 sps:$4 sm:$0xff]   ;;  %v5193_v45 = vpack.c.bf16 %v13622_v42, %v13619_v39  ;;  %v13605_v46 = vld [vmem:[#allocation6 + $0x90] ss:$8 sps:$4 sm:$0xff]   ;;  %v13609_v47 = vld [vmem:[#allocation6 + $0xa4] ss:$8 sps:$4 sm:$0xff]  }
  0x4a   :  { %6809 = vmatpush1.bf16.msra.mxu1 %v13569_v18  ;;  %v15997_v48 = vld [vmem:[#allocation6 + $0x1c4] ss:$8 sps:$4 sm:$0xff]   ;;  %v15999_v49 = vld [vmem:[#allocation6 + $0x1c0] ss:$8 sps:$4 sm:$0xff]   ;;  %v16001_v50 = vld [vmem:[#allocation6 + $0x1d4] ss:$8 sps:$4 sm:$0xff]  }
  0x4b   :  { %6810 = vmatprep.subr.bf16.mxu1 %v13573_v20  ;;  %7507 = vmatprep.mubr.bf16.mxu0 %v5193_v45  ;;  %v13611_v51 = vld [vmem:[#allocation6 + $0xa0] ss:$8 sps:$4 sm:$0xff]   ;;  %v13615_v52 = vld [vmem:[#allocation6 + $0xb4] ss:$8 sps:$4 sm:$0xff]   ;;  %v16005_v53 = vld [vmem:[#allocation6 + $0x1d0] ss:$8 sps:$4 sm:$0xff]  }
  0x4c   :  { %7484 = vmatpush1.bf16.msra.mxu0 %v15952_v15  ;;  %v13623_v54 = vld [vmem:[#allocation6 + $0xb0] ss:$8 sps:$4 sm:$0xff]   ;;  %v13624_v55 = vld [vmem:[#allocation6 + $0xc4] ss:$8 sps:$4 sm:$0xff]   ;;  %v13653_v58 = vld [vmem:[#allocation3 + $0x54] ss:$40 sps:$4 sm:$0xff]  }
  0x4d   :  { %7485 = vmatprep.subr.bf16.mxu0 %v15955_v17  ;;  %v16009_v56 = vld [vmem:[#allocation6 + $0x1e4] ss:$8 sps:$4 sm:$0xff]   ;;  %v13626_v59 = vld [vmem:[#allocation6 + $0xc0] ss:$8 sps:$4 sm:$0xff]   ;;  %v16014_v61 = vld [vmem:[#allocation6 + $0x1f4] ss:$8 sps:$4 sm:$0xff]  }
  0x4e   :  { %6811 = vmatpush1.bf16.msra.mxu1 %v13575_v22  ;;  %v13650_v57 = vld [vmem:[#allocation3 + $0x4] ss:$40 sps:$4 sm:$0xff]   ;;  %v16012_v60 = vld [vmem:[#allocation6 + $0x1e0] ss:$8 sps:$4 sm:$0xff]   ;;  %v13627_v62 = vld [vmem:[#allocation6 + $0xd4] ss:$8 sps:$4 sm:$0xff]  }
  0x4f   :  { %6812 = vmatprep.subr.bf16.mxu1 %v13579_v24  ;;  %v5191_v63 = vpack.c.bf16 %v13653_v58, %v13650_v57  ;;  %v13617_v6 = vld [vmem:[#allocation3 + $0x8] ss:$40 sps:$4 sm:$0xff]   ;;  %v13620_v7 = vld [vmem:[#allocation3 + $0x58] ss:$40 sps:$4 sm:$0xff]   ;;  %v13629_v10 = vld [vmem:[#allocation3 + $0xac] ss:$40 sps:$4 sm:$0xff]  }
  0x50   :  { %7486 = vmatpush1.bf16.msra.mxu0 %v15958_v19  ;;  %v16017_v9 = vld [vmem:[#allocation6 + $0x1f0] ss:$8 sps:$4 sm:$0xff]   ;;  %v13631_v13 = vld [vmem:[#allocation3 + $0xfc] ss:$40 sps:$4 sm:$0xff]   ;;  %v5192_v18 = vpack.c.bf16 %v13620_v7, %v13617_v6  ;;  %v13638_v20 = vld [vmem:[#allocation6 + $0xe0] ss:$8 sps:$4 sm:$0xff]  }
  0x51   :  { %7487 = vmatprep.subr.bf16.mxu0 %v15961_v21  ;;  %6834 = vmatprep.mubr.bf16.mxu1 %v5191_v63  ;;  %v13633_v14 = vld [vmem:[#allocation6 + $0xd0] ss:$8 sps:$4 sm:$0xff]   ;;  %v13636_v16 = vld [vmem:[#allocation6 + $0xe4] ss:$8 sps:$4 sm:$0xff]   ;;  %v5203_v22 = vpack.c.bf16 %v13631_v13, %v13629_v10  ;;  %v13639_v24 = vld [vmem:[#allocation6 + $0xf4] ss:$8 sps:$4 sm:$0xff]  }
  0x52   :  { %6813 = vmatpush1.bf16.msra.mxu1 %v13581_v26  ;;  %v13634_v26 = vld [vmem:[#allocation3 + $0xa8] ss:$40 sps:$4 sm:$0xff]   ;;  %v13660_v39 = vld [vmem:[#allocation3 + $0xa4] ss:$40 sps:$4 sm:$0xff]   ;;  %v13647_v58 = vld [vmem:[#allocation3 + $0x198] ss:$40 sps:$4 sm:$0xff]  }
  0x53   :  { %6814 = vmatprep.subr.bf16.mxu1 %v13585_v28  ;;  %v13635_v28 = vld [vmem:[#allocation3 + $0xf8] ss:$40 sps:$4 sm:$0xff]   ;;  %v13686_v45 = vld [vmem:[#allocation6 + $0x204] ss:$8 sps:$4 sm:$0xff]   ;;  %v13646_v57 = vld [vmem:[#allocation3 + $0x148] ss:$40 sps:$4 sm:$0xff]  }
  0x54   :  { %7488 = vmatpush1.bf16.msra.mxu0 %v15964_v23  ;;  %v13684_v42 = vld [vmem:[#allocation6 + $0x200] ss:$8 sps:$4 sm:$0xff]   ;;  %v13665_v6 = vld [vmem:[#allocation3 + $0xf0] ss:$40 sps:$4 sm:$0xff]   ;;  %v13672_v7 = vld [vmem:[#allocation3 + $0x144] ss:$40 sps:$4 sm:$0xff]  }
  0x55   :  { %7489 = vmatprep.subr.bf16.mxu0 %v15967_v25  ;;  %v13664_v63 = vld [vmem:[#allocation3 + $0xa0] ss:$40 sps:$4 sm:$0xff]   ;;  %v13674_v10 = vld [vmem:[#allocation3 + $0x194] ss:$40 sps:$4 sm:$0xff]  }
  0x56   :  { %6815 = vmatpush1.bf16.msra.mxu1 %v13587_v30  ;;  %v13645_v30 = vld [vmem:[#allocation6 + $0xf0] ss:$8 sps:$4 sm:$0xff]   ;;  %v13702_v13 = vld [vmem:[#allocation6 + $0x220] ss:$8 sps:$4 sm:$0xff]  }
  0x57   :  { %6816 = vmatprep.subr.bf16.mxu1 %v13591_v32  ;;  %v13641_v32 = vld [vmem:[#allocation3 + $0x14c] ss:$40 sps:$4 sm:$0xff]  }
  0x58   :  { %7490 = vmatpush1.bf16.msra.mxu0 %v15970_v27 }
  0x59   :  { %7491 = vmatprep.subr.bf16.mxu0 %v15973_v29 }
  0x5a   :  { %6817 = vmatpush1.bf16.msra.mxu1 %v13593_v34  ;;  %v13643_v34 = vld [vmem:[#allocation3 + $0x19c] ss:$40 sps:$4 sm:$0xff]  }
  0x5b   :  { %6818 = vmatprep.subr.bf16.mxu1 %v13597_v36  ;;  %v13648_v36 = vld [vmem:[#allocation3] ss:$40 sps:$4 sm:$0xff]  }
  0x5c   :  { %7492 = vmatpush1.bf16.msra.mxu0 %v15976_v31 }
  0x5d   :  { %7493 = vmatprep.subr.bf16.mxu0 %v15979_v33 }
  0x5e   :  { %6819 = vmatpush1.bf16.msra.mxu1 %v13599_v38  ;;  %v13651_v38 = vld [vmem:[#allocation3 + $0x50] ss:$40 sps:$4 sm:$0xff]  }
  0x5f   :  { %6820 = vmatprep.subr.bf16.mxu1 %v13603_v41  ;;  %v13662_v41 = vld [vmem:[#allocation3 + $0xf4] ss:$40 sps:$4 sm:$0xff]  }
  0x60   :  { %7494 = vmatpush1.bf16.msra.mxu0 %v15982_v35 }
  0x61   :  { %7495 = vmatprep.subr.bf16.mxu0 %v15985_v37 }
  0x62   :  { %6821 = vmatpush1.bf16.msra.mxu1 %v13605_v46  ;;  %v5190_v46 = vpack.c.bf16 %v13651_v38, %v13648_v36  ;;  %v13677_v36 = vld [vmem:[#allocation3 + $0x190] ss:$40 sps:$4 sm:$0xff]   ;;  %v13720_v38 = vld [vmem:[#allocation6 + $0x240] ss:$8 sps:$4 sm:$0xff]  }
  0x63   :  { %6822 = vmatprep.subr.bf16.mxu1 %v13609_v47  ;;  %v5202_v47 = vpack.c.bf16 %v13635_v28, %v13634_v26  ;;  %v13658_v26 = vld [vmem:[#allocation3 + $0x1e8] ss:$40 sps:$4 sm:$0xff]   ;;  %v13659_v28 = vld [vmem:[#allocation3 + $0x238] ss:$40 sps:$4 sm:$0xff]  }
  0x64   :  { %7496 = vmatpush1.bf16.msra.mxu0 %v15988_v40 }
  0x65   :  { %7497 = vmatprep.subr.bf16.mxu0 %v15991_v43 }
  0x66   :  { %6823 = vmatpush1.bf16.msra.mxu1 %v13611_v51  ;;  %v5201_v51 = vpack.c.bf16 %v13662_v41, %v13660_v39  ;;  %v13722_v39 = vld [vmem:[#allocation6 + $0x244] ss:$8 sps:$4 sm:$0xff]  }
  0x67   :  { %6824 = vmatprep.subr.bf16.mxu1 %v13615_v52  ;;  %v5213_v52 = vpack.c.bf16 %v13643_v34, %v13641_v32  ;;  %v13668_v32 = vld [vmem:[#allocation3 + $0x2dc] ss:$40 sps:$4 sm:$0xff]   ;;  %v13676_v34 = vld [vmem:[#allocation3 + $0x140] ss:$40 sps:$4 sm:$0xff]  }
  0x68   :  { %7498 = vmatpush1.bf16.msra.mxu0 %v15993_v44  ;;  %v5210_v41 = vpack.c.bf16 %v13677_v36, %v13676_v34  ;;  %v13765_v34 = vld [vmem:[#allocation6 + $0x290] ss:$8 sps:$4 sm:$0xff]   ;;  %v13767_v36 = vld [vmem:[#allocation6 + $0x294] ss:$8 sps:$4 sm:$0xff]  }
  0x69   :  { %7499 = vmatprep.subr.bf16.mxu0 %v15997_v48 }
  0x6a   :  { %6825 = vmatpush1.bf16.msra.mxu1 %v13623_v54  ;;  %v13693_v54 = vld [vmem:[#allocation6 + $0x210] ss:$8 sps:$4 sm:$0xff]  }
  0x6b   :  { %6826 = vmatprep.subr.bf16.mxu1 %v13624_v55  ;;  %v13695_v55 = vld [vmem:[#allocation6 + $0x214] ss:$8 sps:$4 sm:$0xff]  }
  0x6c   :  { %7500 = vmatpush1.bf16.msra.mxu0 %v15999_v49 }
  0x6d   :  { %7501 = vmatprep.subr.bf16.mxu0 %v16001_v50 }
  0x6e   :  { %6827 = vmatpush1.bf16.msra.mxu1 %v13626_v59  ;;  %v13654_v59 = vld [vmem:[#allocation3 + $0x1ec] ss:$40 sps:$4 sm:$0xff]  }
  0x6f   :  { %6828 = vmatprep.subr.bf16.mxu1 %v13627_v62  ;;  %v13656_v62 = vld [vmem:[#allocation3 + $0x23c] ss:$40 sps:$4 sm:$0xff]  }
  0x70   :  { %7502 = vmatpush1.bf16.msra.mxu0 %v16005_v53 }
  0x71   :  { %7503 = vmatprep.subr.bf16.mxu0 %v16009_v56 }
  0x72   :  { %6829 = vmatpush1.bf16.msra.mxu1 %v13633_v14  ;;  %v13704_v14 = vld [vmem:[#allocation6 + $0x224] ss:$8 sps:$4 sm:$0xff]  }
  0x73   :  { %6830 = vmatprep.subr.bf16.mxu1 %v13636_v16  ;;  %v5200_v16 = vpack.c.bf16 %v13665_v6, %v13664_v63 }
  0x74   :  { %7504 = vmatpush1.bf16.msra.mxu0 %v16012_v60 }
  0x75   :  { %7505 = vmatprep.subr.bf16.mxu0 %v16014_v61 }
  0x76   :  { %6831 = vmatpush1.bf16.msra.mxu1 %v13638_v20  ;;  %v5223_v20 = vpack.c.bf16 %v13656_v62, %v13654_v59  ;;  %v13738_v59 = vld [vmem:[#allocation6 + $0x260] ss:$8 sps:$4 sm:$0xff]  }
  0x77   :  { %6832 = vmatprep.subr.bf16.mxu1 %v13639_v24  ;;  %v13713_v24 = vld [vmem:[#allocation6 + $0x234] ss:$8 sps:$4 sm:$0xff]  }
  0x78   :  { %7506 = vmatpush1.bf16.msra.mxu0 %v16017_v9 }
  0x79   :  { %8148 = vmatprep.subr.bf16.mxu0 %v13686_v45 }
  0x7a   :  { %6833 = vmatpush1.bf16.msra.mxu1 %v13645_v30  ;;  %v13666_v30 = vld [vmem:[#allocation3 + $0x28c] ss:$40 sps:$4 sm:$0xff]  }
  0x7b   :  { %7508 = vmatmul.mubr.bf16.vlgmr.msra.gmra.mrb[0].mxu0 %v5192_v18  ;;  %12210 = vmatprep.subr.bf16.mxu1 %v15926_v0  ;;  %v5212_v0 = vpack.c.bf16 %v13647_v58, %v13646_v57  ;;  %v5211_v18 = vpack.c.bf16 %v13674_v10, %v13672_v7  ;;  %v5233_v45 = vpack.c.bf16 %v13668_v32, %v13666_v30  ;;  %v13691_v57 = vld [vmem:[#allocation3 + $0x1e0] ss:$40 sps:$4 sm:$0xff]   ;;  %v13692_v58 = vld [vmem:[#allocation3 + $0x230] ss:$40 sps:$4 sm:$0xff]  }
  0x7c   :  { %7517 = vmatprep.mubr.bf16.mxu0 %v5203_v22  ;;  %8149 = vmatpush1.bf16.msra.mxu0 %v13684_v42  ;;  %v13711_v22 = vld [vmem:[#allocation6 + $0x230] ss:$8 sps:$4 sm:$0xff]   ;;  %v5220_v62 = vpack.c.bf16 %v13692_v58, %v13691_v57  ;;  %v13732_v58 = vld [vmem:[#allocation3 + $0x50c] ss:$40 sps:$4 sm:$0xff]  }
  0x7d   :  { %6835 = vmatmul.mubr.bf16.vlgmr.msra.gmra.mrb[0].mxu1 %v5190_v46  ;;  %8150 = vmatprep.subr.bf16.mxu0 %v13695_v55  ;;  %v13729_v46 = vld [vmem:[#allocation6 + $0x250] ss:$8 sps:$4 sm:$0xff]   ;;  %v13680_v55 = vld [vmem:[#allocation3 + $0x37c] ss:$40 sps:$4 sm:$0xff]  }
  0x7e   :  { %6844 = vmatprep.mubr.bf16.mxu1 %v5201_v51  ;;  %12226 = vmatpush1.bf16.msra.mxu1 %v15928_v1  ;;  %v13687_v1 = vld [vmem:[#allocation3 + $0x1e4] ss:$40 sps:$4 sm:$0xff]   ;;  %v13670_v51 = vld [vmem:[#allocation3 + $0x288] ss:$40 sps:$4 sm:$0xff]   ;;  %v13719_v57 = vld [vmem:[#allocation3 + $0x4b8] ss:$40 sps:$4 sm:$0xff]  }
  0x7f   :  { %12211 = vmatprep.subr.bf16.mxu1 %v15931_v2  ;;  %v13689_v2 = vld [vmem:[#allocation3 + $0x234] ss:$40 sps:$4 sm:$0xff]   ;;  %v13747_v10 = vld [vmem:[#allocation6 + $0x270] ss:$8 sps:$4 sm:$0xff]  }
  0x80   :  { %8151 = vmatpush1.bf16.msra.mxu0 %v13693_v54  ;;  %v5221_v42 = vpack.c.bf16 %v13689_v2, %v13687_v1  ;;  %v13678_v54 = vld [vmem:[#allocation3 + $0x32c] ss:$40 sps:$4 sm:$0xff]   ;;  %v13700_v1 = vld [vmem:[#allocation3 + $0x3c8] ss:$40 sps:$4 sm:$0xff]   ;;  %v13701_v2 = vld [vmem:[#allocation3 + $0x418] ss:$40 sps:$4 sm:$0xff]  }
  0x81   :  { %8152 = vmatprep.subr.bf16.mxu0 %v13704_v14  ;;  %v5243_v7 = vpack.c.bf16 %v13680_v55, %v13678_v54  ;;  %v13682_v14 = vld [vmem:[#allocation3 + $0x328] ss:$40 sps:$4 sm:$0xff]   ;;  %v13785_v54 = vld [vmem:[#allocation6 + $0x2b4] ss:$8 sps:$4 sm:$0xff]  }
  0x82   :  { %12227 = vmatpush1.bf16.msra.mxu1 %v15934_v3  ;;  %v5222_v3 = vpack.c.bf16 %v13659_v28, %v13658_v26  ;;  %v13758_v26 = vld [vmem:[#allocation6 + $0x284] ss:$8 sps:$4 sm:$0xff]   ;;  %v13718_v55 = vld [vmem:[#allocation3 + $0x468] ss:$40 sps:$4 sm:$0xff]  }
  0x83   :  { %7518 = vmatmul.mubr.bf16.gmra.mrb[4].mxu0 %v5202_v47  ;;  %12212 = vmatprep.subr.bf16.mxu1 %v15937_v4  ;;  %v13731_v47 = vld [vmem:[#allocation6 + $0x254] ss:$8 sps:$4 sm:$0xff]   ;;  %v13705_v4 = vld [vmem:[#allocation3 + $0x284] ss:$40 sps:$4 sm:$0xff]  }
  0x84   :  { %7527 = vmatprep.mubr.bf16.mxu0 %v5213_v52  ;;  %8153 = vmatpush1.bf16.msra.mxu0 %v13702_v13  ;;  %v13671_v52 = vld [vmem:[#allocation3 + $0x2d8] ss:$40 sps:$4 sm:$0xff]   ;;  %v13749_v13 = vld [vmem:[#allocation6 + $0x274] ss:$8 sps:$4 sm:$0xff]  }
  0x85   :  { %6845 = vmatmul.mubr.bf16.gmra.mrb[4].mxu1 %v5200_v16  ;;  %8154 = vmatprep.subr.bf16.mxu0 %v13713_v24  ;;  %v5232_v63 = vpack.c.bf16 %v13671_v52, %v13670_v51  ;;  %v13683_v16 = vld [vmem:[#allocation3 + $0x378] ss:$40 sps:$4 sm:$0xff]  }
  0x86   :  { %6854 = vmatprep.mubr.bf16.mxu1 %v5211_v18  ;;  %12228 = vmatpush1.bf16.msra.mxu1 %v15939_v5  ;;  %v13707_v5 = vld [vmem:[#allocation3 + $0x2d4] ss:$40 sps:$4 sm:$0xff]   ;;  %v13756_v24 = vld [vmem:[#allocation6 + $0x280] ss:$8 sps:$4 sm:$0xff]   ;;  %v13783_v52 = vld [vmem:[#allocation6 + $0x2b0] ss:$8 sps:$4 sm:$0xff]  }
  0x87   :  { %12213 = vmatprep.subr.bf16.mxu1 %v15943_v8  ;;  %v13740_v8 = vld [vmem:[#allocation6 + $0x264] ss:$8 sps:$4 sm:$0xff]   ;;  %v5231_v6 = vpack.c.bf16 %v13707_v5, %v13705_v4  ;;  %v13745_v5 = vld [vmem:[#allocation3 + $0x3c0] ss:$40 sps:$4 sm:$0xff]  }
  0x88   :  { %8155 = vmatpush1.bf16.msra.mxu0 %v13711_v22  ;;  %v13698_v18 = vld [vmem:[#allocation3 + $0x41c] ss:$40 sps:$4 sm:$0xff]   ;;  %v13710_v22 = vld [vmem:[#allocation3 + $0x2d0] ss:$40 sps:$4 sm:$0xff]  }
  0x89   :  { %8156 = vmatprep.subr.bf16.mxu0 %v13722_v39  ;;  %v13716_v39 = vld [vmem:[#allocation3 + $0x4bc] ss:$40 sps:$4 sm:$0xff]  }
  0x8a   :  { %12229 = vmatpush1.bf16.msra.mxu1 %v15946_v11  ;;  %v13723_v11 = vld [vmem:[#allocation3 + $0x324] ss:$40 sps:$4 sm:$0xff]  }
  0x8b   :  { %7528 = vmatmul.mubr.bf16.gmra.mrb[8].mxu0 %v5212_v0  ;;  %12214 = vmatprep.subr.bf16.mxu1 %v15948_v12  ;;  %v13696_v0 = vld [vmem:[#allocation3 + $0x3cc] ss:$40 sps:$4 sm:$0xff]   ;;  %v13734_v4 = vld [vmem:[#allocation3 + $0x55c] ss:$40 sps:$4 sm:$0xff]  }
  0x8c   :  { %7537 = vmatprep.mubr.bf16.mxu0 %v5223_v20  ;;  %8157 = vmatpush1.bf16.msra.mxu0 %v13720_v38  ;;  %v13709_v20 = vld [vmem:[#allocation3 + $0x280] ss:$40 sps:$4 sm:$0xff]   ;;  %v13725_v12 = vld [vmem:[#allocation3 + $0x374] ss:$40 sps:$4 sm:$0xff]   ;;  %v5253_v32 = vpack.c.bf16 %v13698_v18, %v13696_v0 }
  0x8d   :  { %6855 = vmatmul.mubr.bf16.gmra.mrb[8].mxu1 %v5210_v41  ;;  %8158 = vmatprep.subr.bf16.mxu0 %v13731_v47  ;;  %v5230_v28 = vpack.c.bf16 %v13710_v22, %v13709_v20  ;;  %v5241_v30 = vpack.c.bf16 %v13725_v12, %v13723_v11  ;;  %v13714_v38 = vld [vmem:[#allocation3 + $0x46c] ss:$40 sps:$4 sm:$0xff]   ;;  %v13727_v41 = vld [vmem:[#allocation3 + $0x320] ss:$40 sps:$4 sm:$0xff]   ;;  %v13752_v18 = vld [vmem:[#allocation3 + $0x5fc] ss:$40 sps:$4 sm:$0xff]  }
  0x8e   :  { %6864 = vmatprep.mubr.bf16.mxu1 %v5221_v42  ;;  %12230 = vmatpush1.bf16.msra.mxu1 %v15952_v15  ;;  %v5242_v15 = vpack.c.bf16 %v13683_v16, %v13682_v14  ;;  %v13774_v42 = vld [vmem:[#allocation6 + $0x2a0] ss:$8 sps:$4 sm:$0xff]   ;;  %v5263_v51 = vpack.c.bf16 %v13716_v39, %v13714_v38  ;;  %v13750_v0 = vld [vmem:[#allocation3 + $0x5ac] ss:$40 sps:$4 sm:$0xff]   ;;  %v13764_v22 = vld [vmem:[#allocation3 + $0x4b0] ss:$40 sps:$4 sm:$0xff]  }
  0x8f   :  { %12215 = vmatprep.subr.bf16.mxu1 %v15955_v17  ;;  %v13741_v17 = vld [vmem:[#allocation3 + $0x3c4] ss:$40 sps:$4 sm:$0xff]   ;;  %v13736_v14 = vld [vmem:[#allocation3 + $0x508] ss:$40 sps:$4 sm:$0xff]   ;;  %v13737_v16 = vld [vmem:[#allocation3 + $0x558] ss:$40 sps:$4 sm:$0xff]  }
  0x90   :  { %8159 = vmatpush1.bf16.msra.mxu0 %v13729_v46  ;;  %v5252_v46 = vpack.c.bf16 %v13701_v2, %v13700_v1  ;;  %v13763_v20 = vld [vmem:[#allocation3 + $0x460] ss:$40 sps:$4 sm:$0xff]   ;;  %v13770_v1 = vld [vmem:[#allocation3 + $0x69c] ss:$40 sps:$4 sm:$0xff]   ;;  %v13782_v38 = vld [vmem:[#allocation3 + $0x550] ss:$40 sps:$4 sm:$0xff]  }
  0x91   :  { %8160 = vmatprep.subr.bf16.mxu0 %v13740_v8  ;;  %v13792_v8 = vld [vmem:[#allocation6 + $0x2c0] ss:$8 sps:$4 sm:$0xff]   ;;  %v5260_v12 = vpack.c.bf16 %v13764_v22, %v13763_v20  ;;  %v13845_v22 = vld [vmem:[#allocation3 + $0x7d0] ss:$40 sps:$4 sm:$0xff]  }
  0x92   :  { %12231 = vmatpush1.bf16.msra.mxu1 %v15958_v19  ;;  %v13743_v19 = vld [vmem:[#allocation3 + $0x414] ss:$40 sps:$4 sm:$0xff]   ;;  %v13810_v11 = vld [vmem:[#allocation6 + $0x2e0] ss:$8 sps:$4 sm:$0xff]  }
  0x93   :  { %7538 = vmatmul.mubr.bf16.gmra.mrb[12].mxu0 %v5222_v3  ;;  %12216 = vmatprep.subr.bf16.mxu1 %v15961_v21  ;;  %v13728_v3 = vld [vmem:[#allocation3 + $0x370] ss:$40 sps:$4 sm:$0xff]   ;;  %v13776_v21 = vld [vmem:[#allocation6 + $0x2a4] ss:$8 sps:$4 sm:$0xff]   ;;  %v5251_v47 = vpack.c.bf16 %v13743_v19, %v13741_v17  ;;  %v13781_v2 = vld [vmem:[#allocation3 + $0x500] ss:$40 sps:$4 sm:$0xff]  }
  0x94   :  { %7547 = vmatprep.mubr.bf16.mxu0 %v5233_v45  ;;  %8161 = vmatpush1.bf16.msra.mxu0 %v13738_v59  ;;  %v5240_v45 = vpack.c.bf16 %v13728_v3, %v13727_v41  ;;  %v13746_v59 = vld [vmem:[#allocation3 + $0x410] ss:$40 sps:$4 sm:$0xff]   ;;  %v5270_v39 = vpack.c.bf16 %v13782_v38, %v13781_v2  ;;  %v13844_v20 = vld [vmem:[#allocation3 + $0x780] ss:$40 sps:$4 sm:$0xff]  }
  0x95   :  { %6865 = vmatmul.mubr.bf16.gmra.mrb[12].mxu1 %v5220_v62  ;;  %8162 = vmatprep.subr.bf16.mxu0 %v13749_v13  ;;  %v13794_v62 = vld [vmem:[#allocation6 + $0x2c4] ss:$8 sps:$4 sm:$0xff]   ;;  %v13803_v13 = vld [vmem:[#allocation6 + $0x2d4] ss:$8 sps:$4 sm:$0xff]   ;;  %v13772_v17 = vld [vmem:[#allocation3 + $0x648] ss:$40 sps:$4 sm:$0xff]  }
  0x96   :  { %6874 = vmatprep.mubr.bf16.mxu1 %v5231_v6  ;;  %12232 = vmatpush1.bf16.msra.mxu1 %v15964_v23  ;;  %v13759_v23 = vld [vmem:[#allocation3 + $0x464] ss:$40 sps:$4 sm:$0xff]   ;;  %v13773_v19 = vld [vmem:[#allocation3 + $0x698] ss:$40 sps:$4 sm:$0xff]  }
  0x97   :  { %12217 = vmatprep.subr.bf16.mxu1 %v15967_v25  ;;  %v13761_v25 = vld [vmem:[#allocation3 + $0x4b4] ss:$40 sps:$4 sm:$0xff]  }
  0x98   :  { %8163 = vmatpush1.bf16.msra.mxu0 %v13747_v10  ;;  %v5261_v6 = vpack.c.bf16 %v13761_v25, %v13759_v23  ;;  %v13801_v10 = vld [vmem:[#allocation6 + $0x2d0] ss:$8 sps:$4 sm:$0xff]  }
  0x99   :  { %8164 = vmatprep.subr.bf16.mxu0 %v13758_v26 }
  0x9a   :  { %12233 = vmatpush1.bf16.msra.mxu1 %v15970_v27  ;;  %v5262_v27 = vpack.c.bf16 %v13719_v57, %v13718_v55  ;;  %v13791_v55 = vld [vmem:[#allocation3 + $0x738] ss:$40 sps:$4 sm:$0xff]   ;;  %v13804_v57 = vld [vmem:[#allocation3 + $0x78c] ss:$40 sps:$4 sm:$0xff]  }
  0x9b   :  { %7548 = vmatmul.mubr.bf16.gmra.mrb[16].mxu0 %v5232_v63  ;;  %12218 = vmatprep.subr.bf16.mxu1 %v15973_v29  ;;  %v5250_v63 = vpack.c.bf16 %v13746_v59, %v13745_v5  ;;  %v13777_v29 = vld [vmem:[#allocation3 + $0x504] ss:$40 sps:$4 sm:$0xff]   ;;  %v13818_v5 = vld [vmem:[#allocation3 + $0x690] ss:$40 sps:$4 sm:$0xff]   ;;  %v13830_v59 = vld [vmem:[#allocation3 + $0x734] ss:$40 sps:$4 sm:$0xff]  }
  0x9c   :  { %7557 = vmatprep.mubr.bf16.mxu0 %v5243_v7  ;;  %8165 = vmatpush1.bf16.msra.mxu0 %v13756_v24  ;;  %v5273_v7 = vpack.c.bf16 %v13734_v4, %v13732_v58  ;;  %v5272_v24 = vpack.c.bf16 %v13737_v16, %v13736_v14  ;;  %v13806_v58 = vld [vmem:[#allocation3 + $0x7dc] ss:$40 sps:$4 sm:$0xff]   ;;  %v13817_v4 = vld [vmem:[#allocation3 + $0x640] ss:$40 sps:$4 sm:$0xff]   ;;  %v13822_v16 = vld [vmem:[#allocation3 + $0x10] ss:$40 sps:$4 sm:$0xff]  }
  0x9d   :  { %6875 = vmatmul.mubr.bf16.gmra.mrb[16].mxu1 %v5230_v28  ;;  %8166 = vmatprep.subr.bf16.mxu0 %v13767_v36  ;;  %v5283_v28 = vpack.c.bf16 %v13752_v18, %v13750_v0  ;;  %v13768_v36 = vld [vmem:[#allocation3 + $0x64c] ss:$40 sps:$4 sm:$0xff]   ;;  %v5313_v25 = vpack.c.bf16 %v13806_v58, %v13804_v57  ;;  %v13825_v0 = vld [vmem:[#allocation3 + $0x60] ss:$40 sps:$4 sm:$0xff]  }
  0x9e   :  { %6884 = vmatprep.mubr.bf16.mxu1 %v5241_v30  ;;  %12234 = vmatpush1.bf16.msra.mxu1 %v15976_v31  ;;  %v13779_v31 = vld [vmem:[#allocation3 + $0x554] ss:$40 sps:$4 sm:$0xff]   ;;  %v13836_v18 = vld [vmem:[#allocation3 + $0x104] ss:$40 sps:$4 sm:$0xff]  }
  0x9f   :  { %12219 = vmatprep.subr.bf16.mxu1 %v15979_v33  ;;  %v13812_v33 = vld [vmem:[#allocation6 + $0x2e4] ss:$8 sps:$4 sm:$0xff]   ;;  %v5271_v26 = vpack.c.bf16 %v13779_v31, %v13777_v29  ;;  %v13821_v30 = vld [vmem:[#allocation6 + $0x2f4] ss:$8 sps:$4 sm:$0xff]  }
  0xa0   :  { %8167 = vmatpush1.bf16.msra.mxu0 %v13765_v34  ;;  %v13755_v34 = vld [vmem:[#allocation3 + $0x5f8] ss:$40 sps:$4 sm:$0xff]   ;;  %v13852_v29 = vld [vmem:[#allocation3 + $0x824] ss:$40 sps:$4 sm:$0xff]   ;;  %v13854_v31 = vld [vmem:[#allocation3 + $0x874] ss:$40 sps:$4 sm:$0xff]  }
  0xa1   :  { %8168 = vmatprep.subr.bf16.mxu0 %v13776_v21  ;;  %v13788_v21 = vld [vmem:[#allocation3 + $0x73c] ss:$40 sps:$4 sm:$0xff]  }
  0xa2   :  { %12235 = vmatpush1.bf16.msra.mxu1 %v15982_v35  ;;  %v13795_v35 = vld [vmem:[#allocation3 + $0x5a4] ss:$40 sps:$4 sm:$0xff]   ;;  %v13890_v58 = vld [vmem:[#allocation3 + $0xa54] ss:$40 sps:$4 sm:$0xff]  }
  0xa3   :  { %7558 = vmatmul.mubr.bf16.gmra.mrb[20].mxu0 %v5242_v15  ;;  %12220 = vmatprep.subr.bf16.mxu1 %v15985_v37  ;;  %v13819_v15 = vld [vmem:[#allocation6 + $0x2f0] ss:$8 sps:$4 sm:$0xff]   ;;  %v13797_v37 = vld [vmem:[#allocation3 + $0x5f4] ss:$40 sps:$4 sm:$0xff]   ;;  %v13888_v57 = vld [vmem:[#allocation3 + $0xa04] ss:$40 sps:$4 sm:$0xff]  }
  0xa4   :  { %7567 = vmatprep.mubr.bf16.mxu0 %v5253_v32  ;;  %8169 = vmatpush1.bf16.msra.mxu0 %v13774_v42  ;;  %v13754_v32 = vld [vmem:[#allocation3 + $0x5a8] ss:$40 sps:$4 sm:$0xff]   ;;  %v5281_v3 = vpack.c.bf16 %v13797_v37, %v13795_v35  ;;  %v13786_v42 = vld [vmem:[#allocation3 + $0x6ec] ss:$40 sps:$4 sm:$0xff]  }
  0xa5   :  { %6885 = vmatmul.mubr.bf16.gmra.mrb[20].mxu1 %v5240_v45  ;;  %8170 = vmatprep.subr.bf16.mxu0 %v13785_v54  ;;  %v5282_v41 = vpack.c.bf16 %v13755_v34, %v13754_v32  ;;  %v13799_v45 = vld [vmem:[#allocation3 + $0x5a0] ss:$40 sps:$4 sm:$0xff]   ;;  %v13857_v34 = vld [vmem:[#allocation3 + $0x870] ss:$40 sps:$4 sm:$0xff]  }
  0xa6   :  { %6894 = vmatprep.mubr.bf16.mxu1 %v5251_v47  ;;  %12236 = vmatpush1.bf16.msra.mxu1 %v15988_v40  ;;  %v5293_v40 = vpack.c.bf16 %v13770_v1, %v13768_v36  ;;  %v13813_v47 = vld [vmem:[#allocation3 + $0x644] ss:$40 sps:$4 sm:$0xff]   ;;  %v13790_v54 = vld [vmem:[#allocation3 + $0x6e8] ss:$40 sps:$4 sm:$0xff]   ;;  %v13866_v1 = vld [vmem:[#allocation3 + $0x914] ss:$40 sps:$4 sm:$0xff]  }
  0xa7   :  { %12221 = vmatprep.subr.bf16.mxu1 %v15991_v43  ;;  %v13856_v32 = vld [vmem:[#allocation3 + $0x820] ss:$40 sps:$4 sm:$0xff]   ;;  %v13864_v36 = vld [vmem:[#allocation3 + $0x8c4] ss:$40 sps:$4 sm:$0xff]  }
  0xa8   :  { %8171 = vmatpush1.bf16.msra.mxu0 %v13783_v52  ;;  %v5303_v52 = vpack.c.bf16 %v13788_v21, %v13786_v42  ;;  %v5320_v2 = vpack.c.bf16 %v13857_v34, %v13856_v32  ;;  %v5331_v35 = vpack.c.bf16 %v13866_v1, %v13864_v36  ;;  %v13876_v42 = vld [vmem:[#allocation3 + $0x964] ss:$40 sps:$4 sm:$0xff]   ;;  %v13878_v21 = vld [vmem:[#allocation3 + $0x9b4] ss:$40 sps:$4 sm:$0xff]  }
  0xa9   :  { %8172 = vmatprep.subr.bf16.mxu0 %v13794_v62  ;;  %v13824_v62 = vld [vmem:[#allocation3 + $0x14] ss:$40 sps:$4 sm:$0xff]  }
  0xaa   :  { %12237 = vmatpush1.bf16.msra.mxu1 %v15993_v44  ;;  %v5292_v44 = vpack.c.bf16 %v13773_v19, %v13772_v17  ;;  %v13868_v17 = vld [vmem:[#allocation3 + $0x8c0] ss:$40 sps:$4 sm:$0xff]   ;;  %v13869_v19 = vld [vmem:[#allocation3 + $0x910] ss:$40 sps:$4 sm:$0xff]  }
  0xab   :  { %7568 = vmatmul.mubr.bf16.gmra.mrb[24].mxu0 %v5252_v46  ;;  %12222 = vmatprep.subr.bf16.mxu1 %v15997_v48  ;;  %v13800_v46 = vld [vmem:[#allocation3 + $0x5f0] ss:$40 sps:$4 sm:$0xff]  }
  0xac   :  { %7577 = vmatprep.mubr.bf16.mxu0 %v5263_v51  ;;  %8173 = vmatpush1.bf16.msra.mxu0 %v13792_v8  ;;  %v13815_v51 = vld [vmem:[#allocation3 + $0x694] ss:$40 sps:$4 sm:$0xff]   ;;  %v5280_v43 = vpack.c.bf16 %v13800_v46, %v13799_v45  ;;  %v13809_v8 = vld [vmem:[#allocation3 + $0x7d8] ss:$40 sps:$4 sm:$0xff]   ;;  %v5330_v45 = vpack.c.bf16 %v13869_v19, %v13868_v17 }
  0xad   :  { %6895 = vmatmul.mubr.bf16.gmra.mrb[24].mxu1 %v5250_v63  ;;  %8174 = vmatprep.subr.bf16.mxu0 %v13803_v13  ;;  %v5291_v48 = vpack.c.bf16 %v13815_v51, %v13813_v47  ;;  %v13827_v63 = vld [vmem:[#allocation3 + $0x64] ss:$40 sps:$4 sm:$0xff]   ;;  %v5341_v47 = vpack.c.bf16 %v13878_v21, %v13876_v42 }
  0xae   :  { %6904 = vmatprep.mubr.bf16.mxu1 %v5261_v6  ;;  %12238 = vmatpush1.bf16.msra.mxu1 %v15999_v49  ;;  %v13828_v49 = vld [vmem:[#allocation3 + $0x6e4] ss:$40 sps:$4 sm:$0xff]   ;;  %v13833_v6 = vld [vmem:[#allocation3 + $0x730] ss:$40 sps:$4 sm:$0xff]   ;;  %v5195_v14 = vpack.c.bf16 %v13827_v63, %v13824_v62  ;;  %v13902_v63 = vld [vmem:[#allocation3 + $0xaf4] ss:$40 sps:$4 sm:$0xff]  }
  0xaf   :  { %12223 = vmatprep.subr.bf16.mxu1 %v16001_v50  ;;  %v5290_v50 = vpack.c.bf16 %v13818_v5, %v13817_v4  ;;  %v5301_v23 = vpack.c.bf16 %v13830_v59, %v13828_v49  ;;  %v5351_v49 = vpack.c.bf16 %v13890_v58, %v13888_v57  ;;  %v13900_v62 = vld [vmem:[#allocation3 + $0xaa4] ss:$40 sps:$4 sm:$0xff]  }
  0xb0   :  { %8175 = vmatpush1.bf16.msra.mxu0 %v13801_v10  ;;  %v13842_v10 = vld [vmem:[#allocation3 + $0x7d4] ss:$40 sps:$4 sm:$0xff]  }
  0xb1   :  { %8176 = vmatprep.subr.bf16.mxu0 %v13812_v33  ;;  %v5194_v33 = vpack.c.bf16 %v13825_v0, %v13822_v16  ;;  %v13904_v16 = vld [vmem:[#allocation3 + $0xaa0] ss:$40 sps:$4 sm:$0xff]   ;;  %v13905_v0 = vld [vmem:[#allocation3 + $0xaf0] ss:$40 sps:$4 sm:$0xff]  }
  0xb2   :  { %12239 = vmatpush1.bf16.msra.mxu1 %v16005_v53  ;;  %v5302_v53 = vpack.c.bf16 %v13791_v55, %v13790_v54  ;;  %v13880_v54 = vld [vmem:[#allocation3 + $0x960] ss:$40 sps:$4 sm:$0xff]   ;;  %v13881_v55 = vld [vmem:[#allocation3 + $0x9b0] ss:$40 sps:$4 sm:$0xff]  }
  0xb3   :  { %7578 = vmatmul.mubr.bf16.gmra.mrb[28].mxu0 %v5262_v27  ;;  %12224 = vmatprep.subr.bf16.mxu1 %v16009_v56  ;;  %v13808_v56 = vld [vmem:[#allocation3 + $0x788] ss:$40 sps:$4 sm:$0xff]   ;;  %v5340_v4 = vpack.c.bf16 %v13881_v55, %v13880_v54 }
  0xb4   :  { %7587 = vmatprep.mubr.bf16.mxu0 %v5273_v7  ;;  %8177 = vmatpush1.bf16.msra.mxu0 %v13810_v11  ;;  %v13832_v27 = vld [vmem:[#allocation3 + $0x6e0] ss:$40 sps:$4 sm:$0xff]   ;;  %v13840_v7 = vld [vmem:[#allocation3 + $0x784] ss:$40 sps:$4 sm:$0xff]   ;;  %v5310_v11 = vpack.c.bf16 %v13845_v22, %v13844_v20  ;;  %v5360_v20 = vpack.c.bf16 %v13905_v0, %v13904_v16 }
  0xb5   :  { %6905 = vmatmul.mubr.bf16.gmra.mrb[28].mxu1 %v5260_v12  ;;  %8178 = vmatprep.subr.bf16.mxu0 %v13821_v30  ;;  %v5311_v13 = vpack.c.bf16 %v13842_v10, %v13840_v7  ;;  %v5321_v12 = vpack.c.bf16 %v13854_v31, %v13852_v29  ;;  %v13848_v30 = vld [vmem:[#allocation3 + $0x1a4] ss:$40 sps:$4 sm:$0xff]   ;;  %v5361_v7 = vpack.c.bf16 %v13902_v63, %v13900_v62 }
  0xb6   :  { %6914 = vmatprep.mubr.bf16.mxu1 %v5271_v26  ;;  %12240 = vmatpush1.bf16.msra.mxu1 %v16012_v60  ;;  %v5300_v60 = vpack.c.bf16 %v13833_v6, %v13832_v27  ;;  %v13838_v26 = vld [vmem:[#allocation3 + $0xb0] ss:$40 sps:$4 sm:$0xff]  }
  0xb7   :  { %12225 = vmatprep.subr.bf16.mxu1 %v16014_v61  ;;  %v5312_v61 = vpack.c.bf16 %v13809_v8, %v13808_v56  ;;  %v13892_v56 = vld [vmem:[#allocation3 + $0xa00] ss:$40 sps:$4 sm:$0xff]   ;;  %v13893_v8 = vld [vmem:[#allocation3 + $0xa50] ss:$40 sps:$4 sm:$0xff]  }
  0xb8   :  { %8179 = vmatpush1.bf16.msra.mxu0 %v13819_v15  ;;  %v13846_v15 = vld [vmem:[#allocation3 + $0x154] ss:$40 sps:$4 sm:$0xff]   ;;  %v5350_v27 = vpack.c.bf16 %v13893_v8, %v13892_v56 }
  0xb9   :  { %v5215_v37 = vpack.c.bf16 %v13848_v30, %v13846_v15  ;;  %v13924_v15 = vld [vmem:[#allocation3 + $0xbe4] ss:$40 sps:$4 sm:$0xff]   ;;  %v13926_v30 = vld [vmem:[#allocation3 + $0xc34] ss:$40 sps:$4 sm:$0xff]  }
  0xba   :  { %12241 = vmatpush1.bf16.msra.mxu1 %v16017_v9  ;;  %v13834_v9 = vld [vmem:[#allocation3 + $0xb4] ss:$40 sps:$4 sm:$0xff]   ;;  %v5381_v36 = vpack.c.bf16 %v13926_v30, %v13924_v15 }
  0xbb   :  { %7588 = vmatmul.mubr.bf16.gmra.mrb[32].mxu0 %v5272_v24  ;;  %v5205_v24 = vpack.c.bf16 %v13836_v18, %v13834_v9  ;;  %v13912_v9 = vld [vmem:[#allocation3 + $0xb44] ss:$40 sps:$4 sm:$0xff]   ;;  %v13914_v18 = vld [vmem:[#allocation3 + $0xb94] ss:$40 sps:$4 sm:$0xff]  }
  0xbc   :  { %7597 = vmatprep.mubr.bf16.mxu0 %v5283_v28  ;;  %v13839_v28 = vld [vmem:[#allocation3 + $0x100] ss:$40 sps:$4 sm:$0xff]   ;;  %v5371_v29 = vpack.c.bf16 %v13914_v18, %v13912_v9 }
  0xbd   :  { %6915 = vmatmul.mubr.bf16.gmra.mrb[32].mxu1 %v5270_v39  ;;  %v5204_v38 = vpack.c.bf16 %v13839_v28, %v13838_v26  ;;  %v13850_v39 = vld [vmem:[#allocation3 + $0x150] ss:$40 sps:$4 sm:$0xff]   ;;  %v13916_v26 = vld [vmem:[#allocation3 + $0xb40] ss:$40 sps:$4 sm:$0xff]  }
  0xbe   :  { %6924 = vmatprep.mubr.bf16.mxu1 %v5281_v3  ;;  %v13858_v3 = vld [vmem:[#allocation3 + $0x1f4] ss:$40 sps:$4 sm:$0xff]   ;;  %v13917_v28 = vld [vmem:[#allocation3 + $0xb90] ss:$40 sps:$4 sm:$0xff]  }
  0xbf   :  { %v5370_v32 = vpack.c.bf16 %v13917_v28, %v13916_v26 }
  0xc3   :  { %7598 = vmatmul.mubr.bf16.gmra.mrb[36].mxu0 %v5282_v41  ;;  %v13851_v41 = vld [vmem:[#allocation3 + $0x1a0] ss:$40 sps:$4 sm:$0xff]  }
  0xc4   :  { %7607 = vmatprep.mubr.bf16.mxu0 %v5293_v40  ;;  %v13860_v40 = vld [vmem:[#allocation3 + $0x244] ss:$40 sps:$4 sm:$0xff]   ;;  %v5214_v46 = vpack.c.bf16 %v13851_v41, %v13850_v39  ;;  %v13928_v39 = vld [vmem:[#allocation3 + $0xbe0] ss:$40 sps:$4 sm:$0xff]   ;;  %v13929_v41 = vld [vmem:[#allocation3 + $0xc30] ss:$40 sps:$4 sm:$0xff]  }
  0xc5   :  { %6925 = vmatmul.mubr.bf16.gmra.mrb[36].mxu1 %v5280_v43  ;;  %v5225_v51 = vpack.c.bf16 %v13860_v40, %v13858_v3  ;;  %v13862_v43 = vld [vmem:[#allocation3 + $0x1f0] ss:$40 sps:$4 sm:$0xff]   ;;  %v13936_v3 = vld [vmem:[#allocation3 + $0xc84] ss:$40 sps:$4 sm:$0xff]   ;;  %v13938_v40 = vld [vmem:[#allocation3 + $0xcd4] ss:$40 sps:$4 sm:$0xff]   ;;  %v5380_v17 = vpack.c.bf16 %v13929_v41, %v13928_v39 }
  0xc6   :  { %6934 = vmatprep.mubr.bf16.mxu1 %v5291_v48  ;;  %v13870_v48 = vld [vmem:[#allocation3 + $0x294] ss:$40 sps:$4 sm:$0xff]   ;;  %v5391_v42 = vpack.c.bf16 %v13938_v40, %v13936_v3 }
  0xcb   :  { %7608 = vmatmul.mubr.bf16.gmra.mrb[40].mxu0 %v5292_v44  ;;  %v13863_v44 = vld [vmem:[#allocation3 + $0x240] ss:$40 sps:$4 sm:$0xff]  }
  0xcc   :  { %7617 = vmatprep.mubr.bf16.mxu0 %v5303_v52  ;;  %v13872_v52 = vld [vmem:[#allocation3 + $0x2e4] ss:$40 sps:$4 sm:$0xff]   ;;  %v5224_v5 = vpack.c.bf16 %v13863_v44, %v13862_v43  ;;  %v13940_v43 = vld [vmem:[#allocation3 + $0xc80] ss:$40 sps:$4 sm:$0xff]   ;;  %v13941_v44 = vld [vmem:[#allocation3 + $0xcd0] ss:$40 sps:$4 sm:$0xff]  }
  0xcd   :  { %6935 = vmatmul.mubr.bf16.gmra.mrb[40].mxu1 %v5290_v50  ;;  %v5235_v59 = vpack.c.bf16 %v13872_v52, %v13870_v48  ;;  %v13874_v50 = vld [vmem:[#allocation3 + $0x290] ss:$40 sps:$4 sm:$0xff]   ;;  %v13948_v48 = vld [vmem:[#allocation3 + $0xd24] ss:$40 sps:$4 sm:$0xff]   ;;  %v13950_v52 = vld [vmem:[#allocation3 + $0xd74] ss:$40 sps:$4 sm:$0xff]   ;;  %v5390_v54 = vpack.c.bf16 %v13941_v44, %v13940_v43 }
  0xce   :  { %6944 = vmatprep.mubr.bf16.mxu1 %v5301_v23  ;;  %v13882_v23 = vld [vmem:[#allocation3 + $0x334] ss:$40 sps:$4 sm:$0xff]   ;;  %v5401_v57 = vpack.c.bf16 %v13950_v52, %v13948_v48 }
  0xd3   :  { %7618 = vmatmul.mubr.bf16.gmra.mrb[44].mxu0 %v5302_v53  ;;  %v13875_v53 = vld [vmem:[#allocation3 + $0x2e0] ss:$40 sps:$4 sm:$0xff]  }
  0xd4   :  { %7627 = vmatprep.mubr.bf16.mxu0 %v5313_v25  ;;  %v13884_v25 = vld [vmem:[#allocation3 + $0x384] ss:$40 sps:$4 sm:$0xff]   ;;  %v5234_v6 = vpack.c.bf16 %v13875_v53, %v13874_v50  ;;  %v13952_v50 = vld [vmem:[#allocation3 + $0xd20] ss:$40 sps:$4 sm:$0xff]   ;;  %v13953_v53 = vld [vmem:[#allocation3 + $0xd70] ss:$40 sps:$4 sm:$0xff]  }
  0xd5   :  { %6945 = vmatmul.mubr.bf16.gmra.mrb[44].mxu1 %v5300_v60  ;;  %v5245_v10 = vpack.c.bf16 %v13884_v25, %v13882_v23  ;;  %v13886_v60 = vld [vmem:[#allocation3 + $0x330] ss:$40 sps:$4 sm:$0xff]   ;;  %v13960_v23 = vld [vmem:[#allocation3 + $0xdc4] ss:$40 sps:$4 sm:$0xff]   ;;  %v13962_v25 = vld [vmem:[#allocation3 + $0xe14] ss:$40 sps:$4 sm:$0xff]   ;;  %v5400_v56 = vpack.c.bf16 %v13953_v53, %v13952_v50 }
  0xd6   :  { %6954 = vmatprep.mubr.bf16.mxu1 %v5311_v13  ;;  %v13894_v13 = vld [vmem:[#allocation3 + $0x3d4] ss:$40 sps:$4 sm:$0xff]   ;;  %v5411_v62 = vpack.c.bf16 %v13962_v25, %v13960_v23 }
  0xdb   :  { %7628 = vmatmul.mubr.bf16.gmra.mrb[48].mxu0 %v5312_v61  ;;  %v13887_v61 = vld [vmem:[#allocation3 + $0x380] ss:$40 sps:$4 sm:$0xff]  }
  0xdc   :  { %8180 = vmatprep.mubr.bf16.mxu0 %v5195_v14  ;;  %v13896_v14 = vld [vmem:[#allocation3 + $0x424] ss:$40 sps:$4 sm:$0xff]   ;;  %v5244_v22 = vpack.c.bf16 %v13887_v61, %v13886_v60  ;;  %v13964_v60 = vld [vmem:[#allocation3 + $0xdc0] ss:$40 sps:$4 sm:$0xff]   ;;  %v13965_v61 = vld [vmem:[#allocation3 + $0xe10] ss:$40 sps:$4 sm:$0xff]  }
  0xdd   :  { %6955 = vmatmul.mubr.bf16.gmra.mrb[48].mxu1 %v5310_v11  ;;  %v5255_v31 = vpack.c.bf16 %v13896_v14, %v13894_v13  ;;  %v13898_v11 = vld [vmem:[#allocation3 + $0x3d0] ss:$40 sps:$4 sm:$0xff]   ;;  %v13972_v13 = vld [vmem:[#allocation3 + $0xe64] ss:$40 sps:$4 sm:$0xff]   ;;  %v13974_v14 = vld [vmem:[#allocation3 + $0xeb4] ss:$40 sps:$4 sm:$0xff]   ;;  %v5410_v16 = vpack.c.bf16 %v13965_v61, %v13964_v60 }
  0xde   :  { %6964 = vmatprep.mubr.bf16.mxu1 %v5321_v12  ;;  %v13906_v12 = vld [vmem:[#allocation3 + $0x474] ss:$40 sps:$4 sm:$0xff]   ;;  %v5421_v9 = vpack.c.bf16 %v13974_v14, %v13972_v13 }
  0xe3   :  { %8181 = vmatmul.mubr.bf16.vlgmr.msra.gmra.mrb[0].mxu0 %v5194_v33  ;;  %v13899_v33 = vld [vmem:[#allocation3 + $0x420] ss:$40 sps:$4 sm:$0xff]  }
  0xe4   :  { %8190 = vmatprep.mubr.bf16.mxu0 %v5205_v24  ;;  %v13908_v24 = vld [vmem:[#allocation3 + $0x4c4] ss:$40 sps:$4 sm:$0xff]   ;;  %v5254_v34 = vpack.c.bf16 %v13899_v33, %v13898_v11  ;;  %v13976_v11 = vld [vmem:[#allocation3 + $0xe60] ss:$40 sps:$4 sm:$0xff]   ;;  %v13977_v33 = vld [vmem:[#allocation3 + $0xeb0] ss:$40 sps:$4 sm:$0xff]  }
  0xe5   :  { %6965 = vmatmul.mubr.bf16.gmra.mrb[52].mxu1 %v5320_v2  ;;  %v5265_v1 = vpack.c.bf16 %v13908_v24, %v13906_v12  ;;  %v13910_v2 = vld [vmem:[#allocation3 + $0x470] ss:$40 sps:$4 sm:$0xff]   ;;  %v13984_v12 = vld [vmem:[#allocation3 + $0xf04] ss:$40 sps:$4 sm:$0xff]   ;;  %v13986_v24 = vld [vmem:[#allocation3 + $0xf54] ss:$40 sps:$4 sm:$0xff]   ;;  %v5420_v26 = vpack.c.bf16 %v13977_v33, %v13976_v11 }
  0xe6   :  { %6974 = vmatprep.mubr.bf16.mxu1 %v5331_v35  ;;  %v13918_v35 = vld [vmem:[#allocation3 + $0x514] ss:$40 sps:$4 sm:$0xff]   ;;  %v5431_v15 = vpack.c.bf16 %v13986_v24, %v13984_v12 }
  0xeb   :  { %8191 = vmatmul.mubr.bf16.gmra.mrb[4].mxu0 %v5204_v38  ;;  %v13911_v38 = vld [vmem:[#allocation3 + $0x4c0] ss:$40 sps:$4 sm:$0xff]  }
  0xec   :  { %8200 = vmatprep.mubr.bf16.mxu0 %v5215_v37  ;;  %v13920_v37 = vld [vmem:[#allocation3 + $0x564] ss:$40 sps:$4 sm:$0xff]   ;;  %v5264_v19 = vpack.c.bf16 %v13911_v38, %v13910_v2  ;;  %v13988_v2 = vld [vmem:[#allocation3 + $0xf00] ss:$40 sps:$4 sm:$0xff]   ;;  %v13989_v38 = vld [vmem:[#allocation3 + $0xf50] ss:$40 sps:$4 sm:$0xff]  }
  0xed   :  { %6975 = vmatmul.mubr.bf16.gmra.mrb[56].mxu1 %v5330_v45  ;;  %v5275_v21 = vpack.c.bf16 %v13920_v37, %v13918_v35  ;;  %v13922_v45 = vld [vmem:[#allocation3 + $0x510] ss:$40 sps:$4 sm:$0xff]   ;;  %v13996_v35 = vld [vmem:[#allocation3 + $0xfa4] ss:$40 sps:$4 sm:$0xff]   ;;  %v13998_v37 = vld [vmem:[#allocation3 + $0xff4] ss:$40 sps:$4 sm:$0xff]   ;;  %v5430_v39 = vpack.c.bf16 %v13989_v38, %v13988_v2 }
  0xee   :  { %6984 = vmatprep.mubr.bf16.mxu1 %v5341_v47  ;;  %v13930_v47 = vld [vmem:[#allocation3 + $0x5b4] ss:$40 sps:$4 sm:$0xff]   ;;  %v5441_v3 = vpack.c.bf16 %v13998_v37, %v13996_v35  ;;  %v14210_v38 = vld [vmem:[#allocation6 + $0x300] ss:$8 sps:$4 sm:$0xff]   ;;  %v14212_v35 = vld [vmem:[#allocation6 + $0x304] ss:$8 sps:$4 sm:$0xff]  }
  0xef   :  { %8821 = vmatprep.subr.bf16.mxu0 %v14212_v35 }
  0xf0   :  { %8822 = vmatpush1.bf16.msra.mxu0 %v14210_v38 }
  0xf3   :  { %8201 = vmatmul.mubr.bf16.gmra.mrb[8].mxu0 %v5214_v46  ;;  %v13923_v46 = vld [vmem:[#allocation3 + $0x560] ss:$40 sps:$4 sm:$0xff]  }
  0xf4   :  { %8210 = vmatprep.mubr.bf16.mxu0 %v5225_v51  ;;  %v13932_v51 = vld [vmem:[#allocation3 + $0x604] ss:$40 sps:$4 sm:$0xff]   ;;  %v5274_v55 = vpack.c.bf16 %v13923_v46, %v13922_v45  ;;  %v14000_v45 = vld [vmem:[#allocation3 + $0xfa0] ss:$40 sps:$4 sm:$0xff]   ;;  %v14001_v46 = vld [vmem:[#allocation3 + $0xff0] ss:$40 sps:$4 sm:$0xff]  }
  0xf5   :  { %6985 = vmatmul.mubr.bf16.gmra.mrb[60].mxu1 %v5340_v4  ;;  %v5285_v58 = vpack.c.bf16 %v13932_v51, %v13930_v47  ;;  %v13934_v4 = vld [vmem:[#allocation3 + $0x5b0] ss:$40 sps:$4 sm:$0xff]   ;;  %v14008_v47 = vld [vmem:[#allocation3 + $0x1044] ss:$40 sps:$4 sm:$0xff]   ;;  %v14010_v51 = vld [vmem:[#allocation3 + $0x1094] ss:$40 sps:$4 sm:$0xff]   ;;  %v5440_v43 = vpack.c.bf16 %v14001_v46, %v14000_v45 }
  0xf6   :  { %6994 = vmatprep.mubr.bf16.mxu1 %v5351_v49  ;;  %v13942_v49 = vld [vmem:[#allocation3 + $0x654] ss:$40 sps:$4 sm:$0xff]   ;;  %v5451_v48 = vpack.c.bf16 %v14010_v51, %v14008_v47  ;;  %v14052_v46 = vld [vmem:[#allocation3 + $0xc44] ss:$40 sps:$4 sm:$0xff]  }
  0xf7   :  { %v14050_v45 = vld [vmem:[#allocation3 + $0xbf4] ss:$40 sps:$4 sm:$0xff]  }
  0xfb   :  { %8211 = vmatmul.mubr.bf16.gmra.mrb[12].mxu0 %v5224_v5  ;;  %v13935_v5 = vld [vmem:[#allocation3 + $0x600] ss:$40 sps:$4 sm:$0xff]  }
  0xfc   :  { %8220 = vmatprep.mubr.bf16.mxu0 %v5235_v59  ;;  %v13944_v59 = vld [vmem:[#allocation3 + $0x6a4] ss:$40 sps:$4 sm:$0xff]   ;;  %v5284_v8 = vpack.c.bf16 %v13935_v5, %v13934_v4  ;;  %v14012_v4 = vld [vmem:[#allocation3 + $0x1040] ss:$40 sps:$4 sm:$0xff]   ;;  %v14013_v5 = vld [vmem:[#allocation3 + $0x1090] ss:$40 sps:$4 sm:$0xff]  }
  0xfd   :  { %6995 = vmatmul.mubr.bf16.gmra.mrb[64].mxu1 %v5350_v27  ;;  %v5295_v63 = vpack.c.bf16 %v13944_v59, %v13942_v49  ;;  %v13946_v27 = vld [vmem:[#allocation3 + $0x650] ss:$40 sps:$4 sm:$0xff]   ;;  %v14020_v49 = vld [vmem:[#allocation3 + $0x10e4] ss:$40 sps:$4 sm:$0xff]   ;;  %v14022_v59 = vld [vmem:[#allocation3 + $0x1134] ss:$40 sps:$4 sm:$0xff]   ;;  %v5450_v50 = vpack.c.bf16 %v14013_v5, %v14012_v4 }
  0xfe   :  { %7004 = vmatprep.mubr.bf16.mxu1 %v5361_v7  ;;  %v13954_v7 = vld [vmem:[#allocation3 + $0x6f4] ss:$40 sps:$4 sm:$0xff]   ;;  %v5461_v23 = vpack.c.bf16 %v14022_v59, %v14020_v49  ;;  %v14064_v5 = vld [vmem:[#allocation3 + $0xce4] ss:$40 sps:$4 sm:$0xff]  }
  0xff   :  { %v14062_v4 = vld [vmem:[#allocation3 + $0xc94] ss:$40 sps:$4 sm:$0xff]  }
 0x103   :  { %8221 = vmatmul.mubr.bf16.gmra.mrb[16].mxu0 %v5234_v6  ;;  %v13947_v6 = vld [vmem:[#allocation3 + $0x6a0] ss:$40 sps:$4 sm:$0xff]  }
 0x104   :  { %8230 = vmatprep.mubr.bf16.mxu0 %v5245_v10  ;;  %v13956_v10 = vld [vmem:[#allocation3 + $0x744] ss:$40 sps:$4 sm:$0xff]   ;;  %v5294_v0 = vpack.c.bf16 %v13947_v6, %v13946_v27  ;;  %v14024_v27 = vld [vmem:[#allocation3 + $0x10e0] ss:$40 sps:$4 sm:$0xff]   ;;  %v14025_v6 = vld [vmem:[#allocation3 + $0x1130] ss:$40 sps:$4 sm:$0xff]  }
 0x105   :  { %7005 = vmatmul.mubr.bf16.gmra.mrb[68].mxu1 %v5360_v20  ;;  %v5305_v18 = vpack.c.bf16 %v13956_v10, %v13954_v7  ;;  %v13958_v20 = vld [vmem:[#allocation3 + $0x6f0] ss:$40 sps:$4 sm:$0xff]   ;;  %v14032_v7 = vld [vmem:[#allocation3 + $0x1184] ss:$40 sps:$4 sm:$0xff]   ;;  %v14034_v10 = vld [vmem:[#allocation3 + $0x11d4] ss:$40 sps:$4 sm:$0xff]   ;;  %v5460_v60 = vpack.c.bf16 %v14025_v6, %v14024_v27 }
 0x106   :  { %7014 = vmatprep.mubr.bf16.mxu1 %v5371_v29  ;;  %v13966_v29 = vld [vmem:[#allocation3 + $0x794] ss:$40 sps:$4 sm:$0xff]   ;;  %v5471_v13 = vpack.c.bf16 %v14034_v10, %v14032_v7  ;;  %v14076_v6 = vld [vmem:[#allocation3 + $0xd84] ss:$40 sps:$4 sm:$0xff]   ;;  %v14261_v7 = vld [vmem:[#allocation6 + $0x310] ss:$8 sps:$4 sm:$0xff]  }
 0x107   :  { %v14094_v27 = vld [vmem:[#allocation3 + $0x14f4] ss:$40 sps:$4 sm:$0xff]  }
 0x108   :  { %v14263_v10 = vld [vmem:[#allocation6 + $0x314] ss:$8 sps:$4 sm:$0xff]  }
 0x109   :  { %8823 = vmatprep.subr.bf16.mxu0 %v14263_v10 }
 0x10a   :  { %8824 = vmatpush1.bf16.msra.mxu0 %v14261_v7 }
 0x10b   :  { %8231 = vmatmul.mubr.bf16.gmra.mrb[20].mxu0 %v5244_v22  ;;  %v13959_v22 = vld [vmem:[#allocation3 + $0x740] ss:$40 sps:$4 sm:$0xff]  }
 0x10c   :  { %8240 = vmatprep.mubr.bf16.mxu0 %v5255_v31  ;;  %v13968_v31 = vld [vmem:[#allocation3 + $0x7e4] ss:$40 sps:$4 sm:$0xff]   ;;  %v5304_v28 = vpack.c.bf16 %v13959_v22, %v13958_v20  ;;  %v14036_v20 = vld [vmem:[#allocation3 + $0x1180] ss:$40 sps:$4 sm:$0xff]   ;;  %v14037_v22 = vld [vmem:[#allocation3 + $0x11d0] ss:$40 sps:$4 sm:$0xff]  }
 0x10d   :  { %7015 = vmatmul.mubr.bf16.gmra.mrb[72].mxu1 %v5370_v32  ;;  %v5315_v30 = vpack.c.bf16 %v13968_v31, %v13966_v29  ;;  %v13970_v32 = vld [vmem:[#allocation3 + $0x790] ss:$40 sps:$4 sm:$0xff]   ;;  %v14044_v29 = vld [vmem:[#allocation3 + $0x1224] ss:$40 sps:$4 sm:$0xff]   ;;  %v14046_v31 = vld [vmem:[#allocation3 + $0x1274] ss:$40 sps:$4 sm:$0xff]   ;;  %v5470_v11 = vpack.c.bf16 %v14037_v22, %v14036_v20 }
 0x10e   :  { %7024 = vmatprep.mubr.bf16.mxu1 %v5381_v36  ;;  %v13978_v36 = vld [vmem:[#allocation3 + $0x834] ss:$40 sps:$4 sm:$0xff]   ;;  %v5481_v12 = vpack.c.bf16 %v14046_v31, %v14044_v29  ;;  %v14104_v20 = vld [vmem:[#allocation3 + $0x1544] ss:$40 sps:$4 sm:$0xff]  }
 0x10f   :  { %v14106_v22 = vld [vmem:[#allocation3 + $0x1594] ss:$40 sps:$4 sm:$0xff]   ;;  %v14088_v31 = vld [vmem:[#allocation3 + $0xe24] ss:$40 sps:$4 sm:$0xff]  }
 0x110   :  { %v14086_v29 = vld [vmem:[#allocation3 + $0xdd4] ss:$40 sps:$4 sm:$0xff]  }
 0x113   :  { %8241 = vmatmul.mubr.bf16.gmra.mrb[24].mxu0 %v5254_v34  ;;  %v13971_v34 = vld [vmem:[#allocation3 + $0x7e0] ss:$40 sps:$4 sm:$0xff]  }
 0x114   :  { %8250 = vmatprep.mubr.bf16.mxu0 %v5265_v1  ;;  %v13980_v1 = vld [vmem:[#allocation3 + $0x884] ss:$40 sps:$4 sm:$0xff]   ;;  %v5314_v41 = vpack.c.bf16 %v13971_v34, %v13970_v32  ;;  %v14048_v32 = vld [vmem:[#allocation3 + $0x1220] ss:$40 sps:$4 sm:$0xff]   ;;  %v14049_v34 = vld [vmem:[#allocation3 + $0x1270] ss:$40 sps:$4 sm:$0xff]  }
 0x115   :  { %7025 = vmatmul.mubr.bf16.gmra.mrb[76].mxu1 %v5380_v17  ;;  %v5325_v40 = vpack.c.bf16 %v13980_v1, %v13978_v36  ;;  %v13982_v17 = vld [vmem:[#allocation3 + $0x830] ss:$40 sps:$4 sm:$0xff]   ;;  %v14056_v36 = vld [vmem:[#allocation3 + $0x12c4] ss:$40 sps:$4 sm:$0xff]   ;;  %v14058_v1 = vld [vmem:[#allocation3 + $0x1314] ss:$40 sps:$4 sm:$0xff]   ;;  %v5480_v2 = vpack.c.bf16 %v14049_v34, %v14048_v32 }
 0x116   :  { %7034 = vmatprep.mubr.bf16.mxu1 %v5391_v42  ;;  %v13990_v42 = vld [vmem:[#allocation3 + $0x8d4] ss:$40 sps:$4 sm:$0xff]   ;;  %v14116_v32 = vld [vmem:[#allocation3 + $0x15e4] ss:$40 sps:$4 sm:$0xff]  }
 0x117   :  { %v14118_v34 = vld [vmem:[#allocation3 + $0x1634] ss:$40 sps:$4 sm:$0xff]  }
 0x118   :  { %v5541_v35 = vpack.c.bf16 %v14118_v34, %v14116_v32  ;;  %v14158_v32 = vld [vmem:[#allocation3 + $0x1194] ss:$40 sps:$4 sm:$0xff]   ;;  %v14160_v34 = vld [vmem:[#allocation3 + $0x11e4] ss:$40 sps:$4 sm:$0xff]  }
 0x11b   :  { %8251 = vmatmul.mubr.bf16.gmra.mrb[28].mxu0 %v5264_v19  ;;  %v13983_v19 = vld [vmem:[#allocation3 + $0x880] ss:$40 sps:$4 sm:$0xff]  }
 0x11c   :  { %8260 = vmatprep.mubr.bf16.mxu0 %v5275_v21  ;;  %v13992_v21 = vld [vmem:[#allocation3 + $0x924] ss:$40 sps:$4 sm:$0xff]   ;;  %v5324_v44 = vpack.c.bf16 %v13983_v19, %v13982_v17  ;;  %v14060_v17 = vld [vmem:[#allocation3 + $0x12c0] ss:$40 sps:$4 sm:$0xff]   ;;  %v14061_v19 = vld [vmem:[#allocation3 + $0x1310] ss:$40 sps:$4 sm:$0xff]  }
 0x11d   :  { %7035 = vmatmul.mubr.bf16.gmra.mrb[80].mxu1 %v5390_v54  ;;  %v5335_v52 = vpack.c.bf16 %v13992_v21, %v13990_v42  ;;  %v13994_v54 = vld [vmem:[#allocation3 + $0x8d0] ss:$40 sps:$4 sm:$0xff]   ;;  %v14068_v42 = vld [vmem:[#allocation3 + $0x1364] ss:$40 sps:$4 sm:$0xff]   ;;  %v14070_v21 = vld [vmem:[#allocation3 + $0x13b4] ss:$40 sps:$4 sm:$0xff]   ;;  %v5490_v47 = vpack.c.bf16 %v14061_v19, %v14060_v17 }
 0x11e   :  { %7044 = vmatprep.mubr.bf16.mxu1 %v5401_v57  ;;  %v14002_v57 = vld [vmem:[#allocation3 + $0x974] ss:$40 sps:$4 sm:$0xff]   ;;  %v14128_v17 = vld [vmem:[#allocation3 + $0x1684] ss:$40 sps:$4 sm:$0xff]  }
 0x11f   :  { %v14130_v19 = vld [vmem:[#allocation3 + $0x16d4] ss:$40 sps:$4 sm:$0xff]  }
 0x123   :  { %8261 = vmatmul.mubr.bf16.gmra.mrb[32].mxu0 %v5274_v55  ;;  %v13995_v55 = vld [vmem:[#allocation3 + $0x920] ss:$40 sps:$4 sm:$0xff]  }
 0x124   :  { %8270 = vmatprep.mubr.bf16.mxu0 %v5285_v58  ;;  %v14004_v58 = vld [vmem:[#allocation3 + $0x9c4] ss:$40 sps:$4 sm:$0xff]   ;;  %v5334_v53 = vpack.c.bf16 %v13995_v55, %v13994_v54  ;;  %v14072_v54 = vld [vmem:[#allocation3 + $0x1360] ss:$40 sps:$4 sm:$0xff]   ;;  %v14073_v55 = vld [vmem:[#allocation3 + $0x13b0] ss:$40 sps:$4 sm:$0xff]  }
 0x125   :  { %7045 = vmatmul.mubr.bf16.gmra.mrb[84].mxu1 %v5400_v56  ;;  %v5345_v25 = vpack.c.bf16 %v14004_v58, %v14002_v57  ;;  %v14006_v56 = vld [vmem:[#allocation3 + $0x970] ss:$40 sps:$4 sm:$0xff]   ;;  %v14080_v57 = vld [vmem:[#allocation3 + $0x1404] ss:$40 sps:$4 sm:$0xff]   ;;  %v14082_v58 = vld [vmem:[#allocation3 + $0x1454] ss:$40 sps:$4 sm:$0xff]   ;;  %v5500_v49 = vpack.c.bf16 %v14073_v55, %v14072_v54 }
 0x126   :  { %7054 = vmatprep.mubr.bf16.mxu1 %v5411_v62  ;;  %v14014_v62 = vld [vmem:[#allocation3 + $0xa14] ss:$40 sps:$4 sm:$0xff]   ;;  %v14133_v54 = vld [vmem:[#allocation3 + $0x16d0] ss:$40 sps:$4 sm:$0xff]   ;;  %v14140_v55 = vld [vmem:[#allocation3 + $0x1724] ss:$40 sps:$4 sm:$0xff]  }
 0x12b   :  { %8271 = vmatmul.mubr.bf16.gmra.mrb[36].mxu0 %v5284_v8  ;;  %v14007_v8 = vld [vmem:[#allocation3 + $0x9c0] ss:$40 sps:$4 sm:$0xff]  }
 0x12c   :  { %8280 = vmatprep.mubr.bf16.mxu0 %v5295_v63  ;;  %v14016_v63 = vld [vmem:[#allocation3 + $0xa64] ss:$40 sps:$4 sm:$0xff]   ;;  %v5344_v61 = vpack.c.bf16 %v14007_v8, %v14006_v56  ;;  %v14084_v56 = vld [vmem:[#allocation3 + $0x1400] ss:$40 sps:$4 sm:$0xff]   ;;  %v14074_v8 = vld [vmem:[#allocation3 + $0xd34] ss:$40 sps:$4 sm:$0xff]  }
 0x12d   :  { %7055 = vmatmul.mubr.bf16.gmra.mrb[88].mxu1 %v5410_v16  ;;  %v5355_v14 = vpack.c.bf16 %v14016_v63, %v14014_v62  ;;  %v14018_v16 = vld [vmem:[#allocation3 + $0xa10] ss:$40 sps:$4 sm:$0xff]   ;;  %v14092_v63 = vld [vmem:[#allocation3 + $0x14a4] ss:$40 sps:$4 sm:$0xff]  }
 0x12e   :  { %7064 = vmatprep.mubr.bf16.mxu1 %v5421_v9  ;;  %v14026_v9 = vld [vmem:[#allocation3 + $0xab4] ss:$40 sps:$4 sm:$0xff]   ;;  %v14085_v62 = vld [vmem:[#allocation3 + $0x1450] ss:$40 sps:$4 sm:$0xff]  }
 0x133   :  { %8281 = vmatmul.mubr.bf16.gmra.mrb[40].mxu0 %v5294_v0  ;;  %v14019_v0 = vld [vmem:[#allocation3 + $0xa60] ss:$40 sps:$4 sm:$0xff]  }
 0x134   :  { %8290 = vmatprep.mubr.bf16.mxu0 %v5305_v18  ;;  %v14028_v18 = vld [vmem:[#allocation3 + $0xb04] ss:$40 sps:$4 sm:$0xff]   ;;  %v5354_v33 = vpack.c.bf16 %v14019_v0, %v14018_v16  ;;  %v14078_v16 = vld [vmem:[#allocation3 + $0xd30] ss:$40 sps:$4 sm:$0xff]   ;;  %v14079_v0 = vld [vmem:[#allocation3 + $0xd80] ss:$40 sps:$4 sm:$0xff]  }
 0x135   :  { %7065 = vmatmul.mubr.bf16.gmra.mrb[92].mxu1 %v5420_v26  ;;  %v5365_v24 = vpack.c.bf16 %v14028_v18, %v14026_v9  ;;  %v14030_v26 = vld [vmem:[#allocation3 + $0xab0] ss:$40 sps:$4 sm:$0xff]   ;;  %v14096_v9 = vld [vmem:[#allocation3 + $0x14a0] ss:$40 sps:$4 sm:$0xff]  }
 0x136   :  { %7074 = vmatprep.mubr.bf16.mxu1 %v5431_v15  ;;  %v14038_v15 = vld [vmem:[#allocation3 + $0xb54] ss:$40 sps:$4 sm:$0xff]   ;;  %v14097_v18 = vld [vmem:[#allocation3 + $0x14f0] ss:$40 sps:$4 sm:$0xff]  }
 0x13b   :  { %8291 = vmatmul.mubr.bf16.gmra.mrb[44].mxu0 %v5304_v28  ;;  %v14031_v28 = vld [vmem:[#allocation3 + $0xb00] ss:$40 sps:$4 sm:$0xff]  }
 0x13c   :  { %8300 = vmatprep.mubr.bf16.mxu0 %v5315_v30  ;;  %v14040_v30 = vld [vmem:[#allocation3 + $0xba4] ss:$40 sps:$4 sm:$0xff]   ;;  %v5364_v37 = vpack.c.bf16 %v14031_v28, %v14030_v26  ;;  %v14090_v26 = vld [vmem:[#allocation3 + $0xdd0] ss:$40 sps:$4 sm:$0xff]   ;;  %v14091_v28 = vld [vmem:[#allocation3 + $0xe20] ss:$40 sps:$4 sm:$0xff]  }
 0x13d   :  { %7075 = vmatmul.mubr.bf16.gmra.mrb[96].mxu1 %v5430_v39  ;;  %v5491_v39 = vpack.c.bf16 %v14058_v1, %v14056_v36  ;;  %v14098_v36 = vld [vmem:[#allocation3 + $0xe74] ss:$40 sps:$4 sm:$0xff]   ;;  %v14100_v1 = vld [vmem:[#allocation3 + $0xec4] ss:$40 sps:$4 sm:$0xff]   ;;  %v5414_v38 = vpack.c.bf16 %v14091_v28, %v14090_v26  ;;  %v14168_v26 = vld [vmem:[#allocation3 + $0x1860] ss:$40 sps:$4 sm:$0xff]  }
 0x13e   :  { %7084 = vmatprep.mubr.bf16.mxu1 %v5441_v3  ;;  %v14042_v3 = vld [vmem:[#allocation3 + $0xb50] ss:$40 sps:$4 sm:$0xff]  }
 0x13f   :  { %v14169_v28 = vld [vmem:[#allocation3 + $0x18b0] ss:$40 sps:$4 sm:$0xff]  }
 0x143   :  { %8301 = vmatmul.mubr.bf16.gmra.mrb[48].mxu0 %v5314_v41  ;;  %v5375_v41 = vpack.c.bf16 %v14040_v30, %v14038_v15  ;;  %v14108_v15 = vld [vmem:[#allocation3 + $0x1540] ss:$40 sps:$4 sm:$0xff]   ;;  %v14109_v30 = vld [vmem:[#allocation3 + $0x1590] ss:$40 sps:$4 sm:$0xff]  }
 0x144   :  { %8310 = vmatprep.mubr.bf16.mxu0 %v5325_v40  ;;  %v14043_v40 = vld [vmem:[#allocation3 + $0xba0] ss:$40 sps:$4 sm:$0xff]  }
 0x145   :  { %7085 = vmatmul.mubr.bf16.gmra.mrb[100].mxu1 %v5440_v43  ;;  %v5374_v51 = vpack.c.bf16 %v14043_v40, %v14042_v3  ;;  %v5501_v43 = vpack.c.bf16 %v14070_v21, %v14068_v42  ;;  %v14120_v3 = vld [vmem:[#allocation3 + $0x15e0] ss:$40 sps:$4 sm:$0xff]   ;;  %v14121_v40 = vld [vmem:[#allocation3 + $0x1630] ss:$40 sps:$4 sm:$0xff]   ;;  %v14110_v42 = vld [vmem:[#allocation3 + $0xf14] ss:$40 sps:$4 sm:$0xff]  }
 0x146   :  { %7094 = vmatprep.mubr.bf16.mxu1 %v5451_v48  ;;  %v14054_v48 = vld [vmem:[#allocation3 + $0xbf0] ss:$40 sps:$4 sm:$0xff]   ;;  %v14112_v21 = vld [vmem:[#allocation3 + $0xf64] ss:$40 sps:$4 sm:$0xff]  }
 0x14b   :  { %8311 = vmatmul.mubr.bf16.gmra.mrb[52].mxu0 %v5324_v44  ;;  %v5385_v44 = vpack.c.bf16 %v14052_v46, %v14050_v45  ;;  %v5540_v45 = vpack.c.bf16 %v14121_v40, %v14120_v3  ;;  %v14181_v3 = vld [vmem:[#allocation3 + $0x1950] ss:$40 sps:$4 sm:$0xff]   ;;  %v14188_v40 = vld [vmem:[#allocation3 + $0x19a4] ss:$40 sps:$4 sm:$0xff]  }
 0x14c   :  { %8320 = vmatprep.mubr.bf16.mxu0 %v5335_v52  ;;  %v14055_v52 = vld [vmem:[#allocation3 + $0xc40] ss:$40 sps:$4 sm:$0xff]  }
 0x14d   :  { %7095 = vmatmul.mubr.bf16.gmra.mrb[104].mxu1 %v5450_v50  ;;  %v5384_v59 = vpack.c.bf16 %v14055_v52, %v14054_v48  ;;  %v5511_v50 = vpack.c.bf16 %v14082_v58, %v14080_v57  ;;  %v14122_v48 = vld [vmem:[#allocation3 + $0xfb4] ss:$40 sps:$4 sm:$0xff]   ;;  %v14132_v52 = vld [vmem:[#allocation3 + $0x1680] ss:$40 sps:$4 sm:$0xff]   ;;  %v14124_v58 = vld [vmem:[#allocation3 + $0x1004] ss:$40 sps:$4 sm:$0xff]  }
 0x14e   :  { %7104 = vmatprep.mubr.bf16.mxu1 %v5461_v23  ;;  %v14066_v23 = vld [vmem:[#allocation3 + $0xc90] ss:$40 sps:$4 sm:$0xff]   ;;  %v14142_v57 = vld [vmem:[#allocation3 + $0x1774] ss:$40 sps:$4 sm:$0xff]  }
 0x153   :  { %8321 = vmatmul.mubr.bf16.gmra.mrb[56].mxu0 %v5334_v53  ;;  %v5395_v53 = vpack.c.bf16 %v14064_v5, %v14062_v4  ;;  %v14312_v4 = vld [vmem:[#allocation6 + $0x320] ss:$8 sps:$4 sm:$0xff]   ;;  %v14314_v5 = vld [vmem:[#allocation6 + $0x324] ss:$8 sps:$4 sm:$0xff]  }
 0x154   :  { %8330 = vmatprep.mubr.bf16.mxu0 %v5345_v25  ;;  %v14067_v25 = vld [vmem:[#allocation3 + $0xce0] ss:$40 sps:$4 sm:$0xff]   ;;  %8825 = vmatprep.subr.bf16.mxu0 %v14314_v5 }
 0x155   :  { %7105 = vmatmul.mubr.bf16.gmra.mrb[108].mxu1 %v5460_v60  ;;  %v5510_v60 = vpack.c.bf16 %v14085_v62, %v14084_v56  ;;  %8826 = vmatpush1.bf16.msra.mxu0 %v14312_v4  ;;  %v14144_v56 = vld [vmem:[#allocation3 + $0x1720] ss:$40 sps:$4 sm:$0xff]   ;;  %v14152_v62 = vld [vmem:[#allocation3 + $0x17c4] ss:$40 sps:$4 sm:$0xff]  }
 0x156   :  { %7114 = vmatprep.mubr.bf16.mxu1 %v5471_v13  ;;  %v5521_v13 = vpack.c.bf16 %v14094_v27, %v14092_v63  ;;  %v14154_v63 = vld [vmem:[#allocation3 + $0x1814] ss:$40 sps:$4 sm:$0xff]  }
 0x157   :  { %v14134_v27 = vld [vmem:[#allocation3 + $0x1054] ss:$40 sps:$4 sm:$0xff]  }
 0x15b   :  { %8331 = vmatmul.mubr.bf16.gmra.mrb[60].mxu0 %v5344_v61  ;;  %v5394_v61 = vpack.c.bf16 %v14067_v25, %v14066_v23  ;;  %v14126_v23 = vld [vmem:[#allocation3 + $0xfb0] ss:$40 sps:$4 sm:$0xff]   ;;  %v14127_v25 = vld [vmem:[#allocation3 + $0x1000] ss:$40 sps:$4 sm:$0xff]  }
 0x15c   :  { %8340 = vmatprep.mubr.bf16.mxu0 %v5355_v14  ;;  %v5405_v14 = vpack.c.bf16 %v14076_v6, %v14074_v8  ;;  %v14145_v8 = vld [vmem:[#allocation3 + $0x1770] ss:$40 sps:$4 sm:$0xff]   ;;  %v14136_v6 = vld [vmem:[#allocation3 + $0x10a4] ss:$40 sps:$4 sm:$0xff]   ;;  %v5444_v10 = vpack.c.bf16 %v14127_v25, %v14126_v23  ;;  %v14204_v23 = vld [vmem:[#allocation3 + $0x1a40] ss:$40 sps:$4 sm:$0xff]  }
 0x15d   :  { %7115 = vmatmul.mubr.bf16.gmra.mrb[112].mxu1 %v5470_v11  ;;  %v5520_v11 = vpack.c.bf16 %v14097_v18, %v14096_v9  ;;  %v5560_v7 = vpack.c.bf16 %v14145_v8, %v14144_v56  ;;  %v14164_v9 = vld [vmem:[#allocation3 + $0x1864] ss:$40 sps:$4 sm:$0xff]   ;;  %v14166_v18 = vld [vmem:[#allocation3 + $0x18b4] ss:$40 sps:$4 sm:$0xff]   ;;  %v14205_v25 = vld [vmem:[#allocation3 + $0x1a90] ss:$40 sps:$4 sm:$0xff]  }
 0x15e   :  { %7124 = vmatprep.mubr.bf16.mxu1 %v5481_v12  ;;  %v5531_v12 = vpack.c.bf16 %v14106_v22, %v14104_v20  ;;  %v14146_v20 = vld [vmem:[#allocation3 + $0x10f4] ss:$40 sps:$4 sm:$0xff]   ;;  %v14148_v22 = vld [vmem:[#allocation3 + $0x1144] ss:$40 sps:$4 sm:$0xff]  }
 0x15f   :  { %v14215_v56 = vld [vmem:[#allocation3 + $0x1ae4] ss:$40 sps:$4 sm:$0xff]   ;;  %v14217_v8 = vld [vmem:[#allocation3 + $0x1b34] ss:$40 sps:$4 sm:$0xff]  }
 0x163   :  { %8341 = vmatmul.mubr.bf16.gmra.mrb[64].mxu0 %v5354_v33  ;;  %v5404_v33 = vpack.c.bf16 %v14079_v0, %v14078_v16  ;;  %v14156_v16 = vld [vmem:[#allocation3 + $0x17c0] ss:$40 sps:$4 sm:$0xff]   ;;  %v14157_v0 = vld [vmem:[#allocation3 + $0x1810] ss:$40 sps:$4 sm:$0xff]  }
 0x164   :  { %8350 = vmatprep.mubr.bf16.mxu0 %v5365_v24  ;;  %v5415_v24 = vpack.c.bf16 %v14088_v31, %v14086_v29  ;;  %v5570_v29 = vpack.c.bf16 %v14157_v0, %v14156_v16  ;;  %v14227_v16 = vld [vmem:[#allocation3 + $0x1b84] ss:$40 sps:$4 sm:$0xff]   ;;  %v14229_v0 = vld [vmem:[#allocation3 + $0x1bd4] ss:$40 sps:$4 sm:$0xff]  }
 0x165   :  { %7125 = vmatmul.mubr.bf16.gmra.mrb[116].mxu1 %v5480_v2  ;;  %v5530_v2 = vpack.c.bf16 %v14109_v30, %v14108_v15  ;;  %v14176_v15 = vld [vmem:[#allocation3 + $0x1904] ss:$40 sps:$4 sm:$0xff]   ;;  %v14178_v30 = vld [vmem:[#allocation3 + $0x1954] ss:$40 sps:$4 sm:$0xff]  }
 0x166   :  { %7134 = vmatprep.mubr.bf16.mxu1 %v5491_v39  ;;  %v14102_v39 = vld [vmem:[#allocation3 + $0xe70] ss:$40 sps:$4 sm:$0xff]  }
 0x16b   :  { %8351 = vmatmul.mubr.bf16.gmra.mrb[68].mxu0 %v5364_v37  ;;  %v5425_v37 = vpack.c.bf16 %v14100_v1, %v14098_v36  ;;  %v5580_v36 = vpack.c.bf16 %v14169_v28, %v14168_v26  ;;  %v14232_v26 = vld [vmem:[#allocation3 + $0x1bd0] ss:$40 sps:$4 sm:$0xff]   ;;  %v14239_v28 = vld [vmem:[#allocation3 + $0x1c24] ss:$40 sps:$4 sm:$0xff]  }
 0x16c   :  { %8360 = vmatprep.mubr.bf16.mxu0 %v5375_v41  ;;  %v14103_v41 = vld [vmem:[#allocation3 + $0xec0] ss:$40 sps:$4 sm:$0xff]  }
 0x16d   :  { %7135 = vmatmul.mubr.bf16.gmra.mrb[120].mxu1 %v5490_v47  ;;  %v5424_v46 = vpack.c.bf16 %v14103_v41, %v14102_v39  ;;  %v5551_v47 = vpack.c.bf16 %v14130_v19, %v14128_v17  ;;  %v14170_v39 = vld [vmem:[#allocation3 + $0x1234] ss:$40 sps:$4 sm:$0xff]   ;;  %v14180_v41 = vld [vmem:[#allocation3 + $0x1900] ss:$40 sps:$4 sm:$0xff]   ;;  %v14172_v19 = vld [vmem:[#allocation3 + $0x1284] ss:$40 sps:$4 sm:$0xff]  }
 0x16e   :  { %7144 = vmatprep.mubr.bf16.mxu1 %v5501_v43  ;;  %v14114_v43 = vld [vmem:[#allocation3 + $0xf10] ss:$40 sps:$4 sm:$0xff]   ;;  %v14190_v17 = vld [vmem:[#allocation3 + $0x19f4] ss:$40 sps:$4 sm:$0xff]  }
 0x173   :  { %8361 = vmatmul.mubr.bf16.gmra.mrb[72].mxu0 %v5374_v51  ;;  %v5435_v51 = vpack.c.bf16 %v14112_v21, %v14110_v42  ;;  %v14363_v42 = vld [vmem:[#allocation6 + $0x330] ss:$8 sps:$4 sm:$0xff]   ;;  %v14365_v21 = vld [vmem:[#allocation6 + $0x334] ss:$8 sps:$4 sm:$0xff]  }
 0x174   :  { %8370 = vmatprep.mubr.bf16.mxu0 %v5385_v44  ;;  %v14115_v44 = vld [vmem:[#allocation3 + $0xf60] ss:$40 sps:$4 sm:$0xff]   ;;  %8827 = vmatprep.subr.bf16.mxu0 %v14365_v21 }
 0x175   :  { %7145 = vmatmul.mubr.bf16.gmra.mrb[124].mxu1 %v5500_v49  ;;  %v5550_v49 = vpack.c.bf16 %v14133_v54, %v14132_v52  ;;  %8828 = vmatpush1.bf16.msra.mxu0 %v14363_v42  ;;  %v14193_v52 = vld [vmem:[#allocation3 + $0x19f0] ss:$40 sps:$4 sm:$0xff]   ;;  %v14200_v54 = vld [vmem:[#allocation3 + $0x1a44] ss:$40 sps:$4 sm:$0xff]  }
 0x176   :  { %7154 = vmatprep.mubr.bf16.mxu1 %v5511_v50  ;;  %v5561_v50 = vpack.c.bf16 %v14142_v57, %v14140_v55  ;;  %v14202_v55 = vld [vmem:[#allocation3 + $0x1a94] ss:$40 sps:$4 sm:$0xff]  }
 0x177   :  { %v14182_v57 = vld [vmem:[#allocation3 + $0x12d4] ss:$40 sps:$4 sm:$0xff]  }
 0x17b   :  { %8371 = vmatmul.mubr.bf16.gmra.mrb[76].mxu0 %v5384_v59  ;;  %v5434_v59 = vpack.c.bf16 %v14115_v44, %v14114_v43  ;;  %v14174_v43 = vld [vmem:[#allocation3 + $0x1230] ss:$40 sps:$4 sm:$0xff]   ;;  %v14175_v44 = vld [vmem:[#allocation3 + $0x1280] ss:$40 sps:$4 sm:$0xff]  }
 0x17c   :  { %8380 = vmatprep.mubr.bf16.mxu0 %v5395_v53  ;;  %v5445_v53 = vpack.c.bf16 %v14124_v58, %v14122_v48  ;;  %v14192_v48 = vld [vmem:[#allocation3 + $0x19a0] ss:$40 sps:$4 sm:$0xff]   ;;  %v14184_v58 = vld [vmem:[#allocation3 + $0x1324] ss:$40 sps:$4 sm:$0xff]   ;;  %v5484_v5 = vpack.c.bf16 %v14175_v44, %v14174_v43  ;;  %v14256_v44 = vld [vmem:[#allocation3 + $0x1d10] ss:$40 sps:$4 sm:$0xff]  }
 0x17d   :  { %7155 = vmatmul.mubr.bf16.gmra.mrb[128].mxu1 %v5510_v60  ;;  %v5571_v60 = vpack.c.bf16 %v14154_v63, %v14152_v62  ;;  %v5600_v4 = vpack.c.bf16 %v14193_v52, %v14192_v48  ;;  %v14194_v62 = vld [vmem:[#allocation3 + $0x1374] ss:$40 sps:$4 sm:$0xff]   ;;  %v14196_v63 = vld [vmem:[#allocation3 + $0x13c4] ss:$40 sps:$4 sm:$0xff]   ;;  %v14255_v43 = vld [vmem:[#allocation3 + $0x1cc0] ss:$40 sps:$4 sm:$0xff]  }
 0x17e   :  { %7164 = vmatprep.mubr.bf16.mxu1 %v5521_v13  ;;  %v14138_v13 = vld [vmem:[#allocation3 + $0x1050] ss:$40 sps:$4 sm:$0xff]   ;;  %v14266_v48 = vld [vmem:[#allocation3 + $0x1d64] ss:$40 sps:$4 sm:$0xff]   ;;  %v14268_v52 = vld [vmem:[#allocation3 + $0x1db4] ss:$40 sps:$4 sm:$0xff]  }
 0x183   :  { %8381 = vmatmul.mubr.bf16.gmra.mrb[80].mxu0 %v5394_v61  ;;  %v5455_v61 = vpack.c.bf16 %v14136_v6, %v14134_v27  ;;  %v5610_v27 = vpack.c.bf16 %v14205_v25, %v14204_v23  ;;  %v14278_v23 = vld [vmem:[#allocation3 + $0x1e04] ss:$40 sps:$4 sm:$0xff]   ;;  %v14280_v25 = vld [vmem:[#allocation3 + $0x1e54] ss:$40 sps:$4 sm:$0xff]  }
 0x184   :  { %8390 = vmatprep.mubr.bf16.mxu0 %v5405_v14  ;;  %v14139_v14 = vld [vmem:[#allocation3 + $0x10a0] ss:$40 sps:$4 sm:$0xff]  }
 0x185   :  { %7165 = vmatmul.mubr.bf16.gmra.mrb[132].mxu1 %v5520_v11  ;;  %v5454_v31 = vpack.c.bf16 %v14139_v14, %v14138_v13  ;;  %v5581_v11 = vpack.c.bf16 %v14166_v18, %v14164_v9  ;;  %v14219_v13 = vld [vmem:[#allocation3 + $0x1ae0] ss:$40 sps:$4 sm:$0xff]   ;;  %v14220_v14 = vld [vmem:[#allocation3 + $0x1b30] ss:$40 sps:$4 sm:$0xff]   ;;  %v14206_v9 = vld [vmem:[#allocation3 + $0x1414] ss:$40 sps:$4 sm:$0xff]  }
 0x186   :  { %7174 = vmatprep.mubr.bf16.mxu1 %v5531_v12  ;;  %v14150_v12 = vld [vmem:[#allocation3 + $0x10f0] ss:$40 sps:$4 sm:$0xff]   ;;  %v14208_v18 = vld [vmem:[#allocation3 + $0x1464] ss:$40 sps:$4 sm:$0xff]  }
 0x18b   :  { %8391 = vmatmul.mubr.bf16.gmra.mrb[84].mxu0 %v5404_v33  ;;  %v5465_v33 = vpack.c.bf16 %v14148_v22, %v14146_v20  ;;  %v5620_v20 = vpack.c.bf16 %v14220_v14, %v14219_v13  ;;  %v14283_v13 = vld [vmem:[#allocation3 + $0x1e50] ss:$40 sps:$4 sm:$0xff]   ;;  %v14290_v14 = vld [vmem:[#allocation3 + $0x1ea4] ss:$40 sps:$4 sm:$0xff]  }
 0x18c   :  { %8400 = vmatprep.mubr.bf16.mxu0 %v5415_v24  ;;  %v14151_v24 = vld [vmem:[#allocation3 + $0x1140] ss:$40 sps:$4 sm:$0xff]  }
 0x18d   :  { %7175 = vmatmul.mubr.bf16.gmra.mrb[136].mxu1 %v5530_v2  ;;  %v5464_v1 = vpack.c.bf16 %v14151_v24, %v14150_v12  ;;  %v5591_v2 = vpack.c.bf16 %v14178_v30, %v14176_v15  ;;  %v14221_v12 = vld [vmem:[#allocation3 + $0x14b4] ss:$40 sps:$4 sm:$0xff]   ;;  %v14231_v24 = vld [vmem:[#allocation3 + $0x1b80] ss:$40 sps:$4 sm:$0xff]   ;;  %v14223_v30 = vld [vmem:[#allocation3 + $0x1504] ss:$40 sps:$4 sm:$0xff]  }
 0x18e   :  { %7184 = vmatprep.mubr.bf16.mxu1 %v5541_v35  ;;  %v14162_v35 = vld [vmem:[#allocation3 + $0x1190] ss:$40 sps:$4 sm:$0xff]   ;;  %v14241_v15 = vld [vmem:[#allocation3 + $0x1c74] ss:$40 sps:$4 sm:$0xff]  }
 0x193   :  { %8401 = vmatmul.mubr.bf16.gmra.mrb[88].mxu0 %v5414_v38  ;;  %v5475_v38 = vpack.c.bf16 %v14160_v34, %v14158_v32  ;;  %v14414_v32 = vld [vmem:[#allocation6 + $0x340] ss:$8 sps:$4 sm:$0xff]   ;;  %v14416_v34 = vld [vmem:[#allocation6 + $0x344] ss:$8 sps:$4 sm:$0xff]  }
 0x194   :  { %8410 = vmatprep.mubr.bf16.mxu0 %v5425_v37  ;;  %v14163_v37 = vld [vmem:[#allocation3 + $0x11e0] ss:$40 sps:$4 sm:$0xff]   ;;  %8829 = vmatprep.subr.bf16.mxu0 %v14416_v34 }
 0x195   :  { %7185 = vmatmul.mubr.bf16.gmra.mrb[140].mxu1 %v5540_v45  ;;  %v5590_v45 = vpack.c.bf16 %v14181_v3, %v14180_v41  ;;  %8830 = vmatpush1.bf16.msra.mxu0 %v14414_v32  ;;  %v14244_v41 = vld [vmem:[#allocation3 + $0x1c70] ss:$40 sps:$4 sm:$0xff]   ;;  %v14251_v3 = vld [vmem:[#allocation3 + $0x1cc4] ss:$40 sps:$4 sm:$0xff]  }
 0x196   :  { %7194 = vmatprep.mubr.bf16.mxu1 %v5551_v47  ;;  %v5601_v47 = vpack.c.bf16 %v14190_v17, %v14188_v40  ;;  %v14253_v40 = vld [vmem:[#allocation3 + $0x1d14] ss:$40 sps:$4 sm:$0xff]  }
 0x197   :  { %v14233_v17 = vld [vmem:[#allocation3 + $0x1554] ss:$40 sps:$4 sm:$0xff]  }
 0x19b   :  { %8411 = vmatmul.mubr.bf16.gmra.mrb[92].mxu0 %v5424_v46  ;;  %v5474_v46 = vpack.c.bf16 %v14163_v37, %v14162_v35  ;;  %v14225_v35 = vld [vmem:[#allocation3 + $0x14b0] ss:$40 sps:$4 sm:$0xff]   ;;  %v14226_v37 = vld [vmem:[#allocation3 + $0x1500] ss:$40 sps:$4 sm:$0xff]  }
 0x19c   :  { %8420 = vmatprep.mubr.bf16.mxu0 %v5435_v51  ;;  %v5485_v51 = vpack.c.bf16 %v14172_v19, %v14170_v39  ;;  %v14243_v39 = vld [vmem:[#allocation3 + $0x1c20] ss:$40 sps:$4 sm:$0xff]   ;;  %v14235_v19 = vld [vmem:[#allocation3 + $0x15a4] ss:$40 sps:$4 sm:$0xff]   ;;  %v5524_v21 = vpack.c.bf16 %v14226_v37, %v14225_v35  ;;  %v14307_v37 = vld [vmem:[#allocation3 + $0x1f90] ss:$40 sps:$4 sm:$0xff]  }
 0x19d   :  { %7195 = vmatmul.mubr.bf16.gmra.mrb[144].mxu1 %v5550_v49  ;;  %v5611_v49 = vpack.c.bf16 %v14202_v55, %v14200_v54  ;;  %v5640_v42 = vpack.c.bf16 %v14244_v41, %v14243_v39  ;;  %v14245_v54 = vld [vmem:[#allocation3 + $0x15f4] ss:$40 sps:$4 sm:$0xff]   ;;  %v14247_v55 = vld [vmem:[#allocation3 + $0x1644] ss:$40 sps:$4 sm:$0xff]   ;;  %v14306_v35 = vld [vmem:[#allocation3 + $0x1f40] ss:$40 sps:$4 sm:$0xff]  }
 0x19e   :  { %7204 = vmatprep.mubr.bf16.mxu1 %v5561_v50  ;;  %v14186_v50 = vld [vmem:[#allocation3 + $0x12d0] ss:$40 sps:$4 sm:$0xff]   ;;  %v14317_v39 = vld [vmem:[#allocation3 + $0x1fe4] ss:$40 sps:$4 sm:$0xff]   ;;  %v14319_v41 = vld [vmem:[#allocation3 + $0x2034] ss:$40 sps:$4 sm:$0xff]  }
 0x1a3   :  { %8421 = vmatmul.mubr.bf16.gmra.mrb[96].mxu0 %v5434_v59  ;;  %v5495_v59 = vpack.c.bf16 %v14184_v58, %v14182_v57  ;;  %v5650_v57 = vpack.c.bf16 %v14256_v44, %v14255_v43  ;;  %v14329_v43 = vld [vmem:[#allocation3 + $0x2084] ss:$40 sps:$4 sm:$0xff]   ;;  %v14331_v44 = vld [vmem:[#allocation3 + $0x20d4] ss:$40 sps:$4 sm:$0xff]  }
 0x1a4   :  { %8430 = vmatprep.mubr.bf16.mxu0 %v5445_v53  ;;  %v14187_v53 = vld [vmem:[#allocation3 + $0x1320] ss:$40 sps:$4 sm:$0xff]  }
 0x1a5   :  { %7205 = vmatmul.mubr.bf16.gmra.mrb[148].mxu1 %v5560_v7  ;;  %v5494_v6 = vpack.c.bf16 %v14187_v53, %v14186_v50  ;;  %v5621_v7 = vpack.c.bf16 %v14217_v8, %v14215_v56  ;;  %v14270_v50 = vld [vmem:[#allocation3 + $0x1d60] ss:$40 sps:$4 sm:$0xff]   ;;  %v14271_v53 = vld [vmem:[#allocation3 + $0x1db0] ss:$40 sps:$4 sm:$0xff]   ;;  %v14257_v56 = vld [vmem:[#allocation3 + $0x1694] ss:$40 sps:$4 sm:$0xff]  }
 0x1a6   :  { %7214 = vmatprep.mubr.bf16.mxu1 %v5571_v60  ;;  %v14198_v60 = vld [vmem:[#allocation3 + $0x1370] ss:$40 sps:$4 sm:$0xff]   ;;  %v14259_v8 = vld [vmem:[#allocation3 + $0x16e4] ss:$40 sps:$4 sm:$0xff]  }
 0x1ab   :  { %8431 = vmatmul.mubr.bf16.gmra.mrb[100].mxu0 %v5444_v10  ;;  %v5505_v10 = vpack.c.bf16 %v14196_v63, %v14194_v62  ;;  %v5660_v62 = vpack.c.bf16 %v14271_v53, %v14270_v50  ;;  %v14334_v50 = vld [vmem:[#allocation3 + $0x20d0] ss:$40 sps:$4 sm:$0xff]   ;;  %v14341_v53 = vld [vmem:[#allocation3 + $0x2124] ss:$40 sps:$4 sm:$0xff]  }
 0x1ac   :  { %8440 = vmatprep.mubr.bf16.mxu0 %v5455_v61  ;;  %v14199_v61 = vld [vmem:[#allocation3 + $0x13c0] ss:$40 sps:$4 sm:$0xff]  }
 0x1ad   :  { %7215 = vmatmul.mubr.bf16.gmra.mrb[152].mxu1 %v5570_v29  ;;  %v5504_v22 = vpack.c.bf16 %v14199_v61, %v14198_v60  ;;  %v5631_v29 = vpack.c.bf16 %v14229_v0, %v14227_v16  ;;  %v14272_v60 = vld [vmem:[#allocation3 + $0x1734] ss:$40 sps:$4 sm:$0xff]   ;;  %v14282_v61 = vld [vmem:[#allocation3 + $0x1e00] ss:$40 sps:$4 sm:$0xff]   ;;  %v14274_v0 = vld [vmem:[#allocation3 + $0x1784] ss:$40 sps:$4 sm:$0xff]  }
 0x1ae   :  { %7224 = vmatprep.mubr.bf16.mxu1 %v5581_v11  ;;  %v14213_v11 = vld [vmem:[#allocation3 + $0x1410] ss:$40 sps:$4 sm:$0xff]   ;;  %v14292_v16 = vld [vmem:[#allocation3 + $0x1ef4] ss:$40 sps:$4 sm:$0xff]  }
 0x1b3   :  { %8441 = vmatmul.mubr.bf16.gmra.mrb[104].mxu0 %v5454_v31  ;;  %v5515_v31 = vpack.c.bf16 %v14208_v18, %v14206_v9  ;;  %v14465_v9 = vld [vmem:[#allocation6 + $0x350] ss:$8 sps:$4 sm:$0xff]   ;;  %v14467_v18 = vld [vmem:[#allocation6 + $0x354] ss:$8 sps:$4 sm:$0xff]  }
 0x1b4   :  { %8450 = vmatprep.mubr.bf16.mxu0 %v5465_v33  ;;  %v14214_v33 = vld [vmem:[#allocation3 + $0x1460] ss:$40 sps:$4 sm:$0xff]   ;;  %8831 = vmatprep.subr.bf16.mxu0 %v14467_v18 }
 0x1b5   :  { %7225 = vmatmul.mubr.bf16.gmra.mrb[156].mxu1 %v5580_v36  ;;  %v5630_v36 = vpack.c.bf16 %v14232_v26, %v14231_v24  ;;  %8832 = vmatpush1.bf16.msra.mxu0 %v14465_v9  ;;  %v14295_v24 = vld [vmem:[#allocation3 + $0x1ef0] ss:$40 sps:$4 sm:$0xff]   ;;  %v14302_v26 = vld [vmem:[#allocation3 + $0x1f44] ss:$40 sps:$4 sm:$0xff]  }
 0x1b6   :  { %7234 = vmatprep.mubr.bf16.mxu1 %v5591_v2  ;;  %v5641_v2 = vpack.c.bf16 %v14241_v15, %v14239_v28  ;;  %v14304_v28 = vld [vmem:[#allocation3 + $0x1f94] ss:$40 sps:$4 sm:$0xff]  }
 0x1b7   :  { %v14284_v15 = vld [vmem:[#allocation3 + $0x17d4] ss:$40 sps:$4 sm:$0xff]  }
 0x1bb   :  { %8451 = vmatmul.mubr.bf16.gmra.mrb[108].mxu0 %v5464_v1  ;;  %v5514_v1 = vpack.c.bf16 %v14214_v33, %v14213_v11  ;;  %v14276_v11 = vld [vmem:[#allocation3 + $0x1730] ss:$40 sps:$4 sm:$0xff]   ;;  %v14277_v33 = vld [vmem:[#allocation3 + $0x1780] ss:$40 sps:$4 sm:$0xff]  }
 0x1bc   :  { %8460 = vmatprep.mubr.bf16.mxu0 %v5475_v38  ;;  %v5525_v38 = vpack.c.bf16 %v14223_v30, %v14221_v12  ;;  %v14294_v12 = vld [vmem:[#allocation3 + $0x1ea0] ss:$40 sps:$4 sm:$0xff]   ;;  %v14286_v30 = vld [vmem:[#allocation3 + $0x1824] ss:$40 sps:$4 sm:$0xff]   ;;  %v5564_v34 = vpack.c.bf16 %v14277_v33, %v14276_v11  ;;  %v14358_v33 = vld [vmem:[#allocation3 + $0x2210] ss:$40 sps:$4 sm:$0xff]  }
 0x1bd   :  { %7235 = vmatmul.mubr.bf16.gmra.mrb[160].mxu1 %v5590_v45  ;;  %v5651_v45 = vpack.c.bf16 %v14253_v40, %v14251_v3  ;;  %v5680_v32 = vpack.c.bf16 %v14295_v24, %v14294_v12  ;;  %v14296_v3 = vld [vmem:[#allocation3 + $0x1874] ss:$40 sps:$4 sm:$0xff]   ;;  %v14298_v40 = vld [vmem:[#allocation3 + $0x18c4] ss:$40 sps:$4 sm:$0xff]   ;;  %v14357_v11 = vld [vmem:[#allocation3 + $0x21c0] ss:$40 sps:$4 sm:$0xff]  }
 0x1be   :  { %7244 = vmatprep.mubr.bf16.mxu1 %v5601_v47  ;;  %v14237_v47 = vld [vmem:[#allocation3 + $0x1550] ss:$40 sps:$4 sm:$0xff]   ;;  %v14368_v12 = vld [vmem:[#allocation3 + $0x2264] ss:$40 sps:$4 sm:$0xff]   ;;  %v14370_v24 = vld [vmem:[#allocation3 + $0x22b4] ss:$40 sps:$4 sm:$0xff]  }
 0x1c3   :  { %8461 = vmatmul.mubr.bf16.gmra.mrb[112].mxu0 %v5474_v46  ;;  %v5535_v46 = vpack.c.bf16 %v14235_v19, %v14233_v17  ;;  %v5690_v17 = vpack.c.bf16 %v14307_v37, %v14306_v35  ;;  %v14380_v35 = vld [vmem:[#allocation3 + $0x2304] ss:$40 sps:$4 sm:$0xff]   ;;  %v14382_v37 = vld [vmem:[#allocation3 + $0x2354] ss:$40 sps:$4 sm:$0xff]  }
 0x1c4   :  { %8470 = vmatprep.mubr.bf16.mxu0 %v5485_v51  ;;  %v14238_v51 = vld [vmem:[#allocation3 + $0x15a0] ss:$40 sps:$4 sm:$0xff]  }
 0x1c5   :  { %7245 = vmatmul.mubr.bf16.gmra.mrb[164].mxu1 %v5600_v4  ;;  %v5534_v58 = vpack.c.bf16 %v14238_v51, %v14237_v47  ;;  %v5661_v4 = vpack.c.bf16 %v14268_v52, %v14266_v48  ;;  %v14321_v47 = vld [vmem:[#allocation3 + $0x1fe0] ss:$40 sps:$4 sm:$0xff]   ;;  %v14322_v51 = vld [vmem:[#allocation3 + $0x2030] ss:$40 sps:$4 sm:$0xff]   ;;  %v14308_v48 = vld [vmem:[#allocation3 + $0x1914] ss:$40 sps:$4 sm:$0xff]  }
 0x1c6   :  { %7254 = vmatprep.mubr.bf16.mxu1 %v5611_v49  ;;  %v14249_v49 = vld [vmem:[#allocation3 + $0x15f0] ss:$40 sps:$4 sm:$0xff]   ;;  %v14310_v52 = vld [vmem:[#allocation3 + $0x1964] ss:$40 sps:$4 sm:$0xff]  }
 0x1cb   :  { %8471 = vmatmul.mubr.bf16.gmra.mrb[116].mxu0 %v5484_v5  ;;  %v5545_v5 = vpack.c.bf16 %v14247_v55, %v14245_v54  ;;  %v5700_v54 = vpack.c.bf16 %v14322_v51, %v14321_v47  ;;  %v14392_v47 = vld [vmem:[#allocation3 + $0x23a4] ss:$40 sps:$4 sm:$0xff]   ;;  %v14394_v51 = vld [vmem:[#allocation3 + $0x23f4] ss:$40 sps:$4 sm:$0xff]  }
 0x1cc   :  { %8480 = vmatprep.mubr.bf16.mxu0 %v5495_v59  ;;  %v14250_v59 = vld [vmem:[#allocation3 + $0x1640] ss:$40 sps:$4 sm:$0xff]  }
 0x1cd   :  { %7255 = vmatmul.mubr.bf16.gmra.mrb[168].mxu1 %v5610_v27  ;;  %v5544_v63 = vpack.c.bf16 %v14250_v59, %v14249_v49  ;;  %v5671_v27 = vpack.c.bf16 %v14280_v25, %v14278_v23  ;;  %v14323_v49 = vld [vmem:[#allocation3 + $0x19b4] ss:$40 sps:$4 sm:$0xff]   ;;  %v14333_v59 = vld [vmem:[#allocation3 + $0x2080] ss:$40 sps:$4 sm:$0xff]   ;;  %v14325_v25 = vld [vmem:[#allocation3 + $0x1a04] ss:$40 sps:$4 sm:$0xff]  }
 0x1ce   :  { %7264 = vmatprep.mubr.bf16.mxu1 %v5621_v7  ;;  %v14264_v7 = vld [vmem:[#allocation3 + $0x1690] ss:$40 sps:$4 sm:$0xff]   ;;  %v14343_v23 = vld [vmem:[#allocation3 + $0x2174] ss:$40 sps:$4 sm:$0xff]  }
 0x1d3   :  { %8481 = vmatmul.mubr.bf16.gmra.mrb[120].mxu0 %v5494_v6  ;;  %v5555_v6 = vpack.c.bf16 %v14259_v8, %v14257_v56  ;;  %v14516_v56 = vld [vmem:[#allocation6 + $0x360] ss:$8 sps:$4 sm:$0xff]   ;;  %v14518_v8 = vld [vmem:[#allocation6 + $0x364] ss:$8 sps:$4 sm:$0xff]  }
 0x1d4   :  { %8490 = vmatprep.mubr.bf16.mxu0 %v5505_v10  ;;  %v14265_v10 = vld [vmem:[#allocation3 + $0x16e0] ss:$40 sps:$4 sm:$0xff]   ;;  %8833 = vmatprep.subr.bf16.mxu0 %v14518_v8  ;;  %v14386_v8 = vld [vmem:[#allocation3 + $0x1cd4] ss:$40 sps:$4 sm:$0xff]  }
 0x1d5   :  { %7265 = vmatmul.mubr.bf16.gmra.mrb[172].mxu1 %v5620_v20  ;;  %v5670_v20 = vpack.c.bf16 %v14283_v13, %v14282_v61  ;;  %8834 = vmatpush1.bf16.msra.mxu0 %v14516_v56  ;;  %v14346_v61 = vld [vmem:[#allocation3 + $0x2170] ss:$40 sps:$4 sm:$0xff]   ;;  %v14353_v13 = vld [vmem:[#allocation3 + $0x21c4] ss:$40 sps:$4 sm:$0xff]   ;;  %v14583_v56 = vld [vmem:[#allocation6 + $0x394] ss:$8 sps:$4 sm:$0xff]  }
 0x1d6   :  { %7274 = vmatprep.mubr.bf16.mxu1 %v5631_v29  ;;  %v5681_v29 = vpack.c.bf16 %v14292_v16, %v14290_v14  ;;  %v14355_v14 = vld [vmem:[#allocation3 + $0x2214] ss:$40 sps:$4 sm:$0xff]  }
 0x1d7   :  { %v14335_v16 = vld [vmem:[#allocation3 + $0x1a54] ss:$40 sps:$4 sm:$0xff]  }
 0x1db   :  { %8491 = vmatmul.mubr.bf16.gmra.mrb[124].mxu0 %v5504_v22  ;;  %v5554_v22 = vpack.c.bf16 %v14265_v10, %v14264_v7  ;;  %v14327_v7 = vld [vmem:[#allocation3 + $0x19b0] ss:$40 sps:$4 sm:$0xff]   ;;  %v14328_v10 = vld [vmem:[#allocation3 + $0x1a00] ss:$40 sps:$4 sm:$0xff]  }
 0x1dc   :  { %8500 = vmatprep.mubr.bf16.mxu0 %v5515_v31  ;;  %v5565_v31 = vpack.c.bf16 %v14274_v0, %v14272_v60  ;;  %v14345_v60 = vld [vmem:[#allocation3 + $0x2120] ss:$40 sps:$4 sm:$0xff]   ;;  %v14337_v0 = vld [vmem:[#allocation3 + $0x1aa4] ss:$40 sps:$4 sm:$0xff]   ;;  %v5604_v18 = vpack.c.bf16 %v14328_v10, %v14327_v7 }
 0x1dd   :  { %7275 = vmatmul.mubr.bf16.gmra.mrb[176].mxu1 %v5630_v36  ;;  %v5691_v36 = vpack.c.bf16 %v14304_v28, %v14302_v26  ;;  %v5720_v9 = vpack.c.bf16 %v14346_v61, %v14345_v60  ;;  %v14347_v26 = vld [vmem:[#allocation3 + $0x1af4] ss:$40 sps:$4 sm:$0xff]   ;;  %v14349_v28 = vld [vmem:[#allocation3 + $0x1b44] ss:$40 sps:$4 sm:$0xff]   ;;  %v14390_v60 = vld [vmem:[#allocation3 + $0x1cd0] ss:$40 sps:$4 sm:$0xff]  }
 0x1de   :  { %7284 = vmatprep.mubr.bf16.mxu1 %v5641_v2  ;;  %v14288_v2 = vld [vmem:[#allocation3 + $0x17d0] ss:$40 sps:$4 sm:$0xff]   ;;  %v14391_v61 = vld [vmem:[#allocation3 + $0x1d20] ss:$40 sps:$4 sm:$0xff]  }
 0x1e3   :  { %8501 = vmatmul.mubr.bf16.gmra.mrb[128].mxu0 %v5514_v1  ;;  %v5575_v1 = vpack.c.bf16 %v14286_v30, %v14284_v15  ;;  %v5730_v15 = vpack.c.bf16 %v14358_v33, %v14357_v11  ;;  %v5654_v33 = vpack.c.bf16 %v14391_v61, %v14390_v60  ;;  %v14470_v60 = vld [vmem:[#allocation3 + $0x2764] ss:$40 sps:$4 sm:$0xff]   ;;  %v14472_v61 = vld [vmem:[#allocation3 + $0x27b4] ss:$40 sps:$4 sm:$0xff]  }
 0x1e4   :  { %8510 = vmatprep.mubr.bf16.mxu0 %v5525_v38  ;;  %v14289_v38 = vld [vmem:[#allocation3 + $0x1820] ss:$40 sps:$4 sm:$0xff]  }
 0x1e5   :  { %7285 = vmatmul.mubr.bf16.gmra.mrb[180].mxu1 %v5640_v42  ;;  %v5574_v19 = vpack.c.bf16 %v14289_v38, %v14288_v2  ;;  %v5701_v42 = vpack.c.bf16 %v14319_v41, %v14317_v39  ;;  %v14372_v2 = vld [vmem:[#allocation3 + $0x2260] ss:$40 sps:$4 sm:$0xff]   ;;  %v14373_v38 = vld [vmem:[#allocation3 + $0x22b0] ss:$40 sps:$4 sm:$0xff]   ;;  %v14359_v39 = vld [vmem:[#allocation3 + $0x1b94] ss:$40 sps:$4 sm:$0xff]  }
 0x1e6   :  { %7294 = vmatprep.mubr.bf16.mxu1 %v5651_v45  ;;  %v14300_v45 = vld [vmem:[#allocation3 + $0x1870] ss:$40 sps:$4 sm:$0xff]   ;;  %v14361_v41 = vld [vmem:[#allocation3 + $0x1be4] ss:$40 sps:$4 sm:$0xff]  }
 0x1eb   :  { %8511 = vmatmul.mubr.bf16.gmra.mrb[132].mxu0 %v5524_v21  ;;  %v5585_v21 = vpack.c.bf16 %v14298_v40, %v14296_v3  ;;  %v5740_v3 = vpack.c.bf16 %v14373_v38, %v14372_v2  ;;  %v14619_v2 = vld [vmem:[#allocation6 + $0x3d4] ss:$8 sps:$4 sm:$0xff]  }
 0x1ec   :  { %8520 = vmatprep.mubr.bf16.mxu0 %v5535_v46  ;;  %v14301_v46 = vld [vmem:[#allocation3 + $0x18c0] ss:$40 sps:$4 sm:$0xff]   ;;  %v14410_v38 = vld [vmem:[#allocation3 + $0x1e14] ss:$40 sps:$4 sm:$0xff]  }
 0x1ed   :  { %7295 = vmatmul.mubr.bf16.gmra.mrb[184].mxu1 %v5650_v57  ;;  %v5584_v55 = vpack.c.bf16 %v14301_v46, %v14300_v45  ;;  %v5711_v57 = vpack.c.bf16 %v14331_v44, %v14329_v43  ;;  %v14384_v45 = vld [vmem:[#allocation3 + $0x2300] ss:$40 sps:$4 sm:$0xff]   ;;  %v14385_v46 = vld [vmem:[#allocation3 + $0x2350] ss:$40 sps:$4 sm:$0xff]   ;;  %v14565_v44 = vld [vmem:[#allocation6 + $0x374] ss:$8 sps:$4 sm:$0xff]  }
 0x1ee   :  { %7304 = vmatprep.mubr.bf16.mxu1 %v5661_v4  ;;  %v14315_v4 = vld [vmem:[#allocation3 + $0x1910] ss:$40 sps:$4 sm:$0xff]   ;;  %8835 = vmatprep.subr.bf16.mxu0 %v14565_v44  ;;  %v14425_v44 = vld [vmem:[#allocation3 + $0x1eb4] ss:$40 sps:$4 sm:$0xff]  }
 0x1ef   :  { %v14563_v43 = vld [vmem:[#allocation6 + $0x370] ss:$8 sps:$4 sm:$0xff]  }
 0x1f0   :  { %8836 = vmatpush1.bf16.msra.mxu0 %v14563_v43  ;;  %v14637_v43 = vld [vmem:[#allocation6 + $0x3f4] ss:$8 sps:$4 sm:$0xff]  }
 0x1f3   :  { %8521 = vmatmul.mubr.bf16.gmra.mrb[136].mxu0 %v5534_v58  ;;  %v5595_v58 = vpack.c.bf16 %v14310_v52, %v14308_v48  ;;  %v14374_v48 = vld [vmem:[#allocation3 + $0x1c34] ss:$40 sps:$4 sm:$0xff]   ;;  %v14376_v52 = vld [vmem:[#allocation3 + $0x1c84] ss:$40 sps:$4 sm:$0xff]  }
 0x1f4   :  { %8530 = vmatprep.mubr.bf16.mxu0 %v5545_v5  ;;  %v14316_v5 = vld [vmem:[#allocation3 + $0x1960] ss:$40 sps:$4 sm:$0xff]  }
 0x1f5   :  { %7305 = vmatmul.mubr.bf16.gmra.mrb[188].mxu1 %v5660_v62  ;;  %v5710_v62 = vpack.c.bf16 %v14334_v50, %v14333_v59  ;;  %v14396_v59 = vld [vmem:[#allocation3 + $0x23a0] ss:$40 sps:$4 sm:$0xff]   ;;  %v14397_v50 = vld [vmem:[#allocation3 + $0x23f0] ss:$40 sps:$4 sm:$0xff]  }
 0x1f6   :  { %7314 = vmatprep.mubr.bf16.mxu1 %v5671_v27  ;;  %v5721_v27 = vpack.c.bf16 %v14343_v23, %v14341_v53  ;;  %v14572_v53 = vld [vmem:[#allocation6 + $0x380] ss:$8 sps:$4 sm:$0xff]   ;;  %v14404_v23 = vld [vmem:[#allocation3 + $0x2444] ss:$40 sps:$4 sm:$0xff]  }
 0x1fb   :  { %8531 = vmatmul.mubr.bf16.gmra.mrb[140].mxu0 %v5544_v63  ;;  %v5594_v63 = vpack.c.bf16 %v14316_v5, %v14315_v4  ;;  %v14378_v4 = vld [vmem:[#allocation3 + $0x1c30] ss:$40 sps:$4 sm:$0xff]   ;;  %v14379_v5 = vld [vmem:[#allocation3 + $0x1c80] ss:$40 sps:$4 sm:$0xff]  }
 0x1fc   :  { %8540 = vmatprep.mubr.bf16.mxu0 %v5555_v6  ;;  %v5605_v6 = vpack.c.bf16 %v14325_v25, %v14323_v49  ;;  %v14574_v49 = vld [vmem:[#allocation6 + $0x384] ss:$8 sps:$4 sm:$0xff]   ;;  %v14406_v25 = vld [vmem:[#allocation3 + $0x2494] ss:$40 sps:$4 sm:$0xff]  }
 0x1fd   :  { %7315 = vmatmul.mubr.bf16.gmra.mrb[192].mxu1 %v5670_v20  ;;  %v5731_v20 = vpack.c.bf16 %v14355_v14, %v14353_v13  ;;  %8837 = vmatprep.subr.bf16.mxu0 %v14574_v49  ;;  %v5771_v7 = vpack.c.bf16 %v14406_v25, %v14404_v23  ;;  %v14592_v13 = vld [vmem:[#allocation6 + $0x3a4] ss:$8 sps:$4 sm:$0xff]   ;;  %v14408_v14 = vld [vmem:[#allocation3 + $0x2440] ss:$40 sps:$4 sm:$0xff]   ;;  %v14437_v23 = vld [vmem:[#allocation3 + $0x1f54] ss:$40 sps:$4 sm:$0xff]  }
 0x1fe   :  { %7324 = vmatprep.mubr.bf16.mxu1 %v5681_v29  ;;  %v14339_v29 = vld [vmem:[#allocation3 + $0x1a50] ss:$40 sps:$4 sm:$0xff]   ;;  %8838 = vmatpush1.bf16.msra.mxu0 %v14572_v53  ;;  %v14447_v49 = vld [vmem:[#allocation3 + $0x2620] ss:$40 sps:$4 sm:$0xff]   ;;  %v14457_v53 = vld [vmem:[#allocation3 + $0x2714] ss:$40 sps:$4 sm:$0xff]  }
 0x1ff   :  { %8839 = vmatprep.subr.bf16.mxu0 %v14583_v56  ;;  %v14439_v25 = vld [vmem:[#allocation3 + $0x1fa4] ss:$40 sps:$4 sm:$0xff]  }
 0x203   :  { %8541 = vmatmul.mubr.bf16.gmra.mrb[144].mxu0 %v5554_v22  ;;  %v5615_v22 = vpack.c.bf16 %v14337_v0, %v14335_v16  ;;  %v14409_v16 = vld [vmem:[#allocation3 + $0x2490] ss:$40 sps:$4 sm:$0xff]   ;;  %v14590_v0 = vld [vmem:[#allocation6 + $0x3a0] ss:$8 sps:$4 sm:$0xff]  }
 0x204   :  { %8550 = vmatprep.mubr.bf16.mxu0 %v5565_v31  ;;  %v14340_v31 = vld [vmem:[#allocation3 + $0x1aa0] ss:$40 sps:$4 sm:$0xff]   ;;  %v5770_v11 = vpack.c.bf16 %v14409_v16, %v14408_v14  ;;  %v14451_v14 = vld [vmem:[#allocation3 + $0x2044] ss:$40 sps:$4 sm:$0xff]  }
 0x205   :  { %7325 = vmatmul.mubr.bf16.gmra.mrb[196].mxu1 %v5680_v32  ;;  %v5614_v30 = vpack.c.bf16 %v14340_v31, %v14339_v29  ;;  %v5741_v32 = vpack.c.bf16 %v14370_v24, %v14368_v12  ;;  %v14400_v29 = vld [vmem:[#allocation3 + $0x1dc4] ss:$40 sps:$4 sm:$0xff]   ;;  %v14599_v31 = vld [vmem:[#allocation6 + $0x3b0] ss:$8 sps:$4 sm:$0xff]  }
 0x206   :  { %7334 = vmatprep.mubr.bf16.mxu1 %v5691_v36  ;;  %v14351_v36 = vld [vmem:[#allocation3 + $0x1af0] ss:$40 sps:$4 sm:$0xff]  }
 0x20b   :  { %8551 = vmatmul.mubr.bf16.gmra.mrb[148].mxu0 %v5564_v34  ;;  %v5625_v34 = vpack.c.bf16 %v14349_v28, %v14347_v26  ;;  %v14402_v26 = vld [vmem:[#allocation3 + $0x1d70] ss:$40 sps:$4 sm:$0xff]   ;;  %v14403_v28 = vld [vmem:[#allocation3 + $0x1dc0] ss:$40 sps:$4 sm:$0xff]  }
 0x20c   :  { %8560 = vmatprep.mubr.bf16.mxu0 %v5575_v1  ;;  %v14352_v1 = vld [vmem:[#allocation3 + $0x1b40] ss:$40 sps:$4 sm:$0xff]  }
 0x20d   :  { %7335 = vmatmul.mubr.bf16.gmra.mrb[200].mxu1 %v5690_v17  ;;  %v5624_v40 = vpack.c.bf16 %v14352_v1, %v14351_v36  ;;  %v5751_v17 = vpack.c.bf16 %v14382_v37, %v14380_v35  ;;  %v14431_v36 = vld [vmem:[#allocation3 + $0x2584] ss:$40 sps:$4 sm:$0xff]   ;;  %v14433_v1 = vld [vmem:[#allocation3 + $0x25d4] ss:$40 sps:$4 sm:$0xff]   ;;  %v14617_v37 = vld [vmem:[#allocation6 + $0x3d0] ss:$8 sps:$4 sm:$0xff]  }
 0x20e   :  { %7344 = vmatprep.mubr.bf16.mxu1 %v5701_v42  ;;  %v14366_v42 = vld [vmem:[#allocation3 + $0x1b90] ss:$40 sps:$4 sm:$0xff]   ;;  %v14412_v35 = vld [vmem:[#allocation3 + $0x1e64] ss:$40 sps:$4 sm:$0xff]  }
 0x213   :  { %8561 = vmatmul.mubr.bf16.gmra.mrb[152].mxu0 %v5574_v19  ;;  %v5635_v19 = vpack.c.bf16 %v14361_v41, %v14359_v39  ;;  %v5664_v41 = vpack.c.bf16 %v14403_v28, %v14402_v26  ;;  %v14463_v26 = vld [vmem:[#allocation3 + $0x20e4] ss:$40 sps:$4 sm:$0xff]  }
 0x214   :  { %8570 = vmatprep.mubr.bf16.mxu0 %v5585_v21  ;;  %v14367_v21 = vld [vmem:[#allocation3 + $0x1be0] ss:$40 sps:$4 sm:$0xff]  }
 0x215   :  { %7345 = vmatmul.mubr.bf16.gmra.mrb[204].mxu1 %v5700_v54  ;;  %v5750_v54 = vpack.c.bf16 %v14385_v46, %v14384_v45  ;;  %v14436_v45 = vld [vmem:[#allocation3 + $0x25d0] ss:$40 sps:$4 sm:$0xff]   ;;  %v14626_v46 = vld [vmem:[#allocation6 + $0x3e0] ss:$8 sps:$4 sm:$0xff]  }
 0x216   :  { %7354 = vmatprep.mubr.bf16.mxu1 %v5711_v57  ;;  %v5761_v57 = vpack.c.bf16 %v14394_v51, %v14392_v47  ;;  %v14443_v47 = vld [vmem:[#allocation3 + $0x2624] ss:$40 sps:$4 sm:$0xff]   ;;  %v14445_v51 = vld [vmem:[#allocation3 + $0x2674] ss:$40 sps:$4 sm:$0xff]  }
 0x21b   :  { %8571 = vmatmul.mubr.bf16.gmra.mrb[156].mxu0 %v5584_v55  ;;  %v5634_v55 = vpack.c.bf16 %v14367_v21, %v14366_v42  ;;  %v14628_v42 = vld [vmem:[#allocation6 + $0x3e4] ss:$8 sps:$4 sm:$0xff]   ;;  %v14435_v21 = vld [vmem:[#allocation3 + $0x2580] ss:$40 sps:$4 sm:$0xff]  }
 0x21c   :  { %8580 = vmatprep.mubr.bf16.mxu0 %v5595_v58  ;;  %v5645_v58 = vpack.c.bf16 %v14376_v52, %v14374_v48  ;;  %v14427_v48 = vld [vmem:[#allocation3 + $0x1f04] ss:$40 sps:$4 sm:$0xff]   ;;  %v14635_v52 = vld [vmem:[#allocation6 + $0x3f0] ss:$8 sps:$4 sm:$0xff]  }
 0x21d   :  { %7355 = vmatmul.mubr.bf16.gmra.mrb[208].mxu1 %v5710_v62  ;;  %v14388_v62 = vld [vmem:[#allocation3 + $0x1d24] ss:$40 sps:$4 sm:$0xff]  }
 0x21e   :  { %7364 = vmatprep.mubr.bf16.mxu1 %v5721_v27  ;;  %v5760_v27 = vpack.c.bf16 %v14397_v50, %v14396_v59  ;;  %v5655_v10 = vpack.c.bf16 %v14388_v62, %v14386_v8  ;;  %v14448_v59 = vld [vmem:[#allocation3 + $0x2670] ss:$40 sps:$4 sm:$0xff]   ;;  %v14455_v50 = vld [vmem:[#allocation3 + $0x26c4] ss:$40 sps:$4 sm:$0xff]  }
 0x21f   :  { %v5800_v56 = vpack.c.bf16 %v14448_v59, %v14447_v49  ;;  %v5811_v62 = vpack.c.bf16 %v14457_v53, %v14455_v50 }
 0x223   :  { %8581 = vmatmul.mubr.bf16.gmra.mrb[160].mxu0 %v5594_v63  ;;  %v14581_v63 = vld [vmem:[#allocation6 + $0x390] ss:$8 sps:$4 sm:$0xff]  }
 0x224   :  { %8590 = vmatprep.mubr.bf16.mxu0 %v5605_v6  ;;  %v5644_v6 = vpack.c.bf16 %v14379_v5, %v14378_v4  ;;  %8840 = vmatpush1.bf16.msra.mxu0 %v14581_v63  ;;  %v14429_v4 = vld [vmem:[#allocation3 + $0x1eb0] ss:$40 sps:$4 sm:$0xff]   ;;  %v14430_v5 = vld [vmem:[#allocation3 + $0x1f00] ss:$40 sps:$4 sm:$0xff]   ;;  %v5695_v63 = vpack.c.bf16 %v14439_v25, %v14437_v23 }
 0x225   :  { %7365 = vmatmul.mubr.bf16.gmra.mrb[212].mxu1 %v5720_v9  ;;  %v14419_v9 = vld [vmem:[#allocation3 + $0x24e4] ss:$40 sps:$4 sm:$0xff]   ;;  %8841 = vmatprep.subr.bf16.mxu0 %v14592_v13  ;;  %v5684_v8 = vpack.c.bf16 %v14430_v5, %v14429_v4  ;;  %v14449_v13 = vld [vmem:[#allocation3 + $0x1ff4] ss:$40 sps:$4 sm:$0xff]   ;;  %v14492_v25 = vld [vmem:[#allocation3 + $0x21d0] ss:$40 sps:$4 sm:$0xff]  }
 0x226   :  { %7374 = vmatprep.mubr.bf16.mxu1 %v5731_v20  ;;  %v14601_v20 = vld [vmem:[#allocation6 + $0x3b4] ss:$8 sps:$4 sm:$0xff]  }
 0x228   :  { %8842 = vmatpush1.bf16.msra.mxu0 %v14590_v0 }
 0x229   :  { %8843 = vmatprep.subr.bf16.mxu0 %v14601_v20  ;;  %v14453_v20 = vld [vmem:[#allocation3 + $0x1ff0] ss:$40 sps:$4 sm:$0xff]  }
 0x22b   :  { %8591 = vmatmul.mubr.bf16.gmra.mrb[164].mxu0 %v5604_v18  ;;  %v14421_v18 = vld [vmem:[#allocation3 + $0x2534] ss:$40 sps:$4 sm:$0xff]  }
 0x22c   :  { %8600 = vmatprep.mubr.bf16.mxu0 %v5615_v22  ;;  %v14398_v22 = vld [vmem:[#allocation3 + $0x1d74] ss:$40 sps:$4 sm:$0xff]   ;;  %v5781_v12 = vpack.c.bf16 %v14421_v18, %v14419_v9  ;;  %8844 = vmatpush1.bf16.msra.mxu0 %v14599_v31  ;;  %v5821_v9 = vpack.c.bf16 %v14472_v61, %v14470_v60  ;;  %v5705_v18 = vpack.c.bf16 %v14451_v14, %v14449_v13  ;;  %v14475_v31 = vld [vmem:[#allocation3 + $0x27b0] ss:$40 sps:$4 sm:$0xff]  }
 0x22d   :  { %7375 = vmatmul.mubr.bf16.gmra.mrb[216].mxu1 %v5730_v15  ;;  %v5665_v24 = vpack.c.bf16 %v14400_v29, %v14398_v22  ;;  %v14610_v15 = vld [vmem:[#allocation6 + $0x3c4] ss:$8 sps:$4 sm:$0xff]   ;;  %v14454_v22 = vld [vmem:[#allocation3 + $0x2040] ss:$40 sps:$4 sm:$0xff]  }
 0x22e   :  { %7384 = vmatprep.mubr.bf16.mxu1 %v5741_v32  ;;  %v14424_v32 = vld [vmem:[#allocation3 + $0x2530] ss:$40 sps:$4 sm:$0xff]   ;;  %8845 = vmatprep.subr.bf16.mxu0 %v14610_v15  ;;  %v14474_v29 = vld [vmem:[#allocation3 + $0x2760] ss:$40 sps:$4 sm:$0xff]  }
 0x233   :  { %8601 = vmatmul.mubr.bf16.gmra.mrb[168].mxu0 %v5614_v30  ;;  %v14423_v30 = vld [vmem:[#allocation3 + $0x24e0] ss:$40 sps:$4 sm:$0xff]  }
 0x234   :  { %8610 = vmatprep.mubr.bf16.mxu0 %v5625_v34  ;;  %v14608_v34 = vld [vmem:[#allocation6 + $0x3c0] ss:$8 sps:$4 sm:$0xff]   ;;  %v5780_v39 = vpack.c.bf16 %v14424_v32, %v14423_v30  ;;  %v5820_v30 = vpack.c.bf16 %v14475_v31, %v14474_v29  ;;  %v5704_v32 = vpack.c.bf16 %v14454_v22, %v14453_v20  ;;  %v14533_v31 = vld [vmem:[#allocation3 + $0xaac] ss:$40 sps:$4 sm:$0xff]  }
 0x235   :  { %7385 = vmatmul.mubr.bf16.gmra.mrb[220].mxu1 %v5740_v3  ;;  %8846 = vmatpush1.bf16.msra.mxu0 %v14608_v34  ;;  %v5791_v3 = vpack.c.bf16 %v14433_v1, %v14431_v36  ;;  %v14468_v1 = vld [vmem:[#allocation3 + $0x2090] ss:$40 sps:$4 sm:$0xff]   ;;  %v14505_v20 = vld [vmem:[#allocation3 + $0x22c0] ss:$40 sps:$4 sm:$0xff]  }
 0x236   :  { %7394 = vmatprep.mubr.bf16.mxu1 %v5751_v17  ;;  %8847 = vmatprep.subr.bf16.mxu0 %v14619_v2  ;;  %v14417_v17 = vld [vmem:[#allocation3 + $0x1e10] ss:$40 sps:$4 sm:$0xff]   ;;  %v14469_v2 = vld [vmem:[#allocation3 + $0x20e0] ss:$40 sps:$4 sm:$0xff]  }
 0x237   :  { %v14525_v22 = vld [vmem:[#allocation3 + $0xa08] ss:$40 sps:$4 sm:$0xff]   ;;  %v14526_v29 = vld [vmem:[#allocation3 + $0xa58] ss:$40 sps:$4 sm:$0xff]  }
 0x239   :  { %8848 = vmatpush1.bf16.msra.mxu0 %v14617_v37  ;;  %v14494_v37 = vld [vmem:[#allocation3 + $0x8cc] ss:$40 sps:$4 sm:$0xff]  }
 0x23a   :  { %8849 = vmatprep.subr.bf16.mxu0 %v14628_v42 }
 0x23b   :  { %8611 = vmatmul.mubr.bf16.gmra.mrb[172].mxu0 %v5624_v40  ;;  %v5675_v40 = vpack.c.bf16 %v14412_v35, %v14410_v38  ;;  %v14482_v38 = vld [vmem:[#allocation3 + $0x828] ss:$40 sps:$4 sm:$0xff]   ;;  %v14485_v35 = vld [vmem:[#allocation3 + $0x878] ss:$40 sps:$4 sm:$0xff]  }
 0x23c   :  { %8620 = vmatprep.mubr.bf16.mxu0 %v5635_v19  ;;  %v14418_v19 = vld [vmem:[#allocation3 + $0x1e60] ss:$40 sps:$4 sm:$0xff]   ;;  %v5322_v42 = vpack.c.bf16 %v14485_v35, %v14482_v38  ;;  %v14519_v35 = vld [vmem:[#allocation3 + $0x2310] ss:$40 sps:$4 sm:$0xff]  }
 0x23d   :  { %7395 = vmatmul.mubr.bf16.gmra.mrb[224].mxu1 %v5750_v54  ;;  %8850 = vmatpush1.bf16.msra.mxu0 %v14626_v46  ;;  %v5790_v54 = vpack.c.bf16 %v14436_v45, %v14435_v21  ;;  %v5714_v45 = vpack.c.bf16 %v14469_v2, %v14468_v1 }
 0x23e   :  { %7404 = vmatprep.mubr.bf16.mxu1 %v5761_v57  ;;  %8851 = vmatprep.subr.bf16.mxu0 %v14637_v43  ;;  %v5801_v57 = vpack.c.bf16 %v14445_v51, %v14443_v47  ;;  %v14480_v51 = vld [vmem:[#allocation3 + $0x2130] ss:$40 sps:$4 sm:$0xff]   ;;  %v14481_v43 = vld [vmem:[#allocation3 + $0x2180] ss:$40 sps:$4 sm:$0xff]  }
 0x23f   :  { %v5724_v50 = vpack.c.bf16 %v14481_v43, %v14480_v51 }
 0x241   :  { %8852 = vmatpush1.bf16.msra.mxu0 %v14635_v52  ;;  %v14506_v52 = vld [vmem:[#allocation3 + $0x96c] ss:$40 sps:$4 sm:$0xff]  }
 0x243   :  { %8621 = vmatmul.mubr.bf16.gmra.mrb[176].mxu0 %v5634_v55  ;;  %v5674_v55 = vpack.c.bf16 %v14418_v19, %v14417_v17 }
 0x244   :  { %8630 = vmatprep.mubr.bf16.mxu0 %v5645_v58  ;;  %v5685_v58 = vpack.c.bf16 %v14427_v48, %v14425_v44  ;;  %v14498_v44 = vld [vmem:[#allocation3 + $0x8c8] ss:$40 sps:$4 sm:$0xff]   ;;  %v14499_v48 = vld [vmem:[#allocation3 + $0x918] ss:$40 sps:$4 sm:$0xff]  }
 0x245   :  { %7405 = vmatmul.mubr.bf16.gmra.mrb[228].mxu1 %v5760_v27  ;;  %v14441_v27 = vld [vmem:[#allocation3 + $0x1f50] ss:$40 sps:$4 sm:$0xff]   ;;  %v5332_v49 = vpack.c.bf16 %v14499_v48, %v14498_v44 }
 0x246   :  { %7414 = vmatprep.mubr.bf16.mxu1 %v5771_v7  ;;  %v14459_v7 = vld [vmem:[#allocation3 + $0x26c0] ss:$40 sps:$4 sm:$0xff]  }
 0x24b   :  { %8631 = vmatmul.mubr.bf16.gmra.mrb[180].mxu0 %v5644_v6  ;;  %v14442_v6 = vld [vmem:[#allocation3 + $0x1fa0] ss:$40 sps:$4 sm:$0xff]  }
 0x24c   :  { %8640 = vmatprep.mubr.bf16.mxu0 %v5655_v10  ;;  %v14460_v10 = vld [vmem:[#allocation3 + $0x2710] ss:$40 sps:$4 sm:$0xff]   ;;  %v5694_v0 = vpack.c.bf16 %v14442_v6, %v14441_v27  ;;  %v14523_v27 = vld [vmem:[#allocation3 + $0xa5c] ss:$40 sps:$4 sm:$0xff]  }
 0x24d   :  { %7415 = vmatmul.mubr.bf16.gmra.mrb[232].mxu1 %v5770_v11  ;;  %v5810_v16 = vpack.c.bf16 %v14460_v10, %v14459_v7  ;;  %v14484_v11 = vld [vmem:[#allocation3 + $0x82c] ss:$40 sps:$4 sm:$0xff]  }
 0x24e   :  { %7424 = vmatprep.mubr.bf16.mxu1 %v5781_v12  ;;  %v16054_v12 = vpop.f32.mrb[0].mxu1  ;;  %v14500_v7 = vld [vmem:[#allocation3 + $0x2274] ss:$40 sps:$4 sm:$0xff]   ;;  %v14502_v10 = vld [vmem:[#allocation3 + $0x22c4] ss:$40 sps:$4 sm:$0xff]  }
 0x24f   :  { %v16056_v28 = vpop.f32.mrb[1].mxu1 }
 0x250   :  { %v16058_v15 = vpop.f32.mrb[2].mxu1 }
 0x253   :  { %8641 = vmatmul.mubr.bf16.gmra.mrb[184].mxu0 %v5654_v33  ;;  %v14487_v33 = vld [vmem:[#allocation3 + $0x87c] ss:$40 sps:$4 sm:$0xff]  }
 0x254   :  { %8650 = vmatprep.mubr.bf16.mxu0 %v5665_v24  ;;  %v14461_v24 = vld [vmem:[#allocation3 + $0x2094] ss:$40 sps:$4 sm:$0xff]   ;;  %v5323_v34 = vpack.c.bf16 %v14487_v33, %v14484_v11 }
 0x255   :  { %7425 = vmatmul.mubr.bf16.gmra.mrb[236].mxu1 %v5780_v39  ;;  %v5715_v36 = vpack.c.bf16 %v14463_v26, %v14461_v24  ;;  %v14496_v39 = vld [vmem:[#allocation3 + $0x91c] ss:$40 sps:$4 sm:$0xff]  }
 0x256   :  { %7434 = vmatprep.mubr.bf16.mxu1 %v5791_v3  ;;  %v14476_v3 = vld [vmem:[#allocation3 + $0x2134] ss:$40 sps:$4 sm:$0xff]   ;;  %v5333_v46 = vpack.c.bf16 %v14496_v39, %v14494_v37  ;;  %v14514_v26 = vld [vmem:[#allocation3 + $0x2364] ss:$40 sps:$4 sm:$0xff]   ;;  %v14520_v37 = vld [vmem:[#allocation3 + $0x2360] ss:$40 sps:$4 sm:$0xff]  }
 0x257   :  { %v14535_v11 = vld [vmem:[#allocation3 + $0xafc] ss:$40 sps:$4 sm:$0xff]   ;;  %v14537_v39 = vld [vmem:[#allocation3 + $0xaa8] ss:$40 sps:$4 sm:$0xff]  }
 0x258   :  { %v14512_v24 = vld [vmem:[#allocation3 + $0x2314] ss:$40 sps:$4 sm:$0xff]   ;;  %v5363_v2 = vpack.c.bf16 %v14535_v11, %v14533_v31 }
 0x259   :  { %v5755_v38 = vpack.c.bf16 %v14514_v26, %v14512_v24  ;;  %v14577_v31 = vld [vmem:[#allocation3 + $0xcdc] ss:$40 sps:$4 sm:$0xff]  }
 0x25a   :  { %v14551_v24 = vld [vmem:[#allocation3 + $0x24f4] ss:$40 sps:$4 sm:$0xff]   ;;  %v14553_v26 = vld [vmem:[#allocation3 + $0x2544] ss:$40 sps:$4 sm:$0xff]  }
 0x25b   :  { %8651 = vmatmul.mubr.bf16.gmra.mrb[188].mxu0 %v5664_v41  ;;  %v16060_v41 = vpop.f32.mrb[3].mxu1 }
 0x25c   :  { %8660 = vmatprep.mubr.bf16.mxu0 %v5675_v40  ;;  %v14478_v40 = vld [vmem:[#allocation3 + $0x2184] ss:$40 sps:$4 sm:$0xff]   ;;  %v16062_v17 = vpop.f32.mrb[4].mxu1 }
 0x25d   :  { %7435 = vmatmul.mubr.bf16.gmra.mrb[240].mxu1 %v5790_v54  ;;  %v16064_v19 = vpop.f32.mrb[5].mxu1  ;;  %v5725_v47 = vpack.c.bf16 %v14478_v40, %v14476_v3  ;;  %v14508_v54 = vld [vmem:[#allocation3 + $0x9bc] ss:$40 sps:$4 sm:$0xff]   ;;  %v14538_v3 = vld [vmem:[#allocation3 + $0xaf8] ss:$40 sps:$4 sm:$0xff]  }
 0x25e   :  { %7444 = vmatprep.mubr.bf16.mxu1 %v5801_v57  ;;  %v16066_v21 = vpop.f32.mrb[6].mxu1  ;;  %v14488_v57 = vld [vmem:[#allocation3 + $0x21d4] ss:$40 sps:$4 sm:$0xff]   ;;  %v5343_v53 = vpack.c.bf16 %v14508_v54, %v14506_v52  ;;  %v5362_v44 = vpack.c.bf16 %v14538_v3, %v14537_v39  ;;  %v5754_v52 = vpack.c.bf16 %v14520_v37, %v14519_v35  ;;  %v5785_v39 = vpack.c.bf16 %v14553_v26, %v14551_v24  ;;  %v14555_v3 = vld [vmem:[#allocation3 + $0x24f0] ss:$40 sps:$4 sm:$0xff]  }
 0x25f   :  { %v14545_v40 = vld [vmem:[#allocation3 + $0xb4c] ss:$40 sps:$4 sm:$0xff]  }
 0x263   :  { %8661 = vmatmul.mubr.bf16.gmra.mrb[192].mxu0 %v5674_v55  ;;  %v16068_v55 = vpop.f32.mrb[7].mxu1 }
 0x264   :  { %8670 = vmatprep.mubr.bf16.mxu0 %v5685_v58  ;;  %v14490_v58 = vld [vmem:[#allocation3 + $0x2224] ss:$40 sps:$4 sm:$0xff]   ;;  %v16070_v4 = vpop.f32.mrb[8].mxu1 }
 0x265   :  { %7445 = vmatmul.mubr.bf16.gmra.mrb[244].mxu1 %v5800_v56  ;;  %v16072_v5 = vpop.f32.mrb[9].mxu1  ;;  %v5735_v23 = vpack.c.bf16 %v14490_v58, %v14488_v57  ;;  %v14493_v56 = vld [vmem:[#allocation3 + $0x2220] ss:$40 sps:$4 sm:$0xff]   ;;  %v14531_v58 = vld [vmem:[#allocation3 + $0x23b0] ss:$40 sps:$4 sm:$0xff]  }
 0x266   :  { %7454 = vmatprep.mubr.bf16.mxu1 %v5811_v62  ;;  %v16074_v59 = vpop.f32.mrb[10].mxu1  ;;  %v14511_v62 = vld [vmem:[#allocation3 + $0x9b8] ss:$40 sps:$4 sm:$0xff]  }
 0x267   :  { %v16076_v6 = vpop.f32.mrb[11].mxu1 }
 0x268   :  { %v16078_v60 = vpop.f32.mrb[12].mxu1 }
 0x269   :  { %v16080_v61 = vpop.f32.mrb[13].mxu1 }
 0x26a   :  { %v16082_v14 = vpop.f32.mrb[14].mxu1 }
 0x26b   :  { %8671 = vmatmul.mubr.bf16.gmra.mrb[196].mxu0 %v5684_v8  ;;  %v14510_v8 = vld [vmem:[#allocation3 + $0x968] ss:$40 sps:$4 sm:$0xff]   ;;  %v16084_v33 = vpop.f32.mrb[15].mxu1 }
 0x26c   :  { %8680 = vmatprep.mubr.bf16.mxu0 %v5695_v63  ;;  %v14521_v63 = vld [vmem:[#allocation3 + $0xa0c] ss:$40 sps:$4 sm:$0xff]   ;;  %v5342_v13 = vpack.c.bf16 %v14511_v62, %v14510_v8 }
 0x26d   :  { %7455 = vmatmul.mubr.bf16.gmra.mrb[248].mxu1 %v5810_v16  ;;  %v5734_v16 = vpack.c.bf16 %v14493_v56, %v14492_v25  ;;  %v14559_v25 = vld [vmem:[#allocation3 + $0xc3c] ss:$40 sps:$4 sm:$0xff]  }
 0x26e   :  { %7464 = vmatprep.mubr.bf16.mxu1 %v5821_v9  ;;  %v5745_v9 = vpack.c.bf16 %v14502_v10, %v14500_v7  ;;  %v14539_v8 = vld [vmem:[#allocation3 + $0x2454] ss:$40 sps:$4 sm:$0xff]   ;;  %v14541_v62 = vld [vmem:[#allocation3 + $0x24a4] ss:$40 sps:$4 sm:$0xff]  }
 0x273   :  { %8681 = vmatmul.mubr.bf16.gmra.mrb[200].mxu0 %v5694_v0  ;;  %v5353_v0 = vpack.c.bf16 %v14523_v27, %v14521_v63 }
 0x274   :  { %8690 = vmatprep.mubr.bf16.mxu0 %v5705_v18  ;;  %v14504_v18 = vld [vmem:[#allocation3 + $0x2270] ss:$40 sps:$4 sm:$0xff]  }
 0x275   :  { %7465 = vmatmul.mubr.bf16.gmra.mrb[252].mxu1 %v5820_v30  ;;  %v16086_v30 = vpop.f32.mrb[16].mxu1  ;;  %v5744_v1 = vpack.c.bf16 %v14505_v20, %v14504_v18  ;;  %v14544_v18 = vld [vmem:[#allocation3 + $0x24a0] ss:$40 sps:$4 sm:$0xff]  }
 0x276   :  { %7637 = vmatprep.mubr.bf16.mxu1 %v5323_v34  ;;  %v5352_v34 = vpack.c.bf16 %v14526_v29, %v14525_v22  ;;  %v14561_v20 = vld [vmem:[#allocation3 + $0xbe8] ss:$40 sps:$4 sm:$0xff]   ;;  %v14562_v22 = vld [vmem:[#allocation3 + $0xc38] ss:$40 sps:$4 sm:$0xff]   ;;  %v14575_v29 = vld [vmem:[#allocation3 + $0xc8c] ss:$40 sps:$4 sm:$0xff]  }
 0x277   :  { %v5393_v37 = vpack.c.bf16 %v14577_v31, %v14575_v29 }
 0x27b   :  { %8691 = vmatmul.mubr.bf16.gmra.mrb[204].mxu0 %v5704_v32  ;;  %v16088_v32 = vpop.f32.mrb[17].mxu1 }
 0x27c   :  { %8700 = vmatprep.mubr.bf16.mxu0 %v5715_v36  ;;  %v16090_v36 = vpop.f32.mrb[18].mxu1 }
 0x27d   :  { %7638 = vmatmul.mubr.bf16.vlgmr.msra.gmra.mrb[52].mxu1 %v5322_v42  ;;  %v14547_v42 = vld [vmem:[#allocation3 + $0xb9c] ss:$40 sps:$4 sm:$0xff]  }
 0x27e   :  { %7647 = vmatprep.mubr.bf16.mxu1 %v5333_v46  ;;  %v14527_v46 = vld [vmem:[#allocation3 + $0x23b4] ss:$40 sps:$4 sm:$0xff]   ;;  %v5373_v54 = vpack.c.bf16 %v14547_v42, %v14545_v40  ;;  %v14556_v40 = vld [vmem:[#allocation3 + $0x2540] ss:$40 sps:$4 sm:$0xff]  }
 0x27f   :  { %v14579_v42 = vld [vmem:[#allocation3 + $0xc88] ss:$40 sps:$4 sm:$0xff]  }
 0x283   :  { %8701 = vmatmul.mubr.bf16.gmra.mrb[208].mxu0 %v5714_v45  ;;  %v16092_v45 = vpop.f32.mrb[19].mxu1 }
 0x284   :  { %8710 = vmatprep.mubr.bf16.mxu0 %v5725_v47  ;;  %v14529_v47 = vld [vmem:[#allocation3 + $0x2404] ss:$40 sps:$4 sm:$0xff]   ;;  %v16094_v51 = vpop.f32.mrb[20].mxu1 }
 0x285   :  { %7648 = vmatmul.mubr.bf16.gmra.mrb[56].mxu1 %v5332_v49  ;;  %v16096_v43 = vpop.f32.mrb[21].mxu1  ;;  %v5765_v57 = vpack.c.bf16 %v14529_v47, %v14527_v46  ;;  %v14532_v49 = vld [vmem:[#allocation3 + $0x2400] ss:$40 sps:$4 sm:$0xff]   ;;  %v14593_v47 = vld [vmem:[#allocation3 + $0xd2c] ss:$40 sps:$4 sm:$0xff]  }
 0x286   :  { %7657 = vmatprep.mubr.bf16.mxu1 %v5343_v53  ;;  %v16098_v48 = vpop.f32.mrb[22].mxu1  ;;  %v14550_v53 = vld [vmem:[#allocation3 + $0xb98] ss:$40 sps:$4 sm:$0xff]  }
 0x287   :  { %v16100_v56 = vpop.f32.mrb[23].mxu1  ;;  %v14580_v46 = vld [vmem:[#allocation3 + $0xcd8] ss:$40 sps:$4 sm:$0xff]  }
 0x288   :  { %v16102_v63 = vpop.f32.mrb[24].mxu1 }
 0x289   :  { %v16104_v27 = vpop.f32.mrb[25].mxu1 }
 0x28a   :  { %v16106_v10 = vpop.f32.mrb[26].mxu1 }
 0x28b   :  { %8711 = vmatmul.mubr.bf16.gmra.mrb[212].mxu0 %v5724_v50  ;;  %v14549_v50 = vld [vmem:[#allocation3 + $0xb48] ss:$40 sps:$4 sm:$0xff]   ;;  %v16108_v11 = vpop.f32.mrb[27].mxu1 }
 0x28c   :  { %8720 = vmatprep.mubr.bf16.mxu0 %v5735_v23  ;;  %v14557_v23 = vld [vmem:[#allocation3 + $0xbec] ss:$40 sps:$4 sm:$0xff]   ;;  %v5372_v7 = vpack.c.bf16 %v14550_v53, %v14549_v50  ;;  %v5392_v50 = vpack.c.bf16 %v14580_v46, %v14579_v42  ;;  %v14616_v42 = vld [vmem:[#allocation3 + $0xe18] ss:$40 sps:$4 sm:$0xff]  }
 0x28d   :  { %7658 = vmatmul.mubr.bf16.gmra.mrb[60].mxu1 %v5342_v13  ;;  %v5764_v13 = vpack.c.bf16 %v14532_v49, %v14531_v58  ;;  %v14629_v46 = vld [vmem:[#allocation3 + $0xe6c] ss:$40 sps:$4 sm:$0xff]  }
 0x28e   :  { %7667 = vmatprep.mubr.bf16.mxu1 %v5353_v0  ;;  %v5775_v0 = vpack.c.bf16 %v14541_v62, %v14539_v8  ;;  %v14570_v62 = vld [vmem:[#allocation3 + $0x2590] ss:$40 sps:$4 sm:$0xff]  }
 0x293   :  { %8721 = vmatmul.mubr.bf16.gmra.mrb[216].mxu0 %v5734_v16  ;;  %v5383_v16 = vpack.c.bf16 %v14559_v25, %v14557_v23  ;;  %v5784_v23 = vpack.c.bf16 %v14556_v40, %v14555_v3  ;;  %v14589_v3 = vld [vmem:[#allocation3 + $0x2680] ss:$40 sps:$4 sm:$0xff]  }
 0x294   :  { %8730 = vmatprep.mubr.bf16.mxu0 %v5745_v9  ;;  %v14543_v9 = vld [vmem:[#allocation3 + $0x2450] ss:$40 sps:$4 sm:$0xff]  }
 0x295   :  { %7668 = vmatmul.mubr.bf16.gmra.mrb[64].mxu1 %v5352_v34  ;;  %v16110_v34 = vpop.f32.mrb[28].mxu1  ;;  %v5774_v35 = vpack.c.bf16 %v14544_v18, %v14543_v9  ;;  %v14613_v9 = vld [vmem:[#allocation3 + $0xe1c] ss:$40 sps:$4 sm:$0xff]   ;;  %v14615_v40 = vld [vmem:[#allocation3 + $0xdc8] ss:$40 sps:$4 sm:$0xff]  }
 0x296   :  { %7677 = vmatprep.mubr.bf16.mxu1 %v5363_v2  ;;  %v5382_v2 = vpack.c.bf16 %v14562_v22, %v14561_v20  ;;  %v14584_v20 = vld [vmem:[#allocation3 + $0x2634] ss:$40 sps:$4 sm:$0xff]   ;;  %v14586_v22 = vld [vmem:[#allocation3 + $0x2684] ss:$40 sps:$4 sm:$0xff]  }
 0x29b   :  { %8731 = vmatmul.mubr.bf16.gmra.mrb[220].mxu0 %v5744_v1  ;;  %v16112_v1 = vpop.f32.mrb[29].mxu1 }
 0x29c   :  { %8740 = vmatprep.mubr.bf16.mxu0 %v5755_v38  ;;  %v16114_v38 = vpop.f32.mrb[30].mxu1 }
 0x29d   :  { %7678 = vmatmul.mubr.bf16.gmra.mrb[68].mxu1 %v5362_v44  ;;  %v14595_v44 = vld [vmem:[#allocation3 + $0xd7c] ss:$40 sps:$4 sm:$0xff]  }
 0x29e   :  { %7687 = vmatprep.mubr.bf16.mxu1 %v5373_v54  ;;  %v14566_v54 = vld [vmem:[#allocation3 + $0x2594] ss:$40 sps:$4 sm:$0xff]   ;;  %v5403_v25 = vpack.c.bf16 %v14595_v44, %v14593_v47 }
 0x29f   :  { %v14631_v47 = vld [vmem:[#allocation3 + $0xebc] ss:$40 sps:$4 sm:$0xff]  }
 0x2a3   :  { %8741 = vmatmul.mubr.bf16.gmra.mrb[224].mxu0 %v5754_v52  ;;  %v16116_v52 = vpop.f32.mrb[31].mxu1 }
 0x2a4   :  { %8750 = vmatprep.mubr.bf16.mxu0 %v5765_v57  ;;  %v14568_v57 = vld [vmem:[#allocation3 + $0x25e4] ss:$40 sps:$4 sm:$0xff]   ;;  %v16118_v58 = vpop.f32.mrb[32].mxu1 }
 0x2a5   :  { %7688 = vmatmul.mubr.bf16.gmra.mrb[72].mxu1 %v5372_v7  ;;  %v16120_v49 = vpop.f32.mrb[33].mxu1  ;;  %v5795_v8 = vpack.c.bf16 %v14568_v57, %v14566_v54  ;;  %v14571_v7 = vld [vmem:[#allocation3 + $0x25e0] ss:$40 sps:$4 sm:$0xff]   ;;  %v14602_v54 = vld [vmem:[#allocation3 + $0x26d4] ss:$40 sps:$4 sm:$0xff]  }
 0x2a6   :  { %7697 = vmatprep.mubr.bf16.mxu1 %v5383_v16  ;;  %v16122_v53 = vpop.f32.mrb[34].mxu1  ;;  %v14598_v16 = vld [vmem:[#allocation3 + $0xd78] ss:$40 sps:$4 sm:$0xff]   ;;  %v14604_v57 = vld [vmem:[#allocation3 + $0x2724] ss:$40 sps:$4 sm:$0xff]  }
 0x2a7   :  { %v16124_v18 = vpop.f32.mrb[35].mxu1 }
 0x2a8   :  { %v16126_v29 = vpop.f32.mrb[36].mxu1 }
 0x2a9   :  { %v16128_v31 = vpop.f32.mrb[37].mxu1 }
 0x2aa   :  { %v16130_v26 = vpop.f32.mrb[38].mxu1 }
 0x2ab   :  { %8751 = vmatmul.mubr.bf16.gmra.mrb[228].mxu0 %v5764_v13  ;;  %v14597_v13 = vld [vmem:[#allocation3 + $0xd28] ss:$40 sps:$4 sm:$0xff]   ;;  %v16132_v44 = vpop.f32.mrb[39].mxu1 }
 0x2ac   :  { %8760 = vmatprep.mubr.bf16.mxu0 %v5775_v0  ;;  %v14611_v0 = vld [vmem:[#allocation3 + $0xdcc] ss:$40 sps:$4 sm:$0xff]   ;;  %v5402_v24 = vpack.c.bf16 %v14598_v16, %v14597_v13  ;;  %v5815_v13 = vpack.c.bf16 %v14604_v57, %v14602_v54  ;;  %v14606_v16 = vld [vmem:[#allocation3 + $0x26d0] ss:$40 sps:$4 sm:$0xff]  }
 0x2ad   :  { %7698 = vmatmul.mubr.bf16.gmra.mrb[76].mxu1 %v5382_v2  ;;  %v5794_v2 = vpack.c.bf16 %v14571_v7, %v14570_v62  ;;  %v5423_v7 = vpack.c.bf16 %v14631_v47, %v14629_v46  ;;  %v14624_v57 = vld [vmem:[#allocation3 + $0x2770] ss:$40 sps:$4 sm:$0xff]  }
 0x2ae   :  { %7707 = vmatprep.mubr.bf16.mxu1 %v5393_v37  ;;  %v5805_v37 = vpack.c.bf16 %v14586_v22, %v14584_v20  ;;  %v14634_v20 = vld [vmem:[#allocation3 + $0xeb8] ss:$40 sps:$4 sm:$0xff]   ;;  %v14644_v22 = vld [vmem:[#allocation3 + $0xf0c] ss:$40 sps:$4 sm:$0xff]  }
 0x2b3   :  { %8761 = vmatmul.mubr.bf16.gmra.mrb[232].mxu0 %v5774_v35  ;;  %v5413_v35 = vpack.c.bf16 %v14613_v9, %v14611_v0  ;;  %v14607_v0 = vld [vmem:[#allocation3 + $0x2720] ss:$40 sps:$4 sm:$0xff]  }
 0x2b4   :  { %8770 = vmatprep.mubr.bf16.mxu0 %v5785_v39  ;;  %v14588_v39 = vld [vmem:[#allocation3 + $0x2630] ss:$40 sps:$4 sm:$0xff]   ;;  %v5814_v46 = vpack.c.bf16 %v14607_v0, %v14606_v16 }
 0x2b5   :  { %7708 = vmatmul.mubr.bf16.gmra.mrb[80].mxu1 %v5392_v50  ;;  %v16134_v50 = vpop.f32.mrb[40].mxu1  ;;  %v5804_v62 = vpack.c.bf16 %v14589_v3, %v14588_v39  ;;  %v14633_v9 = vld [vmem:[#allocation3 + $0xe68] ss:$40 sps:$4 sm:$0xff]  }
 0x2b6   :  { %7717 = vmatprep.mubr.bf16.mxu1 %v5403_v25  ;;  %17415 = vst [vmem:[#allocation13_spill] sm:$0xff] %v16134_v50  ;;  %v5412_v25 = vpack.c.bf16 %v14616_v42, %v14615_v40  ;;  %v5422_v39 = vpack.c.bf16 %v14634_v20, %v14633_v9 }
 0x2bb   :  { %8771 = vmatmul.mubr.bf16.gmra.mrb[236].mxu0 %v5784_v23  ;;  %v16136_v23 = vpop.f32.mrb[41].mxu1 }
 0x2bc   :  { %8780 = vmatprep.mubr.bf16.mxu0 %v5795_v8  ;;  %17416 = vst [vmem:[#allocation14_spill] sm:$0xff] %v16136_v23  ;;  %v16138_v8 = vpop.f32.mrb[42].mxu1 }
 0x2bd   :  { %7718 = vmatmul.mubr.bf16.gmra.mrb[84].mxu1 %v5402_v24  ;;  %17417 = vst [vmem:[#allocation15_spill] sm:$0xff] %v16138_v8  ;;  %v14646_v24 = vld [vmem:[#allocation3 + $0xf5c] ss:$40 sps:$4 sm:$0xff]  }
 0x2be   :  { %7727 = vmatprep.mubr.bf16.mxu1 %v5413_v35  ;;  %v14620_v35 = vld [vmem:[#allocation3 + $0x2774] ss:$40 sps:$4 sm:$0xff]   ;;  %v5433_v47 = vpack.c.bf16 %v14646_v24, %v14644_v22 }
 0x2c3   :  { %8781 = vmatmul.mubr.bf16.gmra.mrb[240].mxu0 %v5794_v2  ;;  %v16140_v2 = vpop.f32.mrb[43].mxu1 }
 0x2c4   :  { %8790 = vmatprep.mubr.bf16.mxu0 %v5805_v37  ;;  %17418 = vst [vmem:[#allocation16_spill] sm:$0xff] %v16140_v2  ;;  %v14622_v37 = vld [vmem:[#allocation3 + $0x27c4] ss:$40 sps:$4 sm:$0xff]   ;;  %v16142_v40 = vpop.f32.mrb[44].mxu1 }
 0x2c5   :  { %7728 = vmatmul.mubr.bf16.gmra.mrb[88].mxu1 %v5412_v25  ;;  %17419 = vst [vmem:[#allocation17_spill] sm:$0xff] %v16142_v40  ;;  %v16144_v42 = vpop.f32.mrb[45].mxu1  ;;  %v5825_v54 = vpack.c.bf16 %v14622_v37, %v14620_v35  ;;  %v14625_v25 = vld [vmem:[#allocation3 + $0x27c0] ss:$40 sps:$4 sm:$0xff]   ;;  %v14658_v2 = vld [vmem:[#allocation3 + $0xffc] ss:$40 sps:$4 sm:$0xff]  }
 0x2c6   :  { %7737 = vmatprep.mubr.bf16.mxu1 %v5423_v7  ;;  %17420 = vst [vmem:[#allocation18_spill] sm:$0xff] %v16144_v42  ;;  %v16146_v3 = vpop.f32.mrb[46].mxu1  ;;  %v14649_v7 = vld [vmem:[#allocation3 + $0xf58] ss:$40 sps:$4 sm:$0xff]   ;;  %v14640_v40 = vld [vmem:[#allocation3 + $0x1c] ss:$40 sps:$4 sm:$0xff]   ;;  %v5824_v22 = vpack.c.bf16 %v14625_v25, %v14624_v57 }
 0x2c7   :  { %17421 = vst [vmem:[#allocation19_spill] sm:$0xff] %v16146_v3  ;;  %v16148_v8 = vpop.f32.mrb[47].mxu1  ;;  %v14643_v42 = vld [vmem:[#allocation3 + $0x6c] ss:$40 sps:$4 sm:$0xff]   ;;  %v14638_v37 = vld [vmem:[#allocation3 + $0x18] ss:$40 sps:$4 sm:$0xff]  }
 0x2c8   :  { %17422 = vst [vmem:[#allocation20_spill] sm:$0xff] %v16148_v8  ;;  %v16150_v9 = vpop.f32.mrb[48].mxu1  ;;  %v5197_v35 = vpack.c.bf16 %v14643_v42, %v14640_v40  ;;  %v14670_v8 = vld [vmem:[#allocation3 + $0x109c] ss:$40 sps:$4 sm:$0xff]   ;;  %v14655_v40 = vld [vmem:[#allocation3 + $0x108] ss:$40 sps:$4 sm:$0xff]  }
 0x2c9   :  { %17423 = vst [vmem:[#allocation21_spill] sm:$0xff] %v16150_v9  ;;  %v16152_v20 = vpop.f32.mrb[49].mxu1  ;;  %v14650_v9 = vld [vmem:[#allocation3 + $0xbc] ss:$40 sps:$4 sm:$0xff]   ;;  %v14672_v42 = vld [vmem:[#allocation3 + $0x1048] ss:$40 sps:$4 sm:$0xff]  }
 0x2ca   :  { %17424 = vst [vmem:[#allocation22_spill] sm:$0xff] %v16152_v20  ;;  %v16154_v0 = vpop.f32.mrb[50].mxu1  ;;  %v14652_v20 = vld [vmem:[#allocation3 + $0x10c] ss:$40 sps:$4 sm:$0xff]   ;;  %v14673_v25 = vld [vmem:[#allocation3 + $0x1098] ss:$40 sps:$4 sm:$0xff]  }
 0x2cb   :  { %8791 = vmatmul.mubr.bf16.gmra.mrb[244].mxu0 %v5804_v62  ;;  %v14648_v62 = vld [vmem:[#allocation3 + $0xf08] ss:$40 sps:$4 sm:$0xff]   ;;  %17425 = vst [vmem:[#allocation23_spill] sm:$0xff] %v16154_v0  ;;  %v16156_v3 = vpop.f32.mrb[51].mxu1  ;;  %v5207_v57 = vpack.c.bf16 %v14652_v20, %v14650_v9  ;;  %v14685_v9 = vld [vmem:[#allocation3 + $0x1138] ss:$40 sps:$4 sm:$0xff]  }
 0x2cc   :  { %8800 = vmatprep.mubr.bf16.mxu0 %v5815_v13  ;;  %v14656_v13 = vld [vmem:[#allocation3 + $0xfac] ss:$40 sps:$4 sm:$0xff]   ;;  %v5432_v16 = vpack.c.bf16 %v14649_v7, %v14648_v62  ;;  %17426 = vst [vmem:[#allocation24_spill] sm:$0xff] %v16156_v3  ;;  %v5452_v3 = vpack.c.bf16 %v14673_v25, %v14672_v42  ;;  %v14678_v42 = vld [vmem:[#allocation3 + $0x1f8] ss:$40 sps:$4 sm:$0xff]  }
 0x2cd   :  { %7738 = vmatmul.mubr.bf16.gmra.mrb[92].mxu1 %v5422_v39  ;;  %v5443_v24 = vpack.c.bf16 %v14658_v2, %v14656_v13  ;;  %v14641_v39 = vld [vmem:[#allocation3 + $0x68] ss:$40 sps:$4 sm:$0xff]   ;;  %v14654_v2 = vld [vmem:[#allocation3 + $0xb8] ss:$40 sps:$4 sm:$0xff]   ;;  %v14680_v13 = vld [vmem:[#allocation3 + $0x10ec] ss:$40 sps:$4 sm:$0xff]  }
 0x2ce   :  { %7747 = vmatprep.mubr.bf16.mxu1 %v5433_v47  ;;  %v14661_v47 = vld [vmem:[#allocation3 + $0xff8] ss:$40 sps:$4 sm:$0xff]   ;;  %v5196_v7 = vpack.c.bf16 %v14641_v39, %v14638_v37  ;;  %v14667_v37 = vld [vmem:[#allocation3 + $0x1a8] ss:$40 sps:$4 sm:$0xff]   ;;  %v14692_v20 = vld [vmem:[#allocation3 + $0x118c] ss:$40 sps:$4 sm:$0xff]  }
 0x2cf   :  { %v14694_v39 = vld [vmem:[#allocation3 + $0x11dc] ss:$40 sps:$4 sm:$0xff]   ;;  %v14697_v25 = vld [vmem:[#allocation3 + $0x11d8] ss:$40 sps:$4 sm:$0xff]  }
 0x2d3   :  { %8801 = vmatmul.mubr.bf16.gmra.mrb[248].mxu0 %v5814_v46  ;;  %v14660_v46 = vld [vmem:[#allocation3 + $0xfa8] ss:$40 sps:$4 sm:$0xff]  }
 0x2d4   :  { %8810 = vmatprep.mubr.bf16.mxu0 %v5825_v54  ;;  %v14668_v54 = vld [vmem:[#allocation3 + $0x104c] ss:$40 sps:$4 sm:$0xff]   ;;  %v5442_v62 = vpack.c.bf16 %v14661_v47, %v14660_v46  ;;  %v14666_v46 = vld [vmem:[#allocation3 + $0x158] ss:$40 sps:$4 sm:$0xff]  }
 0x2d5   :  { %7748 = vmatmul.mubr.bf16.gmra.mrb[96].mxu1 %v5432_v16  ;;  %v5453_v0 = vpack.c.bf16 %v14670_v8, %v14668_v54  ;;  %v14682_v16 = vld [vmem:[#allocation3 + $0x113c] ss:$40 sps:$4 sm:$0xff]   ;;  %v14684_v8 = vld [vmem:[#allocation3 + $0x10e8] ss:$40 sps:$4 sm:$0xff]   ;;  %v14676_v47 = vld [vmem:[#allocation3 + $0x24c] ss:$40 sps:$4 sm:$0xff]  }
 0x2d6   :  { %7757 = vmatprep.mubr.bf16.mxu1 %v5443_v24  ;;  %v14664_v24 = vld [vmem:[#allocation3 + $0x1ac] ss:$40 sps:$4 sm:$0xff]   ;;  %v5463_v23 = vpack.c.bf16 %v14682_v16, %v14680_v13  ;;  %v5462_v54 = vpack.c.bf16 %v14685_v9, %v14684_v8  ;;  %v14706_v13 = vld [vmem:[#allocation3 + $0x127c] ss:$40 sps:$4 sm:$0xff]   ;;  %v14690_v8 = vld [vmem:[#allocation3 + $0x298] ss:$40 sps:$4 sm:$0xff]  }
 0x2d7   :  { %v14688_v16 = vld [vmem:[#allocation3 + $0x2ec] ss:$40 sps:$4 sm:$0xff]   ;;  %v14709_v9 = vld [vmem:[#allocation3 + $0x1278] ss:$40 sps:$4 sm:$0xff]  }
 0x2db   :  { %8811 = vmatmul.mubr.bf16.gmra.mrb[252].mxu0 %v5824_v22  ;;  %v14662_v22 = vld [vmem:[#allocation3 + $0x15c] ss:$40 sps:$4 sm:$0xff]  }
 0x2dc   :  { %8853 = vmatprep.mubr.bf16.mxu0 %v5197_v35  ;;  %v5206_v35 = vpack.c.bf16 %v14655_v40, %v14654_v2  ;;  %v5217_v50 = vpack.c.bf16 %v14664_v24, %v14662_v22  ;;  %v14679_v2 = vld [vmem:[#allocation3 + $0x248] ss:$40 sps:$4 sm:$0xff]  }
 0x2dd   :  { %7758 = vmatmul.mubr.bf16.gmra.mrb[100].mxu1 %v5442_v62  ;;  %v5216_v62 = vpack.c.bf16 %v14667_v37, %v14666_v46  ;;  %v14696_v40 = vld [vmem:[#allocation3 + $0x1188] ss:$40 sps:$4 sm:$0xff]  }
 0x2de   :  { %7767 = vmatprep.mubr.bf16.mxu1 %v5453_v0  ;;  %v14674_v0 = vld [vmem:[#allocation3 + $0x1fc] ss:$40 sps:$4 sm:$0xff]   ;;  %v5472_v22 = vpack.c.bf16 %v14697_v25, %v14696_v40  ;;  %v14691_v46 = vld [vmem:[#allocation3 + $0x2e8] ss:$40 sps:$4 sm:$0xff]   ;;  %v14702_v40 = vld [vmem:[#allocation3 + $0x338] ss:$40 sps:$4 sm:$0xff]  }
 0x2df   :  { %v14708_v37 = vld [vmem:[#allocation3 + $0x1228] ss:$40 sps:$4 sm:$0xff]   ;;  %v14721_v25 = vld [vmem:[#allocation3 + $0x1318] ss:$40 sps:$4 sm:$0xff]  }
 0x2e3   :  { %8854 = vmatmul.mubr.bf16.vlgmr.msra.gmra.mrb[0].mxu0 %v5196_v7  ;;  %v5473_v7 = vpack.c.bf16 %v14694_v39, %v14692_v20  ;;  %v14716_v20 = vld [vmem:[#allocation3 + $0x12cc] ss:$40 sps:$4 sm:$0xff]   ;;  %v14718_v39 = vld [vmem:[#allocation3 + $0x131c] ss:$40 sps:$4 sm:$0xff]  }
 0x2e4   :  { %8863 = vmatprep.mubr.bf16.mxu0 %v5207_v57  ;;  %v5227_v57 = vpack.c.bf16 %v14676_v47, %v14674_v0  ;;  %v14698_v0 = vld [vmem:[#allocation3 + $0x33c] ss:$40 sps:$4 sm:$0xff]   ;;  %v14700_v47 = vld [vmem:[#allocation3 + $0x38c] ss:$40 sps:$4 sm:$0xff]  }
 0x2e5   :  { %7768 = vmatmul.mubr.bf16.gmra.mrb[104].mxu1 %v5452_v3  ;;  %v14704_v3 = vld [vmem:[#allocation3 + $0x122c] ss:$40 sps:$4 sm:$0xff]  }
 0x2e6   :  { %7777 = vmatprep.mubr.bf16.mxu1 %v5463_v23  ;;  %v14686_v23 = vld [vmem:[#allocation3 + $0x29c] ss:$40 sps:$4 sm:$0xff]   ;;  %v5483_v24 = vpack.c.bf16 %v14706_v13, %v14704_v3  ;;  %v14728_v3 = vld [vmem:[#allocation3 + $0x136c] ss:$40 sps:$4 sm:$0xff]  }
 0x2e7   :  { %v14730_v13 = vld [vmem:[#allocation3 + $0x13bc] ss:$40 sps:$4 sm:$0xff]  }
 0x2eb   :  { %8864 = vmatmul.mubr.bf16.gmra.mrb[4].mxu0 %v5206_v35  ;;  %v5237_v35 = vpack.c.bf16 %v14688_v16, %v14686_v23  ;;  %v14710_v23 = vld [vmem:[#allocation3 + $0x3dc] ss:$40 sps:$4 sm:$0xff]   ;;  %v14712_v16 = vld [vmem:[#allocation3 + $0x42c] ss:$40 sps:$4 sm:$0xff]  }
 0x2ec   :  { %8873 = vmatprep.mubr.bf16.mxu0 %v5217_v50  ;;  %v5226_v50 = vpack.c.bf16 %v14679_v2, %v14678_v42  ;;  %v14703_v42 = vld [vmem:[#allocation3 + $0x388] ss:$40 sps:$4 sm:$0xff]  }
 0x2ed   :  { %7778 = vmatmul.mubr.bf16.gmra.mrb[108].mxu1 %v5462_v54  ;;  %v5482_v54 = vpack.c.bf16 %v14709_v9, %v14708_v37  ;;  %v14720_v2 = vld [vmem:[#allocation3 + $0x12c8] ss:$40 sps:$4 sm:$0xff]   ;;  %v14714_v37 = vld [vmem:[#allocation3 + $0x3d8] ss:$40 sps:$4 sm:$0xff]  }
 0x2ee   :  { %7787 = vmatprep.mubr.bf16.mxu1 %v5473_v7  ;;  %v5493_v7 = vpack.c.bf16 %v14718_v39, %v14716_v20  ;;  %v14733_v9 = vld [vmem:[#allocation3 + $0x13b8] ss:$40 sps:$4 sm:$0xff]   ;;  %v14740_v20 = vld [vmem:[#allocation3 + $0x140c] ss:$40 sps:$4 sm:$0xff]   ;;  %v14742_v39 = vld [vmem:[#allocation3 + $0x145c] ss:$40 sps:$4 sm:$0xff]  }
 0x2f3   :  { %8874 = vmatmul.mubr.bf16.gmra.mrb[8].mxu0 %v5216_v62  ;;  %v5236_v62 = vpack.c.bf16 %v14691_v46, %v14690_v8  ;;  %v14715_v8 = vld [vmem:[#allocation3 + $0x428] ss:$40 sps:$4 sm:$0xff]  }
 0x2f4   :  { %8883 = vmatprep.mubr.bf16.mxu0 %v5227_v57  ;;  %v5247_v57 = vpack.c.bf16 %v14700_v47, %v14698_v0  ;;  %v14732_v46 = vld [vmem:[#allocation3 + $0x1368] ss:$40 sps:$4 sm:$0xff]   ;;  %v14722_v0 = vld [vmem:[#allocation3 + $0x47c] ss:$40 sps:$4 sm:$0xff]   ;;  %v14724_v47 = vld [vmem:[#allocation3 + $0x4cc] ss:$40 sps:$4 sm:$0xff]  }
 0x2f5   :  { %7788 = vmatmul.mubr.bf16.gmra.mrb[112].mxu1 %v5472_v22  ;;  %v5492_v22 = vpack.c.bf16 %v14721_v25, %v14720_v2  ;;  %v14726_v2 = vld [vmem:[#allocation3 + $0x478] ss:$40 sps:$4 sm:$0xff]  }
 0x2f6   :  { %7797 = vmatprep.mubr.bf16.mxu1 %v5483_v24  ;;  %v5503_v24 = vpack.c.bf16 %v14730_v13, %v14728_v3  ;;  %v14745_v25 = vld [vmem:[#allocation3 + $0x1458] ss:$40 sps:$4 sm:$0xff]   ;;  %v14752_v3 = vld [vmem:[#allocation3 + $0x14ac] ss:$40 sps:$4 sm:$0xff]   ;;  %v14754_v13 = vld [vmem:[#allocation3 + $0x14fc] ss:$40 sps:$4 sm:$0xff]  }
 0x2fb   :  { %8884 = vmatmul.mubr.bf16.gmra.mrb[12].mxu0 %v5226_v50  ;;  %v5246_v50 = vpack.c.bf16 %v14703_v42, %v14702_v40  ;;  %v14727_v40 = vld [vmem:[#allocation3 + $0x4c8] ss:$40 sps:$4 sm:$0xff]  }
 0x2fc   :  { %8893 = vmatprep.mubr.bf16.mxu0 %v5237_v35  ;;  %v5257_v35 = vpack.c.bf16 %v14712_v16, %v14710_v23  ;;  %v14744_v42 = vld [vmem:[#allocation3 + $0x1408] ss:$40 sps:$4 sm:$0xff]   ;;  %v14734_v23 = vld [vmem:[#allocation3 + $0x51c] ss:$40 sps:$4 sm:$0xff]   ;;  %v14736_v16 = vld [vmem:[#allocation3 + $0x56c] ss:$40 sps:$4 sm:$0xff]  }
 0x2fd   :  { %7798 = vmatmul.mubr.bf16.gmra.mrb[116].mxu1 %v5482_v54  ;;  %v5502_v54 = vpack.c.bf16 %v14733_v9, %v14732_v46  ;;  %v14738_v46 = vld [vmem:[#allocation3 + $0x518] ss:$40 sps:$4 sm:$0xff]  }
 0x2fe   :  { %7807 = vmatprep.mubr.bf16.mxu1 %v5493_v7  ;;  %v5513_v7 = vpack.c.bf16 %v14742_v39, %v14740_v20  ;;  %v14757_v9 = vld [vmem:[#allocation3 + $0x14f8] ss:$40 sps:$4 sm:$0xff]   ;;  %v14764_v20 = vld [vmem:[#allocation3 + $0x154c] ss:$40 sps:$4 sm:$0xff]   ;;  %v14766_v39 = vld [vmem:[#allocation3 + $0x159c] ss:$40 sps:$4 sm:$0xff]  }
 0x303   :  { %8894 = vmatmul.mubr.bf16.gmra.mrb[16].mxu0 %v5236_v62  ;;  %v5256_v62 = vpack.c.bf16 %v14715_v8, %v14714_v37  ;;  %v14739_v37 = vld [vmem:[#allocation3 + $0x568] ss:$40 sps:$4 sm:$0xff]  }
 0x304   :  { %8903 = vmatprep.mubr.bf16.mxu0 %v5247_v57  ;;  %v5267_v57 = vpack.c.bf16 %v14724_v47, %v14722_v0  ;;  %v14756_v8 = vld [vmem:[#allocation3 + $0x14a8] ss:$40 sps:$4 sm:$0xff]   ;;  %v14746_v0 = vld [vmem:[#allocation3 + $0x5bc] ss:$40 sps:$4 sm:$0xff]   ;;  %v14748_v47 = vld [vmem:[#allocation3 + $0x60c] ss:$40 sps:$4 sm:$0xff]  }
 0x305   :  { %7808 = vmatmul.mubr.bf16.gmra.mrb[120].mxu1 %v5492_v22  ;;  %v5512_v22 = vpack.c.bf16 %v14745_v25, %v14744_v42  ;;  %v14750_v42 = vld [vmem:[#allocation3 + $0x5b8] ss:$40 sps:$4 sm:$0xff]  }
 0x306   :  { %7817 = vmatprep.mubr.bf16.mxu1 %v5503_v24  ;;  %v5523_v24 = vpack.c.bf16 %v14754_v13, %v14752_v3  ;;  %v14769_v25 = vld [vmem:[#allocation3 + $0x1598] ss:$40 sps:$4 sm:$0xff]   ;;  %v14776_v3 = vld [vmem:[#allocation3 + $0x15ec] ss:$40 sps:$4 sm:$0xff]   ;;  %v14778_v13 = vld [vmem:[#allocation3 + $0x163c] ss:$40 sps:$4 sm:$0xff]  }
 0x30b   :  { %8904 = vmatmul.mubr.bf16.gmra.mrb[20].mxu0 %v5246_v50  ;;  %v5266_v50 = vpack.c.bf16 %v14727_v40, %v14726_v2  ;;  %v14751_v2 = vld [vmem:[#allocation3 + $0x608] ss:$40 sps:$4 sm:$0xff]  }
 0x30c   :  { %8913 = vmatprep.mubr.bf16.mxu0 %v5257_v35  ;;  %v5277_v35 = vpack.c.bf16 %v14736_v16, %v14734_v23  ;;  %v14768_v40 = vld [vmem:[#allocation3 + $0x1548] ss:$40 sps:$4 sm:$0xff]   ;;  %v14758_v23 = vld [vmem:[#allocation3 + $0x65c] ss:$40 sps:$4 sm:$0xff]   ;;  %v14760_v16 = vld [vmem:[#allocation3 + $0x6ac] ss:$40 sps:$4 sm:$0xff]  }
 0x30d   :  { %7818 = vmatmul.mubr.bf16.gmra.mrb[124].mxu1 %v5502_v54  ;;  %v5522_v54 = vpack.c.bf16 %v14757_v9, %v14756_v8  ;;  %v14762_v8 = vld [vmem:[#allocation3 + $0x658] ss:$40 sps:$4 sm:$0xff]   ;;  %v14763_v9 = vld [vmem:[#allocation3 + $0x6a8] ss:$40 sps:$4 sm:$0xff]  }
 0x30e   :  { %7827 = vmatprep.mubr.bf16.mxu1 %v5513_v7  ;;  %v5533_v7 = vpack.c.bf16 %v14766_v39, %v14764_v20  ;;  %v14788_v20 = vld [vmem:[#allocation3 + $0x168c] ss:$40 sps:$4 sm:$0xff]   ;;  %v14790_v39 = vld [vmem:[#allocation3 + $0x16dc] ss:$40 sps:$4 sm:$0xff]  }
 0x313   :  { %8914 = vmatmul.mubr.bf16.gmra.mrb[24].mxu0 %v5256_v62  ;;  %v5276_v62 = vpack.c.bf16 %v14739_v37, %v14738_v46  ;;  %v14780_v46 = vld [vmem:[#allocation3 + $0x15e8] ss:$40 sps:$4 sm:$0xff]   ;;  %v14781_v37 = vld [vmem:[#allocation3 + $0x1638] ss:$40 sps:$4 sm:$0xff]  }
 0x314   :  { %8923 = vmatprep.mubr.bf16.mxu0 %v5267_v57  ;;  %v5287_v57 = vpack.c.bf16 %v14748_v47, %v14746_v0  ;;  %v14770_v0 = vld [vmem:[#allocation3 + $0x6fc] ss:$40 sps:$4 sm:$0xff]   ;;  %v14772_v47 = vld [vmem:[#allocation3 + $0x74c] ss:$40 sps:$4 sm:$0xff]  }
 0x315   :  { %7828 = vmatmul.mubr.bf16.gmra.mrb[128].mxu1 %v5512_v22  ;;  %v5532_v22 = vpack.c.bf16 %v14769_v25, %v14768_v40  ;;  %v14774_v40 = vld [vmem:[#allocation3 + $0x6f8] ss:$40 sps:$4 sm:$0xff]  }
 0x316   :  { %7837 = vmatprep.mubr.bf16.mxu1 %v5523_v24  ;;  %v5543_v24 = vpack.c.bf16 %v14778_v13, %v14776_v3  ;;  %v14793_v25 = vld [vmem:[#allocation3 + $0x16d8] ss:$40 sps:$4 sm:$0xff]   ;;  %v14800_v3 = vld [vmem:[#allocation3 + $0x172c] ss:$40 sps:$4 sm:$0xff]   ;;  %v14802_v13 = vld [vmem:[#allocation3 + $0x177c] ss:$40 sps:$4 sm:$0xff]  }
 0x31b   :  { %8924 = vmatmul.mubr.bf16.gmra.mrb[28].mxu0 %v5266_v50  ;;  %v5286_v50 = vpack.c.bf16 %v14751_v2, %v14750_v42  ;;  %v14775_v42 = vld [vmem:[#allocation3 + $0x748] ss:$40 sps:$4 sm:$0xff]  }
 0x31c   :  { %8933 = vmatprep.mubr.bf16.mxu0 %v5277_v35  ;;  %v5297_v35 = vpack.c.bf16 %v14760_v16, %v14758_v23  ;;  %v14792_v2 = vld [vmem:[#allocation3 + $0x1688] ss:$40 sps:$4 sm:$0xff]   ;;  %v14782_v23 = vld [vmem:[#allocation3 + $0x79c] ss:$40 sps:$4 sm:$0xff]   ;;  %v14784_v16 = vld [vmem:[#allocation3 + $0x7ec] ss:$40 sps:$4 sm:$0xff]  }
 0x31d   :  { %7838 = vmatmul.mubr.bf16.gmra.mrb[132].mxu1 %v5522_v54  ;;  %v5542_v54 = vpack.c.bf16 %v14781_v37, %v14780_v46  ;;  %v14786_v46 = vld [vmem:[#allocation3 + $0x798] ss:$40 sps:$4 sm:$0xff]   ;;  %v14804_v37 = vld [vmem:[#allocation3 + $0x1728] ss:$40 sps:$4 sm:$0xff]  }
 0x31e   :  { %7847 = vmatprep.mubr.bf16.mxu1 %v5533_v7  ;;  %v5553_v7 = vpack.c.bf16 %v14790_v39, %v14788_v20  ;;  %v14812_v20 = vld [vmem:[#allocation3 + $0x17cc] ss:$40 sps:$4 sm:$0xff]   ;;  %v14814_v39 = vld [vmem:[#allocation3 + $0x181c] ss:$40 sps:$4 sm:$0xff]  }
 0x323   :  { %8934 = vmatmul.mubr.bf16.gmra.mrb[32].mxu0 %v5276_v62  ;;  %v5296_v62 = vpack.c.bf16 %v14763_v9, %v14762_v8  ;;  %v14787_v8 = vld [vmem:[#allocation3 + $0x7e8] ss:$40 sps:$4 sm:$0xff]   ;;  %v14805_v9 = vld [vmem:[#allocation3 + $0x1778] ss:$40 sps:$4 sm:$0xff]  }
 0x324   :  { %8943 = vmatprep.mubr.bf16.mxu0 %v5287_v57  ;;  %v5307_v57 = vpack.c.bf16 %v14772_v47, %v14770_v0  ;;  %v14794_v0 = vld [vmem:[#allocation3 + $0x83c] ss:$40 sps:$4 sm:$0xff]   ;;  %v14796_v47 = vld [vmem:[#allocation3 + $0x88c] ss:$40 sps:$4 sm:$0xff]  }
 0x325   :  { %7848 = vmatmul.mubr.bf16.gmra.mrb[136].mxu1 %v5532_v22  ;;  %v5552_v22 = vpack.c.bf16 %v14793_v25, %v14792_v2  ;;  %v14798_v2 = vld [vmem:[#allocation3 + $0x838] ss:$40 sps:$4 sm:$0xff]  }
 0x326   :  { %7857 = vmatprep.mubr.bf16.mxu1 %v5543_v24  ;;  %v5563_v24 = vpack.c.bf16 %v14802_v13, %v14800_v3  ;;  %v14817_v25 = vld [vmem:[#allocation3 + $0x1818] ss:$40 sps:$4 sm:$0xff]   ;;  %v14824_v3 = vld [vmem:[#allocation3 + $0x186c] ss:$40 sps:$4 sm:$0xff]   ;;  %v14826_v13 = vld [vmem:[#allocation3 + $0x18bc] ss:$40 sps:$4 sm:$0xff]  }
 0x32b   :  { %8944 = vmatmul.mubr.bf16.gmra.mrb[36].mxu0 %v5286_v50  ;;  %v5306_v50 = vpack.c.bf16 %v14775_v42, %v14774_v40  ;;  %v14799_v40 = vld [vmem:[#allocation3 + $0x888] ss:$40 sps:$4 sm:$0xff]  }
 0x32c   :  { %8953 = vmatprep.mubr.bf16.mxu0 %v5297_v35  ;;  %v5317_v35 = vpack.c.bf16 %v14784_v16, %v14782_v23  ;;  %v14816_v42 = vld [vmem:[#allocation3 + $0x17c8] ss:$40 sps:$4 sm:$0xff]   ;;  %v14806_v23 = vld [vmem:[#allocation3 + $0x8dc] ss:$40 sps:$4 sm:$0xff]   ;;  %v14808_v16 = vld [vmem:[#allocation3 + $0x92c] ss:$40 sps:$4 sm:$0xff]  }
 0x32d   :  { %7858 = vmatmul.mubr.bf16.gmra.mrb[140].mxu1 %v5542_v54  ;;  %v5562_v54 = vpack.c.bf16 %v14805_v9, %v14804_v37  ;;  %v14810_v37 = vld [vmem:[#allocation3 + $0x8d8] ss:$40 sps:$4 sm:$0xff]  }
 0x32e   :  { %7867 = vmatprep.mubr.bf16.mxu1 %v5553_v7  ;;  %v5573_v7 = vpack.c.bf16 %v14814_v39, %v14812_v20  ;;  %v14829_v9 = vld [vmem:[#allocation3 + $0x18b8] ss:$40 sps:$4 sm:$0xff]   ;;  %v14836_v20 = vld [vmem:[#allocation3 + $0x190c] ss:$40 sps:$4 sm:$0xff]   ;;  %v14838_v39 = vld [vmem:[#allocation3 + $0x195c] ss:$40 sps:$4 sm:$0xff]  }
 0x333   :  { %8954 = vmatmul.mubr.bf16.gmra.mrb[40].mxu0 %v5296_v62  ;;  %v5316_v62 = vpack.c.bf16 %v14787_v8, %v14786_v46  ;;  %v14811_v46 = vld [vmem:[#allocation3 + $0x928] ss:$40 sps:$4 sm:$0xff]  }
 0x334   :  { %8963 = vmatprep.mubr.bf16.mxu0 %v5307_v57  ;;  %v5327_v57 = vpack.c.bf16 %v14796_v47, %v14794_v0  ;;  %v14828_v8 = vld [vmem:[#allocation3 + $0x1868] ss:$40 sps:$4 sm:$0xff]   ;;  %v14818_v0 = vld [vmem:[#allocation3 + $0x97c] ss:$40 sps:$4 sm:$0xff]   ;;  %v14820_v47 = vld [vmem:[#allocation3 + $0x9cc] ss:$40 sps:$4 sm:$0xff]  }
 0x335   :  { %7868 = vmatmul.mubr.bf16.gmra.mrb[144].mxu1 %v5552_v22  ;;  %v5572_v22 = vpack.c.bf16 %v14817_v25, %v14816_v42  ;;  %v14822_v42 = vld [vmem:[#allocation3 + $0x978] ss:$40 sps:$4 sm:$0xff]  }
 0x336   :  { %7877 = vmatprep.mubr.bf16.mxu1 %v5563_v24  ;;  %v5583_v24 = vpack.c.bf16 %v14826_v13, %v14824_v3  ;;  %v14841_v25 = vld [vmem:[#allocation3 + $0x1958] ss:$40 sps:$4 sm:$0xff]   ;;  %v14848_v3 = vld [vmem:[#allocation3 + $0x19ac] ss:$40 sps:$4 sm:$0xff]   ;;  %v14850_v13 = vld [vmem:[#allocation3 + $0x19fc] ss:$40 sps:$4 sm:$0xff]  }
 0x33b   :  { %8964 = vmatmul.mubr.bf16.gmra.mrb[44].mxu0 %v5306_v50  ;;  %v5326_v50 = vpack.c.bf16 %v14799_v40, %v14798_v2  ;;  %v14823_v2 = vld [vmem:[#allocation3 + $0x9c8] ss:$40 sps:$4 sm:$0xff]  }
 0x33c   :  { %8973 = vmatprep.mubr.bf16.mxu0 %v5317_v35  ;;  %v5337_v35 = vpack.c.bf16 %v14808_v16, %v14806_v23  ;;  %v14840_v40 = vld [vmem:[#allocation3 + $0x1908] ss:$40 sps:$4 sm:$0xff]   ;;  %v14830_v23 = vld [vmem:[#allocation3 + $0xa1c] ss:$40 sps:$4 sm:$0xff]   ;;  %v14832_v16 = vld [vmem:[#allocation3 + $0xa6c] ss:$40 sps:$4 sm:$0xff]  }
 0x33d   :  { %7878 = vmatmul.mubr.bf16.gmra.mrb[148].mxu1 %v5562_v54  ;;  %v5582_v54 = vpack.c.bf16 %v14829_v9, %v14828_v8  ;;  %v5357_v8 = vpack.c.bf16 %v14832_v16, %v14830_v23 }
 0x33e   :  { %7887 = vmatprep.mubr.bf16.mxu1 %v5573_v7  ;;  %v5593_v7 = vpack.c.bf16 %v14838_v39, %v14836_v20  ;;  %v14834_v20 = vld [vmem:[#allocation3 + $0xa18] ss:$40 sps:$4 sm:$0xff]   ;;  %v14835_v39 = vld [vmem:[#allocation3 + $0xa68] ss:$40 sps:$4 sm:$0xff]  }
 0x343   :  { %8974 = vmatmul.mubr.bf16.gmra.mrb[48].mxu0 %v5316_v62  ;;  %v5336_v62 = vpack.c.bf16 %v14811_v46, %v14810_v37  ;;  %v5603_v46 = vpack.c.bf16 %v14850_v13, %v14848_v3  ;;  %v5356_v13 = vpack.c.bf16 %v14835_v39, %v14834_v20 }
 0x344   :  { %8983 = vmatprep.mubr.bf16.mxu0 %v5327_v57  ;;  %v5347_v57 = vpack.c.bf16 %v14820_v47, %v14818_v0  ;;  %v14842_v0 = vld [vmem:[#allocation3 + $0xabc] ss:$40 sps:$4 sm:$0xff]   ;;  %v14852_v47 = vld [vmem:[#allocation3 + $0x19a8] ss:$40 sps:$4 sm:$0xff]  }
 0x345   :  { %7888 = vmatmul.mubr.bf16.gmra.mrb[152].mxu1 %v5572_v22 }
 0x346   :  { %7897 = vmatprep.mubr.bf16.mxu1 %v5583_v24  ;;  %v5592_v24 = vpack.c.bf16 %v14841_v25, %v14840_v40  ;;  %v15026_v40 = vld [vmem:[#allocation6 + $0x400] ss:$8 sps:$4 sm:$0xff]  }
 0x34b   :  { %8984 = vmatmul.mubr.bf16.gmra.mrb[52].mxu0 %v5326_v50 }
 0x34c   :  { %8993 = vmatprep.mubr.bf16.mxu0 %v5337_v35  ;;  %v5346_v35 = vpack.c.bf16 %v14823_v2, %v14822_v42  ;;  %v15028_v42 = vld [vmem:[#allocation6 + $0x404] ss:$8 sps:$4 sm:$0xff]  }
 0x34d   :  { %7898 = vmatmul.mubr.bf16.gmra.mrb[156].mxu1 %v5582_v54  ;;  %v14853_v54 = vld [vmem:[#allocation3 + $0x19f8] ss:$40 sps:$4 sm:$0xff]   ;;  %9494 = vmatprep.subr.bf16.mxu0 %v15028_v42 }
 0x34e   :  { %7907 = vmatprep.mubr.bf16.mxu1 %v5593_v7  ;;  %v14862_v7 = vld [vmem:[#allocation3 + $0x1a9c] ss:$40 sps:$4 sm:$0xff]   ;;  %v5602_v3 = vpack.c.bf16 %v14853_v54, %v14852_v47  ;;  %9495 = vmatpush1.bf16.msra.mxu0 %v15026_v40  ;;  %v14856_v54 = vld [vmem:[#allocation3 + $0xbac] ss:$40 sps:$4 sm:$0xff]  }
 0x34f   :  { %v14854_v47 = vld [vmem:[#allocation3 + $0xb5c] ss:$40 sps:$4 sm:$0xff]  }
 0x350   :  { %v16158_v22 = vpop.f32.mrb[52].mxu1  ;;  %v5377_v40 = vpack.c.bf16 %v14856_v54, %v14854_v47 }
 0x351   :  { %v16160_v50 = vpop.f32.mrb[53].mxu1 }
 0x352   :  { %17427 = vst [vmem:[#allocation25_spill] sm:$0xff] %v16160_v50  ;;  %v16162_v37 = vpop.f32.mrb[54].mxu1  ;;  %v14874_v50 = vld [vmem:[#allocation3 + $0x1b3c] ss:$40 sps:$4 sm:$0xff]  }
 0x353   :  { %8994 = vmatmul.mubr.bf16.gmra.mrb[56].mxu0 %v5336_v62  ;;  %17428 = vst [vmem:[#allocation26_spill] sm:$0xff] %v16162_v37  ;;  %v16164_v9 = vpop.f32.mrb[55].mxu1  ;;  %v14860_v62 = vld [vmem:[#allocation3 + $0x1a4c] ss:$40 sps:$4 sm:$0xff]   ;;  %v14865_v37 = vld [vmem:[#allocation3 + $0x1a98] ss:$40 sps:$4 sm:$0xff]  }
 0x354   :  { %9003 = vmatprep.mubr.bf16.mxu0 %v5347_v57  ;;  %17429 = vst [vmem:[#allocation27_spill] sm:$0xff] %v16164_v9  ;;  %v14844_v57 = vld [vmem:[#allocation3 + $0xb0c] ss:$40 sps:$4 sm:$0xff]   ;;  %v5613_v16 = vpack.c.bf16 %v14862_v7, %v14860_v62  ;;  %v14847_v9 = vld [vmem:[#allocation3 + $0xb08] ss:$40 sps:$4 sm:$0xff]  }
 0x355   :  { %7908 = vmatmul.mubr.bf16.gmra.mrb[160].mxu1 %v5592_v24  ;;  %v5367_v24 = vpack.c.bf16 %v14844_v57, %v14842_v0 }
 0x356   :  { %7917 = vmatprep.mubr.bf16.mxu1 %v5603_v46  ;;  %v14846_v46 = vld [vmem:[#allocation3 + $0xab8] ss:$40 sps:$4 sm:$0xff]  }
 0x357   :  { %v5366_v0 = vpack.c.bf16 %v14847_v9, %v14846_v46 }
 0x358   :  { %v16166_v2 = vpop.f32.mrb[56].mxu1 }
 0x359   :  { %17430 = vst [vmem:[#allocation28_spill] sm:$0xff] %v16166_v2  ;;  %v16168_v25 = vpop.f32.mrb[57].mxu1  ;;  %v14872_v2 = vld [vmem:[#allocation3 + $0x1aec] ss:$40 sps:$4 sm:$0xff]  }
 0x35a   :  { %17431 = vst [vmem:[#allocation29_spill] sm:$0xff] %v16168_v25  ;;  %v16170_v23 = vpop.f32.mrb[58].mxu1  ;;  %v5623_v57 = vpack.c.bf16 %v14874_v50, %v14872_v2  ;;  %v14922_v25 = vld [vmem:[#allocation3 + $0x1dbc] ss:$40 sps:$4 sm:$0xff]  }
 0x35b   :  { %9004 = vmatmul.mubr.bf16.gmra.mrb[60].mxu0 %v5346_v35  ;;  %17432 = vst [vmem:[#allocation30_spill] sm:$0xff] %v16170_v23  ;;  %v16172_v35 = vpop.f32.mrb[59].mxu1  ;;  %v14886_v23 = vld [vmem:[#allocation3 + $0x1bdc] ss:$40 sps:$4 sm:$0xff]  }
 0x35c   :  { %9013 = vmatprep.mubr.bf16.mxu0 %v5357_v8  ;;  %17433 = vst [vmem:[#allocation31_spill] sm:$0xff] %v16172_v35  ;;  %v14864_v8 = vld [vmem:[#allocation3 + $0x1a48] ss:$40 sps:$4 sm:$0xff]   ;;  %v14877_v35 = vld [vmem:[#allocation3 + $0x1b38] ss:$40 sps:$4 sm:$0xff]  }
 0x35d   :  { %7918 = vmatmul.mubr.bf16.gmra.mrb[164].mxu1 %v5602_v3  ;;  %v5612_v62 = vpack.c.bf16 %v14865_v37, %v14864_v8  ;;  %v14858_v3 = vld [vmem:[#allocation3 + $0xb58] ss:$40 sps:$4 sm:$0xff]  }
 0x35e   :  { %7927 = vmatprep.mubr.bf16.mxu1 %v5613_v16  ;;  %v14876_v16 = vld [vmem:[#allocation3 + $0x1ae8] ss:$40 sps:$4 sm:$0xff]  }
 0x35f   :  { %v5622_v50 = vpack.c.bf16 %v14877_v35, %v14876_v16 }
 0x360   :  { %v16174_v20 = vpop.f32.mrb[60].mxu1 }
 0x361   :  { %17434 = vst [vmem:[#allocation32_spill] sm:$0xff] %v16174_v20  ;;  %v16176_v39 = vpop.f32.mrb[61].mxu1  ;;  %v14866_v20 = vld [vmem:[#allocation3 + $0xbfc] ss:$40 sps:$4 sm:$0xff]  }
 0x362   :  { %17435 = vst [vmem:[#allocation33_spill] sm:$0xff] %v16176_v39  ;;  %v16178_v7 = vpop.f32.mrb[62].mxu1  ;;  %v14868_v39 = vld [vmem:[#allocation3 + $0xc4c] ss:$40 sps:$4 sm:$0xff]  }
 0x363   :  { %9014 = vmatmul.mubr.bf16.gmra.mrb[64].mxu0 %v5356_v13  ;;  %17436 = vst [vmem:[#allocation34_spill] sm:$0xff] %v16178_v7  ;;  %v16180_v42 = vpop.f32.mrb[63].mxu1  ;;  %v14859_v13 = vld [vmem:[#allocation3 + $0xba8] ss:$40 sps:$4 sm:$0xff]   ;;  %v5387_v47 = vpack.c.bf16 %v14868_v39, %v14866_v20  ;;  %v14898_v7 = vld [vmem:[#allocation3 + $0x1c7c] ss:$40 sps:$4 sm:$0xff]  }
 0x364   :  { %9023 = vmatprep.mubr.bf16.mxu0 %v5367_v24  ;;  %17437 = vst [vmem:[#allocation35_spill] sm:$0xff] %v16180_v42  ;;  %v14884_v24 = vld [vmem:[#allocation3 + $0x1b8c] ss:$40 sps:$4 sm:$0xff]   ;;  %v5376_v2 = vpack.c.bf16 %v14859_v13, %v14858_v3  ;;  %v14889_v42 = vld [vmem:[#allocation3 + $0x1bd8] ss:$40 sps:$4 sm:$0xff]  }
 0x365   :  { %7928 = vmatmul.mubr.bf16.gmra.mrb[168].mxu1 %v5612_v62  ;;  %v5633_v8 = vpack.c.bf16 %v14886_v23, %v14884_v24  ;;  %v14870_v62 = vld [vmem:[#allocation3 + $0xbf8] ss:$40 sps:$4 sm:$0xff]  }
 0x366   :  { %7937 = vmatprep.mubr.bf16.mxu1 %v5623_v57  ;;  %v14888_v57 = vld [vmem:[#allocation3 + $0x1b88] ss:$40 sps:$4 sm:$0xff]  }
 0x367   :  { %v5632_v23 = vpack.c.bf16 %v14889_v42, %v14888_v57  ;;  %v15077_v42 = vld [vmem:[#allocation6 + $0x410] ss:$8 sps:$4 sm:$0xff]  }
 0x368   :  { %v16182_v37 = vpop.f32.mrb[64].mxu1 }
 0x369   :  { %17438 = vst [vmem:[#allocation36_spill] sm:$0xff] %v16182_v37  ;;  %v16184_v9 = vpop.f32.mrb[65].mxu1  ;;  %v14878_v37 = vld [vmem:[#allocation3 + $0xc9c] ss:$40 sps:$4 sm:$0xff]  }
 0x36a   :  { %17439 = vst [vmem:[#allocation37_spill] sm:$0xff] %v16184_v9  ;;  %v16186_v46 = vpop.f32.mrb[66].mxu1  ;;  %v14880_v9 = vld [vmem:[#allocation3 + $0xcec] ss:$40 sps:$4 sm:$0xff]  }
 0x36b   :  { %9024 = vmatmul.mubr.bf16.gmra.mrb[68].mxu0 %v5366_v0  ;;  %17440 = vst [vmem:[#allocation38_spill] sm:$0xff] %v16186_v46  ;;  %v16188_v54 = vpop.f32.mrb[67].mxu1  ;;  %v14871_v0 = vld [vmem:[#allocation3 + $0xc48] ss:$40 sps:$4 sm:$0xff]   ;;  %v5397_v16 = vpack.c.bf16 %v14880_v9, %v14878_v37  ;;  %v14908_v46 = vld [vmem:[#allocation3 + $0x1ccc] ss:$40 sps:$4 sm:$0xff]  }
 0x36c   :  { %9033 = vmatprep.mubr.bf16.mxu0 %v5377_v40  ;;  %17441 = vst [vmem:[#allocation39_spill] sm:$0xff] %v16188_v54  ;;  %v14896_v40 = vld [vmem:[#allocation3 + $0x1c2c] ss:$40 sps:$4 sm:$0xff]   ;;  %v5386_v20 = vpack.c.bf16 %v14871_v0, %v14870_v62  ;;  %v14901_v54 = vld [vmem:[#allocation3 + $0x1c78] ss:$40 sps:$4 sm:$0xff]  }
 0x36d   :  { %7938 = vmatmul.mubr.bf16.gmra.mrb[172].mxu1 %v5622_v50  ;;  %v5643_v13 = vpack.c.bf16 %v14898_v7, %v14896_v40  ;;  %v14882_v50 = vld [vmem:[#allocation3 + $0xc98] ss:$40 sps:$4 sm:$0xff]   ;;  %v15079_v62 = vld [vmem:[#allocation6 + $0x414] ss:$8 sps:$4 sm:$0xff]  }
 0x36e   :  { %7947 = vmatprep.mubr.bf16.mxu1 %v5633_v8  ;;  %v14900_v8 = vld [vmem:[#allocation3 + $0x1c28] ss:$40 sps:$4 sm:$0xff]   ;;  %9496 = vmatprep.subr.bf16.mxu0 %v15079_v62 }
 0x36f   :  { %v5642_v37 = vpack.c.bf16 %v14901_v54, %v14900_v8  ;;  %9497 = vmatpush1.bf16.msra.mxu0 %v15077_v42  ;;  %v14902_v54 = vld [vmem:[#allocation3 + $0xddc] ss:$40 sps:$4 sm:$0xff]   ;;  %v14904_v8 = vld [vmem:[#allocation3 + $0xe2c] ss:$40 sps:$4 sm:$0xff]  }
 0x370   :  { %v16190_v35 = vpop.f32.mrb[68].mxu1  ;;  %v5417_v42 = vpack.c.bf16 %v14904_v8, %v14902_v54 }
 0x371   :  { %17442 = vst [vmem:[#allocation40_spill] sm:$0xff] %v16190_v35  ;;  %v16192_v3 = vpop.f32.mrb[69].mxu1  ;;  %v14910_v35 = vld [vmem:[#allocation3 + $0x1d1c] ss:$40 sps:$4 sm:$0xff]  }
 0x372   :  { %17443 = vst [vmem:[#allocation41_spill] sm:$0xff] %v16192_v3  ;;  %v16194_v39 = vpop.f32.mrb[70].mxu1  ;;  %v14892_v3 = vld [vmem:[#allocation3 + $0xd8c] ss:$40 sps:$4 sm:$0xff]   ;;  %v5653_v40 = vpack.c.bf16 %v14910_v35, %v14908_v46 }
 0x373   :  { %9034 = vmatmul.mubr.bf16.gmra.mrb[72].mxu0 %v5376_v2  ;;  %17444 = vst [vmem:[#allocation42_spill] sm:$0xff] %v16194_v39  ;;  %v16196_v24 = vpop.f32.mrb[71].mxu1  ;;  %v14883_v2 = vld [vmem:[#allocation3 + $0xce8] ss:$40 sps:$4 sm:$0xff]  }
 0x374   :  { %9043 = vmatprep.mubr.bf16.mxu0 %v5387_v47  ;;  %17445 = vst [vmem:[#allocation43_spill] sm:$0xff] %v16196_v24  ;;  %v14890_v47 = vld [vmem:[#allocation3 + $0xd3c] ss:$40 sps:$4 sm:$0xff]   ;;  %v5396_v9 = vpack.c.bf16 %v14883_v2, %v14882_v50  ;;  %v14913_v24 = vld [vmem:[#allocation3 + $0x1d18] ss:$40 sps:$4 sm:$0xff]  }
 0x375   :  { %7948 = vmatmul.mubr.bf16.gmra.mrb[176].mxu1 %v5632_v23  ;;  %v5407_v23 = vpack.c.bf16 %v14892_v3, %v14890_v47  ;;  %v14895_v39 = vld [vmem:[#allocation3 + $0xd88] ss:$40 sps:$4 sm:$0xff]  }
 0x376   :  { %7957 = vmatprep.mubr.bf16.mxu1 %v5643_v13  ;;  %v14894_v13 = vld [vmem:[#allocation3 + $0xd38] ss:$40 sps:$4 sm:$0xff]  }
 0x377   :  { %v5406_v35 = vpack.c.bf16 %v14895_v39, %v14894_v13 }
 0x378   :  { %v16198_v0 = vpop.f32.mrb[72].mxu1 }
 0x379   :  { %17446 = vst [vmem:[#allocation44_spill] sm:$0xff] %v16198_v0  ;;  %v16200_v7 = vpop.f32.mrb[73].mxu1  ;;  %v14920_v0 = vld [vmem:[#allocation3 + $0x1d6c] ss:$40 sps:$4 sm:$0xff]  }
 0x37a   :  { %17447 = vst [vmem:[#allocation45_spill] sm:$0xff] %v16200_v7  ;;  %v16202_v57 = vpop.f32.mrb[74].mxu1  ;;  %v5663_v47 = vpack.c.bf16 %v14922_v25, %v14920_v0  ;;  %v14970_v7 = vld [vmem:[#allocation3 + $0x203c] ss:$40 sps:$4 sm:$0xff]  }
 0x37b   :  { %9044 = vmatmul.mubr.bf16.gmra.mrb[76].mxu0 %v5386_v20  ;;  %17448 = vst [vmem:[#allocation46_spill] sm:$0xff] %v16202_v57  ;;  %v16204_v20 = vpop.f32.mrb[75].mxu1  ;;  %v14934_v57 = vld [vmem:[#allocation3 + $0x1e5c] ss:$40 sps:$4 sm:$0xff]  }
 0x37c   :  { %9053 = vmatprep.mubr.bf16.mxu0 %v5397_v16  ;;  %17449 = vst [vmem:[#allocation47_spill] sm:$0xff] %v16204_v20  ;;  %v14912_v16 = vld [vmem:[#allocation3 + $0x1cc8] ss:$40 sps:$4 sm:$0xff]   ;;  %v14932_v20 = vld [vmem:[#allocation3 + $0x1e0c] ss:$40 sps:$4 sm:$0xff]  }
 0x37d   :  { %7958 = vmatmul.mubr.bf16.gmra.mrb[180].mxu1 %v5642_v37  ;;  %v5652_v46 = vpack.c.bf16 %v14913_v24, %v14912_v16  ;;  %v14906_v37 = vld [vmem:[#allocation3 + $0xdd8] ss:$40 sps:$4 sm:$0xff]   ;;  %v5673_v16 = vpack.c.bf16 %v14934_v57, %v14932_v20 }
 0x37e   :  { %7967 = vmatprep.mubr.bf16.mxu1 %v5653_v40  ;;  %v14925_v40 = vld [vmem:[#allocation3 + $0x1db8] ss:$40 sps:$4 sm:$0xff]  }
 0x380   :  { %v16206_v50 = vpop.f32.mrb[76].mxu1 }
 0x381   :  { %17450 = vst [vmem:[#allocation48_spill] sm:$0xff] %v16206_v50  ;;  %v16208_v2 = vpop.f32.mrb[77].mxu1  ;;  %v14914_v50 = vld [vmem:[#allocation3 + $0xe7c] ss:$40 sps:$4 sm:$0xff]  }
 0x382   :  { %17451 = vst [vmem:[#allocation49_spill] sm:$0xff] %v16208_v2  ;;  %v16210_v3 = vpop.f32.mrb[78].mxu1  ;;  %v14916_v2 = vld [vmem:[#allocation3 + $0xecc] ss:$40 sps:$4 sm:$0xff]  }
 0x383   :  { %9054 = vmatmul.mubr.bf16.gmra.mrb[80].mxu0 %v5396_v9  ;;  %17452 = vst [vmem:[#allocation50_spill] sm:$0xff] %v16210_v3  ;;  %v16212_v62 = vpop.f32.mrb[79].mxu1  ;;  %v14924_v9 = vld [vmem:[#allocation3 + $0x1d68] ss:$40 sps:$4 sm:$0xff]   ;;  %v5427_v54 = vpack.c.bf16 %v14916_v2, %v14914_v50  ;;  %v14946_v3 = vld [vmem:[#allocation3 + $0x1efc] ss:$40 sps:$4 sm:$0xff]  }
 0x384   :  { %9063 = vmatprep.mubr.bf16.mxu0 %v5407_v23  ;;  %17453 = vst [vmem:[#allocation51_spill] sm:$0xff] %v16212_v62  ;;  %v14907_v23 = vld [vmem:[#allocation3 + $0xe28] ss:$40 sps:$4 sm:$0xff]   ;;  %v5662_v25 = vpack.c.bf16 %v14925_v40, %v14924_v9  ;;  %v14944_v62 = vld [vmem:[#allocation3 + $0x1eac] ss:$40 sps:$4 sm:$0xff]  }
 0x385   :  { %7968 = vmatmul.mubr.bf16.gmra.mrb[184].mxu1 %v5652_v46  ;;  %v5416_v0 = vpack.c.bf16 %v14907_v23, %v14906_v37  ;;  %v14918_v46 = vld [vmem:[#allocation3 + $0xe78] ss:$40 sps:$4 sm:$0xff]   ;;  %v5683_v2 = vpack.c.bf16 %v14946_v3, %v14944_v62 }
 0x386   :  { %7977 = vmatprep.mubr.bf16.mxu1 %v5663_v47  ;;  %v14937_v47 = vld [vmem:[#allocation3 + $0x1e58] ss:$40 sps:$4 sm:$0xff]  }
 0x388   :  { %v16214_v24 = vpop.f32.mrb[80].mxu1 }
 0x389   :  { %17454 = vst [vmem:[#allocation52_spill] sm:$0xff] %v16214_v24  ;;  %v16216_v39 = vpop.f32.mrb[81].mxu1  ;;  %v14926_v24 = vld [vmem:[#allocation3 + $0xf1c] ss:$40 sps:$4 sm:$0xff]  }
 0x38a   :  { %17455 = vst [vmem:[#allocation53_spill] sm:$0xff] %v16216_v39  ;;  %v16218_v13 = vpop.f32.mrb[82].mxu1  ;;  %v14928_v39 = vld [vmem:[#allocation3 + $0xf6c] ss:$40 sps:$4 sm:$0xff]  }
 0x38b   :  { %9064 = vmatmul.mubr.bf16.gmra.mrb[84].mxu0 %v5406_v35  ;;  %17456 = vst [vmem:[#allocation54_spill] sm:$0xff] %v16218_v13  ;;  %v16220_v8 = vpop.f32.mrb[83].mxu1  ;;  %v14936_v35 = vld [vmem:[#allocation3 + $0x1e08] ss:$40 sps:$4 sm:$0xff]   ;;  %v5437_v40 = vpack.c.bf16 %v14928_v39, %v14926_v24  ;;  %v14956_v13 = vld [vmem:[#allocation3 + $0x1f4c] ss:$40 sps:$4 sm:$0xff]  }
 0x38c   :  { %9073 = vmatprep.mubr.bf16.mxu0 %v5417_v42  ;;  %17457 = vst [vmem:[#allocation55_spill] sm:$0xff] %v16220_v8  ;;  %v14919_v42 = vld [vmem:[#allocation3 + $0xec8] ss:$40 sps:$4 sm:$0xff]   ;;  %v5672_v57 = vpack.c.bf16 %v14937_v47, %v14936_v35  ;;  %v14949_v8 = vld [vmem:[#allocation3 + $0x1ef8] ss:$40 sps:$4 sm:$0xff]  }
 0x38d   :  { %7978 = vmatmul.mubr.bf16.gmra.mrb[188].mxu1 %v5662_v25  ;;  %v5426_v20 = vpack.c.bf16 %v14919_v42, %v14918_v46  ;;  %v14930_v25 = vld [vmem:[#allocation3 + $0xf18] ss:$40 sps:$4 sm:$0xff]   ;;  %v15130_v46 = vld [vmem:[#allocation6 + $0x424] ss:$8 sps:$4 sm:$0xff]  }
 0x38e   :  { %7987 = vmatprep.mubr.bf16.mxu1 %v5673_v16  ;;  %v14948_v16 = vld [vmem:[#allocation3 + $0x1ea8] ss:$40 sps:$4 sm:$0xff]   ;;  %9498 = vmatprep.subr.bf16.mxu0 %v15130_v46 }
 0x38f   :  { %v15128_v35 = vld [vmem:[#allocation6 + $0x420] ss:$8 sps:$4 sm:$0xff]   ;;  %v5682_v62 = vpack.c.bf16 %v14949_v8, %v14948_v16  ;;  %v14950_v8 = vld [vmem:[#allocation3 + $0x105c] ss:$40 sps:$4 sm:$0xff]   ;;  %v14952_v16 = vld [vmem:[#allocation3 + $0x10ac] ss:$40 sps:$4 sm:$0xff]  }
 0x390   :  { %v16222_v9 = vpop.f32.mrb[84].mxu1  ;;  %9499 = vmatpush1.bf16.msra.mxu0 %v15128_v35  ;;  %v5457_v35 = vpack.c.bf16 %v14952_v16, %v14950_v8 }
 0x391   :  { %17458 = vst [vmem:[#allocation56_spill] sm:$0xff] %v16222_v9  ;;  %v16224_v37 = vpop.f32.mrb[85].mxu1  ;;  %v14958_v9 = vld [vmem:[#allocation3 + $0x1f9c] ss:$40 sps:$4 sm:$0xff]  }
 0x392   :  { %17459 = vst [vmem:[#allocation57_spill] sm:$0xff] %v16224_v37  ;;  %v16226_v50 = vpop.f32.mrb[86].mxu1  ;;  %v14940_v37 = vld [vmem:[#allocation3 + $0x100c] ss:$40 sps:$4 sm:$0xff]   ;;  %v5693_v42 = vpack.c.bf16 %v14958_v9, %v14956_v13 }
 0x393   :  { %9074 = vmatmul.mubr.bf16.gmra.mrb[88].mxu0 %v5416_v0  ;;  %17460 = vst [vmem:[#allocation58_spill] sm:$0xff] %v16226_v50  ;;  %v16228_v23 = vpop.f32.mrb[87].mxu1  ;;  %v14931_v0 = vld [vmem:[#allocation3 + $0xf68] ss:$40 sps:$4 sm:$0xff]  }
 0x394   :  { %9083 = vmatprep.mubr.bf16.mxu0 %v5427_v54  ;;  %17461 = vst [vmem:[#allocation59_spill] sm:$0xff] %v16228_v23  ;;  %v14938_v54 = vld [vmem:[#allocation3 + $0xfbc] ss:$40 sps:$4 sm:$0xff]   ;;  %v5436_v24 = vpack.c.bf16 %v14931_v0, %v14930_v25  ;;  %v14961_v23 = vld [vmem:[#allocation3 + $0x1f98] ss:$40 sps:$4 sm:$0xff]  }
 0x395   :  { %7988 = vmatmul.mubr.bf16.gmra.mrb[192].mxu1 %v5672_v57  ;;  %v5447_v57 = vpack.c.bf16 %v14940_v37, %v14938_v54  ;;  %v14943_v50 = vld [vmem:[#allocation3 + $0x1008] ss:$40 sps:$4 sm:$0xff]  }
 0x396   :  { %7997 = vmatprep.mubr.bf16.mxu1 %v5683_v2  ;;  %v14942_v2 = vld [vmem:[#allocation3 + $0xfb8] ss:$40 sps:$4 sm:$0xff]  }
 0x397   :  { %v5446_v9 = vpack.c.bf16 %v14943_v50, %v14942_v2 }
 0x398   :  { %v16230_v47 = vpop.f32.mrb[88].mxu1 }
 0x399   :  { %17462 = vst [vmem:[#allocation60_spill] sm:$0xff] %v16230_v47  ;;  %v16232_v3 = vpop.f32.mrb[89].mxu1  ;;  %v14968_v47 = vld [vmem:[#allocation3 + $0x1fec] ss:$40 sps:$4 sm:$0xff]  }
 0x39a   :  { %17463 = vst [vmem:[#allocation61_spill] sm:$0xff] %v16232_v3  ;;  %v16234_v39 = vpop.f32.mrb[90].mxu1  ;;  %v5703_v54 = vpack.c.bf16 %v14970_v7, %v14968_v47  ;;  %v15018_v3 = vld [vmem:[#allocation3 + $0x22bc] ss:$40 sps:$4 sm:$0xff]  }
 0x39b   :  { %9084 = vmatmul.mubr.bf16.gmra.mrb[92].mxu0 %v5426_v20  ;;  %17464 = vst [vmem:[#allocation62_spill] sm:$0xff] %v16234_v39  ;;  %v16236_v20 = vpop.f32.mrb[91].mxu1  ;;  %v14982_v39 = vld [vmem:[#allocation3 + $0x20dc] ss:$40 sps:$4 sm:$0xff]  }
 0x39c   :  { %9093 = vmatprep.mubr.bf16.mxu0 %v5437_v40  ;;  %17465 = vst [vmem:[#allocation63_spill] sm:$0xff] %v16236_v20  ;;  %v14960_v40 = vld [vmem:[#allocation3 + $0x1f48] ss:$40 sps:$4 sm:$0xff]   ;;  %v14980_v20 = vld [vmem:[#allocation3 + $0x208c] ss:$40 sps:$4 sm:$0xff]  }
 0x39d   :  { %7998 = vmatmul.mubr.bf16.gmra.mrb[196].mxu1 %v5682_v62  ;;  %v5692_v13 = vpack.c.bf16 %v14961_v23, %v14960_v40  ;;  %v14954_v62 = vld [vmem:[#allocation3 + $0x1058] ss:$40 sps:$4 sm:$0xff]   ;;  %v5713_v40 = vpack.c.bf16 %v14982_v39, %v14980_v20 }
 0x39e   :  { %8007 = vmatprep.mubr.bf16.mxu1 %v5693_v42  ;;  %v14973_v42 = vld [vmem:[#allocation3 + $0x2038] ss:$40 sps:$4 sm:$0xff]  }
 0x3a0   :  { %v16238_v25 = vpop.f32.mrb[92].mxu1 }
 0x3a1   :  { %17466 = vst [vmem:[#allocation64_spill] sm:$0xff] %v16238_v25  ;;  %v16240_v0 = vpop.f32.mrb[93].mxu1  ;;  %v14962_v25 = vld [vmem:[#allocation3 + $0x10fc] ss:$40 sps:$4 sm:$0xff]  }
 0x3a2   :  { %17467 = vst [vmem:[#allocation65_spill] sm:$0xff] %v16240_v0  ;;  %v16242_v37 = vpop.f32.mrb[94].mxu1  ;;  %v14964_v0 = vld [vmem:[#allocation3 + $0x114c] ss:$40 sps:$4 sm:$0xff]  }
 0x3a3   :  { %9094 = vmatmul.mubr.bf16.gmra.mrb[96].mxu0 %v5436_v24  ;;  %17468 = vst [vmem:[#allocation66_spill] sm:$0xff] %v16242_v37  ;;  %v16244_v46 = vpop.f32.mrb[95].mxu1  ;;  %v14972_v24 = vld [vmem:[#allocation3 + $0x1fe8] ss:$40 sps:$4 sm:$0xff]   ;;  %v5467_v8 = vpack.c.bf16 %v14964_v0, %v14962_v25  ;;  %v14994_v37 = vld [vmem:[#allocation3 + $0x217c] ss:$40 sps:$4 sm:$0xff]  }
 0x3a4   :  { %9103 = vmatprep.mubr.bf16.mxu0 %v5447_v57  ;;  %17469 = vst [vmem:[#allocation67_spill] sm:$0xff] %v16244_v46  ;;  %v14955_v57 = vld [vmem:[#allocation3 + $0x10a8] ss:$40 sps:$4 sm:$0xff]   ;;  %v5702_v7 = vpack.c.bf16 %v14973_v42, %v14972_v24  ;;  %v14992_v46 = vld [vmem:[#allocation3 + $0x212c] ss:$40 sps:$4 sm:$0xff]  }
 0x3a5   :  { %8008 = vmatmul.mubr.bf16.gmra.mrb[200].mxu1 %v5692_v13  ;;  %v5456_v47 = vpack.c.bf16 %v14955_v57, %v14954_v62  ;;  %v14966_v13 = vld [vmem:[#allocation3 + $0x10f8] ss:$40 sps:$4 sm:$0xff]   ;;  %v5723_v0 = vpack.c.bf16 %v14994_v37, %v14992_v46 }
 0x3a6   :  { %8017 = vmatprep.mubr.bf16.mxu1 %v5703_v54  ;;  %v14985_v54 = vld [vmem:[#allocation3 + $0x20d8] ss:$40 sps:$4 sm:$0xff]  }
 0x3a8   :  { %v16246_v23 = vpop.f32.mrb[96].mxu1 }
 0x3a9   :  { %17470 = vst [vmem:[#allocation68_spill] sm:$0xff] %v16246_v23  ;;  %v16248_v50 = vpop.f32.mrb[97].mxu1  ;;  %v14974_v23 = vld [vmem:[#allocation3 + $0x119c] ss:$40 sps:$4 sm:$0xff]  }
 0x3aa   :  { %17471 = vst [vmem:[#allocation69_spill] sm:$0xff] %v16248_v50  ;;  %v16250_v2 = vpop.f32.mrb[98].mxu1  ;;  %v14976_v50 = vld [vmem:[#allocation3 + $0x11ec] ss:$40 sps:$4 sm:$0xff]  }
 0x3ab   :  { %9104 = vmatmul.mubr.bf16.gmra.mrb[100].mxu0 %v5446_v9  ;;  %17472 = vst [vmem:[#allocation70_spill] sm:$0xff] %v16250_v2  ;;  %v16252_v16 = vpop.f32.mrb[99].mxu1  ;;  %v14984_v9 = vld [vmem:[#allocation3 + $0x2088] ss:$40 sps:$4 sm:$0xff]   ;;  %v5477_v42 = vpack.c.bf16 %v14976_v50, %v14974_v23  ;;  %v15004_v2 = vld [vmem:[#allocation3 + $0x21cc] ss:$40 sps:$4 sm:$0xff]  }
 0x3ac   :  { %9113 = vmatprep.mubr.bf16.mxu0 %v5457_v35  ;;  %17473 = vst [vmem:[#allocation71_spill] sm:$0xff] %v16252_v16  ;;  %v14967_v35 = vld [vmem:[#allocation3 + $0x1148] ss:$40 sps:$4 sm:$0xff]   ;;  %v5712_v39 = vpack.c.bf16 %v14985_v54, %v14984_v9  ;;  %v14997_v16 = vld [vmem:[#allocation3 + $0x2178] ss:$40 sps:$4 sm:$0xff]  }
 0x3ad   :  { %8018 = vmatmul.mubr.bf16.gmra.mrb[204].mxu1 %v5702_v7  ;;  %v5466_v20 = vpack.c.bf16 %v14967_v35, %v14966_v13  ;;  %v14978_v7 = vld [vmem:[#allocation3 + $0x1198] ss:$40 sps:$4 sm:$0xff]   ;;  %v15157_v13 = vld [vmem:[#allocation6 + $0x434] ss:$8 sps:$4 sm:$0xff]  }
 0x3ae   :  { %8027 = vmatprep.mubr.bf16.mxu1 %v5713_v40  ;;  %v14996_v40 = vld [vmem:[#allocation3 + $0x2128] ss:$40 sps:$4 sm:$0xff]   ;;  %9500 = vmatprep.subr.bf16.mxu0 %v15157_v13 }
 0x3af   :  { %v15155_v9 = vld [vmem:[#allocation6 + $0x430] ss:$8 sps:$4 sm:$0xff]   ;;  %v5722_v46 = vpack.c.bf16 %v14997_v16, %v14996_v40  ;;  %v14998_v16 = vld [vmem:[#allocation3 + $0x12dc] ss:$40 sps:$4 sm:$0xff]   ;;  %v15000_v40 = vld [vmem:[#allocation3 + $0x132c] ss:$40 sps:$4 sm:$0xff]  }
 0x3b0   :  { %v16254_v24 = vpop.f32.mrb[100].mxu1  ;;  %9501 = vmatpush1.bf16.msra.mxu0 %v15155_v9  ;;  %v5497_v9 = vpack.c.bf16 %v15000_v40, %v14998_v16 }
 0x3b1   :  { %17474 = vst [vmem:[#allocation72_spill] sm:$0xff] %v16254_v24  ;;  %v16256_v62 = vpop.f32.mrb[101].mxu1  ;;  %v15006_v24 = vld [vmem:[#allocation3 + $0x221c] ss:$40 sps:$4 sm:$0xff]  }
 0x3b2   :  { %17475 = vst [vmem:[#allocation73_spill] sm:$0xff] %v16256_v62  ;;  %v16258_v25 = vpop.f32.mrb[102].mxu1  ;;  %v14988_v62 = vld [vmem:[#allocation3 + $0x128c] ss:$40 sps:$4 sm:$0xff]   ;;  %v5733_v35 = vpack.c.bf16 %v15006_v24, %v15004_v2 }
 0x3b3   :  { %9114 = vmatmul.mubr.bf16.gmra.mrb[104].mxu0 %v5456_v47  ;;  %17476 = vst [vmem:[#allocation74_spill] sm:$0xff] %v16258_v25  ;;  %v16260_v57 = vpop.f32.mrb[103].mxu1  ;;  %v14979_v47 = vld [vmem:[#allocation3 + $0x11e8] ss:$40 sps:$4 sm:$0xff]  }
 0x3b4   :  { %9123 = vmatprep.mubr.bf16.mxu0 %v5467_v8  ;;  %17477 = vst [vmem:[#allocation75_spill] sm:$0xff] %v16260_v57  ;;  %v14986_v8 = vld [vmem:[#allocation3 + $0x123c] ss:$40 sps:$4 sm:$0xff]   ;;  %v5476_v23 = vpack.c.bf16 %v14979_v47, %v14978_v7  ;;  %v15009_v57 = vld [vmem:[#allocation3 + $0x2218] ss:$40 sps:$4 sm:$0xff]  }
 0x3b5   :  { %8028 = vmatmul.mubr.bf16.gmra.mrb[208].mxu1 %v5712_v39  ;;  %v5487_v39 = vpack.c.bf16 %v14988_v62, %v14986_v8  ;;  %v14991_v25 = vld [vmem:[#allocation3 + $0x1288] ss:$40 sps:$4 sm:$0xff]  }
 0x3b6   :  { %8037 = vmatprep.mubr.bf16.mxu1 %v5723_v0  ;;  %v14990_v0 = vld [vmem:[#allocation3 + $0x1238] ss:$40 sps:$4 sm:$0xff]  }
 0x3b7   :  { %v5486_v24 = vpack.c.bf16 %v14991_v25, %v14990_v0 }
 0x3b8   :  { %v16262_v54 = vpop.f32.mrb[104].mxu1 }
 0x3b9   :  { %17478 = vst [vmem:[#allocation76_spill] sm:$0xff] %v16262_v54  ;;  %v16264_v37 = vpop.f32.mrb[105].mxu1  ;;  %v15016_v54 = vld [vmem:[#allocation3 + $0x226c] ss:$40 sps:$4 sm:$0xff]  }
 0x3ba   :  { %17479 = vst [vmem:[#allocation77_spill] sm:$0xff] %v16264_v37  ;;  %v16266_v50 = vpop.f32.mrb[106].mxu1  ;;  %v5743_v8 = vpack.c.bf16 %v15018_v3, %v15016_v54  ;;  %v15069_v37 = vld [vmem:[#allocation3 + $0x253c] ss:$40 sps:$4 sm:$0xff]  }
 0x3bb   :  { %9124 = vmatmul.mubr.bf16.gmra.mrb[108].mxu0 %v5466_v20  ;;  %17480 = vst [vmem:[#allocation78_spill] sm:$0xff] %v16266_v50  ;;  %v16268_v20 = vpop.f32.mrb[107].mxu1  ;;  %v15033_v50 = vld [vmem:[#allocation3 + $0x235c] ss:$40 sps:$4 sm:$0xff]  }
 0x3bc   :  { %9133 = vmatprep.mubr.bf16.mxu0 %v5477_v42  ;;  %17481 = vst [vmem:[#allocation79_spill] sm:$0xff] %v16268_v20  ;;  %v15008_v42 = vld [vmem:[#allocation3 + $0x21c8] ss:$40 sps:$4 sm:$0xff]   ;;  %v15031_v20 = vld [vmem:[#allocation3 + $0x230c] ss:$40 sps:$4 sm:$0xff]  }
 0x3bd   :  { %8038 = vmatmul.mubr.bf16.gmra.mrb[212].mxu1 %v5722_v46  ;;  %v5732_v2 = vpack.c.bf16 %v15009_v57, %v15008_v42  ;;  %v15002_v46 = vld [vmem:[#allocation3 + $0x12d8] ss:$40 sps:$4 sm:$0xff]   ;;  %v5753_v42 = vpack.c.bf16 %v15033_v50, %v15031_v20 }
 0x3be   :  { %8047 = vmatprep.mubr.bf16.mxu1 %v5733_v35  ;;  %v15021_v35 = vld [vmem:[#allocation3 + $0x22b8] ss:$40 sps:$4 sm:$0xff]  }
 0x3c0   :  { %v16270_v7 = vpop.f32.mrb[108].mxu1 }
 0x3c1   :  { %17482 = vst [vmem:[#allocation80_spill] sm:$0xff] %v16270_v7  ;;  %v16272_v47 = vpop.f32.mrb[109].mxu1  ;;  %v15010_v7 = vld [vmem:[#allocation3 + $0x137c] ss:$40 sps:$4 sm:$0xff]  }
 0x3c2   :  { %17483 = vst [vmem:[#allocation81_spill] sm:$0xff] %v16272_v47  ;;  %v16274_v62 = vpop.f32.mrb[110].mxu1  ;;  %v15012_v47 = vld [vmem:[#allocation3 + $0x13cc] ss:$40 sps:$4 sm:$0xff]  }
 0x3c3   :  { %9134 = vmatmul.mubr.bf16.gmra.mrb[112].mxu0 %v5476_v23  ;;  %17484 = vst [vmem:[#allocation82_spill] sm:$0xff] %v16274_v62  ;;  %v16276_v13 = vpop.f32.mrb[111].mxu1  ;;  %v15020_v23 = vld [vmem:[#allocation3 + $0x2268] ss:$40 sps:$4 sm:$0xff]   ;;  %v5507_v16 = vpack.c.bf16 %v15012_v47, %v15010_v7  ;;  %v15045_v62 = vld [vmem:[#allocation3 + $0x23fc] ss:$40 sps:$4 sm:$0xff]  }
 0x3c4   :  { %9143 = vmatprep.mubr.bf16.mxu0 %v5487_v39  ;;  %17485 = vst [vmem:[#allocation83_spill] sm:$0xff] %v16276_v13  ;;  %v15003_v39 = vld [vmem:[#allocation3 + $0x1328] ss:$40 sps:$4 sm:$0xff]   ;;  %v5742_v3 = vpack.c.bf16 %v15021_v35, %v15020_v23  ;;  %v15043_v13 = vld [vmem:[#allocation3 + $0x23ac] ss:$40 sps:$4 sm:$0xff]  }
 0x3c5   :  { %8048 = vmatmul.mubr.bf16.gmra.mrb[216].mxu1 %v5732_v2  ;;  %v5496_v54 = vpack.c.bf16 %v15003_v39, %v15002_v46  ;;  %v15014_v2 = vld [vmem:[#allocation3 + $0x1378] ss:$40 sps:$4 sm:$0xff]   ;;  %v5763_v47 = vpack.c.bf16 %v15045_v62, %v15043_v13 }
 0x3c6   :  { %8057 = vmatprep.mubr.bf16.mxu1 %v5743_v8  ;;  %v15036_v8 = vld [vmem:[#allocation3 + $0x2358] ss:$40 sps:$4 sm:$0xff]  }
 0x3c8   :  { %v16278_v57 = vpop.f32.mrb[112].mxu1 }
 0x3c9   :  { %17486 = vst [vmem:[#allocation84_spill] sm:$0xff] %v16278_v57  ;;  %v16280_v25 = vpop.f32.mrb[113].mxu1  ;;  %v15022_v57 = vld [vmem:[#allocation3 + $0x141c] ss:$40 sps:$4 sm:$0xff]  }
 0x3ca   :  { %17487 = vst [vmem:[#allocation85_spill] sm:$0xff] %v16280_v25  ;;  %v16282_v0 = vpop.f32.mrb[114].mxu1  ;;  %v15024_v25 = vld [vmem:[#allocation3 + $0x146c] ss:$40 sps:$4 sm:$0xff]  }
 0x3cb   :  { %9144 = vmatmul.mubr.bf16.gmra.mrb[116].mxu0 %v5486_v24  ;;  %17488 = vst [vmem:[#allocation86_spill] sm:$0xff] %v16282_v0  ;;  %v16284_v40 = vpop.f32.mrb[115].mxu1  ;;  %v15035_v24 = vld [vmem:[#allocation3 + $0x2308] ss:$40 sps:$4 sm:$0xff]   ;;  %v5517_v35 = vpack.c.bf16 %v15024_v25, %v15022_v57  ;;  %v15055_v0 = vld [vmem:[#allocation3 + $0x244c] ss:$40 sps:$4 sm:$0xff]  }
 0x3cc   :  { %9153 = vmatprep.mubr.bf16.mxu0 %v5497_v9  ;;  %17489 = vst [vmem:[#allocation87_spill] sm:$0xff] %v16284_v40  ;;  %v15015_v9 = vld [vmem:[#allocation3 + $0x13c8] ss:$40 sps:$4 sm:$0xff]   ;;  %v5752_v50 = vpack.c.bf16 %v15036_v8, %v15035_v24  ;;  %v15048_v40 = vld [vmem:[#allocation3 + $0x23f8] ss:$40 sps:$4 sm:$0xff]  }
 0x3cd   :  { %8058 = vmatmul.mubr.bf16.gmra.mrb[220].mxu1 %v5742_v3  ;;  %v5506_v20 = vpack.c.bf16 %v15015_v9, %v15014_v2  ;;  %v15029_v3 = vld [vmem:[#allocation3 + $0x1418] ss:$40 sps:$4 sm:$0xff]   ;;  %v15184_v2 = vld [vmem:[#allocation6 + $0x444] ss:$8 sps:$4 sm:$0xff]  }
 0x3ce   :  { %8067 = vmatprep.mubr.bf16.mxu1 %v5753_v42  ;;  %v15047_v42 = vld [vmem:[#allocation3 + $0x23a8] ss:$40 sps:$4 sm:$0xff]   ;;  %9502 = vmatprep.subr.bf16.mxu0 %v15184_v2 }
 0x3cf   :  { %v15182_v24 = vld [vmem:[#allocation6 + $0x440] ss:$8 sps:$4 sm:$0xff]   ;;  %v5762_v13 = vpack.c.bf16 %v15048_v40, %v15047_v42  ;;  %v15049_v40 = vld [vmem:[#allocation3 + $0x155c] ss:$40 sps:$4 sm:$0xff]   ;;  %v15051_v42 = vld [vmem:[#allocation3 + $0x15ac] ss:$40 sps:$4 sm:$0xff]  }
 0x3d0   :  { %v16286_v23 = vpop.f32.mrb[116].mxu1  ;;  %9503 = vmatpush1.bf16.msra.mxu0 %v15182_v24  ;;  %v5537_v24 = vpack.c.bf16 %v15051_v42, %v15049_v40 }
 0x3d1   :  { %17490 = vst [vmem:[#allocation88_spill] sm:$0xff] %v16286_v23  ;;  %v16288_v46 = vpop.f32.mrb[117].mxu1  ;;  %v15057_v23 = vld [vmem:[#allocation3 + $0x249c] ss:$40 sps:$4 sm:$0xff]  }
 0x3d2   :  { %17491 = vst [vmem:[#allocation89_spill] sm:$0xff] %v16288_v46  ;;  %v16290_v7 = vpop.f32.mrb[118].mxu1  ;;  %v15039_v46 = vld [vmem:[#allocation3 + $0x150c] ss:$40 sps:$4 sm:$0xff]   ;;  %v5773_v9 = vpack.c.bf16 %v15057_v23, %v15055_v0 }
 0x3d3   :  { %9154 = vmatmul.mubr.bf16.gmra.mrb[120].mxu0 %v5496_v54  ;;  %17492 = vst [vmem:[#allocation90_spill] sm:$0xff] %v16290_v7  ;;  %v16292_v39 = vpop.f32.mrb[119].mxu1  ;;  %v15030_v54 = vld [vmem:[#allocation3 + $0x1468] ss:$40 sps:$4 sm:$0xff]  }
 0x3d4   :  { %9163 = vmatprep.mubr.bf16.mxu0 %v5507_v16  ;;  %17493 = vst [vmem:[#allocation91_spill] sm:$0xff] %v16292_v39  ;;  %v15037_v16 = vld [vmem:[#allocation3 + $0x14bc] ss:$40 sps:$4 sm:$0xff]   ;;  %v5516_v57 = vpack.c.bf16 %v15030_v54, %v15029_v3  ;;  %v15060_v39 = vld [vmem:[#allocation3 + $0x2498] ss:$40 sps:$4 sm:$0xff]  }
 0x3d5   :  { %8068 = vmatmul.mubr.bf16.gmra.mrb[224].mxu1 %v5752_v50  ;;  %v5527_v50 = vpack.c.bf16 %v15039_v46, %v15037_v16  ;;  %v15042_v7 = vld [vmem:[#allocation3 + $0x1508] ss:$40 sps:$4 sm:$0xff]  }
 0x3d6   :  { %8077 = vmatprep.mubr.bf16.mxu1 %v5763_v47  ;;  %v15041_v47 = vld [vmem:[#allocation3 + $0x14b8] ss:$40 sps:$4 sm:$0xff]  }
 0x3d7   :  { %v5526_v23 = vpack.c.bf16 %v15042_v7, %v15041_v47 }
 0x3d8   :  { %v16294_v8 = vpop.f32.mrb[120].mxu1 }
 0x3d9   :  { %17494 = vst [vmem:[#allocation92_spill] sm:$0xff] %v16294_v8  ;;  %v16296_v62 = vpop.f32.mrb[121].mxu1  ;;  %v15067_v8 = vld [vmem:[#allocation3 + $0x24ec] ss:$40 sps:$4 sm:$0xff]  }
 0x3da   :  { %17495 = vst [vmem:[#allocation93_spill] sm:$0xff] %v16296_v62  ;;  %v16298_v25 = vpop.f32.mrb[122].mxu1  ;;  %v5783_v16 = vpack.c.bf16 %v15069_v37, %v15067_v8  ;;  %v15120_v62 = vld [vmem:[#allocation3 + $0x27bc] ss:$40 sps:$4 sm:$0xff]  }
 0x3db   :  { %9164 = vmatmul.mubr.bf16.gmra.mrb[124].mxu0 %v5506_v20  ;;  %17496 = vst [vmem:[#allocation94_spill] sm:$0xff] %v16298_v25  ;;  %v16300_v20 = vpop.f32.mrb[123].mxu1  ;;  %v15084_v25 = vld [vmem:[#allocation3 + $0x25dc] ss:$40 sps:$4 sm:$0xff]  }
 0x3dc   :  { %9173 = vmatprep.mubr.bf16.mxu0 %v5517_v35  ;;  %17497 = vst [vmem:[#allocation95_spill] sm:$0xff] %v16300_v20  ;;  %v15059_v35 = vld [vmem:[#allocation3 + $0x2448] ss:$40 sps:$4 sm:$0xff]   ;;  %v15082_v20 = vld [vmem:[#allocation3 + $0x258c] ss:$40 sps:$4 sm:$0xff]  }
 0x3dd   :  { %8078 = vmatmul.mubr.bf16.gmra.mrb[228].mxu1 %v5762_v13  ;;  %v5772_v0 = vpack.c.bf16 %v15060_v39, %v15059_v35  ;;  %v15053_v13 = vld [vmem:[#allocation3 + $0x1558] ss:$40 sps:$4 sm:$0xff]   ;;  %v5793_v35 = vpack.c.bf16 %v15084_v25, %v15082_v20 }
 0x3de   :  { %8087 = vmatprep.mubr.bf16.mxu1 %v5773_v9  ;;  %v15072_v9 = vld [vmem:[#allocation3 + $0x2538] ss:$40 sps:$4 sm:$0xff]  }
 0x3e0   :  { %v16302_v3 = vpop.f32.mrb[124].mxu1 }
 0x3e1   :  { %17498 = vst [vmem:[#allocation96_spill] sm:$0xff] %v16302_v3  ;;  %v16304_v54 = vpop.f32.mrb[125].mxu1  ;;  %v15061_v3 = vld [vmem:[#allocation3 + $0x15fc] ss:$40 sps:$4 sm:$0xff]  }
 0x3e2   :  { %17499 = vst [vmem:[#allocation97_spill] sm:$0xff] %v16304_v54  ;;  %v16306_v46 = vpop.f32.mrb[126].mxu1  ;;  %v15063_v54 = vld [vmem:[#allocation3 + $0x164c] ss:$40 sps:$4 sm:$0xff]  }
 0x3e3   :  { %9174 = vmatmul.mubr.bf16.gmra.mrb[128].mxu0 %v5516_v57  ;;  %17500 = vst [vmem:[#allocation98_spill] sm:$0xff] %v16306_v46  ;;  %v16308_v2 = vpop.f32.mrb[127].mxu1  ;;  %v15071_v57 = vld [vmem:[#allocation3 + $0x24e8] ss:$40 sps:$4 sm:$0xff]   ;;  %v5547_v40 = vpack.c.bf16 %v15063_v54, %v15061_v3  ;;  %v15096_v46 = vld [vmem:[#allocation3 + $0x267c] ss:$40 sps:$4 sm:$0xff]  }
 0x3e4   :  { %9183 = vmatprep.mubr.bf16.mxu0 %v5527_v50  ;;  %17501 = vst [vmem:[#allocation99_spill] sm:$0xff] %v16308_v2  ;;  %v15054_v50 = vld [vmem:[#allocation3 + $0x15a8] ss:$40 sps:$4 sm:$0xff]   ;;  %v5782_v37 = vpack.c.bf16 %v15072_v9, %v15071_v57  ;;  %v15094_v2 = vld [vmem:[#allocation3 + $0x262c] ss:$40 sps:$4 sm:$0xff]  }
 0x3e5   :  { %8088 = vmatmul.mubr.bf16.gmra.mrb[232].mxu1 %v5772_v0  ;;  %v5536_v8 = vpack.c.bf16 %v15054_v50, %v15053_v13  ;;  %v15065_v0 = vld [vmem:[#allocation3 + $0x15f8] ss:$40 sps:$4 sm:$0xff]   ;;  %v5803_v54 = vpack.c.bf16 %v15096_v46, %v15094_v2 }
 0x3e6   :  { %8097 = vmatprep.mubr.bf16.mxu1 %v5783_v16  ;;  %v15087_v16 = vld [vmem:[#allocation3 + $0x25d8] ss:$40 sps:$4 sm:$0xff]  }
 0x3e8   :  { %v16310_v39 = vpop.f32.mrb[128].mxu1 }
 0x3e9   :  { %17502 = vst [vmem:[#allocation100_spill] sm:$0xff] %v16310_v39  ;;  %v16312_v7 = vpop.f32.mrb[129].mxu1  ;;  %v15073_v39 = vld [vmem:[#allocation3 + $0x169c] ss:$40 sps:$4 sm:$0xff]  }
 0x3ea   :  { %17503 = vst [vmem:[#allocation101_spill] sm:$0xff] %v16312_v7  ;;  %v16314_v47 = vpop.f32.mrb[130].mxu1  ;;  %v15075_v7 = vld [vmem:[#allocation3 + $0x16ec] ss:$40 sps:$4 sm:$0xff]  }
 0x3eb   :  { %9184 = vmatmul.mubr.bf16.gmra.mrb[132].mxu0 %v5526_v23  ;;  %17504 = vst [vmem:[#allocation102_spill] sm:$0xff] %v16314_v47  ;;  %v16316_v42 = vpop.f32.mrb[131].mxu1  ;;  %v15086_v23 = vld [vmem:[#allocation3 + $0x2588] ss:$40 sps:$4 sm:$0xff]   ;;  %v5557_v9 = vpack.c.bf16 %v15075_v7, %v15073_v39  ;;  %v15106_v47 = vld [vmem:[#allocation3 + $0x26cc] ss:$40 sps:$4 sm:$0xff]  }
 0x3ec   :  { %9193 = vmatprep.mubr.bf16.mxu0 %v5537_v24  ;;  %17505 = vst [vmem:[#allocation103_spill] sm:$0xff] %v16316_v42  ;;  %v15066_v24 = vld [vmem:[#allocation3 + $0x1648] ss:$40 sps:$4 sm:$0xff]   ;;  %v5792_v25 = vpack.c.bf16 %v15087_v16, %v15086_v23  ;;  %v15099_v42 = vld [vmem:[#allocation3 + $0x2678] ss:$40 sps:$4 sm:$0xff]  }
 0x3ed   :  { %8098 = vmatmul.mubr.bf16.gmra.mrb[236].mxu1 %v5782_v37  ;;  %v5546_v20 = vpack.c.bf16 %v15066_v24, %v15065_v0  ;;  %v15080_v37 = vld [vmem:[#allocation3 + $0x1698] ss:$40 sps:$4 sm:$0xff]   ;;  %v15211_v0 = vld [vmem:[#allocation6 + $0x454] ss:$8 sps:$4 sm:$0xff]  }
 0x3ee   :  { %8107 = vmatprep.mubr.bf16.mxu1 %v5793_v35  ;;  %v15098_v35 = vld [vmem:[#allocation3 + $0x2628] ss:$40 sps:$4 sm:$0xff]   ;;  %9504 = vmatprep.subr.bf16.mxu0 %v15211_v0 }
 0x3ef   :  { %v15209_v23 = vld [vmem:[#allocation6 + $0x450] ss:$8 sps:$4 sm:$0xff]   ;;  %v5802_v2 = vpack.c.bf16 %v15099_v42, %v15098_v35  ;;  %v15100_v42 = vld [vmem:[#allocation3 + $0x17dc] ss:$40 sps:$4 sm:$0xff]   ;;  %v15102_v35 = vld [vmem:[#allocation3 + $0x182c] ss:$40 sps:$4 sm:$0xff]  }
 0x3f0   :  { %v16318_v57 = vpop.f32.mrb[132].mxu1  ;;  %9505 = vmatpush1.bf16.msra.mxu0 %v15209_v23  ;;  %v5577_v23 = vpack.c.bf16 %v15102_v35, %v15100_v42  ;;  %v15116_v42 = vld [vmem:[#allocation3 + $0x1878] ss:$40 sps:$4 sm:$0xff]   ;;  %v15117_v35 = vld [vmem:[#allocation3 + $0x18c8] ss:$40 sps:$4 sm:$0xff]  }
 0x3f1   :  { %17506 = vst [vmem:[#allocation104_spill] sm:$0xff] %v16318_v57  ;;  %v16320_v13 = vpop.f32.mrb[133].mxu1  ;;  %v15108_v57 = vld [vmem:[#allocation3 + $0x271c] ss:$40 sps:$4 sm:$0xff]  }
 0x3f2   :  { %17507 = vst [vmem:[#allocation105_spill] sm:$0xff] %v16320_v13  ;;  %v16322_v3 = vpop.f32.mrb[134].mxu1  ;;  %v15090_v13 = vld [vmem:[#allocation3 + $0x178c] ss:$40 sps:$4 sm:$0xff]   ;;  %v5813_v24 = vpack.c.bf16 %v15108_v57, %v15106_v47 }
 0x3f3   :  { %9194 = vmatmul.mubr.bf16.gmra.mrb[136].mxu0 %v5536_v8  ;;  %17508 = vst [vmem:[#allocation106_spill] sm:$0xff] %v16322_v3  ;;  %v16324_v50 = vpop.f32.mrb[135].mxu1  ;;  %v15081_v8 = vld [vmem:[#allocation3 + $0x16e8] ss:$40 sps:$4 sm:$0xff]  }
 0x3f4   :  { %9203 = vmatprep.mubr.bf16.mxu0 %v5547_v40  ;;  %17509 = vst [vmem:[#allocation107_spill] sm:$0xff] %v16324_v50  ;;  %v15088_v40 = vld [vmem:[#allocation3 + $0x173c] ss:$40 sps:$4 sm:$0xff]   ;;  %v5556_v39 = vpack.c.bf16 %v15081_v8, %v15080_v37  ;;  %v15111_v50 = vld [vmem:[#allocation3 + $0x2718] ss:$40 sps:$4 sm:$0xff]  }
 0x3f5   :  { %8108 = vmatmul.mubr.bf16.gmra.mrb[240].mxu1 %v5792_v25  ;;  %v5567_v25 = vpack.c.bf16 %v15090_v13, %v15088_v40  ;;  %v15093_v3 = vld [vmem:[#allocation3 + $0x1788] ss:$40 sps:$4 sm:$0xff]  }
 0x3f6   :  { %8117 = vmatprep.mubr.bf16.mxu1 %v5803_v54  ;;  %v15092_v54 = vld [vmem:[#allocation3 + $0x1738] ss:$40 sps:$4 sm:$0xff]  }
 0x3f7   :  { %v5566_v57 = vpack.c.bf16 %v15093_v3, %v15092_v54 }
 0x3f8   :  { %v16326_v16 = vpop.f32.mrb[136].mxu1 }
 0x3f9   :  { %17510 = vst [vmem:[#allocation108_spill] sm:$0xff] %v16326_v16  ;;  %v16328_v46 = vpop.f32.mrb[137].mxu1  ;;  %v15118_v16 = vld [vmem:[#allocation3 + $0x276c] ss:$40 sps:$4 sm:$0xff]  }
 0x3fa   :  { %17511 = vst [vmem:[#allocation109_spill] sm:$0xff] %v16328_v46  ;;  %v16330_v7 = vpop.f32.mrb[138].mxu1  ;;  %v5823_v40 = vpack.c.bf16 %v15120_v62, %v15118_v16  ;;  %v15500_v46 = vld [vmem:[#allocation3 + $0x1244] ss:$40 sps:$4 sm:$0xff]  }
 0x3fb   :  { %9204 = vmatmul.mubr.bf16.gmra.mrb[140].mxu0 %v5546_v20  ;;  %17512 = vst [vmem:[#allocation110_spill] sm:$0xff] %v16330_v7  ;;  %v16332_v20 = vpop.f32.mrb[139].mxu1 }
 0x3fc   :  { %9213 = vmatprep.mubr.bf16.mxu0 %v5557_v9  ;;  %17513 = vst [vmem:[#allocation111_spill] sm:$0xff] %v16332_v20  ;;  %v15110_v9 = vld [vmem:[#allocation3 + $0x26c8] ss:$40 sps:$4 sm:$0xff]   ;;  %v15112_v20 = vld [vmem:[#allocation3 + $0x187c] ss:$40 sps:$4 sm:$0xff]  }
 0x3fd   :  { %8118 = vmatmul.mubr.bf16.gmra.mrb[244].mxu1 %v5802_v2  ;;  %v5812_v47 = vpack.c.bf16 %v15111_v50, %v15110_v9  ;;  %v15122_v2 = vld [vmem:[#allocation3 + $0x2768] ss:$40 sps:$4 sm:$0xff]  }
 0x3fe   :  { %8127 = vmatprep.mubr.bf16.mxu1 %v5813_v24  ;;  %v15104_v24 = vld [vmem:[#allocation3 + $0x17d8] ss:$40 sps:$4 sm:$0xff]  }
 0x400   :  { %v16334_v37 = vpop.f32.mrb[140].mxu1 }
 0x401   :  { %17514 = vst [vmem:[#allocation112_spill] sm:$0xff] %v16334_v37  ;;  %v16336_v8 = vpop.f32.mrb[141].mxu1  ;;  %v15114_v37 = vld [vmem:[#allocation3 + $0x18cc] ss:$40 sps:$4 sm:$0xff]  }
 0x402   :  { %17515 = vst [vmem:[#allocation113_spill] sm:$0xff] %v16336_v8  ;;  %v16338_v13 = vpop.f32.mrb[142].mxu1  ;;  %v5587_v16 = vpack.c.bf16 %v15114_v37, %v15112_v20  ;;  %v15131_v20 = vld [vmem:[#allocation3 + $0x1918] ss:$40 sps:$4 sm:$0xff]   ;;  %v15132_v37 = vld [vmem:[#allocation3 + $0x1968] ss:$40 sps:$4 sm:$0xff]  }
 0x403   :  { %9214 = vmatmul.mubr.bf16.gmra.mrb[144].mxu0 %v5556_v39  ;;  %17516 = vst [vmem:[#allocation114_spill] sm:$0xff] %v16338_v13  ;;  %v16340_v0 = vpop.f32.mrb[143].mxu1  ;;  %v15123_v39 = vld [vmem:[#allocation3 + $0x27b8] ss:$40 sps:$4 sm:$0xff]  }
 0x404   :  { %9223 = vmatprep.mubr.bf16.mxu0 %v5567_v25  ;;  %17517 = vst [vmem:[#allocation115_spill] sm:$0xff] %v16340_v0  ;;  %v15105_v25 = vld [vmem:[#allocation3 + $0x1828] ss:$40 sps:$4 sm:$0xff]   ;;  %v5822_v3 = vpack.c.bf16 %v15123_v39, %v15122_v2 }
 0x405   :  { %8128 = vmatmul.mubr.bf16.gmra.mrb[248].mxu1 %v5812_v47  ;;  %v5576_v54 = vpack.c.bf16 %v15105_v25, %v15104_v24  ;;  %v15124_v47 = vld [vmem:[#allocation3 + $0x191c] ss:$40 sps:$4 sm:$0xff]   ;;  %v15135_v25 = vld [vmem:[#allocation3 + $0x1a0c] ss:$40 sps:$4 sm:$0xff]   ;;  %v15350_v0 = vld [vmem:[#allocation3 + $0x3e0] ss:$40 sps:$4 sm:$0xff]  }
 0x406   :  { %8137 = vmatprep.mubr.bf16.mxu1 %v5823_v40  ;;  %v15133_v24 = vld [vmem:[#allocation3 + $0x19bc] ss:$40 sps:$4 sm:$0xff]   ;;  %v15498_v8 = vld [vmem:[#allocation3 + $0x11a0] ss:$40 sps:$4 sm:$0xff]  }
 0x408   :  { %v16342_v7 = vpop.f32.mrb[144].mxu1 }
 0x409   :  { %17518 = vst [vmem:[#allocation116_spill] sm:$0xff] %v16342_v7  ;;  %v16344_v50 = vpop.f32.mrb[145].mxu1  ;;  %v5586_v7 = vpack.c.bf16 %v15117_v35, %v15116_v42  ;;  %v5607_v35 = vpack.c.bf16 %v15135_v25, %v15133_v24  ;;  %v15143_v24 = vld [vmem:[#allocation3 + $0x1a58] ss:$40 sps:$4 sm:$0xff]   ;;  %v15144_v25 = vld [vmem:[#allocation3 + $0x1aa8] ss:$40 sps:$4 sm:$0xff]  }
 0x40a   :  { %17519 = vst [vmem:[#allocation117_spill] sm:$0xff] %v16344_v50  ;;  %v16346_v62 = vpop.f32.mrb[146].mxu1 }
 0x40b   :  { %9224 = vmatmul.mubr.bf16.gmra.mrb[148].mxu0 %v5566_v57  ;;  %17520 = vst [vmem:[#allocation118_spill] sm:$0xff] %v16346_v62  ;;  %v16348_v9 = vpop.f32.mrb[147].mxu1  ;;  %v15126_v57 = vld [vmem:[#allocation3 + $0x196c] ss:$40 sps:$4 sm:$0xff]   ;;  %v15333_v62 = vld [vmem:[#allocation3 + $0x250] ss:$40 sps:$4 sm:$0xff]  }
 0x40c   :  { %9233 = vmatprep.mubr.bf16.mxu0 %v5577_v23  ;;  %17521 = vst [vmem:[#allocation119_spill] sm:$0xff] %v16348_v9  ;;  %v5597_v2 = vpack.c.bf16 %v15126_v57, %v15124_v47  ;;  %v15138_v57 = vld [vmem:[#allocation3 + $0x1a08] ss:$40 sps:$4 sm:$0xff]  }
 0x40d   :  { %8138 = vmatmul.mubr.bf16.gmra.mrb[252].mxu1 %v5822_v3  ;;  %v15236_v3 = vld [vmem:[#allocation6 + $0x460] ss:$8 sps:$4 sm:$0xff]  }
 0x410   :  { %v16350_v40 = vpop.f32.mrb[148].mxu1 }
 0x411   :  { %17522 = vst [vmem:[#allocation120_spill] sm:$0xff] %v16350_v40  ;;  %v16352_v23 = vpop.f32.mrb[149].mxu1 }
 0x412   :  { %17523 = vst [vmem:[#allocation121_spill] sm:$0xff] %v16352_v23  ;;  %v16354_v50 = vpop.f32.mrb[150].mxu1  ;;  %v5596_v23 = vpack.c.bf16 %v15132_v37, %v15131_v20 }
 0x413   :  { %9234 = vmatmul.mubr.bf16.gmra.mrb[152].mxu0 %v5576_v54  ;;  %17524 = vst [vmem:[#allocation122_spill] sm:$0xff] %v16354_v50  ;;  %v16356_v39 = vpop.f32.mrb[151].mxu1  ;;  %v15238_v54 = vld [vmem:[#allocation6 + $0x464] ss:$8 sps:$4 sm:$0xff]  }
 0x414   :  { %9243 = vmatprep.mubr.bf16.mxu0 %v5587_v16  ;;  %17525 = vst [vmem:[#allocation123_spill] sm:$0xff] %v16356_v39  ;;  %9506 = vmatprep.subr.bf16.mxu0 %v15238_v54  ;;  %v15141_v39 = vld [vmem:[#allocation3 + $0x1aac] ss:$40 sps:$4 sm:$0xff]  }
 0x415   :  { %9507 = vmatpush1.bf16.msra.mxu0 %v15236_v3  ;;  %v15147_v3 = vld [vmem:[#allocation3 + $0x1b4c] ss:$40 sps:$4 sm:$0xff]  }
 0x418   :  { %v16358_v16 = vpop.f32.mrb[152].mxu1 }
 0x419   :  { %17526 = vst [vmem:[#allocation124_spill] sm:$0xff] %v16358_v16  ;;  %v16360_v9 = vpop.f32.mrb[153].mxu1 }
 0x41a   :  { %17527 = vst [vmem:[#allocation125_spill] sm:$0xff] %v16360_v9  ;;  %v16362_v42 = vpop.f32.mrb[154].mxu1 }
 0x41b   :  { %9244 = vmatmul.mubr.bf16.gmra.mrb[156].mxu0 %v5586_v7  ;;  %17528 = vst [vmem:[#allocation126_spill] sm:$0xff] %v16362_v42  ;;  %v16364_v47 = vpop.f32.mrb[155].mxu1  ;;  %v15137_v7 = vld [vmem:[#allocation3 + $0x19b8] ss:$40 sps:$4 sm:$0xff]   ;;  %v15166_v42 = vld [vmem:[#allocation3 + $0x1cdc] ss:$40 sps:$4 sm:$0xff]  }
 0x41c   :  { %9253 = vmatprep.mubr.bf16.mxu0 %v5597_v2  ;;  %17529 = vst [vmem:[#allocation127_spill] sm:$0xff] %v16364_v47  ;;  %v15139_v2 = vld [vmem:[#allocation3 + $0x1a5c] ss:$40 sps:$4 sm:$0xff]   ;;  %v5606_v16 = vpack.c.bf16 %v15138_v57, %v15137_v7  ;;  %v5616_v47 = vpack.c.bf16 %v15144_v25, %v15143_v24  ;;  %v15150_v57 = vld [vmem:[#allocation3 + $0x1b48] ss:$40 sps:$4 sm:$0xff]  }
 0x41d   :  { %v5617_v20 = vpack.c.bf16 %v15141_v39, %v15139_v2  ;;  %v15149_v39 = vld [vmem:[#allocation3 + $0x1af8] ss:$40 sps:$4 sm:$0xff]   ;;  %v15153_v2 = vld [vmem:[#allocation3 + $0x1bec] ss:$40 sps:$4 sm:$0xff]  }
 0x41e   :  { %v15158_v25 = vld [vmem:[#allocation3 + $0x1b98] ss:$40 sps:$4 sm:$0xff]  }
 0x420   :  { %v16366_v50 = vpop.f32.mrb[156].mxu1 }
 0x421   :  { %17530 = vst [vmem:[#allocation128_spill] sm:$0xff] %v16366_v50  ;;  %v16368_v40 = vpop.f32.mrb[157].mxu1 }
 0x422   :  { %17531 = vst [vmem:[#allocation129_spill] sm:$0xff] %v16368_v40  ;;  %v16370_v9 = vpop.f32.mrb[158].mxu1 }
 0x423   :  { %9254 = vmatmul.mubr.bf16.gmra.mrb[160].mxu0 %v5596_v23  ;;  %17532 = vst [vmem:[#allocation130_spill] sm:$0xff] %v16370_v9  ;;  %v16372_v37 = vpop.f32.mrb[159].mxu1  ;;  %v15145_v23 = vld [vmem:[#allocation3 + $0x1afc] ss:$40 sps:$4 sm:$0xff]   ;;  %v5626_v9 = vpack.c.bf16 %v15150_v57, %v15149_v39 }
 0x424   :  { %9263 = vmatprep.mubr.bf16.mxu0 %v5607_v35  ;;  %17533 = vst [vmem:[#allocation131_spill] sm:$0xff] %v16372_v37  ;;  %v5627_v40 = vpack.c.bf16 %v15147_v3, %v15145_v23  ;;  %v15159_v23 = vld [vmem:[#allocation3 + $0x1be8] ss:$40 sps:$4 sm:$0xff]  }
 0x425   :  { %v15259_v3 = vld [vmem:[#allocation6 + $0x470] ss:$8 sps:$4 sm:$0xff]   ;;  %v5636_v39 = vpack.c.bf16 %v15159_v23, %v15158_v25 }
 0x428   :  { %v16374_v54 = vpop.f32.mrb[160].mxu1 }
 0x429   :  { %17534 = vst [vmem:[#allocation132_spill] sm:$0xff] %v16374_v54  ;;  %v16376_v35 = vpop.f32.mrb[161].mxu1 }
 0x42a   :  { %17535 = vst [vmem:[#allocation133_spill] sm:$0xff] %v16376_v35  ;;  %v16378_v50 = vpop.f32.mrb[162].mxu1 }
 0x42b   :  { %9264 = vmatmul.mubr.bf16.gmra.mrb[164].mxu0 %v5606_v16  ;;  %17536 = vst [vmem:[#allocation134_spill] sm:$0xff] %v16378_v50  ;;  %v16380_v7 = vpop.f32.mrb[163].mxu1  ;;  %v15151_v16 = vld [vmem:[#allocation3 + $0x1b9c] ss:$40 sps:$4 sm:$0xff]  }
 0x42c   :  { %9273 = vmatprep.mubr.bf16.mxu0 %v5617_v20  ;;  %17537 = vst [vmem:[#allocation135_spill] sm:$0xff] %v16380_v7  ;;  %v5637_v35 = vpack.c.bf16 %v15153_v2, %v15151_v16  ;;  %v15160_v7 = vld [vmem:[#allocation3 + $0x1c3c] ss:$40 sps:$4 sm:$0xff]  }
 0x430   :  { %v16382_v37 = vpop.f32.mrb[164].mxu1 }
 0x431   :  { %17538 = vst [vmem:[#allocation136_spill] sm:$0xff] %v16382_v37  ;;  %v16384_v20 = vpop.f32.mrb[165].mxu1 }
 0x432   :  { %17539 = vst [vmem:[#allocation137_spill] sm:$0xff] %v16384_v20  ;;  %v16386_v54 = vpop.f32.mrb[166].mxu1  ;;  %v15165_v20 = vld [vmem:[#allocation3 + $0x1c88] ss:$40 sps:$4 sm:$0xff]  }
 0x433   :  { %9274 = vmatmul.mubr.bf16.gmra.mrb[168].mxu0 %v5616_v47  ;;  %17540 = vst [vmem:[#allocation138_spill] sm:$0xff] %v16386_v54  ;;  %v16388_v24 = vpop.f32.mrb[167].mxu1  ;;  %v15261_v47 = vld [vmem:[#allocation6 + $0x474] ss:$8 sps:$4 sm:$0xff]   ;;  %v15164_v54 = vld [vmem:[#allocation3 + $0x1c38] ss:$40 sps:$4 sm:$0xff]  }
 0x434   :  { %9283 = vmatprep.mubr.bf16.mxu0 %v5627_v40  ;;  %17541 = vst [vmem:[#allocation139_spill] sm:$0xff] %v16388_v24  ;;  %v15162_v40 = vld [vmem:[#allocation3 + $0x1c8c] ss:$40 sps:$4 sm:$0xff]   ;;  %9508 = vmatprep.subr.bf16.mxu0 %v15261_v47  ;;  %v15271_v47 = vld [vmem:[#allocation6 + $0x490] ss:$8 sps:$4 sm:$0xff]  }
 0x435   :  { %9509 = vmatpush1.bf16.msra.mxu0 %v15259_v3  ;;  %v5647_v16 = vpack.c.bf16 %v15162_v40, %v15160_v7  ;;  %v15270_v24 = vld [vmem:[#allocation6 + $0x484] ss:$8 sps:$4 sm:$0xff]   ;;  %v5646_v7 = vpack.c.bf16 %v15165_v20, %v15164_v54 }
 0x436   :  { %9510 = vmatprep.subr.bf16.mxu0 %v15270_v24  ;;  %v15280_v24 = vld [vmem:[#allocation6 + $0x4a0] ss:$8 sps:$4 sm:$0xff]  }
 0x438   :  { %v16390_v50 = vpop.f32.mrb[168].mxu1 }
 0x439   :  { %17542 = vst [vmem:[#allocation140_spill] sm:$0xff] %v16390_v50  ;;  %v16392_v37 = vpop.f32.mrb[169].mxu1  ;;  %v15168_v50 = vld [vmem:[#allocation3 + $0x1d2c] ss:$40 sps:$4 sm:$0xff]  }
 0x43a   :  { %17543 = vst [vmem:[#allocation141_spill] sm:$0xff] %v16392_v37  ;;  %v16394_v57 = vpop.f32.mrb[170].mxu1  ;;  %v5657_v3 = vpack.c.bf16 %v15168_v50, %v15166_v42 }
 0x43b   :  { %9284 = vmatmul.mubr.bf16.gmra.mrb[172].mxu0 %v5626_v9  ;;  %17544 = vst [vmem:[#allocation142_spill] sm:$0xff] %v16394_v57  ;;  %v16396_v2 = vpop.f32.mrb[171].mxu1  ;;  %v15268_v9 = vld [vmem:[#allocation6 + $0x480] ss:$8 sps:$4 sm:$0xff]   ;;  %v15172_v57 = vld [vmem:[#allocation3 + $0x1d7c] ss:$40 sps:$4 sm:$0xff]  }
 0x43c   :  { %9293 = vmatprep.mubr.bf16.mxu0 %v5637_v35  ;;  %17545 = vst [vmem:[#allocation143_spill] sm:$0xff] %v16396_v2  ;;  %v15273_v35 = vld [vmem:[#allocation6 + $0x494] ss:$8 sps:$4 sm:$0xff]   ;;  %9511 = vmatpush1.bf16.msra.mxu0 %v15268_v9  ;;  %v15171_v2 = vld [vmem:[#allocation3 + $0x1d28] ss:$40 sps:$4 sm:$0xff]  }
 0x43d   :  { %9512 = vmatprep.subr.bf16.mxu0 %v15273_v35  ;;  %v15285_v9 = vld [vmem:[#allocation6 + $0x4b4] ss:$8 sps:$4 sm:$0xff]   ;;  %v15283_v35 = vld [vmem:[#allocation6 + $0x4b0] ss:$8 sps:$4 sm:$0xff]  }
 0x440   :  { %v16398_v37 = vpop.f32.mrb[172].mxu1  ;;  %9513 = vmatpush1.bf16.msra.mxu0 %v15271_v47 }
 0x441   :  { %17546 = vst [vmem:[#allocation144_spill] sm:$0xff] %v16398_v37  ;;  %v16400_v25 = vpop.f32.mrb[173].mxu1  ;;  %v15174_v37 = vld [vmem:[#allocation3 + $0x1dcc] ss:$40 sps:$4 sm:$0xff]  }
 0x442   :  { %17547 = vst [vmem:[#allocation145_spill] sm:$0xff] %v16400_v25  ;;  %v16402_v23 = vpop.f32.mrb[174].mxu1  ;;  %v5667_v20 = vpack.c.bf16 %v15174_v37, %v15172_v57 }
 0x443   :  { %9294 = vmatmul.mubr.bf16.gmra.mrb[176].mxu0 %v5636_v39  ;;  %17548 = vst [vmem:[#allocation146_spill] sm:$0xff] %v16402_v23  ;;  %v16404_v40 = vpop.f32.mrb[175].mxu1  ;;  %v15282_v39 = vld [vmem:[#allocation6 + $0x4a4] ss:$8 sps:$4 sm:$0xff]  }
 0x444   :  { %9303 = vmatprep.mubr.bf16.mxu0 %v5647_v16  ;;  %17549 = vst [vmem:[#allocation147_spill] sm:$0xff] %v16404_v40  ;;  %v15170_v16 = vld [vmem:[#allocation3 + $0x1cd8] ss:$40 sps:$4 sm:$0xff]   ;;  %9514 = vmatprep.subr.bf16.mxu0 %v15282_v39  ;;  %v15177_v40 = vld [vmem:[#allocation3 + $0x1dc8] ss:$40 sps:$4 sm:$0xff]  }
 0x445   :  { %9515 = vmatpush1.bf16.msra.mxu0 %v15280_v24  ;;  %v5656_v50 = vpack.c.bf16 %v15171_v2, %v15170_v16  ;;  %v15292_v39 = vld [vmem:[#allocation6 + $0x4c0] ss:$8 sps:$4 sm:$0xff]   ;;  %v15297_v24 = vld [vmem:[#allocation6 + $0x4d4] ss:$8 sps:$4 sm:$0xff]  }
 0x446   :  { %9516 = vmatprep.subr.bf16.mxu0 %v15285_v9  ;;  %v15178_v23 = vld [vmem:[#allocation3 + $0x1e1c] ss:$40 sps:$4 sm:$0xff]   ;;  %v15295_v9 = vld [vmem:[#allocation6 + $0x4d0] ss:$8 sps:$4 sm:$0xff]  }
 0x448   :  { %v16406_v25 = vpop.f32.mrb[176].mxu1 }
 0x449   :  { %17550 = vst [vmem:[#allocation148_spill] sm:$0xff] %v16406_v25  ;;  %v16408_v54 = vpop.f32.mrb[177].mxu1  ;;  %9517 = vmatpush1.bf16.msra.mxu0 %v15283_v35  ;;  %v15180_v25 = vld [vmem:[#allocation3 + $0x1e6c] ss:$40 sps:$4 sm:$0xff]  }
 0x44a   :  { %17551 = vst [vmem:[#allocation149_spill] sm:$0xff] %v16408_v54  ;;  %v16410_v42 = vpop.f32.mrb[178].mxu1  ;;  %v5677_v16 = vpack.c.bf16 %v15180_v25, %v15178_v23 }
 0x44b   :  { %9304 = vmatmul.mubr.bf16.gmra.mrb[180].mxu0 %v5646_v7  ;;  %17552 = vst [vmem:[#allocation150_spill] sm:$0xff] %v16410_v42  ;;  %v16412_v47 = vpop.f32.mrb[179].mxu1  ;;  %v15294_v7 = vld [vmem:[#allocation6 + $0x4c4] ss:$8 sps:$4 sm:$0xff]  }
 0x44c   :  { %9313 = vmatprep.mubr.bf16.mxu0 %v5657_v3  ;;  %17553 = vst [vmem:[#allocation151_spill] sm:$0xff] %v16412_v47  ;;  %v15176_v3 = vld [vmem:[#allocation3 + $0x1d78] ss:$40 sps:$4 sm:$0xff]   ;;  %9518 = vmatprep.subr.bf16.mxu0 %v15294_v7  ;;  %v15186_v47 = vld [vmem:[#allocation3 + $0x1e68] ss:$40 sps:$4 sm:$0xff]  }
 0x44d   :  { %9519 = vmatpush1.bf16.msra.mxu0 %v15292_v39  ;;  %v5666_v37 = vpack.c.bf16 %v15177_v40, %v15176_v3  ;;  %v15304_v7 = vld [vmem:[#allocation6 + $0x4e0] ss:$8 sps:$4 sm:$0xff]   ;;  %v15309_v39 = vld [vmem:[#allocation6 + $0x4f4] ss:$8 sps:$4 sm:$0xff]  }
 0x44e   :  { %9520 = vmatprep.subr.bf16.mxu0 %v15297_v24  ;;  %v15187_v42 = vld [vmem:[#allocation3 + $0x1ebc] ss:$40 sps:$4 sm:$0xff]   ;;  %v15307_v24 = vld [vmem:[#allocation6 + $0x4f0] ss:$8 sps:$4 sm:$0xff]  }
 0x450   :  { %v16414_v54 = vpop.f32.mrb[180].mxu1 }
 0x451   :  { %17554 = vst [vmem:[#allocation152_spill] sm:$0xff] %v16414_v54  ;;  %v16416_v2 = vpop.f32.mrb[181].mxu1  ;;  %9521 = vmatpush1.bf16.msra.mxu0 %v15295_v9  ;;  %v15189_v54 = vld [vmem:[#allocation3 + $0x1f0c] ss:$40 sps:$4 sm:$0xff]  }
 0x452   :  { %17555 = vst [vmem:[#allocation153_spill] sm:$0xff] %v16416_v2  ;;  %v16418_v57 = vpop.f32.mrb[182].mxu1  ;;  %v5687_v3 = vpack.c.bf16 %v15189_v54, %v15187_v42  ;;  %v15197_v54 = vld [vmem:[#allocation3 + $0x1f58] ss:$40 sps:$4 sm:$0xff]   ;;  %v15198_v42 = vld [vmem:[#allocation3 + $0x1fa8] ss:$40 sps:$4 sm:$0xff]  }
 0x453   :  { %9314 = vmatmul.mubr.bf16.gmra.mrb[184].mxu0 %v5656_v50  ;;  %17556 = vst [vmem:[#allocation154_spill] sm:$0xff] %v16418_v57  ;;  %v16420_v35 = vpop.f32.mrb[183].mxu1  ;;  %v15306_v50 = vld [vmem:[#allocation6 + $0x4e4] ss:$8 sps:$4 sm:$0xff]  }
 0x454   :  { %9323 = vmatprep.mubr.bf16.mxu0 %v5667_v20  ;;  %17557 = vst [vmem:[#allocation155_spill] sm:$0xff] %v16420_v35  ;;  %v15185_v20 = vld [vmem:[#allocation3 + $0x1e18] ss:$40 sps:$4 sm:$0xff]   ;;  %9522 = vmatprep.subr.bf16.mxu0 %v15306_v50  ;;  %v15192_v50 = vld [vmem:[#allocation3 + $0x1f08] ss:$40 sps:$4 sm:$0xff]  }
 0x455   :  { %9523 = vmatpush1.bf16.msra.mxu0 %v15304_v7  ;;  %v5676_v25 = vpack.c.bf16 %v15186_v47, %v15185_v20  ;;  %v15195_v35 = vld [vmem:[#allocation3 + $0x1fac] ss:$40 sps:$4 sm:$0xff]  }
 0x456   :  { %9524 = vmatprep.subr.bf16.mxu0 %v15309_v39 }
 0x458   :  { %v16422_v2 = vpop.f32.mrb[184].mxu1 }
 0x459   :  { %17558 = vst [vmem:[#allocation156_spill] sm:$0xff] %v16422_v2  ;;  %v16424_v40 = vpop.f32.mrb[185].mxu1  ;;  %9525 = vmatpush1.bf16.msra.mxu0 %v15307_v24  ;;  %v15199_v24 = vld [vmem:[#allocation3 + $0x1ffc] ss:$40 sps:$4 sm:$0xff]  }
 0x45a   :  { %17559 = vst [vmem:[#allocation157_spill] sm:$0xff] %v16424_v40  ;;  %v16426_v23 = vpop.f32.mrb[186].mxu1 }
 0x45b   :  { %9324 = vmatmul.mubr.bf16.gmra.mrb[188].mxu0 %v5666_v37  ;;  %17560 = vst [vmem:[#allocation158_spill] sm:$0xff] %v16426_v23  ;;  %v16428_v9 = vpop.f32.mrb[187].mxu1  ;;  %v15191_v37 = vld [vmem:[#allocation3 + $0x1eb8] ss:$40 sps:$4 sm:$0xff]   ;;  %v5696_v23 = vpack.c.bf16 %v15198_v42, %v15197_v54 }
 0x45c   :  { %9333 = vmatprep.mubr.bf16.mxu0 %v5677_v16  ;;  %17561 = vst [vmem:[#allocation159_spill] sm:$0xff] %v16428_v9  ;;  %v15193_v16 = vld [vmem:[#allocation3 + $0x1f5c] ss:$40 sps:$4 sm:$0xff]   ;;  %v5686_v39 = vpack.c.bf16 %v15192_v50, %v15191_v37  ;;  %v15204_v50 = vld [vmem:[#allocation3 + $0x2048] ss:$40 sps:$4 sm:$0xff]  }
 0x45d   :  { %v5697_v47 = vpack.c.bf16 %v15195_v35, %v15193_v16  ;;  %v15203_v35 = vld [vmem:[#allocation3 + $0x1ff8] ss:$40 sps:$4 sm:$0xff]   ;;  %v15205_v16 = vld [vmem:[#allocation3 + $0x209c] ss:$40 sps:$4 sm:$0xff]  }
 0x45e   :  { %v15212_v42 = vld [vmem:[#allocation3 + $0x2098] ss:$40 sps:$4 sm:$0xff]  }
 0x460   :  { %v16430_v7 = vpop.f32.mrb[188].mxu1 }
 0x461   :  { %17562 = vst [vmem:[#allocation160_spill] sm:$0xff] %v16430_v7  ;;  %v16432_v57 = vpop.f32.mrb[189].mxu1 }
 0x462   :  { %17563 = vst [vmem:[#allocation161_spill] sm:$0xff] %v16432_v57  ;;  %v16434_v2 = vpop.f32.mrb[190].mxu1 }
 0x463   :  { %9334 = vmatmul.mubr.bf16.gmra.mrb[192].mxu0 %v5676_v25  ;;  %17564 = vst [vmem:[#allocation162_spill] sm:$0xff] %v16434_v2  ;;  %v16436_v20 = vpop.f32.mrb[191].mxu1  ;;  %v15201_v25 = vld [vmem:[#allocation3 + $0x204c] ss:$40 sps:$4 sm:$0xff]   ;;  %v5706_v2 = vpack.c.bf16 %v15204_v50, %v15203_v35  ;;  %v15218_v50 = vld [vmem:[#allocation3 + $0x2138] ss:$40 sps:$4 sm:$0xff]  }
 0x464   :  { %9343 = vmatprep.mubr.bf16.mxu0 %v5687_v3  ;;  %17565 = vst [vmem:[#allocation163_spill] sm:$0xff] %v16436_v20  ;;  %v5707_v57 = vpack.c.bf16 %v15201_v25, %v15199_v24  ;;  %v15213_v24 = vld [vmem:[#allocation3 + $0x20e8] ss:$40 sps:$4 sm:$0xff]   ;;  %v15216_v25 = vld [vmem:[#allocation3 + $0x218c] ss:$40 sps:$4 sm:$0xff]  }
 0x468   :  { %v16438_v9 = vpop.f32.mrb[192].mxu1 }
 0x469   :  { %17566 = vst [vmem:[#allocation164_spill] sm:$0xff] %v16438_v9  ;;  %v16440_v3 = vpop.f32.mrb[193].mxu1 }
 0x46a   :  { %17567 = vst [vmem:[#allocation165_spill] sm:$0xff] %v16440_v3  ;;  %v16442_v7 = vpop.f32.mrb[194].mxu1 }
 0x46b   :  { %9344 = vmatmul.mubr.bf16.gmra.mrb[196].mxu0 %v5686_v39  ;;  %17568 = vst [vmem:[#allocation166_spill] sm:$0xff] %v16442_v7  ;;  %v16444_v37 = vpop.f32.mrb[195].mxu1  ;;  %v15207_v39 = vld [vmem:[#allocation3 + $0x20ec] ss:$40 sps:$4 sm:$0xff]   ;;  %v5716_v7 = vpack.c.bf16 %v15213_v24, %v15212_v42  ;;  %v15224_v24 = vld [vmem:[#allocation3 + $0x21d8] ss:$40 sps:$4 sm:$0xff]  }
 0x46c   :  { %9353 = vmatprep.mubr.bf16.mxu0 %v5697_v47  ;;  %17569 = vst [vmem:[#allocation167_spill] sm:$0xff] %v16444_v37  ;;  %v5717_v3 = vpack.c.bf16 %v15207_v39, %v15205_v16  ;;  %v15219_v16 = vld [vmem:[#allocation3 + $0x2188] ss:$40 sps:$4 sm:$0xff]   ;;  %v15222_v39 = vld [vmem:[#allocation3 + $0x222c] ss:$40 sps:$4 sm:$0xff]  }
 0x470   :  { %v16446_v20 = vpop.f32.mrb[196].mxu1 }
 0x471   :  { %17570 = vst [vmem:[#allocation168_spill] sm:$0xff] %v16446_v20  ;;  %v16448_v47 = vpop.f32.mrb[197].mxu1 }
 0x472   :  { %17571 = vst [vmem:[#allocation169_spill] sm:$0xff] %v16448_v47  ;;  %v16450_v9 = vpop.f32.mrb[198].mxu1 }
 0x473   :  { %9354 = vmatmul.mubr.bf16.gmra.mrb[200].mxu0 %v5696_v23  ;;  %17572 = vst [vmem:[#allocation170_spill] sm:$0xff] %v16450_v9  ;;  %v16452_v54 = vpop.f32.mrb[199].mxu1  ;;  %v15214_v23 = vld [vmem:[#allocation3 + $0x213c] ss:$40 sps:$4 sm:$0xff]   ;;  %v5726_v9 = vpack.c.bf16 %v15219_v16, %v15218_v50  ;;  %v15230_v16 = vld [vmem:[#allocation3 + $0x2278] ss:$40 sps:$4 sm:$0xff]  }
 0x474   :  { %9363 = vmatprep.mubr.bf16.mxu0 %v5707_v57  ;;  %17573 = vst [vmem:[#allocation171_spill] sm:$0xff] %v16452_v54  ;;  %v5727_v47 = vpack.c.bf16 %v15216_v25, %v15214_v23  ;;  %v15225_v23 = vld [vmem:[#allocation3 + $0x2228] ss:$40 sps:$4 sm:$0xff]   ;;  %v15228_v25 = vld [vmem:[#allocation3 + $0x22cc] ss:$40 sps:$4 sm:$0xff]  }
 0x478   :  { %v16454_v37 = vpop.f32.mrb[200].mxu1 }
 0x479   :  { %17574 = vst [vmem:[#allocation172_spill] sm:$0xff] %v16454_v37  ;;  %v16456_v57 = vpop.f32.mrb[201].mxu1 }
 0x47a   :  { %17575 = vst [vmem:[#allocation173_spill] sm:$0xff] %v16456_v57  ;;  %v16458_v20 = vpop.f32.mrb[202].mxu1 }
 0x47b   :  { %9364 = vmatmul.mubr.bf16.gmra.mrb[204].mxu0 %v5706_v2  ;;  %17576 = vst [vmem:[#allocation174_spill] sm:$0xff] %v16458_v20  ;;  %v16460_v35 = vpop.f32.mrb[203].mxu1  ;;  %v15220_v2 = vld [vmem:[#allocation3 + $0x21dc] ss:$40 sps:$4 sm:$0xff]   ;;  %v5736_v20 = vpack.c.bf16 %v15225_v23, %v15224_v24  ;;  %v15239_v23 = vld [vmem:[#allocation3 + $0x2318] ss:$40 sps:$4 sm:$0xff]  }
 0x47c   :  { %9373 = vmatprep.mubr.bf16.mxu0 %v5717_v3  ;;  %17577 = vst [vmem:[#allocation175_spill] sm:$0xff] %v16460_v35  ;;  %v5737_v57 = vpack.c.bf16 %v15222_v39, %v15220_v2  ;;  %v15231_v2 = vld [vmem:[#allocation3 + $0x22c8] ss:$40 sps:$4 sm:$0xff]   ;;  %v15234_v39 = vld [vmem:[#allocation3 + $0x236c] ss:$40 sps:$4 sm:$0xff]  }
 0x480   :  { %v16462_v54 = vpop.f32.mrb[204].mxu1 }
 0x481   :  { %17578 = vst [vmem:[#allocation176_spill] sm:$0xff] %v16462_v54  ;;  %v16464_v3 = vpop.f32.mrb[205].mxu1 }
 0x482   :  { %17579 = vst [vmem:[#allocation177_spill] sm:$0xff] %v16464_v3  ;;  %v16466_v37 = vpop.f32.mrb[206].mxu1 }
 0x483   :  { %9374 = vmatmul.mubr.bf16.gmra.mrb[208].mxu0 %v5716_v7  ;;  %17580 = vst [vmem:[#allocation178_spill] sm:$0xff] %v16466_v37  ;;  %v16468_v42 = vpop.f32.mrb[207].mxu1  ;;  %v15226_v7 = vld [vmem:[#allocation3 + $0x227c] ss:$40 sps:$4 sm:$0xff]   ;;  %v5746_v37 = vpack.c.bf16 %v15231_v2, %v15230_v16  ;;  %v15245_v2 = vld [vmem:[#allocation3 + $0x23b8] ss:$40 sps:$4 sm:$0xff]  }
 0x484   :  { %9383 = vmatprep.mubr.bf16.mxu0 %v5727_v47  ;;  %17581 = vst [vmem:[#allocation179_spill] sm:$0xff] %v16468_v42  ;;  %v5747_v3 = vpack.c.bf16 %v15228_v25, %v15226_v7  ;;  %v15240_v7 = vld [vmem:[#allocation3 + $0x2368] ss:$40 sps:$4 sm:$0xff]   ;;  %v15243_v25 = vld [vmem:[#allocation3 + $0x240c] ss:$40 sps:$4 sm:$0xff]  }
 0x488   :  { %v16470_v35 = vpop.f32.mrb[208].mxu1 }
 0x489   :  { %17582 = vst [vmem:[#allocation180_spill] sm:$0xff] %v16470_v35  ;;  %v16472_v47 = vpop.f32.mrb[209].mxu1 }
 0x48a   :  { %17583 = vst [vmem:[#allocation181_spill] sm:$0xff] %v16472_v47  ;;  %v16474_v54 = vpop.f32.mrb[210].mxu1 }
 0x48b   :  { %9384 = vmatmul.mubr.bf16.gmra.mrb[212].mxu0 %v5726_v9  ;;  %17584 = vst [vmem:[#allocation182_spill] sm:$0xff] %v16474_v54  ;;  %v16476_v50 = vpop.f32.mrb[211].mxu1  ;;  %v15232_v9 = vld [vmem:[#allocation3 + $0x231c] ss:$40 sps:$4 sm:$0xff]   ;;  %v5756_v54 = vpack.c.bf16 %v15240_v7, %v15239_v23 }
 0x48c   :  { %9393 = vmatprep.mubr.bf16.mxu0 %v5737_v57  ;;  %17585 = vst [vmem:[#allocation183_spill] sm:$0xff] %v16476_v50  ;;  %v5757_v47 = vpack.c.bf16 %v15234_v39, %v15232_v9  ;;  %v15246_v9 = vld [vmem:[#allocation3 + $0x2408] ss:$40 sps:$4 sm:$0xff]   ;;  %v15364_v39 = vld [vmem:[#allocation8] sm:$0xff]  }
 0x48d   :  { %v5766_v23 = vpack.c.bf16 %v15246_v9, %v15245_v2  ;;  %v15258_v9 = vld [vmem:[#allocation3 + $0x2548] ss:$40 sps:$4 sm:$0xff]  }
 0x490   :  { %v16478_v42 = vpop.f32.mrb[212].mxu1 }
 0x491   :  { %17586 = vst [vmem:[#allocation184_spill] sm:$0xff] %v16478_v42  ;;  %v16480_v57 = vpop.f32.mrb[213].mxu1 }
 0x492   :  { %17587 = vst [vmem:[#allocation185_spill] sm:$0xff] %v16480_v57  ;;  %v16482_v35 = vpop.f32.mrb[214].mxu1 }
 0x493   :  { %9394 = vmatmul.mubr.bf16.gmra.mrb[216].mxu0 %v5736_v20  ;;  %17588 = vst [vmem:[#allocation186_spill] sm:$0xff] %v16482_v35  ;;  %v16484_v24 = vpop.f32.mrb[215].mxu1  ;;  %v15241_v20 = vld [vmem:[#allocation3 + $0x23bc] ss:$40 sps:$4 sm:$0xff]  }
 0x494   :  { %9403 = vmatprep.mubr.bf16.mxu0 %v5747_v3  ;;  %17589 = vst [vmem:[#allocation187_spill] sm:$0xff] %v16484_v24  ;;  %v5767_v57 = vpack.c.bf16 %v15243_v25, %v15241_v20  ;;  %v15249_v24 = vld [vmem:[#allocation3 + $0x24ac] ss:$40 sps:$4 sm:$0xff]   ;;  %v15252_v25 = vld [vmem:[#allocation3 + $0x24a8] ss:$40 sps:$4 sm:$0xff]  }
 0x498   :  { %v16486_v50 = vpop.f32.mrb[216].mxu1 }
 0x499   :  { %17590 = vst [vmem:[#allocation188_spill] sm:$0xff] %v16486_v50  ;;  %v16488_v3 = vpop.f32.mrb[217].mxu1 }
 0x49a   :  { %17591 = vst [vmem:[#allocation189_spill] sm:$0xff] %v16488_v3  ;;  %v16490_v42 = vpop.f32.mrb[218].mxu1 }
 0x49b   :  { %9404 = vmatmul.mubr.bf16.gmra.mrb[220].mxu0 %v5746_v37  ;;  %17592 = vst [vmem:[#allocation190_spill] sm:$0xff] %v16490_v42  ;;  %v16492_v16 = vpop.f32.mrb[219].mxu1  ;;  %v15247_v37 = vld [vmem:[#allocation3 + $0x245c] ss:$40 sps:$4 sm:$0xff]   ;;  %v15255_v42 = vld [vmem:[#allocation3 + $0x254c] ss:$40 sps:$4 sm:$0xff]  }
 0x49c   :  { %9413 = vmatprep.mubr.bf16.mxu0 %v5757_v47  ;;  %17593 = vst [vmem:[#allocation191_spill] sm:$0xff] %v16492_v16  ;;  %v17412_v47 = vmov 0   ;;  %v15253_v16 = vld [vmem:[#allocation3 + $0x24fc] ss:$40 sps:$4 sm:$0xff]  }
 0x49d   :  { %10686 = vmatprep.subr.bf16.mxu1 %v17412_v47 }
 0x49e   :  { %10687 = vmatpush1.bf16.msra.mxu1 %v15364_v39 }
 0x49f   :  { %10688 = vmatprep.subr.bf16.mxu1 %v17412_v47  ;;  %v5787_v47 = vpack.c.bf16 %v15255_v42, %v15253_v16  ;;  %v15266_v42 = vld [vmem:[#allocation3 + $0x2598] ss:$40 sps:$4 sm:$0xff]   ;;  %v15267_v16 = vld [vmem:[#allocation3 + $0x25e8] ss:$40 sps:$4 sm:$0xff]  }
 0x4a0   :  { %v16495_v35 = vpop.f32.mrb[220].mxu1 }
 0x4a1   :  { %17594 = vst [vmem:[#allocation192_spill] sm:$0xff] %v16495_v35  ;;  %v16497_v3 = vpop.f32.mrb[221].mxu1 }
 0x4a2   :  { %17595 = vst [vmem:[#allocation193_spill] sm:$0xff] %v16497_v3  ;;  %v16500_v7 = vpop.f32.mrb[222].mxu1 }
 0x4a3   :  { %9414 = vmatmul.mubr.bf16.gmra.mrb[224].mxu0 %v5756_v54  ;;  %17596 = vst [vmem:[#allocation194_spill] sm:$0xff] %v16500_v7  ;;  %v5777_v54 = vpack.c.bf16 %v15249_v24, %v15247_v37  ;;  %v16502_v20 = vpop.f32.mrb[223].mxu1  ;;  %v15257_v24 = vld [vmem:[#allocation3 + $0x24f8] ss:$40 sps:$4 sm:$0xff]   ;;  %v15262_v37 = vld [vmem:[#allocation3 + $0x259c] ss:$40 sps:$4 sm:$0xff]  }
 0x4a4   :  { %9423 = vmatprep.mubr.bf16.mxu0 %v5767_v57  ;;  %17597 = vst [vmem:[#allocation195_spill] sm:$0xff] %v16502_v20  ;;  %v15251_v57 = vld [vmem:[#allocation3 + $0x2458] ss:$40 sps:$4 sm:$0xff]   ;;  %v5786_v7 = vpack.c.bf16 %v15258_v9, %v15257_v24 }
 0x4a5   :  { %v5776_v39 = vpack.c.bf16 %v15252_v25, %v15251_v57  ;;  %v15274_v25 = vld [vmem:[#allocation3 + $0x263c] ss:$40 sps:$4 sm:$0xff]   ;;  %v15278_v9 = vld [vmem:[#allocation3 + $0x2638] ss:$40 sps:$4 sm:$0xff]  }
 0x4a8   :  { %v16504_v50 = vpop.f32.mrb[224].mxu1 }
 0x4a9   :  { %17598 = vst [vmem:[#allocation196_spill] sm:$0xff] %v16504_v50  ;;  %v16506_v35 = vpop.f32.mrb[225].mxu1 }
 0x4aa   :  { %17599 = vst [vmem:[#allocation197_spill] sm:$0xff] %v16506_v35  ;;  %v16508_v3 = vpop.f32.mrb[226].mxu1 }
 0x4ab   :  { %9424 = vmatmul.mubr.bf16.gmra.mrb[228].mxu0 %v5766_v23  ;;  %17600 = vst [vmem:[#allocation198_spill] sm:$0xff] %v16508_v3  ;;  %v16510_v2 = vpop.f32.mrb[227].mxu1  ;;  %v15264_v23 = vld [vmem:[#allocation3 + $0x25ec] ss:$40 sps:$4 sm:$0xff]   ;;  %v5796_v3 = vpack.c.bf16 %v15267_v16, %v15266_v42 }
 0x4ac   :  { %9433 = vmatprep.mubr.bf16.mxu0 %v5777_v54  ;;  %17601 = vst [vmem:[#allocation199_spill] sm:$0xff] %v16510_v2  ;;  %v5797_v35 = vpack.c.bf16 %v15264_v23, %v15262_v37  ;;  %v15279_v37 = vld [vmem:[#allocation3 + $0x2688] ss:$40 sps:$4 sm:$0xff]  }
 0x4ad   :  { %v15389_v23 = vld [vmem:[#allocation8 + $0x8] sm:$0xff]   ;;  %v5806_v42 = vpack.c.bf16 %v15279_v37, %v15278_v9 }
 0x4ae   :  { %10689 = vmatpush1.bf16.msra.mxu1 %v15389_v23  ;;  %v15303_v37 = vld [vmem:[#allocation3 + $0x27c8] ss:$40 sps:$4 sm:$0xff]  }
 0x4b0   :  { %v16512_v20 = vpop.f32.mrb[228].mxu1 }
 0x4b1   :  { %17602 = vst [vmem:[#allocation200_spill] sm:$0xff] %v16512_v20  ;;  %v16514_v54 = vpop.f32.mrb[229].mxu1 }
 0x4b2   :  { %17603 = vst [vmem:[#allocation201_spill] sm:$0xff] %v16514_v54  ;;  %v16516_v50 = vpop.f32.mrb[230].mxu1 }
 0x4b3   :  { %9434 = vmatmul.mubr.bf16.gmra.mrb[232].mxu0 %v5776_v39  ;;  %17604 = vst [vmem:[#allocation202_spill] sm:$0xff] %v16516_v50  ;;  %v16518_v57 = vpop.f32.mrb[231].mxu1  ;;  %v15276_v39 = vld [vmem:[#allocation3 + $0x268c] ss:$40 sps:$4 sm:$0xff]  }
 0x4b4   :  { %9443 = vmatprep.mubr.bf16.mxu0 %v5787_v47  ;;  %17605 = vst [vmem:[#allocation203_spill] sm:$0xff] %v16518_v57  ;;  %v5807_v54 = vpack.c.bf16 %v15276_v39, %v15274_v25  ;;  %v15288_v57 = vld [vmem:[#allocation3 + $0x272c] ss:$40 sps:$4 sm:$0xff]  }
 0x4b8   :  { %v16520_v2 = vpop.f32.mrb[232].mxu1 }
 0x4b9   :  { %17606 = vst [vmem:[#allocation204_spill] sm:$0xff] %v16520_v2  ;;  %v16522_v47 = vpop.f32.mrb[233].mxu1  ;;  %v17612_v2 = vmov 0  }
 0x4ba   :  { %17607 = vst [vmem:[#allocation205_spill] sm:$0xff] %v16522_v47  ;;  %v16524_v20 = vpop.f32.mrb[234].mxu1  ;;  %10690 = vmatprep.subr.bf16.mxu1 %v17612_v2 }
 0x4bb   :  { %9444 = vmatmul.mubr.bf16.gmra.mrb[236].mxu0 %v5786_v7  ;;  %17608 = vst [vmem:[#allocation206_spill] sm:$0xff] %v16524_v20  ;;  %v16526_v24 = vpop.f32.mrb[235].mxu1  ;;  %v15286_v7 = vld [vmem:[#allocation3 + $0x26dc] ss:$40 sps:$4 sm:$0xff]   ;;  %v15300_v20 = vld [vmem:[#allocation3 + $0x27cc] ss:$40 sps:$4 sm:$0xff]  }
 0x4bc   :  { %9453 = vmatprep.mubr.bf16.mxu0 %v5797_v35  ;;  %17609 = vst [vmem:[#allocation207_spill] sm:$0xff] %v16526_v24  ;;  %v5817_v25 = vpack.c.bf16 %v15288_v57, %v15286_v7  ;;  %v15291_v24 = vld [vmem:[#allocation3 + $0x2728] ss:$40 sps:$4 sm:$0xff]   ;;  %v15302_v57 = vld [vmem:[#allocation3 + $0x2778] ss:$40 sps:$4 sm:$0xff]  }
 0x4bd   :  { %v15312_v7 = vld [vmem:[#allocation3 + $0x24] ss:$40 sps:$4 sm:$0xff]  }
 0x4c0   :  { %v16528_v35 = vpop.f32.mrb[236].mxu1 }
 0x4c1   :  { %17610 = vst [vmem:[#allocation208_spill] sm:$0xff] %v16528_v35  ;;  %v16530_v50 = vpop.f32.mrb[237].mxu1 }
 0x4c2   :  { %17611 = vst [vmem:[#allocation209_spill] sm:$0xff] %v16530_v50  ;;  %v16533_v16 = vpop.f32.mrb[238].mxu1 }
 0x4c3   :  { %9454 = vmatmul.mubr.bf16.gmra.mrb[240].mxu0 %v5796_v3  ;;  %17613 = vst [vmem:[#allocation210_spill] sm:$0xff] %v16533_v16  ;;  %v16535_v39 = vpop.f32.mrb[239].mxu1  ;;  %v15290_v3 = vld [vmem:[#allocation3 + $0x26d8] ss:$40 sps:$4 sm:$0xff]   ;;  %v5826_v16 = vpack.c.bf16 %v15303_v37, %v15302_v57 }
 0x4c4   :  { %9463 = vmatprep.mubr.bf16.mxu0 %v5807_v54  ;;  %17614 = vst [vmem:[#allocation211_spill] sm:$0xff] %v16535_v39  ;;  %v15298_v54 = vld [vmem:[#allocation3 + $0x277c] ss:$40 sps:$4 sm:$0xff]   ;;  %v5816_v23 = vpack.c.bf16 %v15291_v24, %v15290_v3  ;;  %v15313_v3 = vld [vmem:[#allocation3 + $0x70] ss:$40 sps:$4 sm:$0xff]  }
 0x4c5   :  { %v5827_v40 = vpack.c.bf16 %v15300_v20, %v15298_v54  ;;  %v15310_v20 = vld [vmem:[#allocation3 + $0x20] ss:$40 sps:$4 sm:$0xff]   ;;  %v15408_v54 = vld [vmem:[#allocation8 + $0x10] sm:$0xff]  }
 0x4c6   :  { %10691 = vmatpush1.bf16.msra.mxu1 %v15408_v54  ;;  %v5198_v57 = vpack.c.bf16 %v15313_v3, %v15310_v20  ;;  %v15327_v3 = vld [vmem:[#allocation3 + $0x1b0] ss:$40 sps:$4 sm:$0xff]  }
 0x4c7   :  { %10692 = vmatprep.subr.bf16.mxu1 %v17612_v2 }
 0x4c8   :  { %v16537_v47 = vpop.f32.mrb[240].mxu1 }
 0x4c9   :  { %17615 = vst [vmem:[#allocation212_spill] sm:$0xff] %v16537_v47  ;;  %v16539_v35 = vpop.f32.mrb[241].mxu1 }
 0x4ca   :  { %17616 = vst [vmem:[#allocation213_spill] sm:$0xff] %v16539_v35  ;;  %v16541_v50 = vpop.f32.mrb[242].mxu1 }
 0x4cb   :  { %9464 = vmatmul.mubr.bf16.gmra.mrb[244].mxu0 %v5806_v42  ;;  %17617 = vst [vmem:[#allocation214_spill] sm:$0xff] %v16541_v50  ;;  %v16543_v9 = vpop.f32.mrb[243].mxu1  ;;  %v15315_v42 = vld [vmem:[#allocation3 + $0x74] ss:$40 sps:$4 sm:$0xff]  }
 0x4cc   :  { %9473 = vmatprep.mubr.bf16.mxu0 %v5817_v25  ;;  %17618 = vst [vmem:[#allocation215_spill] sm:$0xff] %v16543_v9  ;;  %v5199_v35 = vpack.c.bf16 %v15315_v42, %v15312_v7  ;;  %v15318_v9 = vld [vmem:[#allocation3 + $0x114] ss:$40 sps:$4 sm:$0xff]  }
 0x4d0   :  { %v16545_v39 = vpop.f32.mrb[244].mxu1 }
 0x4d1   :  { %17619 = vst [vmem:[#allocation216_spill] sm:$0xff] %v16545_v39  ;;  %v16547_v25 = vpop.f32.mrb[245].mxu1 }
 0x4d2   :  { %17620 = vst [vmem:[#allocation217_spill] sm:$0xff] %v16547_v25  ;;  %v16549_v47 = vpop.f32.mrb[246].mxu1 }
 0x4d3   :  { %9474 = vmatmul.mubr.bf16.gmra.mrb[248].mxu0 %v5816_v23  ;;  %17621 = vst [vmem:[#allocation218_spill] sm:$0xff] %v16549_v47  ;;  %v16551_v24 = vpop.f32.mrb[247].mxu1  ;;  %v15316_v23 = vld [vmem:[#allocation3 + $0xc4] ss:$40 sps:$4 sm:$0xff]   ;;  %v15324_v47 = vld [vmem:[#allocation3 + $0x1b4] ss:$40 sps:$4 sm:$0xff]  }
 0x4d4   :  { %9483 = vmatprep.mubr.bf16.mxu0 %v5827_v40  ;;  %17622 = vst [vmem:[#allocation219_spill] sm:$0xff] %v16551_v24  ;;  %v5209_v7 = vpack.c.bf16 %v15318_v9, %v15316_v23  ;;  %v15321_v24 = vld [vmem:[#allocation3 + $0x110] ss:$40 sps:$4 sm:$0xff]   ;;  %v15326_v9 = vld [vmem:[#allocation3 + $0x160] ss:$40 sps:$4 sm:$0xff]  }
 0x4d5   :  { %v15328_v23 = vld [vmem:[#allocation3 + $0x204] ss:$40 sps:$4 sm:$0xff]  }
 0x4d8   :  { %v16553_v40 = vpop.f32.mrb[248].mxu1 }
 0x4d9   :  { %17623 = vst [vmem:[#allocation220_spill] sm:$0xff] %v16553_v40  ;;  %v16555_v50 = vpop.f32.mrb[249].mxu1 }
 0x4da   :  { %17624 = vst [vmem:[#allocation221_spill] sm:$0xff] %v16555_v50  ;;  %v16558_v37 = vpop.f32.mrb[250].mxu1 }
 0x4db   :  { %9484 = vmatmul.mubr.bf16.gmra.mrb[252].mxu0 %v5826_v16  ;;  %17625 = vst [vmem:[#allocation222_spill] sm:$0xff] %v16558_v37  ;;  %v16560_v42 = vpop.f32.mrb[251].mxu1  ;;  %v15320_v16 = vld [vmem:[#allocation3 + $0xc0] ss:$40 sps:$4 sm:$0xff]  }
 0x4dc   :  { %9526 = vmatprep.mubr.bf16.mxu0 %v5199_v35  ;;  %17626 = vst [vmem:[#allocation223_spill] sm:$0xff] %v16560_v42  ;;  %v15322_v35 = vld [vmem:[#allocation3 + $0x164] ss:$40 sps:$4 sm:$0xff]   ;;  %v5208_v54 = vpack.c.bf16 %v15321_v24, %v15320_v16  ;;  %v5218_v42 = vpack.c.bf16 %v15327_v3, %v15326_v9  ;;  %v15332_v37 = vld [vmem:[#allocation3 + $0x200] ss:$40 sps:$4 sm:$0xff]  }
 0x4dd   :  { %v5219_v39 = vpack.c.bf16 %v15324_v47, %v15322_v35  ;;  %v15336_v24 = vld [vmem:[#allocation3 + $0x2f4] ss:$40 sps:$4 sm:$0xff]   ;;  %v5228_v47 = vpack.c.bf16 %v15333_v62, %v15332_v37  ;;  %v15338_v35 = vld [vmem:[#allocation3 + $0x2a0] ss:$40 sps:$4 sm:$0xff]   ;;  %v15351_v62 = vld [vmem:[#allocation3 + $0x430] ss:$40 sps:$4 sm:$0xff]  }
 0x4de   :  { %v15352_v37 = vld [vmem:[#allocation3 + $0x484] ss:$40 sps:$4 sm:$0xff]  }
 0x4e0   :  { %v16562_v25 = vpop.f32.mrb[252].mxu1 }
 0x4e1   :  { %17627 = vst [vmem:[#allocation224_spill] sm:$0xff] %v16562_v25  ;;  %v16564_v40 = vpop.f32.mrb[253].mxu1  ;;  %v15427_v25 = vld [vmem:[#allocation8 + $0x18] sm:$0xff]  }
 0x4e2   :  { %17628 = vst [vmem:[#allocation225_spill] sm:$0xff] %v16564_v40  ;;  %v16566_v50 = vpop.f32.mrb[254].mxu1  ;;  %v15334_v40 = vld [vmem:[#allocation3 + $0x2a4] ss:$40 sps:$4 sm:$0xff]   ;;  %10693 = vmatpush1.bf16.msra.mxu1 %v15427_v25 }
 0x4e3   :  { %9527 = vmatmul.mubr.bf16.vlgmr.msra.gmra.mrb[0].mxu0 %v5198_v57  ;;  %17629 = vst [vmem:[#allocation226_spill] sm:$0xff] %v16566_v50  ;;  %v16568_v20 = vpop.f32.mrb[255].mxu1  ;;  %v15330_v57 = vld [vmem:[#allocation3 + $0x254] ss:$40 sps:$4 sm:$0xff]   ;;  %10694 = vmatprep.subr.bf16.mxu1 %v17612_v2  ;;  %v5239_v16 = vpack.c.bf16 %v15336_v24, %v15334_v40  ;;  %v15446_v40 = vld [vmem:[#allocation8 + $0x20] sm:$0xff]  }
 0x4e4   :  { %9536 = vmatprep.mubr.bf16.mxu0 %v5209_v7  ;;  %17630 = vst [vmem:[#allocation227_spill] sm:$0xff] %v16568_v20  ;;  %v5229_v7 = vpack.c.bf16 %v15330_v57, %v15328_v23  ;;  %v15342_v20 = vld [vmem:[#allocation3 + $0x394] ss:$40 sps:$4 sm:$0xff]   ;;  %v15345_v23 = vld [vmem:[#allocation3 + $0x390] ss:$40 sps:$4 sm:$0xff]  }
 0x4e5   :  { %v15346_v57 = vld [vmem:[#allocation3 + $0x3e4] ss:$40 sps:$4 sm:$0xff]   ;;  %v15354_v24 = vld [vmem:[#allocation3 + $0x4d4] ss:$40 sps:$4 sm:$0xff]  }
 0x4e6   :  { %10695 = vmatpush1.bf16.msra.mxu1 %v15446_v40 }
 0x4e7   :  { %10696 = vmatprep.subr.bf16.mxu1 %v17612_v2 }
 0x4eb   :  { %9537 = vmatmul.mubr.bf16.gmra.mrb[4].mxu0 %v5208_v54  ;;  %v15339_v54 = vld [vmem:[#allocation3 + $0x2f0] ss:$40 sps:$4 sm:$0xff]  }
 0x4ec   :  { %9546 = vmatprep.mubr.bf16.mxu0 %v5219_v39  ;;  %v15340_v39 = vld [vmem:[#allocation3 + $0x344] ss:$40 sps:$4 sm:$0xff]   ;;  %v5238_v9 = vpack.c.bf16 %v15339_v54, %v15338_v35  ;;  %v15357_v35 = vld [vmem:[#allocation3 + $0x4d0] ss:$40 sps:$4 sm:$0xff]  }
 0x4ed   :  { %v5249_v3 = vpack.c.bf16 %v15342_v20, %v15340_v39  ;;  %v5269_v20 = vpack.c.bf16 %v15354_v24, %v15352_v37  ;;  %v15453_v54 = vld [vmem:[#allocation8 + $0x28] sm:$0xff]  }
 0x4ee   :  { %v15358_v39 = vld [vmem:[#allocation3 + $0x524] ss:$40 sps:$4 sm:$0xff]   ;;  %10697 = vmatpush1.bf16.msra.mxu1 %v15453_v54  ;;  %v15369_v24 = vld [vmem:[#allocation3 + $0x5c0] ss:$40 sps:$4 sm:$0xff]   ;;  %v15474_v54 = vld [vmem:[#allocation8 + $0x50] sm:$0xff]  }
 0x4ef   :  { %10698 = vmatprep.subr.bf16.mxu1 %v17612_v2 }
 0x4f3   :  { %9547 = vmatmul.mubr.bf16.gmra.mrb[8].mxu0 %v5218_v42  ;;  %v15344_v42 = vld [vmem:[#allocation3 + $0x340] ss:$40 sps:$4 sm:$0xff]  }
 0x4f4   :  { %9556 = vmatprep.mubr.bf16.mxu0 %v5229_v7  ;;  %v15348_v7 = vld [vmem:[#allocation3 + $0x434] ss:$40 sps:$4 sm:$0xff]   ;;  %v5248_v50 = vpack.c.bf16 %v15345_v23, %v15344_v42  ;;  %v15362_v23 = vld [vmem:[#allocation3 + $0x520] ss:$40 sps:$4 sm:$0xff]  }
 0x4f5   :  { %v5259_v25 = vpack.c.bf16 %v15348_v7, %v15346_v57  ;;  %v15461_v57 = vld [vmem:[#allocation8 + $0x38] sm:$0xff]   ;;  %v15365_v7 = vld [vmem:[#allocation3 + $0x5c4] ss:$40 sps:$4 sm:$0xff]  }
 0x4fb   :  { %9557 = vmatmul.mubr.bf16.gmra.mrb[12].mxu0 %v5228_v47  ;;  %v5258_v47 = vpack.c.bf16 %v15351_v62, %v15350_v0  ;;  %v15363_v0 = vld [vmem:[#allocation3 + $0x570] ss:$40 sps:$4 sm:$0xff]   ;;  %v15466_v62 = vld [vmem:[#allocation8 + $0x40] sm:$0xff]  }
 0x4fc   :  { %9566 = vmatprep.mubr.bf16.mxu0 %v5239_v16  ;;  %v15356_v16 = vld [vmem:[#allocation3 + $0x480] ss:$40 sps:$4 sm:$0xff]   ;;  %v5278_v40 = vpack.c.bf16 %v15363_v0, %v15362_v23  ;;  %v15377_v23 = vld [vmem:[#allocation3 + $0x704] ss:$40 sps:$4 sm:$0xff]   ;;  %v15379_v0 = vld [vmem:[#allocation3 + $0x754] ss:$40 sps:$4 sm:$0xff]  }
 0x503   :  { %9567 = vmatmul.mubr.bf16.gmra.mrb[16].mxu0 %v5238_v9  ;;  %v15360_v9 = vld [vmem:[#allocation3 + $0x574] ss:$40 sps:$4 sm:$0xff]  }
 0x504   :  { %9576 = vmatprep.mubr.bf16.mxu0 %v5249_v3  ;;  %v5268_v3 = vpack.c.bf16 %v15357_v35, %v15356_v16  ;;  %v5279_v42 = vpack.c.bf16 %v15360_v9, %v15358_v39  ;;  %v15371_v16 = vld [vmem:[#allocation3 + $0x664] ss:$40 sps:$4 sm:$0xff]   ;;  %v15373_v35 = vld [vmem:[#allocation3 + $0x6b4] ss:$40 sps:$4 sm:$0xff]  }
 0x505   :  { %v5299_v9 = vpack.c.bf16 %v15373_v35, %v15371_v16  ;;  %v15485_v16 = vld [vmem:[#allocation8 + $0x68] sm:$0xff]  }
 0x506   :  { %v15387_v35 = vld [vmem:[#allocation3 + $0x7a0] ss:$40 sps:$4 sm:$0xff]  }
 0x50b   :  { %9577 = vmatmul.mubr.bf16.gmra.mrb[20].mxu0 %v5248_v50  ;;  %v15458_v50 = vld [vmem:[#allocation8 + $0x30] sm:$0xff]  }
 0x50c   :  { %9586 = vmatprep.mubr.bf16.mxu0 %v5259_v25  ;;  %10699 = vmatpush1.bf16.msra.mxu1 %v15458_v50  ;;  %v15367_v25 = vld [vmem:[#allocation3 + $0x614] ss:$40 sps:$4 sm:$0xff]   ;;  %v15375_v50 = vld [vmem:[#allocation3 + $0x660] ss:$40 sps:$4 sm:$0xff]  }
 0x50d   :  { %10700 = vmatprep.subr.bf16.mxu1 %v17612_v2  ;;  %v5289_v37 = vpack.c.bf16 %v15367_v25, %v15365_v7  ;;  %v5309_v25 = vpack.c.bf16 %v15379_v0, %v15377_v23  ;;  %v15493_v23 = vld [vmem:[#allocation8 + $0x78] sm:$0xff]   ;;  %v15394_v0 = vld [vmem:[#allocation3 + $0x840] ss:$40 sps:$4 sm:$0xff]  }
 0x510   :  { %10701 = vmatpush1.bf16.msra.mxu1 %v15461_v57  ;;  %v15482_v57 = vld [vmem:[#allocation8 + $0x60] sm:$0xff]  }
 0x511   :  { %10702 = vmatprep.subr.bf16.mxu1 %v17612_v2 }
 0x513   :  { %9587 = vmatmul.mubr.bf16.gmra.mrb[24].mxu0 %v5258_v47  ;;  %v15370_v47 = vld [vmem:[#allocation3 + $0x610] ss:$40 sps:$4 sm:$0xff]  }
 0x514   :  { %9596 = vmatprep.mubr.bf16.mxu0 %v5269_v20  ;;  %10703 = vmatpush1.bf16.msra.mxu1 %v15466_v62  ;;  %v15469_v20 = vld [vmem:[#allocation8 + $0x48] sm:$0xff]   ;;  %v5288_v39 = vpack.c.bf16 %v15370_v47, %v15369_v24  ;;  %v15385_v24 = vld [vmem:[#allocation3 + $0x7f4] ss:$40 sps:$4 sm:$0xff]  }
 0x515   :  { %10704 = vmatprep.subr.bf16.mxu1 %v17612_v2  ;;  %v15381_v62 = vld [vmem:[#allocation3 + $0x700] ss:$40 sps:$4 sm:$0xff]  }
 0x518   :  { %10705 = vmatpush1.bf16.msra.mxu1 %v15469_v20 }
 0x519   :  { %10706 = vmatprep.subr.bf16.mxu1 %v17612_v2 }
 0x51b   :  { %9597 = vmatmul.mubr.bf16.gmra.mrb[28].mxu0 %v5268_v3  ;;  %v15376_v3 = vld [vmem:[#allocation3 + $0x6b0] ss:$40 sps:$4 sm:$0xff]  }
 0x51c   :  { %9606 = vmatprep.mubr.bf16.mxu0 %v5279_v42  ;;  %10707 = vmatpush1.bf16.msra.mxu1 %v15474_v54  ;;  %v15477_v42 = vld [vmem:[#allocation8 + $0x58] sm:$0xff]   ;;  %v5298_v7 = vpack.c.bf16 %v15376_v3, %v15375_v50  ;;  %v15490_v50 = vld [vmem:[#allocation8 + $0x70] sm:$0xff]  }
 0x51d   :  { %10708 = vmatprep.subr.bf16.mxu1 %v17612_v2  ;;  %v15388_v54 = vld [vmem:[#allocation3 + $0x7f0] ss:$40 sps:$4 sm:$0xff]  }
 0x51e   :  { %v5318_v3 = vpack.c.bf16 %v15388_v54, %v15387_v35  ;;  %v15407_v54 = vld [vmem:[#allocation3 + $0x9d0] ss:$40 sps:$4 sm:$0xff]  }
 0x520   :  { %10709 = vmatpush1.bf16.msra.mxu1 %v15477_v42 }
 0x521   :  { %10710 = vmatprep.subr.bf16.mxu1 %v17612_v2 }
 0x523   :  { %9607 = vmatmul.mubr.bf16.gmra.mrb[32].mxu0 %v5278_v40  ;;  %v15382_v40 = vld [vmem:[#allocation3 + $0x750] ss:$40 sps:$4 sm:$0xff]  }
 0x524   :  { %9616 = vmatprep.mubr.bf16.mxu0 %v5289_v37  ;;  %10711 = vmatpush1.bf16.msra.mxu1 %v15482_v57  ;;  %v15383_v37 = vld [vmem:[#allocation3 + $0x7a4] ss:$40 sps:$4 sm:$0xff]   ;;  %v5308_v47 = vpack.c.bf16 %v15382_v40, %v15381_v62  ;;  %v15395_v57 = vld [vmem:[#allocation3 + $0x890] ss:$40 sps:$4 sm:$0xff]  }
 0x525   :  { %10712 = vmatprep.subr.bf16.mxu1 %v17612_v2  ;;  %v5319_v20 = vpack.c.bf16 %v15385_v24, %v15383_v37  ;;  %v5328_v62 = vpack.c.bf16 %v15395_v57, %v15394_v0  ;;  %v15400_v37 = vld [vmem:[#allocation3 + $0x8e0] ss:$40 sps:$4 sm:$0xff]   ;;  %v15401_v24 = vld [vmem:[#allocation3 + $0x930] ss:$40 sps:$4 sm:$0xff]   ;;  %v15415_v0 = vld [vmem:[#allocation3 + $0xac4] ss:$40 sps:$4 sm:$0xff]  }
 0x526   :  { %v15417_v57 = vld [vmem:[#allocation3 + $0xb14] ss:$40 sps:$4 sm:$0xff]  }
 0x528   :  { %10713 = vmatpush1.bf16.msra.mxu1 %v15485_v16  ;;  %v5338_v16 = vpack.c.bf16 %v15401_v24, %v15400_v37  ;;  %v15421_v37 = vld [vmem:[#allocation3 + $0xb64] ss:$40 sps:$4 sm:$0xff]   ;;  %v15423_v24 = vld [vmem:[#allocation3 + $0xbb4] ss:$40 sps:$4 sm:$0xff]  }
 0x529   :  { %10714 = vmatprep.subr.bf16.mxu1 %v17612_v2 }
 0x52b   :  { %9617 = vmatmul.mubr.bf16.gmra.mrb[36].mxu0 %v5288_v39  ;;  %v15390_v39 = vld [vmem:[#allocation3 + $0x844] ss:$40 sps:$4 sm:$0xff]  }
 0x52c   :  { %9626 = vmatprep.mubr.bf16.mxu0 %v5299_v9  ;;  %v15392_v9 = vld [vmem:[#allocation3 + $0x894] ss:$40 sps:$4 sm:$0xff]   ;;  %10715 = vmatpush1.bf16.msra.mxu1 %v15490_v50 }
 0x52d   :  { %v5329_v42 = vpack.c.bf16 %v15392_v9, %v15390_v39  ;;  %10716 = vmatprep.subr.bf16.mxu1 %v17612_v2  ;;  %v15406_v2 = vld [vmem:[#allocation3 + $0x980] ss:$40 sps:$4 sm:$0xff]   ;;  %v15409_v39 = vld [vmem:[#allocation3 + $0xa24] ss:$40 sps:$4 sm:$0xff]   ;;  %v15411_v9 = vld [vmem:[#allocation3 + $0xa74] ss:$40 sps:$4 sm:$0xff]  }
 0x52e   :  { %v5348_v50 = vpack.c.bf16 %v15407_v54, %v15406_v2  ;;  %v15428_v2 = vld [vmem:[#allocation3 + $0xc04] ss:$40 sps:$4 sm:$0xff]   ;;  %v15430_v54 = vld [vmem:[#allocation3 + $0xc54] ss:$40 sps:$4 sm:$0xff]  }
 0x530   :  { %10717 = vmatpush1.bf16.msra.mxu1 %v15493_v23  ;;  %v15414_v23 = vld [vmem:[#allocation3 + $0xa70] ss:$40 sps:$4 sm:$0xff]  }
 0x533   :  { %9627 = vmatmul.mubr.bf16.gmra.mrb[40].mxu0 %v5298_v7  ;;  %v15396_v7 = vld [vmem:[#allocation3 + $0x8e4] ss:$40 sps:$4 sm:$0xff]  }
 0x534   :  { %9636 = vmatprep.mubr.bf16.mxu0 %v5309_v25  ;;  %v15398_v25 = vld [vmem:[#allocation3 + $0x934] ss:$40 sps:$4 sm:$0xff]  }
 0x535   :  { %v5339_v40 = vpack.c.bf16 %v15398_v25, %v15396_v7  ;;  %v5369_v25 = vpack.c.bf16 %v15417_v57, %v15415_v0 }
 0x53b   :  { %9637 = vmatmul.mubr.bf16.gmra.mrb[44].mxu0 %v5308_v47  ;;  %v15402_v47 = vld [vmem:[#allocation3 + $0x984] ss:$40 sps:$4 sm:$0xff]  }
 0x53c   :  { %9646 = vmatprep.mubr.bf16.mxu0 %v5319_v20  ;;  %v15404_v20 = vld [vmem:[#allocation3 + $0x9d4] ss:$40 sps:$4 sm:$0xff]  }
 0x53d   :  { %v5349_v35 = vpack.c.bf16 %v15404_v20, %v15402_v47  ;;  %v5379_v20 = vpack.c.bf16 %v15423_v24, %v15421_v37 }
 0x543   :  { %9647 = vmatmul.mubr.bf16.gmra.mrb[48].mxu0 %v5318_v3  ;;  %v5359_v3 = vpack.c.bf16 %v15411_v9, %v15409_v39  ;;  %v5389_v9 = vpack.c.bf16 %v15430_v54, %v15428_v2 }
 0x544   :  { %9656 = vmatprep.mubr.bf16.mxu0 %v5329_v42  ;;  %v15413_v42 = vld [vmem:[#allocation3 + $0xa20] ss:$40 sps:$4 sm:$0xff]  }
 0x545   :  { %v5358_v7 = vpack.c.bf16 %v15414_v23, %v15413_v42  ;;  %v15434_v42 = vld [vmem:[#allocation3 + $0xca4] ss:$40 sps:$4 sm:$0xff]   ;;  %v15436_v23 = vld [vmem:[#allocation3 + $0xcf4] ss:$40 sps:$4 sm:$0xff]  }
 0x546   :  { %v5399_v57 = vpack.c.bf16 %v15436_v23, %v15434_v42 }
 0x54b   :  { %9657 = vmatmul.mubr.bf16.gmra.mrb[52].mxu0 %v5328_v62  ;;  %v15419_v62 = vld [vmem:[#allocation3 + $0xac0] ss:$40 sps:$4 sm:$0xff]  }
 0x54c   :  { %9666 = vmatprep.mubr.bf16.mxu0 %v5339_v40  ;;  %v15420_v40 = vld [vmem:[#allocation3 + $0xb10] ss:$40 sps:$4 sm:$0xff]  }
 0x54d   :  { %v5368_v47 = vpack.c.bf16 %v15420_v40, %v15419_v62  ;;  %v15440_v62 = vld [vmem:[#allocation3 + $0xd44] ss:$40 sps:$4 sm:$0xff]   ;;  %v15442_v40 = vld [vmem:[#allocation3 + $0xd94] ss:$40 sps:$4 sm:$0xff]  }
 0x54e   :  { %v5409_v24 = vpack.c.bf16 %v15442_v40, %v15440_v62 }
 0x553   :  { %9667 = vmatmul.mubr.bf16.gmra.mrb[56].mxu0 %v5338_v16  ;;  %v15425_v16 = vld [vmem:[#allocation3 + $0xb60] ss:$40 sps:$4 sm:$0xff]  }
 0x554   :  { %9676 = vmatprep.mubr.bf16.mxu0 %v5349_v35  ;;  %v15426_v35 = vld [vmem:[#allocation3 + $0xbb0] ss:$40 sps:$4 sm:$0xff]  }
 0x555   :  { %v5378_v39 = vpack.c.bf16 %v15426_v35, %v15425_v16  ;;  %v15447_v16 = vld [vmem:[#allocation3 + $0xde4] ss:$40 sps:$4 sm:$0xff]   ;;  %v15449_v35 = vld [vmem:[#allocation3 + $0xe34] ss:$40 sps:$4 sm:$0xff]  }
 0x556   :  { %v5419_v54 = vpack.c.bf16 %v15449_v35, %v15447_v16 }
 0x55b   :  { %9677 = vmatmul.mubr.bf16.gmra.mrb[60].mxu0 %v5348_v50  ;;  %v15432_v50 = vld [vmem:[#allocation3 + $0xc00] ss:$40 sps:$4 sm:$0xff]  }
 0x55c   :  { %9686 = vmatprep.mubr.bf16.mxu0 %v5359_v3  ;;  %v15433_v3 = vld [vmem:[#allocation3 + $0xc50] ss:$40 sps:$4 sm:$0xff]  }
 0x55d   :  { %v5388_v0 = vpack.c.bf16 %v15433_v3, %v15432_v50  ;;  %v15454_v50 = vld [vmem:[#allocation3 + $0xe84] ss:$40 sps:$4 sm:$0xff]   ;;  %v15456_v3 = vld [vmem:[#allocation3 + $0xed4] ss:$40 sps:$4 sm:$0xff]  }
 0x55e   :  { %v5429_v23 = vpack.c.bf16 %v15456_v3, %v15454_v50  ;;  %v5992_v50 = vlaneseq }
 0x563   :  { %9687 = vmatmul.mubr.bf16.gmra.mrb[64].mxu0 %v5358_v7  ;;  %v15438_v7 = vld [vmem:[#allocation3 + $0xca0] ss:$40 sps:$4 sm:$0xff]  }
 0x564   :  { %9696 = vmatprep.mubr.bf16.mxu0 %v5369_v25  ;;  %v15439_v25 = vld [vmem:[#allocation3 + $0xcf0] ss:$40 sps:$4 sm:$0xff]  }
 0x565   :  { %v5398_v37 = vpack.c.bf16 %v15439_v25, %v15438_v7  ;;  %v15462_v7 = vld [vmem:[#allocation3 + $0xf24] ss:$40 sps:$4 sm:$0xff]   ;;  %v15464_v25 = vld [vmem:[#allocation3 + $0xf74] ss:$40 sps:$4 sm:$0xff]  }
 0x566   :  { %v5439_v40 = vpack.c.bf16 %v15464_v25, %v15462_v7  ;;  %v15486_v7 = vld [vmem:[#allocation3 + $0x1104] ss:$40 sps:$4 sm:$0xff]   ;;  %v15488_v25 = vld [vmem:[#allocation3 + $0x1154] ss:$40 sps:$4 sm:$0xff]  }
 0x56b   :  { %9697 = vmatmul.mubr.bf16.gmra.mrb[68].mxu0 %v5368_v47  ;;  %v15444_v47 = vld [vmem:[#allocation3 + $0xd40] ss:$40 sps:$4 sm:$0xff]  }
 0x56c   :  { %9706 = vmatprep.mubr.bf16.mxu0 %v5379_v20  ;;  %v15445_v20 = vld [vmem:[#allocation3 + $0xd90] ss:$40 sps:$4 sm:$0xff]  }
 0x56d   :  { %v5408_v2 = vpack.c.bf16 %v15445_v20, %v15444_v47  ;;  %v15470_v47 = vld [vmem:[#allocation3 + $0xfc4] ss:$40 sps:$4 sm:$0xff]   ;;  %v15472_v20 = vld [vmem:[#allocation3 + $0x1014] ss:$40 sps:$4 sm:$0xff]  }
 0x56e   :  { %v5449_v35 = vpack.c.bf16 %v15472_v20, %v15470_v47  ;;  %v5469_v47 = vpack.c.bf16 %v15488_v25, %v15486_v7 }
 0x573   :  { %9707 = vmatmul.mubr.bf16.gmra.mrb[72].mxu0 %v5378_v39  ;;  %v15451_v39 = vld [vmem:[#allocation3 + $0xde0] ss:$40 sps:$4 sm:$0xff]  }
 0x574   :  { %9716 = vmatprep.mubr.bf16.mxu0 %v5389_v9  ;;  %v15452_v9 = vld [vmem:[#allocation3 + $0xe30] ss:$40 sps:$4 sm:$0xff]  }
 0x575   :  { %v5418_v42 = vpack.c.bf16 %v15452_v9, %v15451_v39  ;;  %v15478_v39 = vld [vmem:[#allocation3 + $0x1064] ss:$40 sps:$4 sm:$0xff]   ;;  %v15480_v9 = vld [vmem:[#allocation3 + $0x10b4] ss:$40 sps:$4 sm:$0xff]  }
 0x57b   :  { %9717 = vmatmul.mubr.bf16.gmra.mrb[76].mxu0 %v5388_v0  ;;  %v15459_v0 = vld [vmem:[#allocation3 + $0xe80] ss:$40 sps:$4 sm:$0xff]  }
 0x57c   :  { %9726 = vmatprep.mubr.bf16.mxu0 %v5399_v57  ;;  %v15460_v57 = vld [vmem:[#allocation3 + $0xed0] ss:$40 sps:$4 sm:$0xff]  }
 0x57d   :  { %v5428_v62 = vpack.c.bf16 %v15460_v57, %v15459_v0  ;;  %v15483_v0 = vld [vmem:[#allocation3 + $0x1060] ss:$40 sps:$4 sm:$0xff]   ;;  %v15484_v57 = vld [vmem:[#allocation3 + $0x10b0] ss:$40 sps:$4 sm:$0xff]  }
 0x583   :  { %9727 = vmatmul.mubr.bf16.gmra.mrb[80].mxu0 %v5398_v37  ;;  %v15467_v37 = vld [vmem:[#allocation3 + $0xf20] ss:$40 sps:$4 sm:$0xff]  }
 0x584   :  { %9736 = vmatprep.mubr.bf16.mxu0 %v5409_v24  ;;  %v15468_v24 = vld [vmem:[#allocation3 + $0xf70] ss:$40 sps:$4 sm:$0xff]  }
 0x585   :  { %v5438_v16 = vpack.c.bf16 %v15468_v24, %v15467_v37  ;;  %v5458_v24 = vpack.c.bf16 %v15484_v57, %v15483_v0 }
 0x58b   :  { %9737 = vmatmul.mubr.bf16.gmra.mrb[84].mxu0 %v5408_v2  ;;  %v15475_v2 = vld [vmem:[#allocation3 + $0xfc0] ss:$40 sps:$4 sm:$0xff]  }
 0x58c   :  { %9746 = vmatprep.mubr.bf16.mxu0 %v5419_v54  ;;  %v15476_v54 = vld [vmem:[#allocation3 + $0x1010] ss:$40 sps:$4 sm:$0xff]  }
 0x58d   :  { %v5448_v3 = vpack.c.bf16 %v15476_v54, %v15475_v2  ;;  %v15492_v2 = vld [vmem:[#allocation3 + $0x1150] ss:$40 sps:$4 sm:$0xff]   ;;  %v15494_v54 = vld [vmem:[#allocation3 + $0x11a4] ss:$40 sps:$4 sm:$0xff]  }
 0x593   :  { %9747 = vmatmul.mubr.bf16.gmra.mrb[88].mxu0 %v5418_v42  ;;  %v5459_v42 = vpack.c.bf16 %v15480_v9, %v15478_v39  ;;  %v15496_v39 = vld [vmem:[#allocation3 + $0x11f4] ss:$40 sps:$4 sm:$0xff]  }
 0x594   :  { %9756 = vmatprep.mubr.bf16.mxu0 %v5429_v23  ;;  %v16582_v23 = vshrl.u32 %v5992_v50, 7 }
 0x596   :  { %17631 = vst [vmem:[#allocation228_spill] sm:$0xff] %v16582_v23  ;;  %v5998_v37 = vsub.s32 1, %v16582_v23 }
 0x59b   :  { %9757 = vmatmul.mubr.bf16.gmra.mrb[92].mxu0 %v5428_v62  ;;  %v5994_v62 = vsub.s32 0, %v16582_v23 }
 0x59c   :  { %9766 = vmatprep.mubr.bf16.mxu0 %v5439_v40  ;;  %v5990_v40 = vld [vmem:[%s17406_s2] sm:$0x3] }
 0x59d   :  { %v16589_v20 = vrot.slane %v5990_v40, %v5994_v62 }
 0x59f   :  { %v6837_v9 = vadd.f32 %v16054_v12, %v16589_v20  ;;  %v6841_v57 = vadd.f32 %v16058_v15, %v16589_v20  ;;  %v15502_v15 = vld [vmem:[#allocation3 + $0x1294] ss:$40 sps:$4 sm:$0xff]  }
 0x5a3   :  { %9767 = vmatmul.mubr.bf16.gmra.mrb[96].mxu0 %v5438_v16  ;;  %v16591_v16 = vrot.slane %v5990_v40, %v5998_v37  ;;  %v5479_v37 = vpack.c.bf16 %v15496_v39, %v15494_v54 }
 0x5a4   :  { %9776 = vmatprep.mubr.bf16.mxu0 %v5449_v35  ;;  %v15491_v35 = vld [vmem:[#allocation3 + $0x1100] ss:$40 sps:$4 sm:$0xff]  }
 0x5a5   :  { %v5468_v7 = vpack.c.bf16 %v15492_v2, %v15491_v35  ;;  %v6843_v40 = vadd.f32 %v16060_v41, %v16591_v16  ;;  %v6847_v2 = vadd.f32 %v16062_v17, %v16589_v20  ;;  %v6849_v54 = vadd.f32 %v16064_v19, %v16591_v16  ;;  %v15504_v19 = vld [vmem:[#allocation3 + $0x1240] ss:$40 sps:$4 sm:$0xff]  }
 0x5ab   :  { %9777 = vmatmul.mubr.bf16.gmra.mrb[100].mxu0 %v5448_v3  ;;  %v6839_v3 = vadd.f32 %v16056_v28, %v16591_v16  ;;  %v15499_v28 = vld [vmem:[#allocation3 + $0x11f0] ss:$40 sps:$4 sm:$0xff]  }
 0x5ac   :  { %9786 = vmatprep.mubr.bf16.mxu0 %v5459_v42 }
 0x5b3   :  { %9787 = vmatmul.mubr.bf16.gmra.mrb[104].mxu0 %v5458_v24 }
 0x5b4   :  { %9796 = vmatprep.mubr.bf16.mxu0 %v5469_v47 }
 0x5b6   :  { %v9528_v50 = vpop.f32.mrb[0].mxu0 }
 0x5b7   :  { %v12243_v42 = vadd.f32 %v9528_v50, %v6837_v9  ;;  %v9530_v0 = vpop.f32.mrb[1].mxu0 }
 0x5b8   :  { %v12245_v25 = vadd.f32 %v9530_v0, %v6839_v3  ;;  %v9532_v62 = vpop.f32.mrb[2].mxu0  ;;  %v6851_v0 = vadd.f32 %v16066_v21, %v16589_v20  ;;  %v15506_v21 = vld [vmem:[#allocation3 + $0x12e4] ss:$40 sps:$4 sm:$0xff]  }
 0x5b9   :  { %v12247_v24 = vadd.f32 %v9532_v62, %v6841_v57  ;;  %v9534_v47 = vpop.f32.mrb[3].mxu0  ;;  %v10167_v12 = vmax.f32 %v12243_v42, 0.0  ;;  %v5478_v57 = vpack.c.bf16 %v15499_v28, %v15498_v8  ;;  %v15508_v8 = vld [vmem:[#allocation3 + $0x1334] ss:$40 sps:$4 sm:$0xff]  }
 0x5ba   :  { %v12249_v23 = vadd.f32 %v9534_v47, %v6843_v40  ;;  %v10168_v9 = vmax.f32 %v12245_v25, 0.0  ;;  %v5489_v25 = vpack.c.bf16 %v15502_v15, %v15500_v46  ;;  %v15505_v47 = vld [vmem:[#allocation3 + $0x1290] ss:$40 sps:$4 sm:$0xff]   ;;  %v6859_v15 = vadd.f32 %v16072_v5, %v16591_v16  ;;  %v15510_v5 = vld [vmem:[#allocation3 + $0x12e0] ss:$40 sps:$4 sm:$0xff]  }
 0x5bb   :  { %v10169_v13 = vmax.f32 %v12247_v24, 0.0  ;;  %9797 = vmatmul.mubr.bf16.gmra.mrb[108].mxu0 %v5468_v7 }
 0x5bc   :  { %v10170_v50 = vmax.f32 %v12249_v23, 0.0  ;;  %9806 = vmatprep.mubr.bf16.mxu0 %v5479_v37 }
 0x5bd   :  { %v10423_v35 = vpack.c.bf16 %v10169_v13, %v10167_v12  ;;  %v6853_v13 = vadd.f32 %v16068_v55, %v16591_v16 }
 0x5be   :  { %v10424_v3 = vpack.c.bf16 %v10170_v50, %v10168_v9  ;;  %v9538_v41 = vpop.f32.mrb[4].mxu0  ;;  %v6857_v50 = vadd.f32 %v16070_v4, %v16589_v20 }
 0x5bf   :  { %v12251_v39 = vadd.f32 %v9538_v41, %v6847_v2  ;;  %v9540_v42 = vpop.f32.mrb[5].mxu0  ;;  %v5488_v41 = vpack.c.bf16 %v15505_v47, %v15504_v19  ;;  %v6869_v47 = vadd.f32 %v16080_v61, %v16591_v16  ;;  %v15516_v61 = vld [vmem:[#allocation3 + $0x1380] ss:$40 sps:$4 sm:$0xff]  }
 0x5c0   :  { %v12253_v7 = vadd.f32 %v9540_v42, %v6849_v54  ;;  %v9542_v23 = vpop.f32.mrb[6].mxu0  ;;  %10718 = vmatprep.mubr.bf16.mxu1 %v10424_v3  ;;  %v6861_v3 = vadd.f32 %v16074_v59, %v16589_v20  ;;  %v6863_v42 = vadd.f32 %v16076_v6, %v16591_v16  ;;  %v15512_v59 = vld [vmem:[#allocation3 + $0x1384] ss:$40 sps:$4 sm:$0xff]  }
 0x5c1   :  { %v12255_v62 = vadd.f32 %v9542_v23, %v6851_v0  ;;  %v9544_v17 = vpop.f32.mrb[7].mxu0  ;;  %10719 = vmatmul.mubr.bf16.vlgmr.msra.gmra.mrb[0].mxu1 %v10423_v35  ;;  %v10171_v37 = vmax.f32 %v12251_v39, 0.0  ;;  %v5499_v0 = vpack.c.bf16 %v15508_v8, %v15506_v21  ;;  %v6871_v21 = vadd.f32 %v16082_v14, %v16589_v20  ;;  %v15518_v14 = vld [vmem:[#allocation3 + $0x1424] ss:$40 sps:$4 sm:$0xff]  }
 0x5c2   :  { %v12257_v40 = vadd.f32 %v9544_v17, %v6853_v13  ;;  %v10172_v12 = vmax.f32 %v12253_v7, 0.0 }
 0x5c3   :  { %v10173_v24 = vmax.f32 %v12255_v62, 0.0  ;;  %9807 = vmatmul.mubr.bf16.gmra.mrb[112].mxu0 %v5478_v57 }
 0x5c4   :  { %v10174_v9 = vmax.f32 %v12257_v40, 0.0  ;;  %9816 = vmatprep.mubr.bf16.mxu0 %v5489_v25  ;;  %v15511_v25 = vld [vmem:[#allocation3 + $0x1330] ss:$40 sps:$4 sm:$0xff]   ;;  %v15514_v40 = vld [vmem:[#allocation3 + $0x13d4] ss:$40 sps:$4 sm:$0xff]  }
 0x5c5   :  { %v10425_v28 = vpack.c.bf16 %v10173_v24, %v10171_v37  ;;  %v6867_v24 = vadd.f32 %v16078_v60, %v16589_v20  ;;  %v5498_v8 = vpack.c.bf16 %v15511_v25, %v15510_v5  ;;  %v6881_v5 = vadd.f32 %v16090_v36, %v16589_v20  ;;  %v15524_v36 = vld [vmem:[#allocation3 + $0x14c4] ss:$40 sps:$4 sm:$0xff]  }
 0x5c6   :  { %v10426_v55 = vpack.c.bf16 %v10174_v9, %v10172_v12  ;;  %v9548_v46 = vpop.f32.mrb[8].mxu0 }
 0x5c7   :  { %v12259_v35 = vadd.f32 %v9548_v46, %v6857_v50  ;;  %v9550_v2 = vpop.f32.mrb[9].mxu0  ;;  %v5509_v46 = vpack.c.bf16 %v15514_v40, %v15512_v59  ;;  %v6883_v59 = vadd.f32 %v16092_v45, %v16591_v16 }
 0x5c8   :  { %v12261_v54 = vadd.f32 %v9550_v2, %v6859_v15  ;;  %v9552_v39 = vpop.f32.mrb[10].mxu0  ;;  %10726 = vmatprep.mubr.bf16.mxu1 %v10426_v55  ;;  %v6873_v55 = vadd.f32 %v16084_v33, %v16591_v16 }
 0x5c9   :  { %v12263_v57 = vadd.f32 %v9552_v39, %v6861_v3  ;;  %v9554_v4 = vpop.f32.mrb[11].mxu0  ;;  %10727 = vmatmul.mubr.bf16.gmra.mrb[4].mxu1 %v10425_v28  ;;  %v10175_v23 = vmax.f32 %v12259_v35, 0.0 }
 0x5ca   :  { %v12265_v7 = vadd.f32 %v9554_v4, %v6863_v42  ;;  %v10176_v62 = vmax.f32 %v12261_v54, 0.0  ;;  %v15520_v42 = vld [vmem:[#allocation3 + $0x1474] ss:$40 sps:$4 sm:$0xff]  }
 0x5cb   :  { %v10177_v13 = vmax.f32 %v12263_v57, 0.0  ;;  %9817 = vmatmul.mubr.bf16.gmra.mrb[116].mxu0 %v5488_v41  ;;  %v15517_v41 = vld [vmem:[#allocation3 + $0x13d0] ss:$40 sps:$4 sm:$0xff]   ;;  %v6877_v57 = vadd.f32 %v16086_v30, %v16589_v20  ;;  %v5519_v40 = vpack.c.bf16 %v15520_v42, %v15518_v14 }
 0x5cc   :  { %v10178_v17 = vmax.f32 %v12265_v7, 0.0  ;;  %9826 = vmatprep.mubr.bf16.mxu0 %v5499_v0  ;;  %v6879_v7 = vadd.f32 %v16088_v32, %v16591_v16  ;;  %v5508_v25 = vpack.c.bf16 %v15517_v41, %v15516_v61  ;;  %v15522_v32 = vld [vmem:[#allocation3 + $0x1420] ss:$40 sps:$4 sm:$0xff]   ;;  %v6893_v61 = vadd.f32 %v16100_v56, %v16591_v16 }
 0x5cd   :  { %v10427_v37 = vpack.c.bf16 %v10177_v13, %v10175_v23 }
 0x5ce   :  { %v10428_v6 = vpack.c.bf16 %v10178_v17, %v10176_v62  ;;  %v9558_v19 = vpop.f32.mrb[12].mxu0 }
 0x5cf   :  { %v12267_v12 = vadd.f32 %v9558_v19, %v6867_v24  ;;  %v9560_v9 = vpop.f32.mrb[13].mxu0 }
 0x5d0   :  { %v12269_v28 = vadd.f32 %v9560_v9, %v6869_v47  ;;  %v9562_v50 = vpop.f32.mrb[14].mxu0  ;;  %10734 = vmatprep.mubr.bf16.mxu1 %v10428_v6  ;;  %v15523_v47 = vld [vmem:[#allocation3 + $0x1470] ss:$40 sps:$4 sm:$0xff]  }
 0x5d1   :  { %v12271_v15 = vadd.f32 %v9562_v50, %v6871_v21  ;;  %v9564_v60 = vpop.f32.mrb[15].mxu0  ;;  %10735 = vmatmul.mubr.bf16.gmra.mrb[8].mxu1 %v10427_v37  ;;  %v10179_v2 = vmax.f32 %v12267_v12, 0.0  ;;  %v15526_v21 = vld [vmem:[#allocation3 + $0x1514] ss:$40 sps:$4 sm:$0xff]  }
 0x5d2   :  { %v12273_v35 = vadd.f32 %v9564_v60, %v6873_v55  ;;  %v10180_v54 = vmax.f32 %v12269_v28, 0.0  ;;  %v6887_v28 = vadd.f32 %v16094_v51, %v16589_v20  ;;  %v6889_v55 = vadd.f32 %v16096_v43, %v16591_v16  ;;  %v15528_v43 = vld [vmem:[#allocation3 + $0x14c0] ss:$40 sps:$4 sm:$0xff]  }
 0x5d3   :  { %v10181_v3 = vmax.f32 %v12271_v15, 0.0  ;;  %9827 = vmatmul.mubr.bf16.gmra.mrb[120].mxu0 %v5498_v8  ;;  %v6891_v60 = vadd.f32 %v16098_v48, %v16589_v20  ;;  %v5529_v41 = vpack.c.bf16 %v15526_v21, %v15524_v36  ;;  %v15530_v48 = vld [vmem:[#allocation3 + $0x1564] ss:$40 sps:$4 sm:$0xff]   ;;  %v15538_v21 = vld [vmem:[#allocation3 + $0x1654] ss:$40 sps:$4 sm:$0xff]  }
 0x5d4   :  { %v10182_v39 = vmax.f32 %v12273_v35, 0.0  ;;  %9836 = vmatprep.mubr.bf16.mxu0 %v5509_v46  ;;  %v5518_v35 = vpack.c.bf16 %v15523_v47, %v15522_v32 }
 0x5d5   :  { %v10429_v0 = vpack.c.bf16 %v10181_v3, %v10179_v2 }
 0x5d6   :  { %v10430_v33 = vpack.c.bf16 %v10182_v39, %v10180_v54  ;;  %v9568_v4 = vpop.f32.mrb[16].mxu0 }
 0x5d7   :  { %v12275_v23 = vadd.f32 %v9568_v4, %v6877_v57  ;;  %v9570_v13 = vpop.f32.mrb[17].mxu0  ;;  %v15532_v4 = vld [vmem:[#allocation3 + $0x15b4] ss:$40 sps:$4 sm:$0xff]  }
 0x5d8   :  { %v12277_v62 = vadd.f32 %v9570_v13, %v6879_v7  ;;  %v9572_v17 = vpop.f32.mrb[18].mxu0  ;;  %10742 = vmatprep.mubr.bf16.mxu1 %v10430_v33 }
 0x5d9   :  { %v12279_v37 = vadd.f32 %v9572_v17, %v6881_v5  ;;  %v9574_v30 = vpop.f32.mrb[19].mxu0  ;;  %10743 = vmatmul.mubr.bf16.gmra.mrb[12].mxu1 %v10429_v0  ;;  %v10183_v6 = vmax.f32 %v12275_v23, 0.0  ;;  %v15529_v0 = vld [vmem:[#allocation3 + $0x1510] ss:$40 sps:$4 sm:$0xff]   ;;  %v6897_v23 = vadd.f32 %v16102_v63, %v16589_v20  ;;  %v6899_v5 = vadd.f32 %v16104_v27, %v16591_v16  ;;  %v15534_v27 = vld [vmem:[#allocation3 + $0x1560] ss:$40 sps:$4 sm:$0xff]  }
 0x5da   :  { %v12281_v24 = vadd.f32 %v9574_v30, %v6883_v59  ;;  %v10184_v12 = vmax.f32 %v12277_v62, 0.0  ;;  %v6901_v17 = vadd.f32 %v16106_v10, %v16589_v20  ;;  %v5528_v59 = vpack.c.bf16 %v15529_v0, %v15528_v43  ;;  %v15536_v10 = vld [vmem:[#allocation3 + $0x1604] ss:$40 sps:$4 sm:$0xff]   ;;  %v15544_v0 = vld [vmem:[#allocation3 + $0x16f4] ss:$40 sps:$4 sm:$0xff]  }
 0x5db   :  { %v10185_v19 = vmax.f32 %v12279_v37, 0.0  ;;  %9837 = vmatmul.mubr.bf16.gmra.mrb[124].mxu0 %v5508_v25  ;;  %v6903_v30 = vadd.f32 %v16108_v11, %v16591_v16 }
 0x5dc   :  { %v10186_v9 = vmax.f32 %v12281_v24, 0.0  ;;  %9846 = vmatprep.mubr.bf16.mxu0 %v5519_v40  ;;  %v5539_v24 = vpack.c.bf16 %v15532_v4, %v15530_v48  ;;  %v6919_v4 = vadd.f32 %v16120_v49, %v16591_v16  ;;  %v15546_v49 = vld [vmem:[#allocation3 + $0x16a0] ss:$40 sps:$4 sm:$0xff]  }
 0x5dd   :  { %v10431_v8 = vpack.c.bf16 %v10185_v19, %v10183_v6 }
 0x5de   :  { %v10432_v45 = vpack.c.bf16 %v10186_v9, %v10184_v12  ;;  %v9578_v50 = vpop.f32.mrb[20].mxu0  ;;  %v15535_v12 = vld [vmem:[#allocation3 + $0x15b0] ss:$40 sps:$4 sm:$0xff]  }
 0x5df   :  { %v12283_v46 = vadd.f32 %v9578_v50, %v6887_v28  ;;  %v9580_v15 = vpop.f32.mrb[21].mxu0  ;;  %v6907_v28 = vadd.f32 %v16110_v34, %v16589_v20  ;;  %v6909_v50 = vadd.f32 %v16112_v1, %v16591_v16  ;;  %v15540_v1 = vld [vmem:[#allocation3 + $0x1600] ss:$40 sps:$4 sm:$0xff]  }
 0x5e0   :  { %v12285_v2 = vadd.f32 %v9580_v15, %v6889_v55  ;;  %v9582_v3 = vpop.f32.mrb[22].mxu0  ;;  %10750 = vmatprep.mubr.bf16.mxu1 %v10432_v45  ;;  %v6911_v15 = vadd.f32 %v16114_v38, %v16589_v20  ;;  %v15542_v38 = vld [vmem:[#allocation3 + $0x16a4] ss:$40 sps:$4 sm:$0xff]  }
 0x5e1   :  { %v12287_v54 = vadd.f32 %v9582_v3, %v6891_v60  ;;  %v9584_v51 = vpop.f32.mrb[23].mxu0  ;;  %10751 = vmatmul.mubr.bf16.gmra.mrb[16].mxu1 %v10431_v8  ;;  %v10187_v14 = vmax.f32 %v12283_v46, 0.0  ;;  %v5538_v60 = vpack.c.bf16 %v15535_v12, %v15534_v27  ;;  %v6913_v3 = vadd.f32 %v16116_v52, %v16591_v16 }
 0x5e2   :  { %v12289_v39 = vadd.f32 %v9584_v51, %v6893_v61  ;;  %v10188_v57 = vmax.f32 %v12285_v2, 0.0  ;;  %v5549_v61 = vpack.c.bf16 %v15538_v21, %v15536_v10  ;;  %v6929_v12 = vadd.f32 %v16128_v31, %v16591_v16  ;;  %v15552_v31 = vld [vmem:[#allocation3 + $0x1740] ss:$40 sps:$4 sm:$0xff]  }
 0x5e3   :  { %v10189_v42 = vmax.f32 %v12287_v54, 0.0  ;;  %9847 = vmatmul.mubr.bf16.gmra.mrb[128].mxu0 %v5518_v35  ;;  %v6931_v10 = vadd.f32 %v16130_v26, %v16589_v20  ;;  %v15554_v26 = vld [vmem:[#allocation3 + $0x17e4] ss:$40 sps:$4 sm:$0xff]  }
 0x5e4   :  { %v10190_v33 = vmax.f32 %v12289_v39, 0.0  ;;  %9856 = vmatprep.mubr.bf16.mxu0 %v5529_v41 }
 0x5e5   :  { %v10433_v7 = vpack.c.bf16 %v10189_v42, %v10187_v14  ;;  %v15541_v14 = vld [vmem:[#allocation3 + $0x1650] ss:$40 sps:$4 sm:$0xff]  }
 0x5e6   :  { %v10434_v56 = vpack.c.bf16 %v10190_v33, %v10188_v57  ;;  %v9588_v13 = vpop.f32.mrb[24].mxu0  ;;  %v6917_v33 = vadd.f32 %v16118_v58, %v16589_v20 }
 0x5e7   :  { %v12291_v25 = vadd.f32 %v9588_v13, %v6897_v23  ;;  %v9590_v62 = vpop.f32.mrb[25].mxu0  ;;  %v5548_v13 = vpack.c.bf16 %v15541_v14, %v15540_v1 }
 0x5e8   :  { %v12293_v40 = vadd.f32 %v9590_v62, %v6899_v5  ;;  %v9592_v37 = vpop.f32.mrb[26].mxu0  ;;  %10758 = vmatprep.mubr.bf16.mxu1 %v10434_v56  ;;  %v6921_v56 = vadd.f32 %v16122_v53, %v16589_v20  ;;  %v6923_v62 = vadd.f32 %v16124_v18, %v16591_v16  ;;  %v15548_v53 = vld [vmem:[#allocation3 + $0x1744] ss:$40 sps:$4 sm:$0xff]  }
 0x5e9   :  { %v12295_v6 = vadd.f32 %v9592_v37, %v6901_v17  ;;  %v9594_v63 = vpop.f32.mrb[27].mxu0  ;;  %10759 = vmatmul.mubr.bf16.gmra.mrb[20].mxu1 %v10433_v7  ;;  %v10191_v32 = vmax.f32 %v12291_v25, 0.0  ;;  %v5559_v17 = vpack.c.bf16 %v15544_v0, %v15542_v38 }
 0x5ea   :  { %v12297_v19 = vadd.f32 %v9594_v63, %v6903_v30  ;;  %v10192_v9 = vmax.f32 %v12293_v40, 0.0 }
 0x5eb   :  { %v10193_v47 = vmax.f32 %v12295_v6, 0.0  ;;  %9857 = vmatmul.mubr.bf16.gmra.mrb[132].mxu0 %v5528_v59 }
 0x5ec   :  { %v10194_v36 = vmax.f32 %v12297_v19, 0.0  ;;  %9866 = vmatprep.mubr.bf16.mxu0 %v5539_v24  ;;  %v15547_v24 = vld [vmem:[#allocation3 + $0x16f0] ss:$40 sps:$4 sm:$0xff]   ;;  %v15550_v19 = vld [vmem:[#allocation3 + $0x1794] ss:$40 sps:$4 sm:$0xff]  }
 0x5ed   :  { %v10435_v8 = vpack.c.bf16 %v10193_v47, %v10191_v32  ;;  %v6927_v47 = vadd.f32 %v16126_v29, %v16589_v20  ;;  %v5558_v21 = vpack.c.bf16 %v15547_v24, %v15546_v49 }
 0x5ee   :  { %v10436_v11 = vpack.c.bf16 %v10194_v36, %v10192_v9  ;;  %v9598_v45 = vpop.f32.mrb[28].mxu0 }
 0x5ef   :  { %v12299_v55 = vadd.f32 %v9598_v45, %v6907_v28  ;;  %v9600_v46 = vpop.f32.mrb[29].mxu0  ;;  %v5569_v45 = vpack.c.bf16 %v15550_v19, %v15548_v53 }
 0x5f0   :  { %v12301_v35 = vadd.f32 %v9600_v46, %v6909_v50  ;;  %v9602_v2 = vpop.f32.mrb[30].mxu0  ;;  %10766 = vmatprep.mubr.bf16.mxu1 %v10436_v11  ;;  %v6933_v11 = vadd.f32 %v16132_v44, %v16591_v16 }
 0x5f1   :  { %v12303_v41 = vadd.f32 %v9602_v2, %v6911_v15  ;;  %v9604_v34 = vpop.f32.mrb[31].mxu0  ;;  %10767 = vmatmul.mubr.bf16.gmra.mrb[24].mxu1 %v10435_v8  ;;  %v10195_v51 = vmax.f32 %v12299_v55, 0.0 }
 0x5f2   :  { %v12305_v54 = vadd.f32 %v9604_v34, %v6913_v3  ;;  %v10196_v42 = vmax.f32 %v12301_v35, 0.0  ;;  %v15556_v3 = vld [vmem:[#allocation3 + $0x1834] ss:$40 sps:$4 sm:$0xff]  }
 0x5f3   :  { %v10197_v39 = vmax.f32 %v12303_v41, 0.0  ;;  %9867 = vmatmul.mubr.bf16.gmra.mrb[136].mxu0 %v5538_v60  ;;  %v15553_v60 = vld [vmem:[#allocation3 + $0x1790] ss:$40 sps:$4 sm:$0xff]   ;;  %v17632_v41 = vld [vmem:[#allocation13_spill] sm:$0xff] }
 0x5f4   :  { %v10198_v43 = vmax.f32 %v12305_v54, 0.0  ;;  %9876 = vmatprep.mubr.bf16.mxu0 %v5549_v61  ;;  %v6937_v34 = vadd.f32 %v17632_v41, %v16589_v20  ;;  %v5568_v38 = vpack.c.bf16 %v15553_v60, %v15552_v31  ;;  %v15568_v31 = vld [vmem:[#allocation3 + $0x1974] ss:$40 sps:$4 sm:$0xff]  }
 0x5f5   :  { %v10437_v57 = vpack.c.bf16 %v10197_v39, %v10195_v51  ;;  %v17633_v51 = vld [vmem:[#allocation14_spill] sm:$0xff] }
 0x5f6   :  { %v10438_v52 = vpack.c.bf16 %v10198_v43, %v10196_v42  ;;  %v9608_v48 = vpop.f32.mrb[32].mxu0  ;;  %v6939_v39 = vadd.f32 %v17633_v51, %v16591_v16  ;;  %v17634_v42 = vld [vmem:[#allocation15_spill] sm:$0xff] }
 0x5f7   :  { %v12307_v7 = vadd.f32 %v9608_v48, %v6917_v33  ;;  %v9610_v23 = vpop.f32.mrb[33].mxu0  ;;  %v6941_v43 = vadd.f32 %v17634_v42, %v16589_v20  ;;  %v17635_v33 = vld [vmem:[#allocation16_spill] sm:$0xff]  ;;  %v5579_v48 = vpack.c.bf16 %v15556_v3, %v15554_v26 }
 0x5f8   :  { %v12309_v5 = vadd.f32 %v9610_v23, %v6919_v4  ;;  %v9612_v25 = vpop.f32.mrb[34].mxu0  ;;  %10774 = vmatprep.mubr.bf16.mxu1 %v10438_v52  ;;  %v6943_v52 = vadd.f32 %v17635_v33, %v16591_v16  ;;  %v17643_v42 = vld [vmem:[#allocation24_spill] sm:$0xff] }
 0x5f9   :  { %v12311_v59 = vadd.f32 %v9612_v25, %v6921_v56  ;;  %v9614_v58 = vpop.f32.mrb[35].mxu0  ;;  %10775 = vmatmul.mubr.bf16.gmra.mrb[28].mxu1 %v10437_v57  ;;  %v10199_v37 = vmax.f32 %v12307_v7, 0.0  ;;  %v15559_v25 = vld [vmem:[#allocation3 + $0x1830] ss:$40 sps:$4 sm:$0xff]  }
 0x5fa   :  { %v12313_v40 = vadd.f32 %v9614_v58, %v6923_v62  ;;  %v10200_v6 = vmax.f32 %v12309_v5, 0.0  ;;  %v15558_v5 = vld [vmem:[#allocation3 + $0x17e0] ss:$40 sps:$4 sm:$0xff]   ;;  %v15562_v58 = vld [vmem:[#allocation3 + $0x18d4] ss:$40 sps:$4 sm:$0xff]  }
 0x5fb   :  { %v10201_v30 = vmax.f32 %v12311_v59, 0.0  ;;  %9877 = vmatmul.mubr.bf16.gmra.mrb[140].mxu0 %v5548_v13  ;;  %v15560_v59 = vld [vmem:[#allocation3 + $0x1884] ss:$40 sps:$4 sm:$0xff]  }
 0x5fc   :  { %v10202_v63 = vmax.f32 %v12313_v40, 0.0  ;;  %9886 = vmatprep.mubr.bf16.mxu0 %v5559_v17 }
 0x5fd   :  { %v10439_v32 = vpack.c.bf16 %v10201_v30, %v10199_v37  ;;  %v17636_v37 = vld [vmem:[#allocation17_spill] sm:$0xff] }
 0x5fe   :  { %v10440_v18 = vpack.c.bf16 %v10202_v63, %v10200_v6  ;;  %v9618_v27 = vpop.f32.mrb[36].mxu0  ;;  %v6947_v30 = vadd.f32 %v17636_v37, %v16589_v20  ;;  %v17637_v6 = vld [vmem:[#allocation18_spill] sm:$0xff] }
 0x5ff   :  { %v12315_v9 = vadd.f32 %v9618_v27, %v6927_v47  ;;  %v9620_v36 = vpop.f32.mrb[37].mxu0  ;;  %v6949_v63 = vadd.f32 %v17637_v6, %v16591_v16 }
 0x600   :  { %v12317_v8 = vadd.f32 %v9620_v36, %v6929_v12  ;;  %v9622_v28 = vpop.f32.mrb[38].mxu0  ;;  %10782 = vmatprep.mubr.bf16.mxu1 %v10440_v18  ;;  %v5578_v18 = vpack.c.bf16 %v15559_v25, %v15558_v5  ;;  %v15574_v5 = vld [vmem:[#allocation3 + $0x1a14] ss:$40 sps:$4 sm:$0xff]  }
 0x601   :  { %v12319_v50 = vadd.f32 %v9622_v28, %v6931_v10  ;;  %v9624_v29 = vpop.f32.mrb[39].mxu0  ;;  %10783 = vmatmul.mubr.bf16.gmra.mrb[32].mxu1 %v10439_v32  ;;  %v10203_v46 = vmax.f32 %v12315_v9, 0.0  ;;  %v17638_v32 = vld [vmem:[#allocation19_spill] sm:$0xff]  ;;  %v17639_v9 = vld [vmem:[#allocation20_spill] sm:$0xff]  ;;  %v5589_v10 = vpack.c.bf16 %v15562_v58, %v15560_v59  ;;  %v17644_v58 = vld [vmem:[#allocation25_spill] sm:$0xff] }
 0x602   :  { %v12321_v55 = vadd.f32 %v9624_v29, %v6933_v11  ;;  %v10204_v35 = vmax.f32 %v12317_v8, 0.0  ;;  %v6951_v47 = vadd.f32 %v17638_v32, %v16589_v20  ;;  %v6953_v36 = vadd.f32 %v17639_v9, %v16591_v16  ;;  %v15565_v29 = vld [vmem:[#allocation3 + $0x18d0] ss:$40 sps:$4 sm:$0xff]  }
 0x603   :  { %v10205_v15 = vmax.f32 %v12319_v50, 0.0  ;;  %9887 = vmatmul.mubr.bf16.gmra.mrb[144].mxu0 %v5558_v21  ;;  %v15564_v50 = vld [vmem:[#allocation3 + $0x1880] ss:$40 sps:$4 sm:$0xff]  }
 0x604   :  { %v10206_v2 = vmax.f32 %v12321_v55, 0.0  ;;  %9896 = vmatprep.mubr.bf16.mxu0 %v5569_v45 }
 0x605   :  { %v10441_v61 = vpack.c.bf16 %v10205_v15, %v10203_v46  ;;  %v15566_v15 = vld [vmem:[#allocation3 + $0x1924] ss:$40 sps:$4 sm:$0xff]  }
 0x606   :  { %v10442_v44 = vpack.c.bf16 %v10206_v2, %v10204_v35  ;;  %v9628_v54 = vpop.f32.mrb[40].mxu0  ;;  %v17640_v35 = vld [vmem:[#allocation21_spill] sm:$0xff] }
 0x607   :  { %v12323_v1 = vadd.f32 %v9628_v54, %v6937_v34  ;;  %v9630_v14 = vpop.f32.mrb[41].mxu0  ;;  %v6957_v2 = vadd.f32 %v17640_v35, %v16589_v20  ;;  %v17642_v54 = vld [vmem:[#allocation23_spill] sm:$0xff] }
 0x608   :  { %v12325_v0 = vadd.f32 %v9630_v14, %v6939_v39  ;;  %v9632_v57 = vpop.f32.mrb[42].mxu0  ;;  %10790 = vmatprep.mubr.bf16.mxu1 %v10442_v44  ;;  %v6961_v51 = vadd.f32 %v17642_v54, %v16589_v20  ;;  %v5588_v39 = vpack.c.bf16 %v15565_v29, %v15564_v50  ;;  %v17647_v50 = vld [vmem:[#allocation28_spill] sm:$0xff] }
 0x609   :  { %v12327_v4 = vadd.f32 %v9632_v57, %v6941_v43  ;;  %v9634_v7 = vpop.f32.mrb[43].mxu0  ;;  %10791 = vmatmul.mubr.bf16.gmra.mrb[36].mxu1 %v10441_v61  ;;  %v10207_v56 = vmax.f32 %v12323_v1, 0.0  ;;  %v17641_v61 = vld [vmem:[#allocation22_spill] sm:$0xff]  ;;  %v6963_v43 = vadd.f32 %v17643_v42, %v16591_v16  ;;  %v12354_v29 = vadd.f32 %v17647_v50, %v16589_v20 }
 0x60a   :  { %v12329_v23 = vadd.f32 %v9634_v7, %v6943_v52  ;;  %v10208_v62 = vmax.f32 %v12325_v0, 0.0  ;;  %v6959_v41 = vadd.f32 %v17641_v61, %v16591_v16  ;;  %v15571_v7 = vld [vmem:[#allocation3 + $0x1970] ss:$40 sps:$4 sm:$0xff]  }
 0x60b   :  { %v10209_v13 = vmax.f32 %v12327_v4, 0.0  ;;  %9897 = vmatmul.mubr.bf16.gmra.mrb[148].mxu0 %v5568_v38  ;;  %v5599_v38 = vpack.c.bf16 %v15568_v31, %v15566_v15  ;;  %v15570_v4 = vld [vmem:[#allocation3 + $0x1920] ss:$40 sps:$4 sm:$0xff]  }
 0x60c   :  { %v10210_v17 = vmax.f32 %v12329_v23, 0.0  ;;  %9906 = vmatprep.mubr.bf16.mxu0 %v5579_v48  ;;  %v5598_v6 = vpack.c.bf16 %v15571_v7, %v15570_v4  ;;  %v17648_v15 = vld [vmem:[#allocation29_spill] sm:$0xff]  ;;  %v17651_v4 = vld [vmem:[#allocation32_spill] sm:$0xff] }
 0x60d   :  { %v10443_v40 = vpack.c.bf16 %v10209_v13, %v10207_v56  ;;  %v15572_v13 = vld [vmem:[#allocation3 + $0x19c4] ss:$40 sps:$4 sm:$0xff]   ;;  %v12356_v31 = vadd.f32 %v17648_v15, %v16591_v16  ;;  %v12362_v7 = vadd.f32 %v17651_v4, %v16589_v20 }
 0x60e   :  { %v10444_v49 = vpack.c.bf16 %v10210_v17, %v10208_v62  ;;  %v9638_v24 = vpop.f32.mrb[44].mxu0  ;;  %v12346_v62 = vadd.f32 %v16158_v22, %v16589_v20 }
 0x60f   :  { %v12331_v53 = vadd.f32 %v9638_v24, %v6947_v30  ;;  %v9640_v19 = vpop.f32.mrb[45].mxu0 }
 0x610   :  { %v12333_v27 = vadd.f32 %v9640_v19, %v6949_v63  ;;  %v9642_v12 = vpop.f32.mrb[46].mxu0  ;;  %10798 = vmatprep.mubr.bf16.mxu1 %v10444_v49  ;;  %v17645_v49 = vld [vmem:[#allocation26_spill] sm:$0xff]  ;;  %v17646_v19 = vld [vmem:[#allocation27_spill] sm:$0xff] }
 0x611   :  { %v12335_v21 = vadd.f32 %v9642_v12, %v6951_v47  ;;  %v9644_v8 = vpop.f32.mrb[47].mxu0  ;;  %10799 = vmatmul.mubr.bf16.gmra.mrb[40].mxu1 %v10443_v40  ;;  %v10211_v11 = vmax.f32 %v12331_v53, 0.0  ;;  %v12348_v40 = vadd.f32 %v17644_v58, %v16591_v16  ;;  %v12350_v24 = vadd.f32 %v17645_v49, %v16589_v20 }
 0x612   :  { %v12337_v28 = vadd.f32 %v9644_v8, %v6953_v36  ;;  %v10212_v55 = vmax.f32 %v12333_v27, 0.0  ;;  %v12352_v32 = vadd.f32 %v17646_v19, %v16591_v16  ;;  %v5609_v47 = vpack.c.bf16 %v15574_v5, %v15572_v13  ;;  %v15576_v36 = vld [vmem:[#allocation3 + $0x19c0] ss:$40 sps:$4 sm:$0xff]  }
 0x613   :  { %v10213_v45 = vmax.f32 %v12335_v21, 0.0  ;;  %9907 = vmatmul.mubr.bf16.gmra.mrb[152].mxu0 %v5578_v18  ;;  %v17652_v13 = vld [vmem:[#allocation33_spill] sm:$0xff] }
 0x614   :  { %v10214_v46 = vmax.f32 %v12337_v28, 0.0  ;;  %9916 = vmatprep.mubr.bf16.mxu0 %v5589_v10  ;;  %v15577_v10 = vld [vmem:[#allocation3 + $0x1a10] ss:$40 sps:$4 sm:$0xff]   ;;  %v15578_v28 = vld [vmem:[#allocation3 + $0x1a64] ss:$40 sps:$4 sm:$0xff]   ;;  %v12364_v5 = vadd.f32 %v17652_v13, %v16591_v16 }
 0x615   :  { %v10445_v60 = vpack.c.bf16 %v10213_v45, %v10211_v11  ;;  %v15580_v11 = vld [vmem:[#allocation3 + $0x1ab4] ss:$40 sps:$4 sm:$0xff]  }
 0x616   :  { %v10446_v26 = vpack.c.bf16 %v10214_v46, %v10212_v55  ;;  %v9648_v3 = vpop.f32.mrb[48].mxu0  ;;  %v5619_v54 = vpack.c.bf16 %v15580_v11, %v15578_v28  ;;  %v17656_v11 = vld [vmem:[#allocation37_spill] sm:$0xff] }
 0x617   :  { %v12339_v34 = vadd.f32 %v9648_v3, %v6957_v2  ;;  %v9650_v44 = vpop.f32.mrb[49].mxu0  ;;  %v17649_v2 = vld [vmem:[#allocation30_spill] sm:$0xff]  ;;  %v5608_v3 = vpack.c.bf16 %v15577_v10, %v15576_v36  ;;  %v17655_v10 = vld [vmem:[#allocation36_spill] sm:$0xff] }
 0x618   :  { %v12341_v1 = vadd.f32 %v9650_v44, %v6959_v41  ;;  %v9652_v14 = vpop.f32.mrb[50].mxu0  ;;  %10806 = vmatprep.mubr.bf16.mxu1 %v10446_v26  ;;  %v12358_v26 = vadd.f32 %v17649_v2, %v16589_v20 }
 0x619   :  { %v12343_v0 = vadd.f32 %v9652_v14, %v6961_v51  ;;  %v9654_v57 = vpop.f32.mrb[51].mxu0  ;;  %10807 = vmatmul.mubr.bf16.gmra.mrb[44].mxu1 %v10445_v60  ;;  %v10215_v52 = vmax.f32 %v12339_v34, 0.0  ;;  %v17650_v34 = vld [vmem:[#allocation31_spill] sm:$0xff] }
 0x61a   :  { %v12345_v33 = vadd.f32 %v9654_v57, %v6963_v43  ;;  %v10216_v23 = vmax.f32 %v12341_v1, 0.0  ;;  %v12360_v44 = vadd.f32 %v17650_v34, %v16591_v16  ;;  %v15582_v43 = vld [vmem:[#allocation3 + $0x1a60] ss:$40 sps:$4 sm:$0xff]  }
 0x61b   :  { %v10217_v48 = vmax.f32 %v12343_v0, 0.0  ;;  %9917 = vmatmul.mubr.bf16.gmra.mrb[156].mxu0 %v5588_v39 }
 0x61c   :  { %v10218_v56 = vmax.f32 %v12345_v33, 0.0  ;;  %9926 = vmatprep.mubr.bf16.mxu0 %v5599_v38  ;;  %v15583_v38 = vld [vmem:[#allocation3 + $0x1ab0] ss:$40 sps:$4 sm:$0xff]   ;;  %v15584_v33 = vld [vmem:[#allocation3 + $0x1b04] ss:$40 sps:$4 sm:$0xff]  }
 0x61d   :  { %v10447_v25 = vpack.c.bf16 %v10217_v48, %v10215_v52  ;;  %v15586_v52 = vld [vmem:[#allocation3 + $0x1b54] ss:$40 sps:$4 sm:$0xff]   ;;  %v5618_v58 = vpack.c.bf16 %v15583_v38, %v15582_v43  ;;  %v17659_v38 = vld [vmem:[#allocation40_spill] sm:$0xff] }
 0x61e   :  { %v10448_v17 = vpack.c.bf16 %v10218_v56, %v10216_v23  ;;  %v9658_v59 = vpop.f32.mrb[52].mxu0 }
 0x61f   :  { %v12347_v37 = vadd.f32 %v12346_v62, %v9658_v59  ;;  %v9660_v30 = vpop.f32.mrb[53].mxu0 }
 0x620   :  { %v12349_v63 = vadd.f32 %v12348_v40, %v9660_v30  ;;  %v9662_v53 = vpop.f32.mrb[54].mxu0  ;;  %10814 = vmatprep.mubr.bf16.mxu1 %v10448_v17  ;;  %v17653_v17 = vld [vmem:[#allocation34_spill] sm:$0xff]  ;;  %v17654_v30 = vld [vmem:[#allocation35_spill] sm:$0xff] }
 0x621   :  { %v12351_v18 = vadd.f32 %v12350_v24, %v9662_v53  ;;  %v9664_v22 = vpop.f32.mrb[55].mxu0  ;;  %10815 = vmatmul.mubr.bf16.gmra.mrb[48].mxu1 %v10447_v25  ;;  %v10219_v12 = vmax.f32 %v12347_v37, 0.0  ;;  %v12366_v59 = vadd.f32 %v17653_v17, %v16589_v20  ;;  %v12368_v49 = vadd.f32 %v17654_v30, %v16591_v16 }
 0x622   :  { %v12353_v27 = vadd.f32 %v12352_v32, %v9664_v22  ;;  %v10220_v21 = vmax.f32 %v12349_v63, 0.0  ;;  %v5629_v24 = vpack.c.bf16 %v15586_v52, %v15584_v33  ;;  %v17660_v52 = vld [vmem:[#allocation41_spill] sm:$0xff] }
 0x623   :  { %v10221_v9 = vmax.f32 %v12351_v18, 0.0  ;;  %9927 = vmatmul.mubr.bf16.gmra.mrb[160].mxu0 %v5598_v6  ;;  %v15589_v18 = vld [vmem:[#allocation3 + $0x1b50] ss:$40 sps:$4 sm:$0xff]  }
 0x624   :  { %v10222_v8 = vmax.f32 %v12353_v27, 0.0  ;;  %9936 = vmatprep.mubr.bf16.mxu0 %v5609_v47  ;;  %v15588_v47 = vld [vmem:[#allocation3 + $0x1b00] ss:$40 sps:$4 sm:$0xff]  }
 0x625   :  { %v10449_v45 = vpack.c.bf16 %v10221_v9, %v10219_v12  ;;  %v15590_v12 = vld [vmem:[#allocation3 + $0x1ba4] ss:$40 sps:$4 sm:$0xff]   ;;  %v15592_v9 = vld [vmem:[#allocation3 + $0x1bf4] ss:$40 sps:$4 sm:$0xff]   ;;  %v5628_v15 = vpack.c.bf16 %v15589_v18, %v15588_v47 }
 0x626   :  { %v10450_v55 = vpack.c.bf16 %v10222_v8, %v10220_v21  ;;  %v9668_v46 = vpop.f32.mrb[56].mxu0  ;;  %v12370_v21 = vadd.f32 %v17655_v10, %v16589_v20  ;;  %v17663_v18 = vld [vmem:[#allocation44_spill] sm:$0xff] }
 0x627   :  { %v12355_v60 = vadd.f32 %v12354_v29, %v9668_v46  ;;  %v9670_v35 = vpop.f32.mrb[57].mxu0 }
 0x628   :  { %v12357_v61 = vadd.f32 %v12356_v31, %v9670_v35  ;;  %v9672_v41 = vpop.f32.mrb[58].mxu0  ;;  %10822 = vmatprep.mubr.bf16.mxu1 %v10450_v55  ;;  %v17657_v55 = vld [vmem:[#allocation38_spill] sm:$0xff]  ;;  %v17658_v35 = vld [vmem:[#allocation39_spill] sm:$0xff] }
 0x629   :  { %v12359_v51 = vadd.f32 %v12358_v26, %v9672_v41  ;;  %v9674_v39 = vpop.f32.mrb[59].mxu0  ;;  %10823 = vmatmul.mubr.bf16.gmra.mrb[52].mxu1 %v10449_v45  ;;  %v10223_v14 = vmax.f32 %v12355_v60, 0.0  ;;  %v12372_v45 = vadd.f32 %v17656_v11, %v16591_v16  ;;  %v12374_v46 = vadd.f32 %v17657_v55, %v16589_v20 }
 0x62a   :  { %v12361_v1 = vadd.f32 %v12360_v44, %v9674_v39  ;;  %v10224_v0 = vmax.f32 %v12357_v61, 0.0  ;;  %v12376_v2 = vadd.f32 %v17658_v35, %v16591_v16  ;;  %v5639_v26 = vpack.c.bf16 %v15592_v9, %v15590_v12  ;;  %v17664_v9 = vld [vmem:[#allocation45_spill] sm:$0xff] }
 0x62b   :  { %v10225_v42 = vmax.f32 %v12359_v51, 0.0  ;;  %9937 = vmatmul.mubr.bf16.gmra.mrb[164].mxu0 %v5608_v3  ;;  %v15595_v51 = vld [vmem:[#allocation3 + $0x1bf0] ss:$40 sps:$4 sm:$0xff]  }
 0x62c   :  { %v10226_v57 = vmax.f32 %v12361_v1, 0.0  ;;  %9946 = vmatprep.mubr.bf16.mxu0 %v5619_v54  ;;  %v15594_v54 = vld [vmem:[#allocation3 + $0x1ba0] ss:$40 sps:$4 sm:$0xff]  }
 0x62d   :  { %v10451_v48 = vpack.c.bf16 %v10225_v42, %v10223_v14  ;;  %v15596_v14 = vld [vmem:[#allocation3 + $0x1c44] ss:$40 sps:$4 sm:$0xff]   ;;  %v15598_v42 = vld [vmem:[#allocation3 + $0x1c94] ss:$40 sps:$4 sm:$0xff]   ;;  %v5638_v13 = vpack.c.bf16 %v15595_v51, %v15594_v54 }
 0x62e   :  { %v10452_v23 = vpack.c.bf16 %v10226_v57, %v10224_v0  ;;  %v9678_v56 = vpop.f32.mrb[60].mxu0  ;;  %v12378_v0 = vadd.f32 %v17659_v38, %v16589_v20  ;;  %v17667_v51 = vld [vmem:[#allocation48_spill] sm:$0xff] }
 0x62f   :  { %v12363_v25 = vadd.f32 %v12362_v7, %v9678_v56  ;;  %v9680_v62 = vpop.f32.mrb[61].mxu0 }
 0x630   :  { %v12365_v40 = vadd.f32 %v12364_v5, %v9680_v62  ;;  %v9682_v37 = vpop.f32.mrb[62].mxu0  ;;  %10830 = vmatprep.mubr.bf16.mxu1 %v10452_v23  ;;  %v17661_v23 = vld [vmem:[#allocation42_spill] sm:$0xff]  ;;  %v17662_v62 = vld [vmem:[#allocation43_spill] sm:$0xff] }
 0x631   :  { %v12367_v6 = vadd.f32 %v12366_v59, %v9682_v37  ;;  %v9684_v63 = vpop.f32.mrb[63].mxu0  ;;  %10831 = vmatmul.mubr.bf16.gmra.mrb[56].mxu1 %v10451_v48  ;;  %v10227_v19 = vmax.f32 %v12363_v25, 0.0  ;;  %v12380_v48 = vadd.f32 %v17660_v52, %v16591_v16  ;;  %v12382_v56 = vadd.f32 %v17661_v23, %v16589_v20 }
 0x632   :  { %v12369_v53 = vadd.f32 %v12368_v49, %v9684_v63  ;;  %v10228_v22 = vmax.f32 %v12365_v40, 0.0  ;;  %v12384_v17 = vadd.f32 %v17662_v62, %v16591_v16  ;;  %v5649_v59 = vpack.c.bf16 %v15598_v42, %v15596_v14  ;;  %v17668_v42 = vld [vmem:[#allocation49_spill] sm:$0xff] }
 0x633   :  { %v10229_v32 = vmax.f32 %v12367_v6, 0.0  ;;  %9947 = vmatmul.mubr.bf16.gmra.mrb[168].mxu0 %v5618_v58  ;;  %v15601_v6 = vld [vmem:[#allocation3 + $0x1c90] ss:$40 sps:$4 sm:$0xff]  }
 0x634   :  { %v10230_v27 = vmax.f32 %v12369_v53, 0.0  ;;  %9956 = vmatprep.mubr.bf16.mxu0 %v5629_v24  ;;  %v15600_v24 = vld [vmem:[#allocation3 + $0x1c40] ss:$40 sps:$4 sm:$0xff]  }
 0x635   :  { %v10453_v36 = vpack.c.bf16 %v10229_v32, %v10227_v19  ;;  %v15602_v19 = vld [vmem:[#allocation3 + $0x1ce4] ss:$40 sps:$4 sm:$0xff]   ;;  %v15604_v32 = vld [vmem:[#allocation3 + $0x1d34] ss:$40 sps:$4 sm:$0xff]   ;;  %v5648_v11 = vpack.c.bf16 %v15601_v6, %v15600_v24 }
 0x636   :  { %v10454_v8 = vpack.c.bf16 %v10230_v27, %v10228_v22  ;;  %v9688_v28 = vpop.f32.mrb[64].mxu0  ;;  %v12386_v22 = vadd.f32 %v17663_v18, %v16589_v20  ;;  %v17671_v6 = vld [vmem:[#allocation52_spill] sm:$0xff] }
 0x637   :  { %v12371_v50 = vadd.f32 %v12370_v21, %v9688_v28  ;;  %v9690_v29 = vpop.f32.mrb[65].mxu0 }
 0x638   :  { %v12373_v31 = vadd.f32 %v12372_v45, %v9690_v29  ;;  %v9692_v60 = vpop.f32.mrb[66].mxu0  ;;  %10838 = vmatprep.mubr.bf16.mxu1 %v10454_v8  ;;  %v17665_v8 = vld [vmem:[#allocation46_spill] sm:$0xff]  ;;  %v17666_v29 = vld [vmem:[#allocation47_spill] sm:$0xff] }
 0x639   :  { %v12375_v3 = vadd.f32 %v12374_v46, %v9692_v60  ;;  %v9694_v61 = vpop.f32.mrb[67].mxu0  ;;  %10839 = vmatmul.mubr.bf16.gmra.mrb[60].mxu1 %v10453_v36  ;;  %v10231_v34 = vmax.f32 %v12371_v50, 0.0  ;;  %v12388_v36 = vadd.f32 %v17664_v9, %v16591_v16  ;;  %v12390_v28 = vadd.f32 %v17665_v8, %v16589_v20 }
 0x63a   :  { %v12377_v41 = vadd.f32 %v12376_v2, %v9694_v61  ;;  %v10232_v39 = vmax.f32 %v12373_v31, 0.0  ;;  %v12392_v55 = vadd.f32 %v17666_v29, %v16591_v16  ;;  %v5659_v46 = vpack.c.bf16 %v15604_v32, %v15602_v19  ;;  %v17672_v32 = vld [vmem:[#allocation53_spill] sm:$0xff] }
 0x63b   :  { %v10233_v44 = vmax.f32 %v12375_v3, 0.0  ;;  %9957 = vmatmul.mubr.bf16.gmra.mrb[172].mxu0 %v5628_v15  ;;  %v15607_v3 = vld [vmem:[#allocation3 + $0x1d30] ss:$40 sps:$4 sm:$0xff]  }
 0x63c   :  { %v10234_v1 = vmax.f32 %v12377_v41, 0.0  ;;  %9966 = vmatprep.mubr.bf16.mxu0 %v5639_v26  ;;  %v15606_v26 = vld [vmem:[#allocation3 + $0x1ce0] ss:$40 sps:$4 sm:$0xff]  }
 0x63d   :  { %v10455_v43 = vpack.c.bf16 %v10233_v44, %v10231_v34  ;;  %v15608_v34 = vld [vmem:[#allocation3 + $0x1d84] ss:$40 sps:$4 sm:$0xff]   ;;  %v15610_v44 = vld [vmem:[#allocation3 + $0x1dd4] ss:$40 sps:$4 sm:$0xff]   ;;  %v5658_v52 = vpack.c.bf16 %v15607_v3, %v15606_v26 }
 0x63e   :  { %v10456_v57 = vpack.c.bf16 %v10234_v1, %v10232_v39  ;;  %v9698_v33 = vpop.f32.mrb[68].mxu0  ;;  %v12394_v39 = vadd.f32 %v17667_v51, %v16589_v20  ;;  %v17675_v3 = vld [vmem:[#allocation56_spill] sm:$0xff] }
 0x63f   :  { %v12379_v4 = vadd.f32 %v12378_v0, %v9698_v33  ;;  %v9700_v7 = vpop.f32.mrb[69].mxu0 }
 0x640   :  { %v12381_v5 = vadd.f32 %v12380_v48, %v9700_v7  ;;  %v9702_v25 = vpop.f32.mrb[70].mxu0  ;;  %10846 = vmatprep.mubr.bf16.mxu1 %v10456_v57  ;;  %v17669_v57 = vld [vmem:[#allocation50_spill] sm:$0xff]  ;;  %v17670_v7 = vld [vmem:[#allocation51_spill] sm:$0xff] }
 0x641   :  { %v12383_v58 = vadd.f32 %v12382_v56, %v9702_v25  ;;  %v9704_v40 = vpop.f32.mrb[71].mxu0  ;;  %10847 = vmatmul.mubr.bf16.gmra.mrb[64].mxu1 %v10455_v43  ;;  %v10235_v30 = vmax.f32 %v12379_v4, 0.0  ;;  %v12396_v43 = vadd.f32 %v17668_v42, %v16591_v16  ;;  %v12398_v33 = vadd.f32 %v17669_v57, %v16589_v20 }
 0x642   :  { %v12385_v37 = vadd.f32 %v12384_v17, %v9704_v40  ;;  %v10236_v63 = vmax.f32 %v12381_v5, 0.0  ;;  %v12400_v23 = vadd.f32 %v17670_v7, %v16591_v16  ;;  %v5669_v56 = vpack.c.bf16 %v15610_v44, %v15608_v34  ;;  %v17676_v44 = vld [vmem:[#allocation57_spill] sm:$0xff] }
 0x643   :  { %v10237_v49 = vmax.f32 %v12383_v58, 0.0  ;;  %9967 = vmatmul.mubr.bf16.gmra.mrb[176].mxu0 %v5638_v13  ;;  %v15613_v58 = vld [vmem:[#allocation3 + $0x1dd0] ss:$40 sps:$4 sm:$0xff]  }
 0x644   :  { %v10238_v53 = vmax.f32 %v12385_v37, 0.0  ;;  %9976 = vmatprep.mubr.bf16.mxu0 %v5649_v59  ;;  %v15612_v59 = vld [vmem:[#allocation3 + $0x1d80] ss:$40 sps:$4 sm:$0xff]  }
 0x645   :  { %v10457_v47 = vpack.c.bf16 %v10237_v49, %v10235_v30  ;;  %v15614_v30 = vld [vmem:[#allocation3 + $0x1e24] ss:$40 sps:$4 sm:$0xff]   ;;  %v15616_v49 = vld [vmem:[#allocation3 + $0x1e74] ss:$40 sps:$4 sm:$0xff]   ;;  %v5668_v9 = vpack.c.bf16 %v15613_v58, %v15612_v59 }
 0x646   :  { %v10458_v27 = vpack.c.bf16 %v10238_v53, %v10236_v63  ;;  %v9708_v12 = vpop.f32.mrb[72].mxu0  ;;  %v12402_v63 = vadd.f32 %v17671_v6, %v16589_v20  ;;  %v17679_v58 = vld [vmem:[#allocation60_spill] sm:$0xff] }
 0x647   :  { %v12387_v10 = vadd.f32 %v12386_v22, %v9708_v12  ;;  %v9710_v21 = vpop.f32.mrb[73].mxu0 }
 0x648   :  { %v12389_v45 = vadd.f32 %v12388_v36, %v9710_v21  ;;  %v9712_v50 = vpop.f32.mrb[74].mxu0  ;;  %10854 = vmatprep.mubr.bf16.mxu1 %v10458_v27  ;;  %v17673_v27 = vld [vmem:[#allocation54_spill] sm:$0xff]  ;;  %v17674_v21 = vld [vmem:[#allocation55_spill] sm:$0xff] }
 0x649   :  { %v12391_v15 = vadd.f32 %v12390_v28, %v9712_v50  ;;  %v9714_v31 = vpop.f32.mrb[75].mxu0  ;;  %10855 = vmatmul.mubr.bf16.gmra.mrb[68].mxu1 %v10457_v47  ;;  %v10239_v35 = vmax.f32 %v12387_v10, 0.0  ;;  %v12404_v47 = vadd.f32 %v17672_v32, %v16591_v16  ;;  %v12406_v12 = vadd.f32 %v17673_v27, %v16589_v20 }
 0x64a   :  { %v12393_v60 = vadd.f32 %v12392_v55, %v9714_v31  ;;  %v10240_v61 = vmax.f32 %v12389_v45, 0.0  ;;  %v12408_v8 = vadd.f32 %v17674_v21, %v16591_v16  ;;  %v5679_v28 = vpack.c.bf16 %v15616_v49, %v15614_v30  ;;  %v17680_v49 = vld [vmem:[#allocation61_spill] sm:$0xff] }
 0x64b   :  { %v10241_v2 = vmax.f32 %v12391_v15, 0.0  ;;  %9977 = vmatmul.mubr.bf16.gmra.mrb[180].mxu0 %v5648_v11  ;;  %v15619_v15 = vld [vmem:[#allocation3 + $0x1e70] ss:$40 sps:$4 sm:$0xff]  }
 0x64c   :  { %v10242_v41 = vmax.f32 %v12393_v60, 0.0  ;;  %9986 = vmatprep.mubr.bf16.mxu0 %v5659_v46  ;;  %v15618_v46 = vld [vmem:[#allocation3 + $0x1e20] ss:$40 sps:$4 sm:$0xff]  }
 0x64d   :  { %v10459_v54 = vpack.c.bf16 %v10241_v2, %v10239_v35  ;;  %v15620_v35 = vld [vmem:[#allocation3 + $0x1ec4] ss:$40 sps:$4 sm:$0xff]   ;;  %v15622_v2 = vld [vmem:[#allocation3 + $0x1f14] ss:$40 sps:$4 sm:$0xff]   ;;  %v5678_v42 = vpack.c.bf16 %v15619_v15, %v15618_v46 }
 0x64e   :  { %v10460_v1 = vpack.c.bf16 %v10242_v41, %v10240_v61  ;;  %v9718_v14 = vpop.f32.mrb[76].mxu0  ;;  %v12410_v61 = vadd.f32 %v17675_v3, %v16589_v20  ;;  %v17683_v15 = vld [vmem:[#allocation64_spill] sm:$0xff] }
 0x64f   :  { %v12395_v38 = vadd.f32 %v12394_v39, %v9718_v14  ;;  %v9720_v0 = vpop.f32.mrb[77].mxu0 }
 0x650   :  { %v12397_v48 = vadd.f32 %v12396_v43, %v9720_v0  ;;  %v9722_v4 = vpop.f32.mrb[78].mxu0  ;;  %10862 = vmatprep.mubr.bf16.mxu1 %v10460_v1  ;;  %v17677_v1 = vld [vmem:[#allocation58_spill] sm:$0xff]  ;;  %v17678_v0 = vld [vmem:[#allocation59_spill] sm:$0xff] }
 0x651   :  { %v12399_v13 = vadd.f32 %v12398_v33, %v9722_v4  ;;  %v9724_v5 = vpop.f32.mrb[79].mxu0  ;;  %10863 = vmatmul.mubr.bf16.gmra.mrb[72].mxu1 %v10459_v54  ;;  %v10243_v62 = vmax.f32 %v12395_v38, 0.0  ;;  %v12412_v54 = vadd.f32 %v17676_v44, %v16591_v16  ;;  %v12414_v14 = vadd.f32 %v17677_v1, %v16589_v20 }
 0x652   :  { %v12401_v25 = vadd.f32 %v12400_v23, %v9724_v5  ;;  %v10244_v40 = vmax.f32 %v12397_v48, 0.0  ;;  %v12416_v57 = vadd.f32 %v17678_v0, %v16591_v16  ;;  %v5689_v33 = vpack.c.bf16 %v15622_v2, %v15620_v35  ;;  %v17684_v2 = vld [vmem:[#allocation65_spill] sm:$0xff] }
 0x653   :  { %v10245_v17 = vmax.f32 %v12399_v13, 0.0  ;;  %9987 = vmatmul.mubr.bf16.gmra.mrb[184].mxu0 %v5658_v52  ;;  %v15625_v13 = vld [vmem:[#allocation3 + $0x1f10] ss:$40 sps:$4 sm:$0xff]  }
 0x654   :  { %v10246_v37 = vmax.f32 %v12401_v25, 0.0  ;;  %9996 = vmatprep.mubr.bf16.mxu0 %v5669_v56  ;;  %v15624_v56 = vld [vmem:[#allocation3 + $0x1ec0] ss:$40 sps:$4 sm:$0xff]  }
 0x655   :  { %v10461_v24 = vpack.c.bf16 %v10245_v17, %v10243_v62  ;;  %v15626_v62 = vld [vmem:[#allocation3 + $0x1f64] ss:$40 sps:$4 sm:$0xff]   ;;  %v15628_v17 = vld [vmem:[#allocation3 + $0x1fb4] ss:$40 sps:$4 sm:$0xff]   ;;  %v5688_v32 = vpack.c.bf16 %v15625_v13, %v15624_v56 }
 0x656   :  { %v10462_v53 = vpack.c.bf16 %v10246_v37, %v10244_v40  ;;  %v9728_v19 = vpop.f32.mrb[80].mxu0  ;;  %v12418_v40 = vadd.f32 %v17679_v58, %v16589_v20  ;;  %v17687_v13 = vld [vmem:[#allocation68_spill] sm:$0xff] }
 0x657   :  { %v12403_v18 = vadd.f32 %v12402_v63, %v9728_v19  ;;  %v9730_v22 = vpop.f32.mrb[81].mxu0 }
 0x658   :  { %v12405_v36 = vadd.f32 %v12404_v47, %v9730_v22  ;;  %v9732_v10 = vpop.f32.mrb[82].mxu0  ;;  %10870 = vmatprep.mubr.bf16.mxu1 %v10462_v53  ;;  %v17681_v53 = vld [vmem:[#allocation62_spill] sm:$0xff]  ;;  %v17682_v22 = vld [vmem:[#allocation63_spill] sm:$0xff] }
 0x659   :  { %v12407_v11 = vadd.f32 %v12406_v12, %v9732_v10  ;;  %v9734_v45 = vpop.f32.mrb[83].mxu0  ;;  %10871 = vmatmul.mubr.bf16.gmra.mrb[76].mxu1 %v10461_v24  ;;  %v10247_v29 = vmax.f32 %v12403_v18, 0.0  ;;  %v12420_v24 = vadd.f32 %v17680_v49, %v16591_v16  ;;  %v12422_v19 = vadd.f32 %v17681_v53, %v16589_v20 }
 0x65a   :  { %v12409_v50 = vadd.f32 %v12408_v8, %v9734_v45  ;;  %v10248_v31 = vmax.f32 %v12405_v36, 0.0  ;;  %v12424_v27 = vadd.f32 %v17682_v22, %v16591_v16  ;;  %v5699_v12 = vpack.c.bf16 %v15628_v17, %v15626_v62  ;;  %v17688_v17 = vld [vmem:[#allocation69_spill] sm:$0xff] }
 0x65b   :  { %v10249_v55 = vmax.f32 %v12407_v11, 0.0  ;;  %9997 = vmatmul.mubr.bf16.gmra.mrb[188].mxu0 %v5668_v9  ;;  %v15631_v11 = vld [vmem:[#allocation3 + $0x1fb0] ss:$40 sps:$4 sm:$0xff]  }
 0x65c   :  { %v10250_v60 = vmax.f32 %v12409_v50, 0.0  ;;  %10006 = vmatprep.mubr.bf16.mxu0 %v5679_v28  ;;  %v15630_v28 = vld [vmem:[#allocation3 + $0x1f60] ss:$40 sps:$4 sm:$0xff]  }
 0x65d   :  { %v10463_v26 = vpack.c.bf16 %v10249_v55, %v10247_v29  ;;  %v15632_v29 = vld [vmem:[#allocation3 + $0x2004] ss:$40 sps:$4 sm:$0xff]   ;;  %v15634_v55 = vld [vmem:[#allocation3 + $0x2054] ss:$40 sps:$4 sm:$0xff]   ;;  %v5698_v44 = vpack.c.bf16 %v15631_v11, %v15630_v28 }
 0x65e   :  { %v10464_v41 = vpack.c.bf16 %v10250_v60, %v10248_v31  ;;  %v9738_v34 = vpop.f32.mrb[84].mxu0  ;;  %v12426_v31 = vadd.f32 %v17683_v15, %v16589_v20  ;;  %v17691_v11 = vld [vmem:[#allocation72_spill] sm:$0xff] }
 0x65f   :  { %v12411_v51 = vadd.f32 %v12410_v61, %v9738_v34  ;;  %v9740_v39 = vpop.f32.mrb[85].mxu0 }
 0x660   :  { %v12413_v43 = vadd.f32 %v12412_v54, %v9740_v39  ;;  %v9742_v38 = vpop.f32.mrb[86].mxu0  ;;  %10878 = vmatprep.mubr.bf16.mxu1 %v10464_v41  ;;  %v17685_v41 = vld [vmem:[#allocation66_spill] sm:$0xff]  ;;  %v17686_v39 = vld [vmem:[#allocation67_spill] sm:$0xff] }
 0x661   :  { %v12415_v52 = vadd.f32 %v12414_v14, %v9742_v38  ;;  %v9744_v48 = vpop.f32.mrb[87].mxu0  ;;  %10879 = vmatmul.mubr.bf16.gmra.mrb[80].mxu1 %v10463_v26  ;;  %v10251_v7 = vmax.f32 %v12411_v51, 0.0  ;;  %v12428_v26 = vadd.f32 %v17684_v2, %v16591_v16  ;;  %v12430_v34 = vadd.f32 %v17685_v41, %v16589_v20 }
 0x662   :  { %v12417_v4 = vadd.f32 %v12416_v57, %v9744_v48  ;;  %v10252_v5 = vmax.f32 %v12413_v43, 0.0  ;;  %v12432_v1 = vadd.f32 %v17686_v39, %v16591_v16  ;;  %v5709_v14 = vpack.c.bf16 %v15634_v55, %v15632_v29  ;;  %v17692_v55 = vld [vmem:[#allocation73_spill] sm:$0xff] }
 0x663   :  { %v10253_v23 = vmax.f32 %v12415_v52, 0.0  ;;  %10007 = vmatmul.mubr.bf16.gmra.mrb[192].mxu0 %v5678_v42  ;;  %v15637_v52 = vld [vmem:[#allocation3 + $0x2050] ss:$40 sps:$4 sm:$0xff]  }
 0x664   :  { %v10254_v25 = vmax.f32 %v12417_v4, 0.0  ;;  %10016 = vmatprep.mubr.bf16.mxu0 %v5689_v33  ;;  %v15636_v33 = vld [vmem:[#allocation3 + $0x2000] ss:$40 sps:$4 sm:$0xff]  }
 0x665   :  { %v10465_v59 = vpack.c.bf16 %v10253_v23, %v10251_v7  ;;  %v15638_v7 = vld [vmem:[#allocation3 + $0x20a4] ss:$40 sps:$4 sm:$0xff]   ;;  %v15640_v23 = vld [vmem:[#allocation3 + $0x20f4] ss:$40 sps:$4 sm:$0xff]   ;;  %v5708_v49 = vpack.c.bf16 %v15637_v52, %v15636_v33 }
 0x666   :  { %v10466_v37 = vpack.c.bf16 %v10254_v25, %v10252_v5  ;;  %v9748_v30 = vpop.f32.mrb[88].mxu0  ;;  %v12434_v5 = vadd.f32 %v17687_v13, %v16589_v20  ;;  %v17695_v52 = vld [vmem:[#allocation76_spill] sm:$0xff] }
 0x667   :  { %v12419_v6 = vadd.f32 %v12418_v40, %v9748_v30  ;;  %v9750_v63 = vpop.f32.mrb[89].mxu0 }
 0x668   :  { %v12421_v47 = vadd.f32 %v12420_v24, %v9750_v63  ;;  %v9752_v18 = vpop.f32.mrb[90].mxu0  ;;  %10886 = vmatprep.mubr.bf16.mxu1 %v10466_v37  ;;  %v17689_v37 = vld [vmem:[#allocation70_spill] sm:$0xff]  ;;  %v17690_v63 = vld [vmem:[#allocation71_spill] sm:$0xff] }
 0x669   :  { %v12423_v9 = vadd.f32 %v12422_v19, %v9752_v18  ;;  %v9754_v36 = vpop.f32.mrb[91].mxu0  ;;  %10887 = vmatmul.mubr.bf16.gmra.mrb[84].mxu1 %v10465_v59  ;;  %v10255_v21 = vmax.f32 %v12419_v6, 0.0  ;;  %v12436_v59 = vadd.f32 %v17688_v17, %v16591_v16  ;;  %v12438_v30 = vadd.f32 %v17689_v37, %v16589_v20 }
 0x66a   :  { %v12425_v10 = vadd.f32 %v12424_v27, %v9754_v36  ;;  %v10256_v45 = vmax.f32 %v12421_v47, 0.0  ;;  %v12440_v53 = vadd.f32 %v17690_v63, %v16591_v16  ;;  %v5719_v19 = vpack.c.bf16 %v15640_v23, %v15638_v7  ;;  %v17696_v23 = vld [vmem:[#allocation77_spill] sm:$0xff] }
 0x66b   :  { %v10257_v8 = vmax.f32 %v12423_v9, 0.0  ;;  %10017 = vmatmul.mubr.bf16.gmra.mrb[196].mxu0 %v5688_v32  ;;  %v15643_v9 = vld [vmem:[#allocation3 + $0x20f0] ss:$40 sps:$4 sm:$0xff]  }
 0x66c   :  { %v10258_v50 = vmax.f32 %v12425_v10, 0.0  ;;  %10026 = vmatprep.mubr.bf16.mxu0 %v5699_v12  ;;  %v15642_v12 = vld [vmem:[#allocation3 + $0x20a0] ss:$40 sps:$4 sm:$0xff]  }
 0x66d   :  { %v10467_v46 = vpack.c.bf16 %v10257_v8, %v10255_v21  ;;  %v15644_v21 = vld [vmem:[#allocation3 + $0x2144] ss:$40 sps:$4 sm:$0xff]   ;;  %v15646_v8 = vld [vmem:[#allocation3 + $0x2194] ss:$40 sps:$4 sm:$0xff]   ;;  %v5718_v2 = vpack.c.bf16 %v15643_v9, %v15642_v12 }
 0x66e   :  { %v10468_v60 = vpack.c.bf16 %v10258_v50, %v10256_v45  ;;  %v9758_v35 = vpop.f32.mrb[92].mxu0  ;;  %v12442_v45 = vadd.f32 %v17691_v11, %v16589_v20  ;;  %v17699_v9 = vld [vmem:[#allocation80_spill] sm:$0xff] }
 0x66f   :  { %v12427_v3 = vadd.f32 %v12426_v31, %v9758_v35  ;;  %v9760_v61 = vpop.f32.mrb[93].mxu0 }
 0x670   :  { %v12429_v54 = vadd.f32 %v12428_v26, %v9760_v61  ;;  %v9762_v51 = vpop.f32.mrb[94].mxu0  ;;  %10894 = vmatprep.mubr.bf16.mxu1 %v10468_v60  ;;  %v17693_v60 = vld [vmem:[#allocation74_spill] sm:$0xff]  ;;  %v17694_v61 = vld [vmem:[#allocation75_spill] sm:$0xff] }
 0x671   :  { %v12431_v42 = vadd.f32 %v12430_v34, %v9762_v51  ;;  %v9764_v43 = vpop.f32.mrb[95].mxu0  ;;  %10895 = vmatmul.mubr.bf16.gmra.mrb[88].mxu1 %v10467_v46  ;;  %v10259_v0 = vmax.f32 %v12427_v3, 0.0  ;;  %v12444_v46 = vadd.f32 %v17692_v55, %v16591_v16  ;;  %v12446_v35 = vadd.f32 %v17693_v60, %v16589_v20 }
 0x672   :  { %v12433_v38 = vadd.f32 %v12432_v1, %v9764_v43  ;;  %v10260_v48 = vmax.f32 %v12429_v54, 0.0  ;;  %v12448_v41 = vadd.f32 %v17694_v61, %v16591_v16  ;;  %v5729_v34 = vpack.c.bf16 %v15646_v8, %v15644_v21  ;;  %v17700_v8 = vld [vmem:[#allocation81_spill] sm:$0xff]  ;;  %v16820_v61 = vld [vmem:[%s17408_s4] ss:$0 sm:$0xff] }
 0x673   :  { %v10261_v57 = vmax.f32 %v12431_v42, 0.0  ;;  %10027 = vmatmul.mubr.bf16.gmra.mrb[200].mxu0 %v5698_v44  ;;  %v15649_v42 = vld [vmem:[#allocation3 + $0x2190] ss:$40 sps:$4 sm:$0xff]  }
 0x674   :  { %v10262_v4 = vmax.f32 %v12433_v38, 0.0  ;;  %10036 = vmatprep.mubr.bf16.mxu0 %v5709_v14  ;;  %v15648_v14 = vld [vmem:[#allocation3 + $0x2140] ss:$40 sps:$4 sm:$0xff]  }
 0x675   :  { %v10469_v56 = vpack.c.bf16 %v10261_v57, %v10259_v0  ;;  %v15650_v0 = vld [vmem:[#allocation3 + $0x21e4] ss:$40 sps:$4 sm:$0xff]   ;;  %v15652_v57 = vld [vmem:[#allocation3 + $0x2234] ss:$40 sps:$4 sm:$0xff]   ;;  %v5728_v17 = vpack.c.bf16 %v15649_v42, %v15648_v14 }
 0x676   :  { %v10470_v25 = vpack.c.bf16 %v10262_v4, %v10260_v48  ;;  %v9768_v62 = vpop.f32.mrb[96].mxu0  ;;  %v12450_v48 = vadd.f32 %v17695_v52, %v16589_v20  ;;  %v15664_v42 = vld [vmem:[#allocation3 + $0x2374] ss:$40 sps:$4 sm:$0xff]  }
 0x677   :  { %v12435_v58 = vadd.f32 %v12434_v5, %v9768_v62  ;;  %v9770_v40 = vpop.f32.mrb[97].mxu0 }
 0x678   :  { %v12437_v24 = vadd.f32 %v12436_v59, %v9770_v40  ;;  %v9772_v6 = vpop.f32.mrb[98].mxu0  ;;  %10902 = vmatprep.mubr.bf16.mxu1 %v10470_v25  ;;  %v17697_v25 = vld [vmem:[#allocation78_spill] sm:$0xff]  ;;  %v17698_v40 = vld [vmem:[#allocation79_spill] sm:$0xff] }
 0x679   :  { %v12439_v32 = vadd.f32 %v12438_v30, %v9772_v6  ;;  %v9774_v47 = vpop.f32.mrb[99].mxu0  ;;  %10903 = vmatmul.mubr.bf16.gmra.mrb[92].mxu1 %v10469_v56  ;;  %v10263_v22 = vmax.f32 %v12435_v58, 0.0  ;;  %v12452_v56 = vadd.f32 %v17696_v23, %v16591_v16  ;;  %v12454_v62 = vadd.f32 %v17697_v25, %v16589_v20 }
 0x67a   :  { %v12441_v18 = vadd.f32 %v12440_v53, %v9774_v47  ;;  %v10264_v36 = vmax.f32 %v12437_v24, 0.0  ;;  %v12456_v37 = vadd.f32 %v17698_v40, %v16591_v16  ;;  %v5739_v30 = vpack.c.bf16 %v15652_v57, %v15650_v0  ;;  %v17703_v57 = vld [vmem:[#allocation84_spill] sm:$0xff] }
 0x67b   :  { %v10265_v27 = vmax.f32 %v12439_v32, 0.0  ;;  %10037 = vmatmul.mubr.bf16.gmra.mrb[204].mxu0 %v5708_v49  ;;  %v15655_v32 = vld [vmem:[#allocation3 + $0x2230] ss:$40 sps:$4 sm:$0xff]  }
 0x67c   :  { %v10266_v10 = vmax.f32 %v12441_v18, 0.0  ;;  %10046 = vmatprep.mubr.bf16.mxu0 %v5719_v19  ;;  %v15654_v19 = vld [vmem:[#allocation3 + $0x21e0] ss:$40 sps:$4 sm:$0xff]  }
 0x67d   :  { %v10471_v28 = vpack.c.bf16 %v10265_v27, %v10263_v22  ;;  %v15656_v22 = vld [vmem:[#allocation3 + $0x2284] ss:$40 sps:$4 sm:$0xff]   ;;  %v15658_v27 = vld [vmem:[#allocation3 + $0x22d4] ss:$40 sps:$4 sm:$0xff]   ;;  %v5738_v55 = vpack.c.bf16 %v15655_v32, %v15654_v19  ;;  %v15666_v32 = vld [vmem:[#allocation3 + $0x2320] ss:$40 sps:$4 sm:$0xff]  }
 0x67e   :  { %v10472_v50 = vpack.c.bf16 %v10266_v10, %v10264_v36  ;;  %v9778_v29 = vpop.f32.mrb[100].mxu0  ;;  %v12458_v36 = vadd.f32 %v17699_v9, %v16589_v20 }
 0x67f   :  { %v12443_v15 = vadd.f32 %v12442_v45, %v9778_v29  ;;  %v9780_v31 = vpop.f32.mrb[101].mxu0 }
 0x680   :  { %v12445_v26 = vadd.f32 %v12444_v46, %v9780_v31  ;;  %v9782_v3 = vpop.f32.mrb[102].mxu0  ;;  %10910 = vmatprep.mubr.bf16.mxu1 %v10472_v50  ;;  %v17701_v50 = vld [vmem:[#allocation82_spill] sm:$0xff]  ;;  %v17702_v31 = vld [vmem:[#allocation83_spill] sm:$0xff] }
 0x681   :  { %v12447_v44 = vadd.f32 %v12446_v35, %v9782_v3  ;;  %v9784_v54 = vpop.f32.mrb[103].mxu0  ;;  %10911 = vmatmul.mubr.bf16.gmra.mrb[96].mxu1 %v10471_v28  ;;  %v10267_v39 = vmax.f32 %v12443_v15, 0.0  ;;  %v12460_v28 = vadd.f32 %v17700_v8, %v16591_v16  ;;  %v12462_v29 = vadd.f32 %v17701_v50, %v16589_v20 }
 0x682   :  { %v12449_v51 = vadd.f32 %v12448_v41, %v9784_v54  ;;  %v10268_v43 = vmax.f32 %v12445_v26, 0.0  ;;  %v12464_v60 = vadd.f32 %v17702_v31, %v16591_v16  ;;  %v5749_v35 = vpack.c.bf16 %v15658_v27, %v15656_v22  ;;  %v15660_v41 = vld [vmem:[#allocation3 + $0x2280] ss:$40 sps:$4 sm:$0xff]   ;;  %v15661_v54 = vld [vmem:[#allocation3 + $0x22d0] ss:$40 sps:$4 sm:$0xff]  }
 0x683   :  { %v10269_v1 = vmax.f32 %v12447_v44, 0.0  ;;  %10047 = vmatmul.mubr.bf16.gmra.mrb[208].mxu0 %v5718_v2  ;;  %v15667_v27 = vld [vmem:[#allocation3 + $0x2370] ss:$40 sps:$4 sm:$0xff]  }
 0x684   :  { %v10270_v38 = vmax.f32 %v12449_v51, 0.0  ;;  %10056 = vmatprep.mubr.bf16.mxu0 %v5729_v34  ;;  %v15662_v51 = vld [vmem:[#allocation3 + $0x2324] ss:$40 sps:$4 sm:$0xff]  }
 0x685   :  { %v10473_v33 = vpack.c.bf16 %v10269_v1, %v10267_v39 }
 0x686   :  { %v10474_v4 = vpack.c.bf16 %v10270_v38, %v10268_v43  ;;  %v9788_v7 = vpop.f32.mrb[104].mxu0 }
 0x687   :  { %v12451_v13 = vadd.f32 %v12450_v48, %v9788_v7  ;;  %v9790_v5 = vpop.f32.mrb[105].mxu0  ;;  %v17704_v7 = vld [vmem:[#allocation85_spill] sm:$0xff] }
 0x688   :  { %v12453_v59 = vadd.f32 %v12452_v56, %v9790_v5  ;;  %v9792_v58 = vpop.f32.mrb[106].mxu0  ;;  %10918 = vmatprep.mubr.bf16.mxu1 %v10474_v4  ;;  %v12468_v23 = vadd.f32 %v17704_v7, %v16591_v16  ;;  %v15674_v7 = vld [vmem:[#allocation3 + $0x2464] ss:$40 sps:$4 sm:$0xff]  }
 0x689   :  { %v12455_v49 = vadd.f32 %v12454_v62, %v9792_v58  ;;  %v9794_v24 = vpop.f32.mrb[107].mxu0  ;;  %10919 = vmatmul.mubr.bf16.gmra.mrb[100].mxu1 %v10473_v33  ;;  %v10271_v63 = vmax.f32 %v12451_v13, 0.0  ;;  %v12466_v33 = vadd.f32 %v17703_v57, %v16589_v20  ;;  %v17705_v62 = vld [vmem:[#allocation86_spill] sm:$0xff]  ;;  %v15672_v57 = vld [vmem:[#allocation3 + $0x23c0] ss:$40 sps:$4 sm:$0xff]  }
 0x68a   :  { %v12457_v6 = vadd.f32 %v12456_v37, %v9794_v24  ;;  %v10272_v47 = vmax.f32 %v12453_v59, 0.0  ;;  %v5748_v59 = vpack.c.bf16 %v15661_v54, %v15660_v41  ;;  %v17706_v37 = vld [vmem:[#allocation87_spill] sm:$0xff] }
 0x68b   :  { %v10273_v53 = vmax.f32 %v12455_v49, 0.0  ;;  %10057 = vmatmul.mubr.bf16.gmra.mrb[212].mxu0 %v5728_v17  ;;  %v12470_v17 = vadd.f32 %v17705_v62, %v16589_v20  ;;  %v5759_v49 = vpack.c.bf16 %v15664_v42, %v15662_v51  ;;  %v17710_v51 = vld [vmem:[#allocation91_spill] sm:$0xff] }
 0x68c   :  { %v10274_v18 = vmax.f32 %v12457_v6, 0.0  ;;  %10066 = vmatprep.mubr.bf16.mxu0 %v5739_v30  ;;  %v12472_v30 = vadd.f32 %v17706_v37, %v16591_v16 }
 0x68d   :  { %v10475_v12 = vpack.c.bf16 %v10273_v53, %v10271_v63 }
 0x68e   :  { %v10476_v10 = vpack.c.bf16 %v10274_v18, %v10272_v47  ;;  %v9798_v21 = vpop.f32.mrb[108].mxu0 }
 0x68f   :  { %v12459_v11 = vadd.f32 %v12458_v36, %v9798_v21  ;;  %v9800_v45 = vpop.f32.mrb[109].mxu0  ;;  %v15670_v21 = vld [vmem:[#allocation3 + $0x2414] ss:$40 sps:$4 sm:$0xff]  }
 0x690   :  { %v12461_v46 = vadd.f32 %v12460_v28, %v9800_v45  ;;  %v9802_v15 = vpop.f32.mrb[110].mxu0  ;;  %10926 = vmatprep.mubr.bf16.mxu1 %v10476_v10  ;;  %v17707_v45 = vld [vmem:[#allocation88_spill] sm:$0xff] }
 0x691   :  { %v12463_v2 = vadd.f32 %v12462_v29, %v9802_v15  ;;  %v9804_v26 = vpop.f32.mrb[111].mxu0  ;;  %10927 = vmatmul.mubr.bf16.gmra.mrb[104].mxu1 %v10475_v12  ;;  %v10275_v34 = vmax.f32 %v12459_v11, 0.0  ;;  %v15668_v12 = vld [vmem:[#allocation3 + $0x23c4] ss:$40 sps:$4 sm:$0xff]   ;;  %v12474_v50 = vadd.f32 %v17707_v45, %v16589_v20 }
 0x692   :  { %v12465_v3 = vadd.f32 %v12464_v60, %v9804_v26  ;;  %v10276_v39 = vmax.f32 %v12461_v46, 0.0  ;;  %v17708_v15 = vld [vmem:[#allocation89_spill] sm:$0xff] }
 0x693   :  { %v10277_v44 = vmax.f32 %v12463_v2, 0.0  ;;  %10067 = vmatmul.mubr.bf16.gmra.mrb[216].mxu0 %v5738_v55  ;;  %v12476_v31 = vadd.f32 %v17708_v15, %v16591_v16  ;;  %v15679_v15 = vld [vmem:[#allocation3 + $0x24b0] ss:$40 sps:$4 sm:$0xff]  }
 0x694   :  { %v10278_v1 = vmax.f32 %v12465_v3, 0.0  ;;  %v10720_v14 = vpop.f32.mrb[0].mxu1  ;;  %10076 = vmatprep.mubr.bf16.mxu0 %v5749_v35  ;;  %v17709_v3 = vld [vmem:[#allocation90_spill] sm:$0xff] }
 0x695   :  { %v10477_v43 = vpack.c.bf16 %v10277_v44, %v10275_v34  ;;  %v10721_v38 = vadd.f32 %v16820_v61, %v10720_v14  ;;  %v10722_v0 = vpop.f32.mrb[1].mxu1  ;;  %v12478_v41 = vadd.f32 %v17709_v3, %v16589_v20  ;;  %v5758_v34 = vpack.c.bf16 %v15667_v27, %v15666_v32  ;;  %v17713_v32 = vld [vmem:[#allocation94_spill] sm:$0xff] }
 0x696   :  { %v10478_v52 = vpack.c.bf16 %v10278_v1, %v10276_v39  ;;  %v9808_v48 = vpop.f32.mrb[112].mxu0  ;;  %v10723_v4 = vpop.f32.mrb[2].mxu1  ;;  %v12480_v39 = vadd.f32 %v17710_v51, %v16591_v16  ;;  %v5769_v1 = vpack.c.bf16 %v15670_v21, %v15668_v12 }
 0x697   :  { %v12467_v56 = vadd.f32 %v12466_v33, %v9808_v48  ;;  %v10724_v13 = vadd.f32 %v16820_v61, %v10723_v4  ;;  %v9810_v5 = vpop.f32.mrb[113].mxu0  ;;  %v10725_v25 = vpop.f32.mrb[3].mxu1  ;;  %v11231_v24 = vmax.f32 %v10721_v38, 0.0  ;;  %v15673_v4 = vld [vmem:[#allocation3 + $0x2410] ss:$40 sps:$4 sm:$0xff]  }
 0x698   :  { %v12469_v58 = vadd.f32 %v12468_v23, %v9810_v5  ;;  %v9812_v40 = vpop.f32.mrb[114].mxu0  ;;  %10934 = vmatprep.mubr.bf16.mxu1 %v10478_v52  ;;  %v15676_v5 = vld [vmem:[#allocation3 + $0x24b4] ss:$40 sps:$4 sm:$0xff]  }
 0x699   :  { %v11232_v6 = vmax.f32 %v10724_v13, 0.0  ;;  %v12471_v63 = vadd.f32 %v12470_v17, %v9812_v40  ;;  %v9814_v53 = vpop.f32.mrb[115].mxu0  ;;  %10935 = vmatmul.mubr.bf16.gmra.mrb[108].mxu1 %v10477_v43  ;;  %v10279_v47 = vmax.f32 %v12467_v56, 0.0 }
 0x69a   :  { %v12473_v19 = vadd.f32 %v12472_v30, %v9814_v53  ;;  %v10280_v9 = vmax.f32 %v12469_v58, 0.0 }
 0x69b   :  { %v16832_v18 = vpack.c.bf16 %v11232_v6, %v11231_v24  ;;  %v10281_v22 = vmax.f32 %v12471_v63, 0.0  ;;  %10077 = vmatmul.mubr.bf16.gmra.mrb[220].mxu0 %v5748_v59  ;;  %v17711_v59 = vld [vmem:[#allocation92_spill] sm:$0xff] }
 0x69c   :  { %v10282_v36 = vmax.f32 %v12473_v19, 0.0  ;;  %v10728_v10 = vpop.f32.mrb[4].mxu1  ;;  %10086 = vmatprep.mubr.bf16.mxu0 %v5759_v49  ;;  %v12482_v58 = vadd.f32 %v17711_v59, %v16589_v20  ;;  %v17712_v49 = vld [vmem:[#allocation93_spill] sm:$0xff] }
 0x69d   :  { %v10479_v8 = vpack.c.bf16 %v10281_v22, %v10279_v47  ;;  %v10729_v28 = vadd.f32 %v16820_v61, %v10728_v10  ;;  %v10730_v11 = vpop.f32.mrb[5].mxu1  ;;  %v12484_v24 = vadd.f32 %v17712_v49, %v16591_v16  ;;  %v12486_v47 = vadd.f32 %v17713_v32, %v16589_v20  ;;  %v15688_v32 = vld [vmem:[#allocation3 + $0x25f4] ss:$40 sps:$4 sm:$0xff]  }
 0x69e   :  { %v10480_v29 = vpack.c.bf16 %v10282_v36, %v10280_v9  ;;  %v9818_v55 = vpop.f32.mrb[116].mxu0  ;;  %v10731_v46 = vpop.f32.mrb[6].mxu1  ;;  %v5768_v22 = vpack.c.bf16 %v15673_v4, %v15672_v57  ;;  %v17714_v9 = vld [vmem:[#allocation95_spill] sm:$0xff]  ;;  %v5779_v10 = vpack.c.bf16 %v15676_v5, %v15674_v7 }
 0x69f   :  { %v12475_v60 = vadd.f32 %v12474_v50, %v9818_v55  ;;  %v10732_v35 = vadd.f32 %v16820_v61, %v10731_v46  ;;  %v9820_v2 = vpop.f32.mrb[117].mxu0  ;;  %v10733_v26 = vpop.f32.mrb[7].mxu1  ;;  %v11233_v14 = vmax.f32 %v10729_v28, 0.0  ;;  %v12488_v36 = vadd.f32 %v17714_v9, %v16591_v16  ;;  %v15678_v50 = vld [vmem:[#allocation3 + $0x2460] ss:$40 sps:$4 sm:$0xff]  }
 0x6a0   :  { %v12477_v44 = vadd.f32 %v12476_v31, %v9820_v2  ;;  %v9822_v54 = vpop.f32.mrb[118].mxu0  ;;  %10942 = vmatprep.mubr.bf16.mxu1 %v10480_v29  ;;  %v15680_v31 = vld [vmem:[#allocation3 + $0x2504] ss:$40 sps:$4 sm:$0xff]   ;;  %v15682_v26 = vld [vmem:[#allocation3 + $0x2554] ss:$40 sps:$4 sm:$0xff]   ;;  %v5778_v4 = vpack.c.bf16 %v15679_v15, %v15678_v50 }
 0x6a1   :  { %v11234_v42 = vmax.f32 %v10732_v35, 0.0  ;;  %v12479_v43 = vadd.f32 %v12478_v41, %v9822_v54  ;;  %v9824_v38 = vpop.f32.mrb[119].mxu0  ;;  %10943 = vmatmul.mubr.bf16.gmra.mrb[112].mxu1 %v10479_v8  ;;  %v10283_v33 = vmax.f32 %v12475_v60, 0.0  ;;  %v5789_v5 = vpack.c.bf16 %v15682_v26, %v15680_v31 }
 0x6a2   :  { %v12481_v0 = vadd.f32 %v12480_v39, %v9824_v38  ;;  %v10284_v23 = vmax.f32 %v12477_v44, 0.0  ;;  %v17715_v44 = vld [vmem:[#allocation96_spill] sm:$0xff] }
 0x6a3   :  { %v16844_v52 = vpack.c.bf16 %v11234_v42, %v11233_v14  ;;  %v10285_v48 = vmax.f32 %v12479_v43, 0.0  ;;  %10087 = vmatmul.mubr.bf16.gmra.mrb[224].mxu0 %v5758_v34  ;;  %v12490_v54 = vadd.f32 %v17715_v44, %v16589_v20  ;;  %v17716_v14 = vld [vmem:[#allocation97_spill] sm:$0xff] }
 0x6a4   :  { %v10286_v56 = vmax.f32 %v12481_v0, 0.0  ;;  %v10736_v13 = vpop.f32.mrb[8].mxu1  ;;  %10096 = vmatprep.mubr.bf16.mxu0 %v5769_v1  ;;  %v12492_v42 = vadd.f32 %v17716_v14, %v16591_v16 }
 0x6a5   :  { %v10481_v25 = vpack.c.bf16 %v10285_v48, %v10283_v33  ;;  %v10737_v62 = vadd.f32 %v16820_v61, %v10736_v13  ;;  %v10738_v17 = vpop.f32.mrb[9].mxu1  ;;  %v17717_v33 = vld [vmem:[#allocation98_spill] sm:$0xff] }
 0x6a6   :  { %v10482_v40 = vpack.c.bf16 %v10286_v56, %v10284_v23  ;;  %v9828_v37 = vpop.f32.mrb[120].mxu0  ;;  %v10739_v30 = vpop.f32.mrb[10].mxu1  ;;  %v12494_v48 = vadd.f32 %v17717_v33, %v16589_v20  ;;  %v17718_v56 = vld [vmem:[#allocation99_spill] sm:$0xff] }
 0x6a7   :  { %v12483_v6 = vadd.f32 %v12482_v58, %v9828_v37  ;;  %v10740_v63 = vadd.f32 %v16820_v61, %v10739_v30  ;;  %v9830_v53 = vpop.f32.mrb[121].mxu0  ;;  %v10741_v19 = vpop.f32.mrb[11].mxu1  ;;  %v11235_v21 = vmax.f32 %v10737_v62, 0.0  ;;  %v12496_v13 = vadd.f32 %v17718_v56, %v16591_v16  ;;  %v17723_v56 = vld [vmem:[#allocation104_spill] sm:$0xff] }
 0x6a8   :  { %v12485_v27 = vadd.f32 %v12484_v24, %v9830_v53  ;;  %v9832_v12 = vpop.f32.mrb[122].mxu0  ;;  %10950 = vmatprep.mubr.bf16.mxu1 %v10482_v40  ;;  %v15684_v40 = vld [vmem:[#allocation3 + $0x2500] ss:$40 sps:$4 sm:$0xff]   ;;  %v15685_v24 = vld [vmem:[#allocation3 + $0x2550] ss:$40 sps:$4 sm:$0xff]  }
 0x6a9   :  { %v11236_v8 = vmax.f32 %v10740_v63, 0.0  ;;  %v12487_v28 = vadd.f32 %v12486_v47, %v9832_v12  ;;  %v9834_v11 = vpop.f32.mrb[123].mxu0  ;;  %10951 = vmatmul.mubr.bf16.gmra.mrb[116].mxu1 %v10481_v25  ;;  %v10287_v29 = vmax.f32 %v12483_v6, 0.0  ;;  %v15686_v6 = vld [vmem:[#allocation3 + $0x25a4] ss:$40 sps:$4 sm:$0xff]   ;;  %v5788_v31 = vpack.c.bf16 %v15685_v24, %v15684_v40  ;;  %v17725_v24 = vld [vmem:[#allocation106_spill] sm:$0xff] }
 0x6aa   :  { %v12489_v45 = vadd.f32 %v12488_v36, %v9834_v11  ;;  %v10288_v60 = vmax.f32 %v12485_v27, 0.0  ;;  %v17719_v12 = vld [vmem:[#allocation100_spill] sm:$0xff] }
 0x6ab   :  { %v16856_v55 = vpack.c.bf16 %v11236_v8, %v11235_v21  ;;  %v10289_v46 = vmax.f32 %v12487_v28, 0.0  ;;  %10097 = vmatmul.mubr.bf16.gmra.mrb[228].mxu0 %v5768_v22  ;;  %v12498_v9 = vadd.f32 %v17719_v12, %v16589_v20  ;;  %v17720_v8 = vld [vmem:[#allocation101_spill] sm:$0xff] }
 0x6ac   :  { %v10290_v35 = vmax.f32 %v12489_v45, 0.0  ;;  %v10744_v2 = vpop.f32.mrb[12].mxu1  ;;  %10106 = vmatprep.mubr.bf16.mxu0 %v5779_v10  ;;  %v12500_v28 = vadd.f32 %v17720_v8, %v16591_v16 }
 0x6ad   :  { %v10483_v3 = vpack.c.bf16 %v10289_v46, %v10287_v29  ;;  %v10745_v41 = vadd.f32 %v16820_v61, %v10744_v2  ;;  %v10746_v34 = vpop.f32.mrb[13].mxu1  ;;  %v17721_v46 = vld [vmem:[#allocation102_spill] sm:$0xff]  ;;  %v17722_v2 = vld [vmem:[#allocation103_spill] sm:$0xff] }
 0x6ae   :  { %v10484_v51 = vpack.c.bf16 %v10290_v35, %v10288_v60  ;;  %v9838_v39 = vpop.f32.mrb[124].mxu0  ;;  %v10747_v1 = vpop.f32.mrb[14].mxu1  ;;  %v12502_v15 = vadd.f32 %v17721_v46, %v16589_v20  ;;  %v12504_v26 = vadd.f32 %v17722_v2, %v16591_v16 }
 0x6af   :  { %v12491_v43 = vadd.f32 %v12490_v54, %v9838_v39  ;;  %v10748_v38 = vadd.f32 %v16820_v61, %v10747_v1  ;;  %v9840_v0 = vpop.f32.mrb[125].mxu0  ;;  %v10749_v57 = vpop.f32.mrb[15].mxu1  ;;  %v11237_v25 = vmax.f32 %v10745_v41, 0.0  ;;  %v15690_v39 = vld [vmem:[#allocation3 + $0x25a0] ss:$40 sps:$4 sm:$0xff]  }
 0x6b0   :  { %v12493_v7 = vadd.f32 %v12492_v42, %v9840_v0  ;;  %v9842_v23 = vpop.f32.mrb[126].mxu0  ;;  %10958 = vmatprep.mubr.bf16.mxu1 %v10484_v51 }
 0x6b1   :  { %v11238_v62 = vmax.f32 %v10748_v38, 0.0  ;;  %v12495_v17 = vadd.f32 %v12494_v48, %v9842_v23  ;;  %v9844_v59 = vpop.f32.mrb[127].mxu0  ;;  %10959 = vmatmul.mubr.bf16.gmra.mrb[120].mxu1 %v10483_v3  ;;  %v10291_v37 = vmax.f32 %v12491_v43, 0.0  ;;  %v5799_v3 = vpack.c.bf16 %v15688_v32, %v15686_v6  ;;  %v15691_v43 = vld [vmem:[#allocation3 + $0x25f0] ss:$40 sps:$4 sm:$0xff]  }
 0x6b2   :  { %v12497_v58 = vadd.f32 %v12496_v13, %v9844_v59  ;;  %v10292_v63 = vmax.f32 %v12493_v7, 0.0  ;;  %v15692_v38 = vld [vmem:[#allocation3 + $0x2644] ss:$40 sps:$4 sm:$0xff]   ;;  %v15694_v48 = vld [vmem:[#allocation3 + $0x2694] ss:$40 sps:$4 sm:$0xff]   ;;  %v12506_v13 = vadd.f32 %v17723_v56, %v16589_v20  ;;  %v12510_v6 = vadd.f32 %v17725_v24, %v16589_v20 }
 0x6b3   :  { %v16868_v30 = vpack.c.bf16 %v11238_v62, %v11237_v25  ;;  %v10293_v49 = vmax.f32 %v12495_v17, 0.0  ;;  %10107 = vmatmul.mubr.bf16.gmra.mrb[232].mxu0 %v5778_v4  ;;  %v17724_v17 = vld [vmem:[#allocation105_spill] sm:$0xff]  ;;  %v17726_v32 = vld [vmem:[#allocation107_spill] sm:$0xff] }
 0x6b4   :  { %v10294_v53 = vmax.f32 %v12497_v58, 0.0  ;;  %v10752_v19 = vpop.f32.mrb[16].mxu1  ;;  %10116 = vmatprep.mubr.bf16.mxu0 %v5789_v5  ;;  %v12508_v59 = vadd.f32 %v17724_v17, %v16591_v16  ;;  %v15702_v17 = vld [vmem:[#allocation3 + $0x26e0] ss:$40 sps:$4 sm:$0xff]  }
 0x6b5   :  { %v10485_v47 = vpack.c.bf16 %v10293_v49, %v10291_v37  ;;  %v10753_v22 = vadd.f32 %v16820_v61, %v10752_v19  ;;  %v10754_v27 = vpop.f32.mrb[17].mxu1 }
 0x6b6   :  { %v10486_v36 = vpack.c.bf16 %v10294_v53, %v10292_v63  ;;  %v9848_v10 = vpop.f32.mrb[128].mxu0  ;;  %v10755_v21 = vpop.f32.mrb[18].mxu1  ;;  %v5798_v63 = vpack.c.bf16 %v15691_v43, %v15690_v39 }
 0x6b7   :  { %v12499_v11 = vadd.f32 %v12498_v9, %v9848_v10  ;;  %v10756_v45 = vadd.f32 %v16820_v61, %v10755_v21  ;;  %v9850_v50 = vpop.f32.mrb[129].mxu0  ;;  %v10757_v29 = vpop.f32.mrb[19].mxu1  ;;  %v11239_v41 = vmax.f32 %v10753_v22, 0.0  ;;  %v5809_v22 = vpack.c.bf16 %v15694_v48, %v15692_v38  ;;  %v15696_v21 = vld [vmem:[#allocation3 + $0x2640] ss:$40 sps:$4 sm:$0xff]   ;;  %v17729_v38 = vld [vmem:[#allocation110_spill] sm:$0xff] }
 0x6b8   :  { %v12501_v60 = vadd.f32 %v12500_v28, %v9850_v50  ;;  %v9852_v35 = vpop.f32.mrb[130].mxu0  ;;  %10966 = vmatprep.mubr.bf16.mxu1 %v10486_v36  ;;  %v15698_v50 = vld [vmem:[#allocation3 + $0x26e4] ss:$40 sps:$4 sm:$0xff]  }
 0x6b9   :  { %v11240_v34 = vmax.f32 %v10756_v45, 0.0  ;;  %v12503_v44 = vadd.f32 %v12502_v15, %v9852_v35  ;;  %v9854_v54 = vpop.f32.mrb[131].mxu0  ;;  %10967 = vmatmul.mubr.bf16.gmra.mrb[124].mxu1 %v10485_v47  ;;  %v10295_v1 = vmax.f32 %v12499_v11, 0.0  ;;  %v12512_v47 = vadd.f32 %v17726_v32, %v16591_v16  ;;  %v15697_v45 = vld [vmem:[#allocation3 + $0x2690] ss:$40 sps:$4 sm:$0xff]  }
 0x6ba   :  { %v12505_v51 = vadd.f32 %v12504_v26, %v9854_v54  ;;  %v10296_v0 = vmax.f32 %v12501_v60, 0.0  ;;  %v17727_v26 = vld [vmem:[#allocation108_spill] sm:$0xff]  ;;  %v17728_v54 = vld [vmem:[#allocation109_spill] sm:$0xff] }
 0x6bb   :  { %v16880_v14 = vpack.c.bf16 %v11240_v34, %v11239_v41  ;;  %v10297_v42 = vmax.f32 %v12503_v44, 0.0  ;;  %10117 = vmatmul.mubr.bf16.gmra.mrb[236].mxu0 %v5788_v31  ;;  %v15700_v31 = vld [vmem:[#allocation3 + $0x2734] ss:$40 sps:$4 sm:$0xff]  }
 0x6bc   :  { %v10298_v57 = vmax.f32 %v12505_v51, 0.0  ;;  %v10760_v33 = vpop.f32.mrb[20].mxu1  ;;  %10126 = vmatprep.mubr.bf16.mxu0 %v5799_v3  ;;  %v12514_v3 = vadd.f32 %v17727_v26, %v16589_v20  ;;  %v12516_v51 = vadd.f32 %v17728_v54, %v16591_v16 }
 0x6bd   :  { %v10487_v4 = vpack.c.bf16 %v10297_v42, %v10295_v1  ;;  %v10761_v7 = vadd.f32 %v16820_v61, %v10760_v33  ;;  %v10762_v23 = vpop.f32.mrb[21].mxu1 }
 0x6be   :  { %v10488_v5 = vpack.c.bf16 %v10298_v57, %v10296_v0  ;;  %v9858_v25 = vpop.f32.mrb[132].mxu0  ;;  %v10763_v62 = vpop.f32.mrb[22].mxu1  ;;  %v12518_v0 = vadd.f32 %v17729_v38, %v16589_v20  ;;  %v5808_v57 = vpack.c.bf16 %v15697_v45, %v15696_v21  ;;  %v5819_v23 = vpack.c.bf16 %v15700_v31, %v15698_v50 }
 0x6bf   :  { %v12507_v58 = vadd.f32 %v12506_v13, %v9858_v25  ;;  %v10764_v40 = vadd.f32 %v16820_v61, %v10763_v62  ;;  %v9860_v37 = vpop.f32.mrb[133].mxu0  ;;  %v10765_v49 = vpop.f32.mrb[23].mxu1  ;;  %v11241_v27 = vmax.f32 %v10761_v7, 0.0 }
 0x6c0   :  { %v12509_v53 = vadd.f32 %v12508_v59, %v9860_v37  ;;  %v9862_v19 = vpop.f32.mrb[134].mxu0  ;;  %10974 = vmatprep.mubr.bf16.mxu1 %v10488_v5  ;;  %v15703_v37 = vld [vmem:[#allocation3 + $0x2730] ss:$40 sps:$4 sm:$0xff]   ;;  %v15704_v49 = vld [vmem:[#allocation3 + $0x2784] ss:$40 sps:$4 sm:$0xff]  }
 0x6c1   :  { %v11242_v12 = vmax.f32 %v10764_v40, 0.0  ;;  %v12511_v9 = vadd.f32 %v12510_v6, %v9862_v19  ;;  %v9864_v36 = vpop.f32.mrb[135].mxu0  ;;  %10975 = vmatmul.mubr.bf16.gmra.mrb[128].mxu1 %v10487_v4  ;;  %v10299_v8 = vmax.f32 %v12507_v58, 0.0  ;;  %v17730_v4 = vld [vmem:[#allocation111_spill] sm:$0xff] }
 0x6c2   :  { %v12513_v10 = vadd.f32 %v12512_v47, %v9864_v36  ;;  %v10300_v29 = vmax.f32 %v12509_v53, 0.0  ;;  %v12520_v7 = vadd.f32 %v17730_v4, %v16591_v16  ;;  %v15706_v53 = vld [vmem:[#allocation3 + $0x27d4] ss:$40 sps:$4 sm:$0xff]  }
 0x6c3   :  { %v16892_v28 = vpack.c.bf16 %v11242_v12, %v11241_v27  ;;  %v10301_v11 = vmax.f32 %v12511_v9, 0.0  ;;  %10127 = vmatmul.mubr.bf16.gmra.mrb[240].mxu0 %v5798_v63  ;;  %v5829_v26 = vpack.c.bf16 %v15706_v53, %v15704_v49  ;;  %v17737_v49 = vld [vmem:[#allocation118_spill] sm:$0xff] }
 0x6c4   :  { %v10302_v46 = vmax.f32 %v12513_v10, 0.0  ;;  %v10768_v15 = vpop.f32.mrb[24].mxu1  ;;  %10136 = vmatprep.mubr.bf16.mxu0 %v5809_v22  ;;  %v17731_v22 = vld [vmem:[#allocation112_spill] sm:$0xff]  ;;  %v17732_v10 = vld [vmem:[#allocation113_spill] sm:$0xff] }
 0x6c5   :  { %v10489_v60 = vpack.c.bf16 %v10301_v11, %v10299_v8  ;;  %v10769_v35 = vadd.f32 %v16820_v61, %v10768_v15  ;;  %v10770_v2 = vpop.f32.mrb[25].mxu1  ;;  %v12522_v27 = vadd.f32 %v17731_v22, %v16589_v20  ;;  %v12524_v21 = vadd.f32 %v17732_v10, %v16591_v16 }
 0x6c6   :  { %v10490_v41 = vpack.c.bf16 %v10302_v46, %v10300_v29  ;;  %v9868_v34 = vpop.f32.mrb[136].mxu0  ;;  %v10771_v44 = vpop.f32.mrb[26].mxu1  ;;  %v17733_v29 = vld [vmem:[#allocation114_spill] sm:$0xff]  ;;  %v5818_v15 = vpack.c.bf16 %v15703_v37, %v15702_v17 }
 0x6c7   :  { %v12515_v39 = vadd.f32 %v12514_v3, %v9868_v34  ;;  %v10772_v1 = vadd.f32 %v16820_v61, %v10771_v44  ;;  %v9870_v42 = vpop.f32.mrb[137].mxu0  ;;  %v10773_v43 = vpop.f32.mrb[27].mxu1  ;;  %v11243_v56 = vmax.f32 %v10769_v35, 0.0  ;;  %v12526_v46 = vadd.f32 %v17733_v29, %v16589_v20  ;;  %v17734_v35 = vld [vmem:[#allocation115_spill] sm:$0xff] }
 0x6c8   :  { %v12517_v33 = vadd.f32 %v12516_v51, %v9870_v42  ;;  %v9872_v48 = vpop.f32.mrb[138].mxu0  ;;  %10982 = vmatprep.mubr.bf16.mxu1 %v10490_v41  ;;  %v12528_v2 = vadd.f32 %v17734_v35, %v16591_v16  ;;  %v15708_v42 = vld [vmem:[#allocation3 + $0x2780] ss:$40 sps:$4 sm:$0xff]   ;;  %v15709_v43 = vld [vmem:[#allocation3 + $0x27d0] ss:$40 sps:$4 sm:$0xff]  }
 0x6c9   :  { %v11244_v13 = vmax.f32 %v10772_v1, 0.0  ;;  %v12519_v5 = vadd.f32 %v12518_v0, %v9872_v48  ;;  %v9874_v25 = vpop.f32.mrb[139].mxu0  ;;  %10983 = vmatmul.mubr.bf16.gmra.mrb[132].mxu1 %v10489_v60  ;;  %v10303_v59 = vmax.f32 %v12515_v39, 0.0 }
 0x6ca   :  { %v12521_v62 = vadd.f32 %v12520_v7, %v9874_v25  ;;  %v10304_v24 = vmax.f32 %v12517_v33, 0.0  ;;  %v17735_v7 = vld [vmem:[#allocation116_spill] sm:$0xff]  ;;  %v17736_v25 = vld [vmem:[#allocation117_spill] sm:$0xff] }
 0x6cb   :  { %v16904_v58 = vpack.c.bf16 %v11244_v13, %v11243_v56  ;;  %v10305_v40 = vmax.f32 %v12519_v5, 0.0  ;;  %10137 = vmatmul.mubr.bf16.gmra.mrb[244].mxu0 %v5808_v57 }
 0x6cc   :  { %v10306_v6 = vmax.f32 %v12521_v62, 0.0  ;;  %v10776_v63 = vpop.f32.mrb[28].mxu1  ;;  %10146 = vmatprep.mubr.bf16.mxu0 %v5819_v23  ;;  %v12530_v23 = vadd.f32 %v17735_v7, %v16589_v20  ;;  %v12532_v62 = vadd.f32 %v17736_v25, %v16591_v16 }
 0x6cd   :  { %v10491_v19 = vpack.c.bf16 %v10305_v40, %v10303_v59  ;;  %v10777_v32 = vadd.f32 %v16820_v61, %v10776_v63  ;;  %v10778_v47 = vpop.f32.mrb[29].mxu1 }
 0x6ce   :  { %v10492_v12 = vpack.c.bf16 %v10306_v6, %v10304_v24  ;;  %v9878_v9 = vpop.f32.mrb[140].mxu0  ;;  %v10779_v36 = vpop.f32.mrb[30].mxu1  ;;  %v12534_v24 = vadd.f32 %v17737_v49, %v16589_v20  ;;  %v5828_v6 = vpack.c.bf16 %v15709_v43, %v15708_v42 }
 0x6cf   :  { %v12523_v8 = vadd.f32 %v12522_v27, %v9878_v9  ;;  %v10780_v11 = vadd.f32 %v16820_v61, %v10779_v36  ;;  %v9880_v45 = vpop.f32.mrb[141].mxu0  ;;  %v10781_v50 = vpop.f32.mrb[31].mxu1  ;;  %v11245_v3 = vmax.f32 %v10777_v32, 0.0 }
 0x6d0   :  { %v12525_v31 = vadd.f32 %v12524_v21, %v9880_v45  ;;  %v9882_v60 = vpop.f32.mrb[142].mxu0  ;;  %10990 = vmatprep.mubr.bf16.mxu1 %v10492_v12 }
 0x6d1   :  { %v11246_v41 = vmax.f32 %v10780_v11, 0.0  ;;  %v12527_v34 = vadd.f32 %v12526_v46, %v9882_v60  ;;  %v9884_v44 = vpop.f32.mrb[143].mxu0  ;;  %10991 = vmatmul.mubr.bf16.gmra.mrb[136].mxu1 %v10491_v19  ;;  %v10307_v51 = vmax.f32 %v12523_v8, 0.0  ;;  %v17738_v19 = vld [vmem:[#allocation119_spill] sm:$0xff] }
 0x6d2   :  { %v12529_v54 = vadd.f32 %v12528_v2, %v9884_v44  ;;  %v10308_v38 = vmax.f32 %v12525_v31, 0.0  ;;  %v12536_v32 = vadd.f32 %v17738_v19, %v16591_v16 }
 0x6d3   :  { %v16916_v39 = vpack.c.bf16 %v11246_v41, %v11245_v3  ;;  %v10309_v1 = vmax.f32 %v12527_v34, 0.0  ;;  %10147 = vmatmul.mubr.bf16.gmra.mrb[248].mxu0 %v5818_v15  ;;  %v17739_v15 = vld [vmem:[#allocation120_spill] sm:$0xff] }
 0x6d4   :  { %v10310_v0 = vmax.f32 %v12529_v54, 0.0  ;;  %v10784_v57 = vpop.f32.mrb[32].mxu1  ;;  %10156 = vmatprep.mubr.bf16.mxu0 %v5829_v26  ;;  %v12538_v31 = vadd.f32 %v17739_v15, %v16589_v20  ;;  %v17740_v26 = vld [vmem:[#allocation121_spill] sm:$0xff] }
 0x6d5   :  { %v10493_v33 = vpack.c.bf16 %v10309_v1, %v10307_v51  ;;  %v10785_v48 = vadd.f32 %v16820_v61, %v10784_v57  ;;  %v10786_v4 = vpop.f32.mrb[33].mxu1  ;;  %v12540_v3 = vadd.f32 %v17740_v26, %v16591_v16  ;;  %v17741_v51 = vld [vmem:[#allocation122_spill] sm:$0xff] }
 0x6d6   :  { %v10494_v56 = vpack.c.bf16 %v10310_v0, %v10308_v38  ;;  %v9888_v13 = vpop.f32.mrb[144].mxu0  ;;  %v10787_v5 = vpop.f32.mrb[34].mxu1  ;;  %v12542_v1 = vadd.f32 %v17741_v51, %v16589_v20  ;;  %v17742_v38 = vld [vmem:[#allocation123_spill] sm:$0xff] }
 0x6d7   :  { %v12531_v17 = vadd.f32 %v12530_v23, %v9888_v13  ;;  %v10788_v59 = vadd.f32 %v16820_v61, %v10787_v5  ;;  %v9890_v40 = vpop.f32.mrb[145].mxu0  ;;  %v10789_v37 = vpop.f32.mrb[35].mxu1  ;;  %v11247_v47 = vmax.f32 %v10785_v48, 0.0  ;;  %v12544_v0 = vadd.f32 %v17742_v38, %v16591_v16 }
 0x6d8   :  { %v12533_v63 = vadd.f32 %v12532_v62, %v9890_v40  ;;  %v9892_v53 = vpop.f32.mrb[146].mxu0  ;;  %10998 = vmatprep.mubr.bf16.mxu1 %v10494_v56  ;;  %v17743_v40 = vld [vmem:[#allocation124_spill] sm:$0xff] }
 0x6d9   :  { %v11248_v22 = vmax.f32 %v10788_v59, 0.0  ;;  %v12535_v27 = vadd.f32 %v12534_v24, %v9892_v53  ;;  %v9894_v12 = vpop.f32.mrb[147].mxu0  ;;  %10999 = vmatmul.mubr.bf16.gmra.mrb[140].mxu1 %v10493_v33  ;;  %v10311_v36 = vmax.f32 %v12531_v17, 0.0  ;;  %v12546_v37 = vadd.f32 %v17743_v40, %v16589_v20 }
 0x6da   :  { %v12537_v9 = vadd.f32 %v12536_v32, %v9894_v12  ;;  %v10312_v8 = vmax.f32 %v12533_v63, 0.0  ;;  %v17744_v63 = vld [vmem:[#allocation125_spill] sm:$0xff] }
 0x6db   :  { %v12082_v10 = vpack.c.bf16 %v11248_v22, %v11247_v47  ;;  %v10313_v21 = vmax.f32 %v12535_v27, 0.0  ;;  %10157 = vmatmul.mubr.bf16.gmra.mrb[252].mxu0 %v5828_v6  ;;  %v12548_v53 = vadd.f32 %v17744_v63, %v16591_v16  ;;  %v17745_v27 = vld [vmem:[#allocation126_spill] sm:$0xff] }
 0x6dc   :  { %v10314_v11 = vmax.f32 %v12537_v9, 0.0  ;;  %v10792_v45 = vpop.f32.mrb[36].mxu1  ;;  %v12550_v12 = vadd.f32 %v17745_v27, %v16589_v20  ;;  %v17752_v27 = vld [vmem:[#allocation133_spill] sm:$0xff] }
 0x6dd   :  { %v10495_v50 = vpack.c.bf16 %v10313_v21, %v10311_v36  ;;  %v10793_v29 = vadd.f32 %v16820_v61, %v10792_v45  ;;  %v10794_v46 = vpop.f32.mrb[37].mxu1  ;;  %12083 = vmatprep.subr.bf16.mxu1 %v12082_v10  ;;  %v17746_v10 = vld [vmem:[#allocation127_spill] sm:$0xff] }
 0x6de   :  { %v10496_v60 = vpack.c.bf16 %v10314_v11, %v10312_v8  ;;  %v9898_v35 = vpop.f32.mrb[148].mxu0  ;;  %v10795_v2 = vpop.f32.mrb[38].mxu1  ;;  %12085 = vmatpush3.bf16.xpose.msra.mxu1 %v16832_v18  ;;  %v12552_v21 = vadd.f32 %v17746_v10, %v16591_v16 }
 0x6df   :  { %v12539_v41 = vadd.f32 %v12538_v31, %v9898_v35  ;;  %v10796_v34 = vadd.f32 %v16820_v61, %v10795_v2  ;;  %v9900_v44 = vpop.f32.mrb[149].mxu0  ;;  %v10797_v54 = vpop.f32.mrb[39].mxu1  ;;  %v11249_v57 = vmax.f32 %v10793_v29, 0.0 }
 0x6e0   :  { %v12541_v42 = vadd.f32 %v12540_v3, %v9900_v44  ;;  %v9902_v43 = vpop.f32.mrb[150].mxu0  ;;  %11006 = vmatprep.mubr.bf16.mxu1 %v10496_v60 }
 0x6e1   :  { %v11250_v33 = vmax.f32 %v10796_v34, 0.0  ;;  %v12543_v18 = vadd.f32 %v12542_v1, %v9902_v43  ;;  %v9904_v48 = vpop.f32.mrb[151].mxu0  ;;  %11007 = vmatmul.mubr.bf16.gmra.mrb[144].mxu1 %v10495_v50  ;;  %v10315_v7 = vmax.f32 %v12539_v41, 0.0  ;;  %v17747_v41 = vld [vmem:[#allocation128_spill] sm:$0xff]  ;;  %v17748_v1 = vld [vmem:[#allocation129_spill] sm:$0xff] }
 0x6e2   :  { %v12545_v4 = vadd.f32 %v12544_v0, %v9904_v48  ;;  %v10316_v13 = vmax.f32 %v12541_v42, 0.0  ;;  %v12554_v34 = vadd.f32 %v17747_v41, %v16589_v20  ;;  %v12556_v42 = vadd.f32 %v17748_v1, %v16591_v16  ;;  %v17755_v1 = vld [vmem:[#allocation136_spill] sm:$0xff] }
 0x6e3   :  { %v12086_v23 = vpack.c.bf16 %v11250_v33, %v11249_v57  ;;  %v10317_v56 = vmax.f32 %v12543_v18, 0.0  ;;  %v17749_v33 = vld [vmem:[#allocation130_spill] sm:$0xff] }
 0x6e4   :  { %v10318_v5 = vmax.f32 %v12545_v4, 0.0  ;;  %v10800_v25 = vpop.f32.mrb[40].mxu1  ;;  %v12558_v18 = vadd.f32 %v17749_v33, %v16589_v20 }
 0x6e5   :  { %v10497_v62 = vpack.c.bf16 %v10317_v56, %v10315_v7  ;;  %v10801_v17 = vadd.f32 %v16820_v61, %v10800_v25  ;;  %v10802_v59 = vpop.f32.mrb[41].mxu1  ;;  %12087 = vmatprep.subr.bf16.mxu1 %v12086_v23  ;;  %v17750_v7 = vld [vmem:[#allocation131_spill] sm:$0xff] }
 0x6e6   :  { %v10498_v49 = vpack.c.bf16 %v10318_v5, %v10316_v13  ;;  %v9908_v24 = vpop.f32.mrb[152].mxu0  ;;  %v10803_v6 = vpop.f32.mrb[42].mxu1  ;;  %12089 = vmatpush3.bf16.xpose.msra.mxu1 %v16844_v52  ;;  %v12560_v23 = vadd.f32 %v17750_v7, %v16591_v16 }
 0x6e7   :  { %v12547_v19 = vadd.f32 %v12546_v37, %v9908_v24  ;;  %v10804_v32 = vadd.f32 %v16820_v61, %v10803_v6  ;;  %v9910_v47 = vpop.f32.mrb[153].mxu0  ;;  %v10805_v22 = vpop.f32.mrb[43].mxu1  ;;  %v11251_v8 = vmax.f32 %v10801_v17, 0.0 }
 0x6e8   :  { %v12549_v9 = vadd.f32 %v12548_v53, %v9910_v47  ;;  %v9912_v36 = vpop.f32.mrb[154].mxu0  ;;  %11014 = vmatprep.mubr.bf16.mxu1 %v10498_v49  ;;  %v17751_v53 = vld [vmem:[#allocation132_spill] sm:$0xff] }
 0x6e9   :  { %v11252_v11 = vmax.f32 %v10804_v32, 0.0  ;;  %v12551_v52 = vadd.f32 %v12550_v12, %v9912_v36  ;;  %v9914_v45 = vpop.f32.mrb[155].mxu0  ;;  %11015 = vmatmul.mubr.bf16.gmra.mrb[148].mxu1 %v10497_v62  ;;  %v10319_v29 = vmax.f32 %v12547_v19, 0.0  ;;  %v12562_v19 = vadd.f32 %v17751_v53, %v16589_v20 }
 0x6ea   :  { %v12553_v50 = vadd.f32 %v12552_v21, %v9914_v45  ;;  %v10320_v31 = vmax.f32 %v12549_v9, 0.0  ;;  %v12564_v12 = vadd.f32 %v17752_v27, %v16591_v16 }
 0x6eb   :  { %v12090_v46 = vpack.c.bf16 %v11252_v11, %v11251_v8  ;;  %v10321_v15 = vmax.f32 %v12551_v52, 0.0  ;;  %v17753_v8 = vld [vmem:[#allocation134_spill] sm:$0xff] }
 0x6ec   :  { %v10322_v60 = vmax.f32 %v12553_v50, 0.0  ;;  %v10808_v35 = vpop.f32.mrb[44].mxu1  ;;  %v12566_v11 = vadd.f32 %v17753_v8, %v16589_v20  ;;  %v17754_v50 = vld [vmem:[#allocation135_spill] sm:$0xff] }
 0x6ed   :  { %v10499_v2 = vpack.c.bf16 %v10321_v15, %v10319_v29  ;;  %v10809_v26 = vadd.f32 %v16820_v61, %v10808_v35  ;;  %v10810_v3 = vpop.f32.mrb[45].mxu1  ;;  %12091 = vmatprep.subr.bf16.mxu1 %v12090_v46  ;;  %v12568_v29 = vadd.f32 %v17754_v50, %v16591_v16  ;;  %v17761_v50 = vld [vmem:[#allocation142_spill] sm:$0xff] }
 0x6ee   :  { %v10500_v44 = vpack.c.bf16 %v10322_v60, %v10320_v31  ;;  %v9918_v54 = vpop.f32.mrb[156].mxu0  ;;  %v10811_v51 = vpop.f32.mrb[46].mxu1  ;;  %12093 = vmatpush3.bf16.xpose.msra.mxu1 %v16856_v55 }
 0x6ef   :  { %v12555_v43 = vadd.f32 %v12554_v34, %v9918_v54  ;;  %v10812_v38 = vadd.f32 %v16820_v61, %v10811_v51  ;;  %v9920_v0 = vpop.f32.mrb[157].mxu0  ;;  %v10813_v57 = vpop.f32.mrb[47].mxu1  ;;  %v11253_v56 = vmax.f32 %v10809_v26, 0.0 }
 0x6f0   :  { %v12557_v48 = vadd.f32 %v12556_v42, %v9920_v0  ;;  %v9922_v4 = vpop.f32.mrb[158].mxu0  ;;  %11022 = vmatprep.mubr.bf16.mxu1 %v10500_v44  ;;  %v12570_v42 = vadd.f32 %v17755_v1, %v16589_v20  ;;  %v17756_v57 = vld [vmem:[#allocation137_spill] sm:$0xff]  ;;  %v16997_v1 = vld [vmem:[%s17408_s4] ss:$0 sm:$0xff] }
 0x6f1   :  { %v11254_v13 = vmax.f32 %v10812_v38, 0.0  ;;  %v12559_v55 = vadd.f32 %v12558_v18, %v9922_v4  ;;  %v9924_v5 = vpop.f32.mrb[159].mxu0  ;;  %11023 = vmatmul.mubr.bf16.gmra.mrb[152].mxu1 %v10499_v2  ;;  %v10323_v62 = vmax.f32 %v12555_v43, 0.0  ;;  %v12572_v33 = vadd.f32 %v17756_v57, %v16591_v16 }
 0x6f2   :  { %v12561_v25 = vadd.f32 %v12560_v23, %v9924_v5  ;;  %v10324_v40 = vmax.f32 %v12557_v48, 0.0  ;;  %v17757_v23 = vld [vmem:[#allocation138_spill] sm:$0xff]  ;;  %v17758_v5 = vld [vmem:[#allocation139_spill] sm:$0xff] }
 0x6f3   :  { %v12094_v17 = vpack.c.bf16 %v11254_v13, %v11253_v56  ;;  %v10325_v59 = vmax.f32 %v12559_v55, 0.0  ;;  %v12574_v56 = vadd.f32 %v17757_v23, %v16589_v20 }
 0x6f4   :  { %v10326_v37 = vmax.f32 %v12561_v25, 0.0  ;;  %v10816_v49 = vpop.f32.mrb[48].mxu1  ;;  %v12576_v25 = vadd.f32 %v17758_v5, %v16591_v16 }
 0x6f5   :  { %v10501_v24 = vpack.c.bf16 %v10325_v59, %v10323_v62  ;;  %v10817_v6 = vadd.f32 %v16820_v61, %v10816_v49  ;;  %v10818_v63 = vpop.f32.mrb[49].mxu1  ;;  %12095 = vmatprep.subr.bf16.mxu1 %v12094_v17 }
 0x6f6   :  { %v10502_v32 = vpack.c.bf16 %v10326_v37, %v10324_v40  ;;  %v9928_v47 = vpop.f32.mrb[160].mxu0  ;;  %v10819_v22 = vpop.f32.mrb[50].mxu1  ;;  %12097 = vmatpush3.bf16.xpose.msra.mxu1 %v16868_v30 }
 0x6f7   :  { %v12563_v9 = vadd.f32 %v12562_v19, %v9928_v47  ;;  %v10820_v36 = vadd.f32 %v16820_v61, %v10819_v22  ;;  %v9930_v10 = vpop.f32.mrb[161].mxu0  ;;  %v10821_v21 = vpop.f32.mrb[51].mxu1  ;;  %v11255_v46 = vmax.f32 %v10817_v6, 0.0  ;;  %v17759_v22 = vld [vmem:[#allocation140_spill] sm:$0xff] }
 0x6f8   :  { %v12565_v52 = vadd.f32 %v12564_v12, %v9930_v10  ;;  %v9932_v45 = vpop.f32.mrb[162].mxu0  ;;  %11030 = vmatprep.mubr.bf16.mxu1 %v10502_v32  ;;  %v12578_v27 = vadd.f32 %v17759_v22, %v16589_v20  ;;  %v17760_v10 = vld [vmem:[#allocation141_spill] sm:$0xff] }
 0x6f9   :  { %v11256_v15 = vmax.f32 %v10820_v36, 0.0  ;;  %v12567_v30 = vadd.f32 %v12566_v11, %v9932_v45  ;;  %v9934_v31 = vpop.f32.mrb[163].mxu0  ;;  %11031 = vmatmul.mubr.bf16.gmra.mrb[156].mxu1 %v10501_v24  ;;  %v10327_v35 = vmax.f32 %v12563_v9, 0.0  ;;  %v12580_v21 = vadd.f32 %v17760_v10, %v16591_v16 }
 0x6fa   :  { %v12569_v60 = vadd.f32 %v12568_v29, %v9934_v31  ;;  %v10328_v3 = vmax.f32 %v12565_v52, 0.0  ;;  %v12582_v29 = vadd.f32 %v17761_v50, %v16589_v20 }
 0x6fb   :  { %v12098_v2 = vpack.c.bf16 %v11256_v15, %v11255_v46  ;;  %v10329_v26 = vmax.f32 %v12567_v30, 0.0  ;;  %v17762_v30 = vld [vmem:[#allocation143_spill] sm:$0xff] }
 0x6fc   :  { %v10330_v41 = vmax.f32 %v12569_v60, 0.0  ;;  %v10824_v34 = vpop.f32.mrb[52].mxu1  ;;  %v12584_v31 = vadd.f32 %v17762_v30, %v16591_v16 }
 0x6fd   :  { %v10503_v44 = vpack.c.bf16 %v10329_v26, %v10327_v35  ;;  %v10825_v54 = vadd.f32 %v16820_v61, %v10824_v34  ;;  %v10826_v51 = vpop.f32.mrb[53].mxu1  ;;  %12099 = vmatprep.subr.bf16.mxu1 %v12098_v2 }
 0x6fe   :  { %v10504_v43 = vpack.c.bf16 %v10330_v41, %v10328_v3  ;;  %v9938_v38 = vpop.f32.mrb[164].mxu0  ;;  %v10827_v0 = vpop.f32.mrb[54].mxu1  ;;  %12101 = vmatpush3.bf16.xpose.msra.mxu1 %v16880_v14 }
 0x6ff   :  { %v12571_v18 = vadd.f32 %v12570_v42, %v9938_v38  ;;  %v10828_v48 = vadd.f32 %v16820_v61, %v10827_v0  ;;  %v9940_v4 = vpop.f32.mrb[165].mxu0  ;;  %v10829_v7 = vpop.f32.mrb[55].mxu1  ;;  %v11257_v62 = vmax.f32 %v10825_v54, 0.0  ;;  %v17763_v38 = vld [vmem:[#allocation144_spill] sm:$0xff] }
 0x700   :  { %v12573_v13 = vadd.f32 %v12572_v33, %v9940_v4  ;;  %v9942_v55 = vpop.f32.mrb[166].mxu0  ;;  %11038 = vmatprep.mubr.bf16.mxu1 %v10504_v43  ;;  %v12586_v0 = vadd.f32 %v17763_v38, %v16589_v20 }
 0x701   :  { %v11258_v17 = vmax.f32 %v10828_v48, 0.0  ;;  %v12575_v14 = vadd.f32 %v12574_v56, %v9942_v55  ;;  %v9944_v59 = vpop.f32.mrb[167].mxu0  ;;  %11039 = vmatmul.mubr.bf16.gmra.mrb[160].mxu1 %v10503_v44  ;;  %v10331_v37 = vmax.f32 %v12571_v18, 0.0  ;;  %v17764_v48 = vld [vmem:[#allocation145_spill] sm:$0xff]  ;;  %v17765_v55 = vld [vmem:[#allocation146_spill] sm:$0xff] }
 0x702   :  { %v12577_v40 = vadd.f32 %v12576_v25, %v9944_v59  ;;  %v10332_v6 = vmax.f32 %v12573_v13, 0.0  ;;  %v12588_v4 = vadd.f32 %v17764_v48, %v16591_v16  ;;  %v12590_v5 = vadd.f32 %v17765_v55, %v16589_v20 }
 0x703   :  { %v12102_v49 = vpack.c.bf16 %v11258_v17, %v11257_v62  ;;  %v10333_v24 = vmax.f32 %v12575_v14, 0.0  ;;  %v17766_v17 = vld [vmem:[#allocation147_spill] sm:$0xff] }
 0x704   :  { %v10334_v63 = vmax.f32 %v12577_v40, 0.0  ;;  %v10832_v53 = vpop.f32.mrb[56].mxu1  ;;  %v12592_v14 = vadd.f32 %v17766_v17, %v16591_v16 }
 0x705   :  { %v10505_v19 = vpack.c.bf16 %v10333_v24, %v10331_v37  ;;  %v10833_v32 = vadd.f32 %v16820_v61, %v10832_v53  ;;  %v10834_v47 = vpop.f32.mrb[57].mxu1  ;;  %12103 = vmatprep.subr.bf16.mxu1 %v12102_v49 }
 0x706   :  { %v10506_v12 = vpack.c.bf16 %v10334_v63, %v10332_v6  ;;  %v9948_v9 = vpop.f32.mrb[168].mxu0  ;;  %v10835_v36 = vpop.f32.mrb[58].mxu1  ;;  %12105 = vmatpush3.bf16.xpose.msra.mxu1 %v16892_v28 }
 0x707   :  { %v12579_v8 = vadd.f32 %v12578_v27, %v9948_v9  ;;  %v10836_v11 = vadd.f32 %v16820_v61, %v10835_v36  ;;  %v9950_v52 = vpop.f32.mrb[169].mxu0  ;;  %v10837_v45 = vpop.f32.mrb[59].mxu1  ;;  %v11259_v60 = vmax.f32 %v10833_v32, 0.0 }
 0x708   :  { %v12581_v46 = vadd.f32 %v12580_v21, %v9950_v52  ;;  %v9952_v15 = vpop.f32.mrb[170].mxu0  ;;  %11046 = vmatprep.mubr.bf16.mxu1 %v10506_v12  ;;  %v17767_v12 = vld [vmem:[#allocation148_spill] sm:$0xff] }
 0x709   :  { %v11260_v35 = vmax.f32 %v10836_v11, 0.0  ;;  %v12583_v28 = vadd.f32 %v12582_v29, %v9952_v15  ;;  %v9954_v2 = vpop.f32.mrb[171].mxu0  ;;  %11047 = vmatmul.mubr.bf16.gmra.mrb[164].mxu1 %v10505_v19  ;;  %v10335_v3 = vmax.f32 %v12579_v8, 0.0  ;;  %v12594_v9 = vadd.f32 %v17767_v12, %v16589_v20  ;;  %v17768_v8 = vld [vmem:[#allocation149_spill] sm:$0xff] }
 0x70a   :  { %v12585_v26 = vadd.f32 %v12584_v31, %v9954_v2  ;;  %v10336_v34 = vmax.f32 %v12581_v46, 0.0  ;;  %v12596_v11 = vadd.f32 %v17768_v8, %v16591_v16  ;;  %v17769_v46 = vld [vmem:[#allocation150_spill] sm:$0xff] }
 0x70b   :  { %v12106_v41 = vpack.c.bf16 %v11260_v35, %v11259_v60  ;;  %v10337_v61 = vmax.f32 %v12583_v28, 0.0  ;;  %v12598_v15 = vadd.f32 %v17769_v46, %v16589_v20  ;;  %v17770_v60 = vld [vmem:[#allocation151_spill] sm:$0xff] }
 0x70c   :  { %v10338_v44 = vmax.f32 %v12585_v26, 0.0  ;;  %v10840_v54 = vpop.f32.mrb[60].mxu1  ;;  %v12600_v35 = vadd.f32 %v17770_v60, %v16591_v16 }
 0x70d   :  { %v10507_v51 = vpack.c.bf16 %v10337_v61, %v10335_v3  ;;  %v10841_v42 = vadd.f32 %v16997_v1, %v10840_v54  ;;  %v10842_v43 = vpop.f32.mrb[61].mxu1  ;;  %12107 = vmatprep.subr.bf16.mxu1 %v12106_v41 }
 0x70e   :  { %v10508_v57 = vpack.c.bf16 %v10338_v44, %v10336_v34  ;;  %v9958_v33 = vpop.f32.mrb[172].mxu0  ;;  %v10843_v18 = vpop.f32.mrb[62].mxu1  ;;  %12109 = vmatpush3.bf16.xpose.msra.mxu1 %v16904_v58 }
 0x70f   :  { %v12587_v7 = vadd.f32 %v12586_v0, %v9958_v33  ;;  %v10844_v23 = vadd.f32 %v16997_v1, %v10843_v18  ;;  %v9960_v56 = vpop.f32.mrb[173].mxu0  ;;  %v10845_v13 = vpop.f32.mrb[63].mxu1  ;;  %v11261_v59 = vmax.f32 %v10841_v42, 0.0  ;;  %v17771_v0 = vld [vmem:[#allocation152_spill] sm:$0xff] }
 0x710   :  { %v12589_v25 = vadd.f32 %v12588_v4, %v9960_v56  ;;  %v9962_v62 = vpop.f32.mrb[174].mxu0  ;;  %11054 = vmatprep.mubr.bf16.mxu1 %v10508_v57  ;;  %v12602_v57 = vadd.f32 %v17771_v0, %v16589_v20  ;;  %v17772_v4 = vld [vmem:[#allocation153_spill] sm:$0xff] }
 0x711   :  { %v11262_v40 = vmax.f32 %v10844_v23, 0.0  ;;  %v12591_v58 = vadd.f32 %v12590_v5, %v9962_v62  ;;  %v9964_v37 = vpop.f32.mrb[175].mxu0  ;;  %11055 = vmatmul.mubr.bf16.gmra.mrb[168].mxu1 %v10507_v51  ;;  %v10339_v24 = vmax.f32 %v12587_v7, 0.0  ;;  %v12604_v7 = vadd.f32 %v17772_v4, %v16591_v16  ;;  %v17773_v5 = vld [vmem:[#allocation154_spill] sm:$0xff] }
 0x712   :  { %v12593_v49 = vadd.f32 %v12592_v14, %v9964_v37  ;;  %v10340_v53 = vmax.f32 %v12589_v25, 0.0  ;;  %v12606_v25 = vadd.f32 %v17773_v5, %v16589_v20  ;;  %v17774_v14 = vld [vmem:[#allocation155_spill] sm:$0xff] }
 0x713   :  { %v12110_v6 = vpack.c.bf16 %v11262_v40, %v11261_v59  ;;  %v10341_v63 = vmax.f32 %v12591_v58, 0.0  ;;  %v12608_v59 = vadd.f32 %v17774_v14, %v16591_v16 }
 0x714   :  { %v10342_v19 = vmax.f32 %v12593_v49, 0.0  ;;  %v10848_v32 = vpop.f32.mrb[64].mxu1 }
 0x715   :  { %v10509_v47 = vpack.c.bf16 %v10341_v63, %v10339_v24  ;;  %v10849_v22 = vadd.f32 %v16997_v1, %v10848_v32  ;;  %v10850_v27 = vpop.f32.mrb[65].mxu1  ;;  %12111 = vmatprep.subr.bf16.mxu1 %v12110_v6 }
 0x716   :  { %v10510_v36 = vpack.c.bf16 %v10342_v19, %v10340_v53  ;;  %v9968_v10 = vpop.f32.mrb[176].mxu0  ;;  %v10851_v21 = vpop.f32.mrb[66].mxu1  ;;  %12113 = vmatpush3.bf16.xpose.msra.mxu1 %v16916_v39 }
 0x717   :  { %v12595_v52 = vadd.f32 %v12594_v9, %v9968_v10  ;;  %v10852_v45 = vadd.f32 %v16997_v1, %v10851_v21  ;;  %v9970_v50 = vpop.f32.mrb[177].mxu0  ;;  %v10853_v29 = vpop.f32.mrb[67].mxu1  ;;  %v11263_v28 = vmax.f32 %v10849_v22, 0.0  ;;  %v17775_v9 = vld [vmem:[#allocation156_spill] sm:$0xff] }
 0x718   :  { %v12597_v30 = vadd.f32 %v12596_v11, %v9970_v50  ;;  %v9972_v31 = vpop.f32.mrb[178].mxu0  ;;  %11062 = vmatprep.mubr.bf16.mxu1 %v10510_v36  ;;  %v12610_v36 = vadd.f32 %v17775_v9, %v16589_v20  ;;  %v17776_v11 = vld [vmem:[#allocation157_spill] sm:$0xff] }
 0x719   :  { %v11264_v2 = vmax.f32 %v10852_v45, 0.0  ;;  %v12599_v39 = vadd.f32 %v12598_v15, %v9972_v31  ;;  %v9974_v26 = vpop.f32.mrb[179].mxu0  ;;  %11063 = vmatmul.mubr.bf16.gmra.mrb[172].mxu1 %v10509_v47  ;;  %v10343_v41 = vmax.f32 %v12595_v52, 0.0  ;;  %v12612_v52 = vadd.f32 %v17776_v11, %v16591_v16  ;;  %v17777_v15 = vld [vmem:[#allocation158_spill] sm:$0xff] }
 0x71a   :  { %v12601_v3 = vadd.f32 %v12600_v35, %v9974_v26  ;;  %v10344_v44 = vmax.f32 %v12597_v30, 0.0  ;;  %v12614_v30 = vadd.f32 %v17777_v15, %v16589_v20  ;;  %v17778_v35 = vld [vmem:[#allocation159_spill] sm:$0xff] }
 0x71b   :  { %v17021_v61 = vpack.c.bf16 %v11264_v2, %v11263_v28  ;;  %v10345_v34 = vmax.f32 %v12599_v39, 0.0  ;;  %v12616_v28 = vadd.f32 %v17778_v35, %v16591_v16 }
 0x71c   :  { %v10346_v54 = vmax.f32 %v12601_v3, 0.0  ;;  %v10856_v51 = vpop.f32.mrb[68].mxu1 }
 0x71d   :  { %v10511_v42 = vpack.c.bf16 %v10345_v34, %v10343_v41  ;;  %v10857_v43 = vadd.f32 %v16997_v1, %v10856_v51  ;;  %v10858_v38 = vpop.f32.mrb[69].mxu1 }
 0x71e   :  { %v10512_v33 = vpack.c.bf16 %v10346_v54, %v10344_v44  ;;  %v9978_v18 = vpop.f32.mrb[180].mxu0  ;;  %v10859_v48 = vpop.f32.mrb[70].mxu1 }
 0x71f   :  { %v12603_v23 = vadd.f32 %v12602_v57, %v9978_v18  ;;  %v10860_v56 = vadd.f32 %v16997_v1, %v10859_v48  ;;  %v9980_v13 = vpop.f32.mrb[181].mxu0  ;;  %v10861_v55 = vpop.f32.mrb[71].mxu1  ;;  %v11265_v40 = vmax.f32 %v10857_v43, 0.0 }
 0x720   :  { %v12605_v62 = vadd.f32 %v12604_v7, %v9980_v13  ;;  %v9982_v17 = vpop.f32.mrb[182].mxu0  ;;  %11070 = vmatprep.mubr.bf16.mxu1 %v10512_v33  ;;  %v17779_v33 = vld [vmem:[#allocation160_spill] sm:$0xff] }
 0x721   :  { %v11266_v58 = vmax.f32 %v10860_v56, 0.0  ;;  %v12607_v37 = vadd.f32 %v12606_v25, %v9982_v17  ;;  %v9984_v49 = vpop.f32.mrb[183].mxu0  ;;  %11071 = vmatmul.mubr.bf16.gmra.mrb[176].mxu1 %v10511_v42  ;;  %v10347_v6 = vmax.f32 %v12603_v23, 0.0  ;;  %v12618_v18 = vadd.f32 %v17779_v33, %v16589_v20  ;;  %v17780_v23 = vld [vmem:[#allocation161_spill] sm:$0xff] }
 0x722   :  { %v12609_v24 = vadd.f32 %v12608_v59, %v9984_v49  ;;  %v10348_v19 = vmax.f32 %v12605_v62, 0.0  ;;  %v12620_v56 = vadd.f32 %v17780_v23, %v16591_v16  ;;  %v17781_v62 = vld [vmem:[#allocation162_spill] sm:$0xff] }
 0x723   :  { %v17033_v63 = vpack.c.bf16 %v11266_v58, %v11265_v40  ;;  %v10349_v53 = vmax.f32 %v12607_v37, 0.0  ;;  %v12622_v17 = vadd.f32 %v17781_v62, %v16589_v20  ;;  %v17782_v40 = vld [vmem:[#allocation163_spill] sm:$0xff] }
 0x724   :  { %v10350_v32 = vmax.f32 %v12609_v24, 0.0  ;;  %v10864_v47 = vpop.f32.mrb[72].mxu1  ;;  %v12624_v58 = vadd.f32 %v17782_v40, %v16591_v16  ;;  %v17789_v40 = vld [vmem:[#allocation170_spill] sm:$0xff] }
 0x725   :  { %v10513_v22 = vpack.c.bf16 %v10349_v53, %v10347_v6  ;;  %v10865_v27 = vadd.f32 %v16997_v1, %v10864_v47  ;;  %v10866_v12 = vpop.f32.mrb[73].mxu1 }
 0x726   :  { %v10514_v10 = vpack.c.bf16 %v10350_v32, %v10348_v19  ;;  %v9988_v21 = vpop.f32.mrb[184].mxu0  ;;  %v10867_v8 = vpop.f32.mrb[74].mxu1 }
 0x727   :  { %v12611_v45 = vadd.f32 %v12610_v36, %v9988_v21  ;;  %v10868_v50 = vadd.f32 %v16997_v1, %v10867_v8  ;;  %v9990_v29 = vpop.f32.mrb[185].mxu0  ;;  %v10869_v46 = vpop.f32.mrb[75].mxu1  ;;  %v11267_v2 = vmax.f32 %v10865_v27, 0.0  ;;  %v17783_v21 = vld [vmem:[#allocation164_spill] sm:$0xff] }
 0x728   :  { %v12613_v31 = vadd.f32 %v12612_v52, %v9990_v29  ;;  %v9992_v60 = vpop.f32.mrb[186].mxu0  ;;  %11078 = vmatprep.mubr.bf16.mxu1 %v10514_v10  ;;  %v12626_v8 = vadd.f32 %v17783_v21, %v16589_v20 }
 0x729   :  { %v11268_v39 = vmax.f32 %v10868_v50, 0.0  ;;  %v12615_v26 = vadd.f32 %v12614_v30, %v9992_v60  ;;  %v9994_v3 = vpop.f32.mrb[187].mxu0  ;;  %11079 = vmatmul.mubr.bf16.gmra.mrb[180].mxu1 %v10513_v22  ;;  %v10351_v34 = vmax.f32 %v12611_v45, 0.0  ;;  %v17784_v50 = vld [vmem:[#allocation165_spill] sm:$0xff]  ;;  %v17785_v60 = vld [vmem:[#allocation166_spill] sm:$0xff] }
 0x72a   :  { %v12617_v41 = vadd.f32 %v12616_v28, %v9994_v3  ;;  %v10352_v51 = vmax.f32 %v12613_v31, 0.0  ;;  %v12628_v29 = vadd.f32 %v17784_v50, %v16591_v16  ;;  %v12630_v35 = vadd.f32 %v17785_v60, %v16589_v20  ;;  %v17791_v50 = vld [vmem:[#allocation172_spill] sm:$0xff] }
 0x72b   :  { %v17045_v44 = vpack.c.bf16 %v11268_v39, %v11267_v2  ;;  %v10353_v54 = vmax.f32 %v12615_v26, 0.0  ;;  %v17786_v39 = vld [vmem:[#allocation167_spill] sm:$0xff] }
 0x72c   :  { %v10354_v42 = vmax.f32 %v12617_v41, 0.0  ;;  %v10872_v43 = vpop.f32.mrb[76].mxu1  ;;  %v12632_v26 = vadd.f32 %v17786_v39, %v16591_v16 }
 0x72d   :  { %v10515_v38 = vpack.c.bf16 %v10353_v54, %v10351_v34  ;;  %v10873_v0 = vadd.f32 %v16997_v1, %v10872_v43  ;;  %v10874_v57 = vpop.f32.mrb[77].mxu1 }
 0x72e   :  { %v10516_v48 = vpack.c.bf16 %v10354_v42, %v10352_v51  ;;  %v9998_v4 = vpop.f32.mrb[188].mxu0  ;;  %v10875_v7 = vpop.f32.mrb[78].mxu1 }
 0x72f   :  { %v12619_v13 = vadd.f32 %v12618_v18, %v9998_v4  ;;  %v10876_v55 = vadd.f32 %v16997_v1, %v10875_v7  ;;  %v10000_v5 = vpop.f32.mrb[189].mxu0  ;;  %v10877_v25 = vpop.f32.mrb[79].mxu1  ;;  %v11269_v37 = vmax.f32 %v10873_v0, 0.0  ;;  %v17787_v7 = vld [vmem:[#allocation168_spill] sm:$0xff] }
 0x730   :  { %v12621_v14 = vadd.f32 %v12620_v56, %v10000_v5  ;;  %v10002_v59 = vpop.f32.mrb[190].mxu0  ;;  %11086 = vmatprep.mubr.bf16.mxu1 %v10516_v48  ;;  %v12634_v23 = vadd.f32 %v17787_v7, %v16589_v20  ;;  %v17788_v5 = vld [vmem:[#allocation169_spill] sm:$0xff] }
 0x731   :  { %v11270_v49 = vmax.f32 %v10876_v55, 0.0  ;;  %v12623_v24 = vadd.f32 %v12622_v17, %v10002_v59  ;;  %v10004_v6 = vpop.f32.mrb[191].mxu0  ;;  %11087 = vmatmul.mubr.bf16.gmra.mrb[184].mxu1 %v10515_v38  ;;  %v10355_v19 = vmax.f32 %v12619_v13, 0.0  ;;  %v12636_v25 = vadd.f32 %v17788_v5, %v16591_v16 }
 0x732   :  { %v12625_v53 = vadd.f32 %v12624_v58, %v10004_v6  ;;  %v10356_v22 = vmax.f32 %v12621_v14, 0.0  ;;  %v12638_v58 = vadd.f32 %v17789_v40, %v16589_v20  ;;  %v17796_v40 = vld [vmem:[#allocation177_spill] sm:$0xff] }
 0x733   :  { %v17057_v32 = vpack.c.bf16 %v11270_v49, %v11269_v37  ;;  %v10357_v47 = vmax.f32 %v12623_v24, 0.0  ;;  %v17790_v24 = vld [vmem:[#allocation171_spill] sm:$0xff] }
 0x734   :  { %v10358_v27 = vmax.f32 %v12625_v53, 0.0  ;;  %v10880_v12 = vpop.f32.mrb[80].mxu1  ;;  %v12640_v6 = vadd.f32 %v17790_v24, %v16591_v16 }
 0x735   :  { %v10517_v9 = vpack.c.bf16 %v10357_v47, %v10355_v19  ;;  %v10881_v36 = vadd.f32 %v16997_v1, %v10880_v12  ;;  %v10882_v10 = vpop.f32.mrb[81].mxu1 }
 0x736   :  { %v10518_v11 = vpack.c.bf16 %v10358_v27, %v10356_v22  ;;  %v10008_v52 = vpop.f32.mrb[192].mxu0  ;;  %v10883_v45 = vpop.f32.mrb[82].mxu1 }
 0x737   :  { %v12627_v46 = vadd.f32 %v12626_v8, %v10008_v52  ;;  %v10884_v15 = vadd.f32 %v16997_v1, %v10883_v45  ;;  %v10010_v30 = vpop.f32.mrb[193].mxu0  ;;  %v10885_v31 = vpop.f32.mrb[83].mxu1  ;;  %v11271_v3 = vmax.f32 %v10881_v36, 0.0 }
 0x738   :  { %v12629_v28 = vadd.f32 %v12628_v29, %v10010_v30  ;;  %v10012_v2 = vpop.f32.mrb[194].mxu0  ;;  %11094 = vmatprep.mubr.bf16.mxu1 %v10518_v11  ;;  %v12642_v29 = vadd.f32 %v17791_v50, %v16589_v20  ;;  %v17792_v31 = vld [vmem:[#allocation173_spill] sm:$0xff] }
 0x739   :  { %v11272_v41 = vmax.f32 %v10884_v15, 0.0  ;;  %v12631_v34 = vadd.f32 %v12630_v35, %v10012_v2  ;;  %v10014_v54 = vpop.f32.mrb[195].mxu0  ;;  %11095 = vmatmul.mubr.bf16.gmra.mrb[188].mxu1 %v10517_v9  ;;  %v10359_v42 = vmax.f32 %v12627_v46, 0.0  ;;  %v12644_v60 = vadd.f32 %v17792_v31, %v16591_v16 }
 0x73a   :  { %v12633_v51 = vadd.f32 %v12632_v26, %v10014_v54  ;;  %v10360_v0 = vmax.f32 %v12629_v28, 0.0  ;;  %v17793_v26 = vld [vmem:[#allocation174_spill] sm:$0xff]  ;;  %v17794_v54 = vld [vmem:[#allocation175_spill] sm:$0xff] }
 0x73b   :  { %v17069_v43 = vpack.c.bf16 %v11272_v41, %v11271_v3  ;;  %v10361_v38 = vmax.f32 %v12631_v34, 0.0  ;;  %v12646_v3 = vadd.f32 %v17793_v26, %v16589_v20 }
 0x73c   :  { %v10362_v57 = vmax.f32 %v12633_v51, 0.0  ;;  %v10888_v33 = vpop.f32.mrb[84].mxu1  ;;  %v12648_v51 = vadd.f32 %v17794_v54, %v16591_v16 }
 0x73d   :  { %v10519_v18 = vpack.c.bf16 %v10361_v38, %v10359_v42  ;;  %v10889_v48 = vadd.f32 %v16997_v1, %v10888_v33  ;;  %v10890_v4 = vpop.f32.mrb[85].mxu1 }
 0x73e   :  { %v10520_v56 = vpack.c.bf16 %v10362_v57, %v10360_v0  ;;  %v10018_v13 = vpop.f32.mrb[196].mxu0  ;;  %v10891_v55 = vpop.f32.mrb[86].mxu1 }
 0x73f   :  { %v12635_v62 = vadd.f32 %v12634_v23, %v10018_v13  ;;  %v10892_v17 = vadd.f32 %v16997_v1, %v10891_v55  ;;  %v10020_v14 = vpop.f32.mrb[197].mxu0  ;;  %v10893_v59 = vpop.f32.mrb[87].mxu1  ;;  %v11273_v53 = vmax.f32 %v10889_v48, 0.0 }
 0x740   :  { %v12637_v37 = vadd.f32 %v12636_v25, %v10020_v14  ;;  %v10022_v49 = vpop.f32.mrb[198].mxu0  ;;  %11102 = vmatprep.mubr.bf16.mxu1 %v10520_v56  ;;  %v17795_v25 = vld [vmem:[#allocation176_spill] sm:$0xff] }
 0x741   :  { %v11274_v19 = vmax.f32 %v10892_v17, 0.0  ;;  %v12639_v47 = vadd.f32 %v12638_v58, %v10022_v49  ;;  %v10024_v22 = vpop.f32.mrb[199].mxu0  ;;  %11103 = vmatmul.mubr.bf16.gmra.mrb[192].mxu1 %v10519_v18  ;;  %v10363_v12 = vmax.f32 %v12635_v62, 0.0  ;;  %v12650_v62 = vadd.f32 %v17795_v25, %v16589_v20 }
 0x742   :  { %v12641_v27 = vadd.f32 %v12640_v6, %v10024_v22  ;;  %v10364_v10 = vmax.f32 %v12637_v37, 0.0  ;;  %v12652_v58 = vadd.f32 %v17796_v40, %v16591_v16 }
 0x743   :  { %v17081_v9 = vpack.c.bf16 %v11274_v19, %v11273_v53  ;;  %v10365_v36 = vmax.f32 %v12639_v47, 0.0  ;;  %v17797_v53 = vld [vmem:[#allocation178_spill] sm:$0xff] }
 0x744   :  { %v10366_v21 = vmax.f32 %v12641_v27, 0.0  ;;  %v10896_v8 = vpop.f32.mrb[88].mxu1  ;;  %v12654_v19 = vadd.f32 %v17797_v53, %v16589_v20  ;;  %v17798_v27 = vld [vmem:[#allocation179_spill] sm:$0xff] }
 0x745   :  { %v10521_v11 = vpack.c.bf16 %v10365_v36, %v10363_v12  ;;  %v10897_v52 = vadd.f32 %v16997_v1, %v10896_v8  ;;  %v10898_v45 = vpop.f32.mrb[89].mxu1  ;;  %v12656_v12 = vadd.f32 %v17798_v27, %v16591_v16 }
 0x746   :  { %v10522_v46 = vpack.c.bf16 %v10366_v21, %v10364_v10  ;;  %v10028_v15 = vpop.f32.mrb[200].mxu0  ;;  %v10899_v30 = vpop.f32.mrb[90].mxu1 }
 0x747   :  { %v12643_v35 = vadd.f32 %v12642_v29, %v10028_v15  ;;  %v10900_v28 = vadd.f32 %v16997_v1, %v10899_v30  ;;  %v10030_v2 = vpop.f32.mrb[201].mxu0  ;;  %v10901_v39 = vpop.f32.mrb[91].mxu1  ;;  %v11275_v42 = vmax.f32 %v10897_v52, 0.0 }
 0x748   :  { %v12645_v41 = vadd.f32 %v12644_v60, %v10030_v2  ;;  %v10032_v34 = vpop.f32.mrb[202].mxu0  ;;  %11110 = vmatprep.mubr.bf16.mxu1 %v10522_v46 }
 0x749   :  { %v11276_v38 = vmax.f32 %v10900_v28, 0.0  ;;  %v12647_v0 = vadd.f32 %v12646_v3, %v10032_v34  ;;  %v10034_v57 = vpop.f32.mrb[203].mxu0  ;;  %11111 = vmatmul.mubr.bf16.gmra.mrb[196].mxu1 %v10521_v11  ;;  %v10367_v18 = vmax.f32 %v12643_v35, 0.0  ;;  %v17799_v35 = vld [vmem:[#allocation180_spill] sm:$0xff]  ;;  %v17800_v3 = vld [vmem:[#allocation181_spill] sm:$0xff] }
 0x74a   :  { %v12649_v33 = vadd.f32 %v12648_v51, %v10034_v57  ;;  %v10368_v7 = vmax.f32 %v12645_v41, 0.0  ;;  %v12658_v28 = vadd.f32 %v17799_v35, %v16589_v20  ;;  %v12660_v41 = vadd.f32 %v17800_v3, %v16591_v16 }
 0x74b   :  { %v17093_v48 = vpack.c.bf16 %v11276_v38, %v11275_v42  ;;  %v10369_v4 = vmax.f32 %v12647_v0, 0.0  ;;  %v17801_v38 = vld [vmem:[#allocation182_spill] sm:$0xff] }
 0x74c   :  { %v10370_v23 = vmax.f32 %v12649_v33, 0.0  ;;  %v10904_v56 = vpop.f32.mrb[92].mxu1  ;;  %v12662_v0 = vadd.f32 %v17801_v38, %v16589_v20 }
 0x74d   :  { %v10523_v13 = vpack.c.bf16 %v10369_v4, %v10367_v18  ;;  %v10905_v55 = vadd.f32 %v16997_v1, %v10904_v56  ;;  %v10906_v5 = vpop.f32.mrb[93].mxu1  ;;  %v17802_v18 = vld [vmem:[#allocation183_spill] sm:$0xff] }
 0x74e   :  { %v10524_v17 = vpack.c.bf16 %v10370_v23, %v10368_v7  ;;  %v10038_v14 = vpop.f32.mrb[204].mxu0  ;;  %v10907_v59 = vpop.f32.mrb[94].mxu1  ;;  %v12664_v4 = vadd.f32 %v17802_v18, %v16591_v16 }
 0x74f   :  { %v12651_v37 = vadd.f32 %v12650_v62, %v10038_v14  ;;  %v10908_v49 = vadd.f32 %v16997_v1, %v10907_v59  ;;  %v10040_v24 = vpop.f32.mrb[205].mxu0  ;;  %v10909_v6 = vpop.f32.mrb[95].mxu1  ;;  %v11277_v36 = vmax.f32 %v10905_v55, 0.0 }
 0x750   :  { %v12653_v47 = vadd.f32 %v12652_v58, %v10040_v24  ;;  %v10042_v22 = vpop.f32.mrb[206].mxu0  ;;  %11118 = vmatprep.mubr.bf16.mxu1 %v10524_v17 }
 0x751   :  { %v11278_v10 = vmax.f32 %v10908_v49, 0.0  ;;  %v12655_v21 = vadd.f32 %v12654_v19, %v10042_v22  ;;  %v10044_v8 = vpop.f32.mrb[207].mxu0  ;;  %11119 = vmatmul.mubr.bf16.gmra.mrb[200].mxu1 %v10523_v13  ;;  %v10371_v52 = vmax.f32 %v12651_v37, 0.0  ;;  %v17803_v49 = vld [vmem:[#allocation184_spill] sm:$0xff] }
 0x752   :  { %v12657_v11 = vadd.f32 %v12656_v12, %v10044_v8  ;;  %v10372_v29 = vmax.f32 %v12653_v47, 0.0  ;;  %v12666_v24 = vadd.f32 %v17803_v49, %v16589_v20  ;;  %v17804_v47 = vld [vmem:[#allocation185_spill] sm:$0xff] }
 0x753   :  { %v17105_v45 = vpack.c.bf16 %v11278_v10, %v11277_v36  ;;  %v10373_v50 = vmax.f32 %v12655_v21, 0.0  ;;  %v12668_v22 = vadd.f32 %v17804_v47, %v16591_v16  ;;  %v17805_v21 = vld [vmem:[#allocation186_spill] sm:$0xff] }
 0x754   :  { %v10374_v46 = vmax.f32 %v12657_v11, 0.0  ;;  %v10912_v15 = vpop.f32.mrb[96].mxu1  ;;  %v12670_v8 = vadd.f32 %v17805_v21, %v16589_v20 }
 0x755   :  { %v10525_v30 = vpack.c.bf16 %v10373_v50, %v10371_v52  ;;  %v10913_v31 = vadd.f32 %v16997_v1, %v10912_v15  ;;  %v10914_v60 = vpop.f32.mrb[97].mxu1  ;;  %v17806_v50 = vld [vmem:[#allocation187_spill] sm:$0xff] }
 0x756   :  { %v10526_v2 = vpack.c.bf16 %v10374_v46, %v10372_v29  ;;  %v10048_v39 = vpop.f32.mrb[208].mxu0  ;;  %v10915_v26 = vpop.f32.mrb[98].mxu1  ;;  %v12672_v29 = vadd.f32 %v17806_v50, %v16591_v16 }
 0x757   :  { %v12659_v34 = vadd.f32 %v12658_v28, %v10048_v39  ;;  %v10916_v54 = vadd.f32 %v16997_v1, %v10915_v26  ;;  %v10050_v51 = vpop.f32.mrb[209].mxu0  ;;  %v10917_v42 = vpop.f32.mrb[99].mxu1  ;;  %v11279_v7 = vmax.f32 %v10913_v31, 0.0 }
 0x758   :  { %v12661_v57 = vadd.f32 %v12660_v41, %v10050_v51  ;;  %v10052_v33 = vpop.f32.mrb[210].mxu0  ;;  %11126 = vmatprep.mubr.bf16.mxu1 %v10526_v2  ;;  %v17807_v51 = vld [vmem:[#allocation188_spill] sm:$0xff] }
 0x759   :  { %v11280_v23 = vmax.f32 %v10916_v54, 0.0  ;;  %v12663_v56 = vadd.f32 %v12662_v0, %v10052_v33  ;;  %v10054_v13 = vpop.f32.mrb[211].mxu0  ;;  %11127 = vmatmul.mubr.bf16.gmra.mrb[204].mxu1 %v10525_v30  ;;  %v10375_v5 = vmax.f32 %v12659_v34, 0.0  ;;  %v12674_v42 = vadd.f32 %v17807_v51, %v16589_v20  ;;  %v17808_v33 = vld [vmem:[#allocation189_spill] sm:$0xff] }
 0x75a   :  { %v12665_v55 = vadd.f32 %v12664_v4, %v10054_v13  ;;  %v10376_v17 = vmax.f32 %v12661_v57, 0.0  ;;  %v12676_v18 = vadd.f32 %v17808_v33, %v16591_v16  ;;  %v17809_v13 = vld [vmem:[#allocation190_spill] sm:$0xff] }
 0x75b   :  { %v12114_v25 = vpack.c.bf16 %v11280_v23, %v11279_v7  ;;  %v10377_v62 = vmax.f32 %v12663_v56, 0.0 }
 0x75c   :  { %v10378_v14 = vmax.f32 %v12665_v55, 0.0  ;;  %v10920_v59 = vpop.f32.mrb[100].mxu1  ;;  %v12678_v55 = vadd.f32 %v17809_v13, %v16589_v20 }
 0x75d   :  { %v10527_v40 = vpack.c.bf16 %v10377_v62, %v10375_v5  ;;  %v10921_v58 = vadd.f32 %v16997_v1, %v10920_v59  ;;  %v10922_v37 = vpop.f32.mrb[101].mxu1  ;;  %12115 = vmatprep.subr.bf16.mxu1 %v12114_v25  ;;  %v17810_v62 = vld [vmem:[#allocation191_spill] sm:$0xff] }
 0x75e   :  { %v10528_v6 = vpack.c.bf16 %v10378_v14, %v10376_v17  ;;  %v10058_v53 = vpop.f32.mrb[212].mxu0  ;;  %v10923_v19 = vpop.f32.mrb[102].mxu1  ;;  %v12680_v17 = vadd.f32 %v17810_v62, %v16591_v16  ;;  %v17816_v62 = vld [vmem:[#allocation197_spill] sm:$0xff] }
 0x75f   :  { %v12667_v27 = vadd.f32 %v12666_v24, %v10058_v53  ;;  %v10924_v12 = vadd.f32 %v16997_v1, %v10923_v19  ;;  %v10060_v36 = vpop.f32.mrb[213].mxu0  ;;  %v10925_v10 = vpop.f32.mrb[103].mxu1  ;;  %v11281_v46 = vmax.f32 %v10921_v58, 0.0 }
 0x760   :  { %v12669_v11 = vadd.f32 %v12668_v22, %v10060_v36  ;;  %v10062_v52 = vpop.f32.mrb[214].mxu0  ;;  %11134 = vmatprep.mubr.bf16.mxu1 %v10528_v6  ;;  %v17811_v36 = vld [vmem:[#allocation192_spill] sm:$0xff] }
 0x761   :  { %v11282_v15 = vmax.f32 %v10924_v12, 0.0  ;;  %v12671_v30 = vadd.f32 %v12670_v8, %v10062_v52  ;;  %v10064_v31 = vpop.f32.mrb[215].mxu0  ;;  %11135 = vmatmul.mubr.bf16.gmra.mrb[208].mxu1 %v10527_v40  ;;  %v10379_v35 = vmax.f32 %v12667_v27, 0.0  ;;  %v12682_v10 = vadd.f32 %v17811_v36, %v16589_v20  ;;  %v17812_v52 = vld [vmem:[#allocation193_spill] sm:$0xff] }
 0x762   :  { %v12673_v60 = vadd.f32 %v12672_v29, %v10064_v31  ;;  %v10380_v39 = vmax.f32 %v12669_v11, 0.0  ;;  %v12684_v50 = vadd.f32 %v17812_v52, %v16591_v16  ;;  %v17813_v31 = vld [vmem:[#allocation194_spill] sm:$0xff] }
 0x763   :  { %v17127_v28 = vpack.c.bf16 %v11282_v15, %v11281_v46  ;;  %v10381_v2 = vmax.f32 %v12671_v30, 0.0 }
 0x764   :  { %v10382_v26 = vmax.f32 %v12673_v60, 0.0  ;;  %v10928_v3 = vpop.f32.mrb[104].mxu1  ;;  %v12686_v60 = vadd.f32 %v17813_v31, %v16589_v20  ;;  %v17819_v31 = vld [vmem:[#allocation200_spill] sm:$0xff] }
 0x765   :  { %v10529_v41 = vpack.c.bf16 %v10381_v2, %v10379_v35  ;;  %v10929_v34 = vadd.f32 %v16997_v1, %v10928_v3  ;;  %v10930_v54 = vpop.f32.mrb[105].mxu1 }
 0x766   :  { %v10530_v38 = vpack.c.bf16 %v10382_v26, %v10380_v39  ;;  %v10068_v0 = vpop.f32.mrb[216].mxu0  ;;  %v10931_v57 = vpop.f32.mrb[106].mxu1  ;;  %v17814_v39 = vld [vmem:[#allocation195_spill] sm:$0xff] }
 0x767   :  { %v12675_v4 = vadd.f32 %v12674_v42, %v10068_v0  ;;  %v10932_v7 = vadd.f32 %v16997_v1, %v10931_v57  ;;  %v10070_v23 = vpop.f32.mrb[217].mxu0  ;;  %v10933_v56 = vpop.f32.mrb[107].mxu1  ;;  %v11283_v14 = vmax.f32 %v10929_v34, 0.0  ;;  %v12688_v26 = vadd.f32 %v17814_v39, %v16591_v16 }
 0x768   :  { %v12677_v5 = vadd.f32 %v12676_v18, %v10070_v23  ;;  %v10072_v25 = vpop.f32.mrb[218].mxu0  ;;  %11142 = vmatprep.mubr.bf16.mxu1 %v10530_v38  ;;  %v17815_v56 = vld [vmem:[#allocation196_spill] sm:$0xff] }
 0x769   :  { %v11284_v59 = vmax.f32 %v10932_v7, 0.0  ;;  %v12679_v40 = vadd.f32 %v12678_v55, %v10072_v25  ;;  %v10074_v58 = vpop.f32.mrb[219].mxu0  ;;  %11143 = vmatmul.mubr.bf16.gmra.mrb[212].mxu1 %v10529_v41  ;;  %v10383_v49 = vmax.f32 %v12675_v4, 0.0  ;;  %v12690_v13 = vadd.f32 %v17815_v56, %v16589_v20 }
 0x76a   :  { %v12681_v37 = vadd.f32 %v12680_v17, %v10074_v58  ;;  %v10384_v53 = vmax.f32 %v12677_v5, 0.0  ;;  %v12692_v17 = vadd.f32 %v17816_v62, %v16591_v16 }
 0x76b   :  { %v17139_v24 = vpack.c.bf16 %v11284_v59, %v11283_v14  ;;  %v10385_v6 = vmax.f32 %v12679_v40, 0.0 }
 0x76c   :  { %v10386_v19 = vmax.f32 %v12681_v37, 0.0  ;;  %v10936_v47 = vpop.f32.mrb[108].mxu1  ;;  %v17817_v37 = vld [vmem:[#allocation198_spill] sm:$0xff] }
 0x76d   :  { %v10531_v22 = vpack.c.bf16 %v10385_v6, %v10383_v49  ;;  %v10937_v27 = vadd.f32 %v16997_v1, %v10936_v47  ;;  %v10938_v12 = vpop.f32.mrb[109].mxu1  ;;  %v12694_v49 = vadd.f32 %v17817_v37, %v16589_v20 }
 0x76e   :  { %v10532_v21 = vpack.c.bf16 %v10386_v19, %v10384_v53  ;;  %v10078_v8 = vpop.f32.mrb[220].mxu0  ;;  %v10939_v11 = vpop.f32.mrb[110].mxu1  ;;  %v17818_v19 = vld [vmem:[#allocation199_spill] sm:$0xff] }
 0x76f   :  { %v12683_v29 = vadd.f32 %v12682_v10, %v10078_v8  ;;  %v10940_v46 = vadd.f32 %v16997_v1, %v10939_v11  ;;  %v10080_v15 = vpop.f32.mrb[221].mxu0  ;;  %v10941_v30 = vpop.f32.mrb[111].mxu1  ;;  %v11285_v3 = vmax.f32 %v10937_v27, 0.0  ;;  %v12696_v47 = vadd.f32 %v17818_v19, %v16591_v16 }
 0x770   :  { %v12685_v35 = vadd.f32 %v12684_v50, %v10080_v15  ;;  %v10082_v2 = vpop.f32.mrb[222].mxu0  ;;  %11150 = vmatprep.mubr.bf16.mxu1 %v10532_v21 }
 0x771   :  { %v11286_v41 = vmax.f32 %v10940_v46, 0.0  ;;  %v12687_v34 = vadd.f32 %v12686_v60, %v10082_v2  ;;  %v10084_v54 = vpop.f32.mrb[223].mxu0  ;;  %11151 = vmatmul.mubr.bf16.gmra.mrb[216].mxu1 %v10531_v22  ;;  %v10387_v42 = vmax.f32 %v12683_v29, 0.0  ;;  %v12698_v60 = vadd.f32 %v17819_v31, %v16589_v20 }
 0x772   :  { %v12689_v51 = vadd.f32 %v12688_v26, %v10084_v54  ;;  %v10388_v57 = vmax.f32 %v12685_v35, 0.0  ;;  %v17820_v26 = vld [vmem:[#allocation201_spill] sm:$0xff] }
 0x773   :  { %v17151_v38 = vpack.c.bf16 %v11286_v41, %v11285_v3  ;;  %v10389_v0 = vmax.f32 %v12687_v34, 0.0  ;;  %v12700_v3 = vadd.f32 %v17820_v26, %v16591_v16 }
 0x774   :  { %v10390_v33 = vmax.f32 %v12689_v51, 0.0  ;;  %v10944_v18 = vpop.f32.mrb[112].mxu1 }
 0x775   :  { %v10533_v4 = vpack.c.bf16 %v10389_v0, %v10387_v42  ;;  %v10945_v7 = vadd.f32 %v16997_v1, %v10944_v18  ;;  %v10946_v23 = vpop.f32.mrb[113].mxu1  ;;  %v17821_v42 = vld [vmem:[#allocation202_spill] sm:$0xff]  ;;  %v17822_v18 = vld [vmem:[#allocation203_spill] sm:$0xff] }
 0x776   :  { %v10534_v55 = vpack.c.bf16 %v10390_v33, %v10388_v57  ;;  %v10088_v5 = vpop.f32.mrb[224].mxu0  ;;  %v10947_v25 = vpop.f32.mrb[114].mxu1  ;;  %v12702_v0 = vadd.f32 %v17821_v42, %v16589_v20 }
 0x777   :  { %v12691_v14 = vadd.f32 %v12690_v13, %v10088_v5  ;;  %v10948_v59 = vadd.f32 %v16997_v1, %v10947_v25  ;;  %v10090_v40 = vpop.f32.mrb[225].mxu0  ;;  %v10949_v58 = vpop.f32.mrb[115].mxu1  ;;  %v11287_v22 = vmax.f32 %v10945_v7, 0.0 }
 0x778   :  { %v12693_v6 = vadd.f32 %v12692_v17, %v10090_v40  ;;  %v10092_v53 = vpop.f32.mrb[226].mxu0  ;;  %11158 = vmatprep.mubr.bf16.mxu1 %v10534_v55 }
 0x779   :  { %v11288_v27 = vmax.f32 %v10948_v59, 0.0  ;;  %v12695_v12 = vadd.f32 %v12694_v49, %v10092_v53  ;;  %v10094_v36 = vpop.f32.mrb[227].mxu0  ;;  %11159 = vmatmul.mubr.bf16.gmra.mrb[220].mxu1 %v10533_v4  ;;  %v10391_v21 = vmax.f32 %v12691_v14, 0.0  ;;  %v12704_v4 = vadd.f32 %v17822_v18, %v16591_v16  ;;  %v17823_v49 = vld [vmem:[#allocation204_spill] sm:$0xff] }
 0x77a   :  { %v12697_v10 = vadd.f32 %v12696_v47, %v10094_v36  ;;  %v10392_v52 = vmax.f32 %v12693_v6, 0.0  ;;  %v12706_v6 = vadd.f32 %v17823_v49, %v16589_v20 }
 0x77b   :  { %v17163_v8 = vpack.c.bf16 %v11288_v27, %v11287_v22  ;;  %v10393_v11 = vmax.f32 %v12695_v12, 0.0  ;;  %v17824_v22 = vld [vmem:[#allocation205_spill] sm:$0xff] }
 0x77c   :  { %v10394_v50 = vmax.f32 %v12697_v10, 0.0  ;;  %v10952_v29 = vpop.f32.mrb[116].mxu1  ;;  %v12708_v27 = vadd.f32 %v17824_v22, %v16591_v16 }
 0x77d   :  { %v10535_v46 = vpack.c.bf16 %v10393_v11, %v10391_v21  ;;  %v10953_v15 = vadd.f32 %v16997_v1, %v10952_v29  ;;  %v10954_v30 = vpop.f32.mrb[117].mxu1  ;;  %v17825_v11 = vld [vmem:[#allocation206_spill] sm:$0xff] }
 0x77e   :  { %v10536_v35 = vpack.c.bf16 %v10394_v50, %v10392_v52  ;;  %v10098_v2 = vpop.f32.mrb[228].mxu0  ;;  %v10955_v39 = vpop.f32.mrb[118].mxu1  ;;  %v12710_v52 = vadd.f32 %v17825_v11, %v16589_v20 }
 0x77f   :  { %v12699_v41 = vadd.f32 %v12698_v60, %v10098_v2  ;;  %v10956_v34 = vadd.f32 %v16997_v1, %v10955_v39  ;;  %v10100_v54 = vpop.f32.mrb[229].mxu0  ;;  %v10957_v51 = vpop.f32.mrb[119].mxu1  ;;  %v11289_v7 = vmax.f32 %v10953_v15, 0.0 }
 0x780   :  { %v12701_v57 = vadd.f32 %v12700_v3, %v10100_v54  ;;  %v10102_v33 = vpop.f32.mrb[230].mxu0  ;;  %11166 = vmatprep.mubr.bf16.mxu1 %v10536_v35 }
 0x781   :  { %v11290_v23 = vmax.f32 %v10956_v34, 0.0  ;;  %v12703_v56 = vadd.f32 %v12702_v0, %v10102_v33  ;;  %v10104_v13 = vpop.f32.mrb[231].mxu0  ;;  %11167 = vmatmul.mubr.bf16.gmra.mrb[224].mxu1 %v10535_v46  ;;  %v10395_v5 = vmax.f32 %v12699_v41, 0.0  ;;  %v17826_v46 = vld [vmem:[#allocation207_spill] sm:$0xff] }
 0x782   :  { %v12705_v55 = vadd.f32 %v12704_v4, %v10104_v13  ;;  %v10396_v17 = vmax.f32 %v12701_v57, 0.0  ;;  %v12712_v15 = vadd.f32 %v17826_v46, %v16591_v16  ;;  %v17827_v57 = vld [vmem:[#allocation208_spill] sm:$0xff] }
 0x783   :  { %v17175_v25 = vpack.c.bf16 %v11290_v23, %v11289_v7  ;;  %v10397_v62 = vmax.f32 %v12703_v56, 0.0  ;;  %v12714_v33 = vadd.f32 %v17827_v57, %v16589_v20  ;;  %v17828_v23 = vld [vmem:[#allocation209_spill] sm:$0xff] }
 0x784   :  { %v10398_v14 = vmax.f32 %v12705_v55, 0.0  ;;  %v10960_v59 = vpop.f32.mrb[120].mxu1  ;;  %v12716_v56 = vadd.f32 %v17828_v23, %v16591_v16 }
 0x785   :  { %v10537_v40 = vpack.c.bf16 %v10397_v62, %v10395_v5  ;;  %v10961_v58 = vadd.f32 %v16997_v1, %v10960_v59  ;;  %v10962_v37 = vpop.f32.mrb[121].mxu1 }
 0x786   :  { %v10538_v53 = vpack.c.bf16 %v10398_v14, %v10396_v17  ;;  %v10108_v19 = vpop.f32.mrb[232].mxu0  ;;  %v10963_v47 = vpop.f32.mrb[122].mxu1  ;;  %v17829_v17 = vld [vmem:[#allocation210_spill] sm:$0xff] }
 0x787   :  { %v12707_v12 = vadd.f32 %v12706_v6, %v10108_v19  ;;  %v10964_v36 = vadd.f32 %v16997_v1, %v10963_v47  ;;  %v10110_v10 = vpop.f32.mrb[233].mxu0  ;;  %v10965_v21 = vpop.f32.mrb[123].mxu1  ;;  %v11291_v30 = vmax.f32 %v10961_v58, 0.0  ;;  %v12718_v14 = vadd.f32 %v17829_v17, %v16589_v20  ;;  %v17830_v58 = vld [vmem:[#allocation211_spill] sm:$0xff] }
 0x788   :  { %v12709_v50 = vadd.f32 %v12708_v27, %v10110_v10  ;;  %v10112_v29 = vpop.f32.mrb[234].mxu0  ;;  %11174 = vmatprep.mubr.bf16.mxu1 %v10538_v53  ;;  %v12720_v37 = vadd.f32 %v17830_v58, %v16591_v16  ;;  %v17835_v58 = vld [vmem:[#allocation216_spill] sm:$0xff] }
 0x789   :  { %v11292_v31 = vmax.f32 %v10964_v36, 0.0  ;;  %v12711_v60 = vadd.f32 %v12710_v52, %v10112_v29  ;;  %v10114_v35 = vpop.f32.mrb[235].mxu0  ;;  %11175 = vmatmul.mubr.bf16.gmra.mrb[228].mxu1 %v10537_v40  ;;  %v10399_v39 = vmax.f32 %v12707_v12, 0.0  ;;  %v17831_v29 = vld [vmem:[#allocation212_spill] sm:$0xff] }
 0x78a   :  { %v12713_v2 = vadd.f32 %v12712_v15, %v10114_v35  ;;  %v10400_v41 = vmax.f32 %v12709_v50, 0.0  ;;  %v12722_v46 = vadd.f32 %v17831_v29, %v16589_v20  ;;  %v17838_v29 = vld [vmem:[#allocation219_spill] sm:$0xff] }
 0x78b   :  { %v17187_v26 = vpack.c.bf16 %v11292_v31, %v11291_v30  ;;  %v10401_v3 = vmax.f32 %v12711_v60, 0.0  ;;  %v17832_v60 = vld [vmem:[#allocation213_spill] sm:$0xff] }
 0x78c   :  { %v10402_v34 = vmax.f32 %v12713_v2, 0.0  ;;  %v10968_v54 = vpop.f32.mrb[124].mxu1  ;;  %v12724_v35 = vadd.f32 %v17832_v60, %v16591_v16 }
 0x78d   :  { %v10539_v51 = vpack.c.bf16 %v10401_v3, %v10399_v39  ;;  %v10969_v42 = vadd.f32 %v16997_v1, %v10968_v54  ;;  %v10970_v0 = vpop.f32.mrb[125].mxu1 }
 0x78e   :  { %v10540_v18 = vpack.c.bf16 %v10402_v34, %v10400_v41  ;;  %v10118_v4 = vpop.f32.mrb[236].mxu0  ;;  %v10971_v7 = vpop.f32.mrb[126].mxu1  ;;  %v17833_v34 = vld [vmem:[#allocation214_spill] sm:$0xff]  ;;  %v17834_v0 = vld [vmem:[#allocation215_spill] sm:$0xff] }
 0x78f   :  { %v12715_v13 = vadd.f32 %v12714_v33, %v10118_v4  ;;  %v10972_v55 = vadd.f32 %v16997_v1, %v10971_v7  ;;  %v10120_v5 = vpop.f32.mrb[237].mxu0  ;;  %v10973_v62 = vpop.f32.mrb[127].mxu1  ;;  %v11293_v49 = vmax.f32 %v10969_v42, 0.0  ;;  %v12726_v54 = vadd.f32 %v17833_v34, %v16589_v20 }
 0x790   :  { %v12717_v59 = vadd.f32 %v12716_v56, %v10120_v5  ;;  %v10122_v40 = vpop.f32.mrb[238].mxu0  ;;  %11182 = vmatprep.mubr.bf16.mxu1 %v10540_v18  ;;  %v12728_v57 = vadd.f32 %v17834_v0, %v16591_v16 }
 0x791   :  { %v11294_v6 = vmax.f32 %v10972_v55, 0.0  ;;  %v12719_v53 = vadd.f32 %v12718_v14, %v10122_v40  ;;  %v10124_v19 = vpop.f32.mrb[239].mxu0  ;;  %11183 = vmatmul.mubr.bf16.gmra.mrb[232].mxu1 %v10539_v51  ;;  %v10403_v22 = vmax.f32 %v12715_v13, 0.0  ;;  %v17216_v14 = vld [vmem:[%s17408_s4] ss:$0 sm:$0xff] }
 0x792   :  { %v12721_v47 = vadd.f32 %v12720_v37, %v10124_v19  ;;  %v10404_v36 = vmax.f32 %v12717_v59, 0.0  ;;  %v12730_v37 = vadd.f32 %v17835_v58, %v16589_v20  ;;  %v17836_v19 = vld [vmem:[#allocation217_spill] sm:$0xff] }
 0x793   :  { %v17199_v27 = vpack.c.bf16 %v11294_v6, %v11293_v49  ;;  %v10405_v12 = vmax.f32 %v12719_v53, 0.0 }
 0x794   :  { %v10406_v10 = vmax.f32 %v12721_v47, 0.0  ;;  %v10976_v21 = vpop.f32.mrb[128].mxu1  ;;  %v12732_v47 = vadd.f32 %v17836_v19, %v16591_v16 }
 0x795   :  { %v10541_v11 = vpack.c.bf16 %v10405_v12, %v10403_v22  ;;  %v10977_v52 = vadd.f32 %v16997_v1, %v10976_v21  ;;  %v10978_v50 = vpop.f32.mrb[129].mxu1  ;;  %v17837_v21 = vld [vmem:[#allocation218_spill] sm:$0xff] }
 0x796   :  { %v10542_v15 = vpack.c.bf16 %v10406_v10, %v10404_v36  ;;  %v10128_v30 = vpop.f32.mrb[240].mxu0  ;;  %v10979_v31 = vpop.f32.mrb[130].mxu1 }
 0x797   :  { %v12723_v2 = vadd.f32 %v12722_v46, %v10128_v30  ;;  %v10980_v39 = vadd.f32 %v16997_v1, %v10979_v31  ;;  %v10130_v3 = vpop.f32.mrb[241].mxu0  ;;  %v10981_v41 = vpop.f32.mrb[131].mxu1  ;;  %v11295_v33 = vmax.f32 %v10977_v52, 0.0  ;;  %v12736_v46 = vadd.f32 %v17838_v29, %v16591_v16 }
 0x798   :  { %v12725_v51 = vadd.f32 %v12724_v35, %v10130_v3  ;;  %v10132_v42 = vpop.f32.mrb[242].mxu0  ;;  %11190 = vmatprep.mubr.bf16.mxu1 %v10542_v15 }
 0x799   :  { %v11296_v18 = vmax.f32 %v10980_v39, 0.0  ;;  %v12727_v4 = vadd.f32 %v12726_v54, %v10132_v42  ;;  %v10134_v7 = vpop.f32.mrb[243].mxu0  ;;  %11191 = vmatmul.mubr.bf16.gmra.mrb[236].mxu1 %v10541_v11  ;;  %v10407_v56 = vmax.f32 %v12723_v2, 0.0  ;;  %v12734_v11 = vadd.f32 %v17837_v21, %v16589_v20 }
 0x79a   :  { %v12729_v23 = vadd.f32 %v12728_v57, %v10134_v7  ;;  %v10408_v55 = vmax.f32 %v12725_v51, 0.0  ;;  %v17839_v57 = vld [vmem:[#allocation220_spill] sm:$0xff] }
 0x79b   :  { %v17211_v13 = vpack.c.bf16 %v11296_v18, %v11295_v33  ;;  %v10409_v1 = vmax.f32 %v12727_v4, 0.0  ;;  %v12738_v33 = vadd.f32 %v17839_v57, %v16589_v20 }
 0x79c   :  { %v10410_v5 = vmax.f32 %v12729_v23, 0.0  ;;  %v10984_v62 = vpop.f32.mrb[132].mxu1  ;;  %v17840_v23 = vld [vmem:[#allocation221_spill] sm:$0xff] }
 0x79d   :  { %v10543_v17 = vpack.c.bf16 %v10409_v1, %v10407_v56  ;;  %v10985_v59 = vadd.f32 %v17216_v14, %v10984_v62  ;;  %v10986_v40 = vpop.f32.mrb[133].mxu1  ;;  %v12740_v56 = vadd.f32 %v17840_v23, %v16591_v16 }
 0x79e   :  { %v10544_v49 = vpack.c.bf16 %v10410_v5, %v10408_v55  ;;  %v10138_v6 = vpop.f32.mrb[244].mxu0  ;;  %v10987_v53 = vpop.f32.mrb[134].mxu1 }
 0x79f   :  { %v12731_v22 = vadd.f32 %v12730_v37, %v10138_v6  ;;  %v10988_v12 = vadd.f32 %v17216_v14, %v10987_v53  ;;  %v10140_v36 = vpop.f32.mrb[245].mxu0  ;;  %v10989_v10 = vpop.f32.mrb[135].mxu1  ;;  %v11297_v15 = vmax.f32 %v10985_v59, 0.0  ;;  %v17842_v37 = vld [vmem:[#allocation223_spill] sm:$0xff] }
 0x7a0   :  { %v12733_v52 = vadd.f32 %v12732_v47, %v10140_v36  ;;  %v10142_v50 = vpop.f32.mrb[246].mxu0  ;;  %11198 = vmatprep.mubr.bf16.mxu1 %v10544_v49  ;;  %v12744_v49 = vadd.f32 %v17842_v37, %v16591_v16 }
 0x7a1   :  { %v11298_v30 = vmax.f32 %v10988_v12, 0.0  ;;  %v12735_v31 = vadd.f32 %v12734_v11, %v10142_v50  ;;  %v10144_v60 = vpop.f32.mrb[247].mxu0  ;;  %11199 = vmatmul.mubr.bf16.gmra.mrb[240].mxu1 %v10543_v17  ;;  %v10411_v2 = vmax.f32 %v12731_v22, 0.0  ;;  %v17841_v17 = vld [vmem:[#allocation222_spill] sm:$0xff] }
 0x7a2   :  { %v12737_v35 = vadd.f32 %v12736_v46, %v10144_v60  ;;  %v10412_v41 = vmax.f32 %v12733_v52, 0.0  ;;  %v12742_v59 = vadd.f32 %v17841_v17, %v16589_v20 }
 0x7a3   :  { %v17228_v39 = vpack.c.bf16 %v11298_v30, %v11297_v15  ;;  %v10413_v3 = vmax.f32 %v12735_v31, 0.0  ;;  %v17843_v15 = vld [vmem:[#allocation224_spill] sm:$0xff] }
 0x7a4   :  { %v10414_v34 = vmax.f32 %v12737_v35, 0.0  ;;  %v10992_v54 = vpop.f32.mrb[136].mxu1  ;;  %v12746_v30 = vadd.f32 %v17843_v15, %v16589_v20 }
 0x7a5   :  { %v10545_v51 = vpack.c.bf16 %v10413_v3, %v10411_v2  ;;  %v10993_v42 = vadd.f32 %v17216_v14, %v10992_v54  ;;  %v10994_v0 = vpop.f32.mrb[137].mxu1  ;;  %v17844_v2 = vld [vmem:[#allocation225_spill] sm:$0xff] }
 0x7a6   :  { %v10546_v18 = vpack.c.bf16 %v10414_v34, %v10412_v41  ;;  %v10148_v4 = vpop.f32.mrb[248].mxu0  ;;  %v10995_v7 = vpop.f32.mrb[138].mxu1  ;;  %v12748_v3 = vadd.f32 %v17844_v2, %v16591_v16 }
 0x7a7   :  { %v12739_v1 = vadd.f32 %v12738_v33, %v10148_v4  ;;  %v10996_v55 = vadd.f32 %v17216_v14, %v10995_v7  ;;  %v10150_v5 = vpop.f32.mrb[249].mxu0  ;;  %v10997_v62 = vpop.f32.mrb[139].mxu1  ;;  %v11299_v6 = vmax.f32 %v10993_v42, 0.0  ;;  %v17845_v42 = vld [vmem:[#allocation226_spill] sm:$0xff] }
 0x7a8   :  { %v12741_v40 = vadd.f32 %v12740_v56, %v10150_v5  ;;  %v10152_v58 = vpop.f32.mrb[250].mxu0  ;;  %11206 = vmatprep.mubr.bf16.mxu1 %v10546_v18  ;;  %v12750_v0 = vadd.f32 %v17845_v42, %v16589_v20  ;;  %v17846_v18 = vld [vmem:[#allocation227_spill] sm:$0xff] }
 0x7a9   :  { %v11300_v53 = vmax.f32 %v10996_v55, 0.0  ;;  %v12743_v19 = vadd.f32 %v12742_v59, %v10152_v58  ;;  %v10154_v47 = vpop.f32.mrb[251].mxu0  ;;  %11207 = vmatmul.mubr.bf16.gmra.mrb[244].mxu1 %v10545_v51  ;;  %v10415_v12 = vmax.f32 %v12739_v1, 0.0  ;;  %v12752_v4 = vadd.f32 %v17846_v18, %v16591_v16 }
 0x7aa   :  { %v12745_v22 = vadd.f32 %v12744_v49, %v10154_v47  ;;  %v10416_v21 = vmax.f32 %v12741_v40, 0.0  ;;  %v17259_v47 = vld [vmem:[%s17409_s5] sm:$0x1] }
 0x7ab   :  { %v17240_v36 = vpack.c.bf16 %v11300_v53, %v11299_v6  ;;  %v10417_v10 = vmax.f32 %v12743_v19, 0.0 }
 0x7ac   :  { %v10418_v11 = vmax.f32 %v12745_v22, 0.0  ;;  %v11000_v52 = vpop.f32.mrb[140].mxu1 }
 0x7ad   :  { %v10547_v50 = vpack.c.bf16 %v10417_v10, %v10415_v12  ;;  %v11001_v29 = vadd.f32 %v17216_v14, %v11000_v52  ;;  %v11002_v46 = vpop.f32.mrb[141].mxu1 }
 0x7ae   :  { %v10548_v31 = vpack.c.bf16 %v10418_v11, %v10416_v21  ;;  %v10158_v60 = vpop.f32.mrb[252].mxu0  ;;  %v11003_v35 = vpop.f32.mrb[142].mxu1 }
 0x7af   :  { %v12747_v41 = vadd.f32 %v12746_v30, %v10158_v60  ;;  %v11004_v34 = vadd.f32 %v17216_v14, %v11003_v35  ;;  %v10160_v54 = vpop.f32.mrb[253].mxu0  ;;  %v11005_v51 = vpop.f32.mrb[143].mxu1  ;;  %v11301_v7 = vmax.f32 %v11001_v29, 0.0 }
 0x7b0   :  { %v12749_v57 = vadd.f32 %v12748_v3, %v10160_v54  ;;  %v10162_v33 = vpop.f32.mrb[254].mxu0  ;;  %11214 = vmatprep.mubr.bf16.mxu1 %v10548_v31 }
 0x7b1   :  { %v11302_v23 = vmax.f32 %v11004_v34, 0.0  ;;  %v12751_v56 = vadd.f32 %v12750_v0, %v10162_v33  ;;  %v10164_v1 = vpop.f32.mrb[255].mxu0  ;;  %11215 = vmatmul.mubr.bf16.gmra.mrb[248].mxu1 %v10547_v50  ;;  %v10419_v5 = vmax.f32 %v12747_v41, 0.0 }
 0x7b2   :  { %v12753_v55 = vadd.f32 %v12752_v4, %v10164_v1  ;;  %v10420_v59 = vmax.f32 %v12749_v57, 0.0 }
 0x7b3   :  { %v17252_v62 = vpack.c.bf16 %v11302_v23, %v11301_v7  ;;  %v10421_v17 = vmax.f32 %v12751_v56, 0.0 }
 0x7b4   :  { %v10422_v40 = vmax.f32 %v12753_v55, 0.0  ;;  %v11008_v58 = vpop.f32.mrb[144].mxu1 }
 0x7b5   :  { %v10549_v20 = vpack.c.bf16 %v10421_v17, %v10419_v5  ;;  %v11009_v37 = vadd.f32 %v17216_v14, %v11008_v58  ;;  %v11010_v49 = vpop.f32.mrb[145].mxu1 }
 0x7b6   :  { %v10550_v6 = vpack.c.bf16 %v10422_v40, %v10420_v59  ;;  %v11011_v53 = vpop.f32.mrb[146].mxu1 }
 0x7b7   :  { %v11012_v16 = vadd.f32 %v17216_v14, %v11011_v53  ;;  %v11013_v19 = vpop.f32.mrb[147].mxu1  ;;  %v11303_v22 = vmax.f32 %v11009_v37, 0.0 }
 0x7b8   :  { %11222 = vmatprep.mubr.bf16.mxu1 %v10550_v6 }
 0x7b9   :  { %v11304_v12 = vmax.f32 %v11012_v16, 0.0  ;;  %11223 = vmatmul.mubr.bf16.gmra.mrb[252].mxu1 %v10549_v20 }
 0x7ba   :  { %11978 = vmatprep.mubr.f32.mxu1 %v17259_v47 }
 0x7bb   :  { %v17262_v10 = vpack.c.bf16 %v11304_v12, %v11303_v22 }
 0x7bc   :  { %v11016_v21 = vpop.f32.mrb[148].mxu1 }
 0x7bd   :  { %v11017_v11 = vadd.f32 %v17216_v14, %v11016_v21  ;;  %v11018_v52 = vpop.f32.mrb[149].mxu1 }
 0x7be   :  { %v11019_v50 = vpop.f32.mrb[150].mxu1 }
 0x7bf   :  { %v11020_v29 = vadd.f32 %v17216_v14, %v11019_v50  ;;  %v11021_v46 = vpop.f32.mrb[151].mxu1  ;;  %v11305_v15 = vmax.f32 %v11017_v11, 0.0 }
 0x7c1   :  { %v11306_v30 = vmax.f32 %v11020_v29, 0.0  ;;  %11979 = vmatmul.mubr.f32.vlgmr.msra.gmra.mrb[0].mxu1 %v17259_v47 }
 0x7c2   :  { %12117 = vmatpush3.bf16.xpose.msra.mxu1 %v17021_v61  ;;  %12012 = vmatprep.mubr.f32.mxu1 %v17259_v47 }
 0x7c3   :  { %v17269_v31 = vpack.c.bf16 %v11306_v30, %v11305_v15  ;;  %12119 = vmatprep.subr.bf16.mxu1 %v17127_v28 }
 0x7c4   :  { %v11024_v60 = vpop.f32.mrb[152].mxu1 }
 0x7c5   :  { %v11025_v35 = vadd.f32 %v17216_v14, %v11024_v60  ;;  %v11026_v2 = vpop.f32.mrb[153].mxu1 }
 0x7c6   :  { %v11027_v3 = vpop.f32.mrb[154].mxu1 }
 0x7c7   :  { %v11028_v41 = vadd.f32 %v17216_v14, %v11027_v3  ;;  %v11029_v34 = vpop.f32.mrb[155].mxu1  ;;  %v11307_v54 = vmax.f32 %v11025_v35, 0.0 }
 0x7c9   :  { %v11308_v51 = vmax.f32 %v11028_v41, 0.0 }
 0x7ca   :  { %12121 = vmatpush3.bf16.xpose.msra.mxu1 %v17033_v63 }
 0x7cb   :  { %v17275_v42 = vpack.c.bf16 %v11308_v51, %v11307_v54  ;;  %12123 = vmatprep.subr.bf16.mxu1 %v17139_v24 }
 0x7cc   :  { %v11032_v61 = vpop.f32.mrb[156].mxu1 }
 0x7cd   :  { %v11033_v0 = vadd.f32 %v17216_v14, %v11032_v61  ;;  %v11034_v28 = vpop.f32.mrb[157].mxu1 }
 0x7ce   :  { %v11035_v57 = vpop.f32.mrb[158].mxu1 }
 0x7cf   :  { %v11036_v33 = vadd.f32 %v17216_v14, %v11035_v57  ;;  %v11037_v18 = vpop.f32.mrb[159].mxu1  ;;  %v11309_v4 = vmax.f32 %v11033_v0, 0.0 }
 0x7d1   :  { %v11310_v7 = vmax.f32 %v11036_v33, 0.0 }
 0x7d2   :  { %12125 = vmatpush3.bf16.xpose.msra.mxu1 %v17045_v44 }
 0x7d3   :  { %v17281_v23 = vpack.c.bf16 %v11310_v7, %v11309_v4  ;;  %12127 = vmatprep.subr.bf16.mxu1 %v17151_v38 }
 0x7d4   :  { %v11040_v63 = vpop.f32.mrb[160].mxu1 }
 0x7d5   :  { %v11041_v56 = vadd.f32 %v17216_v14, %v11040_v63  ;;  %v11042_v24 = vpop.f32.mrb[161].mxu1 }
 0x7d6   :  { %v11043_v1 = vpop.f32.mrb[162].mxu1 }
 0x7d7   :  { %v11044_v55 = vadd.f32 %v17216_v14, %v11043_v1  ;;  %v11045_v5 = vpop.f32.mrb[163].mxu1  ;;  %v11311_v17 = vmax.f32 %v11041_v56, 0.0 }
 0x7d9   :  { %v11312_v59 = vmax.f32 %v11044_v55, 0.0 }
 0x7da   :  { %12129 = vmatpush3.bf16.xpose.msra.mxu1 %v17057_v32 }
 0x7db   :  { %v12146_v40 = vpack.c.bf16 %v11312_v59, %v11311_v17  ;;  %12131 = vmatprep.subr.bf16.mxu1 %v17163_v8 }
 0x7dc   :  { %v11048_v44 = vpop.f32.mrb[164].mxu1 }
 0x7dd   :  { %v11049_v58 = vadd.f32 %v17216_v14, %v11048_v44  ;;  %v11050_v20 = vpop.f32.mrb[165].mxu1 }
 0x7de   :  { %v11051_v38 = vpop.f32.mrb[166].mxu1 }
 0x7df   :  { %v11052_v37 = vadd.f32 %v17216_v14, %v11051_v38  ;;  %v11053_v49 = vpop.f32.mrb[167].mxu1  ;;  %v11313_v6 = vmax.f32 %v11049_v58, 0.0 }
 0x7e1   :  { %v11314_v53 = vmax.f32 %v11052_v37, 0.0 }
 0x7e2   :  { %12133 = vmatpush3.bf16.xpose.msra.mxu1 %v17069_v43 }
 0x7e3   :  { %v12150_v16 = vpack.c.bf16 %v11314_v53, %v11313_v6  ;;  %12135 = vmatprep.subr.bf16.mxu1 %v17175_v25 }
 0x7e4   :  { %v11056_v19 = vpop.f32.mrb[168].mxu1 }
 0x7e5   :  { %v11057_v32 = vadd.f32 %v17216_v14, %v11056_v19  ;;  %v11058_v22 = vpop.f32.mrb[169].mxu1 }
 0x7e6   :  { %v11059_v8 = vpop.f32.mrb[170].mxu1 }
 0x7e7   :  { %v11060_v12 = vadd.f32 %v17216_v14, %v11059_v8  ;;  %v11061_v21 = vpop.f32.mrb[171].mxu1  ;;  %v11315_v11 = vmax.f32 %v11057_v32, 0.0 }
 0x7e9   :  { %v11316_v52 = vmax.f32 %v11060_v12, 0.0 }
 0x7ea   :  { %12137 = vmatpush3.bf16.xpose.msra.mxu1 %v17081_v9 }
 0x7eb   :  { %v12154_v50 = vpack.c.bf16 %v11316_v52, %v11315_v11  ;;  %12139 = vmatprep.subr.bf16.mxu1 %v17187_v26 }
 0x7ec   :  { %v11064_v29 = vpop.f32.mrb[172].mxu1 }
 0x7ed   :  { %v11065_v43 = vadd.f32 %v17216_v14, %v11064_v29  ;;  %v11066_v46 = vpop.f32.mrb[173].mxu1 }
 0x7ee   :  { %v11067_v25 = vpop.f32.mrb[174].mxu1 }
 0x7ef   :  { %v11068_v15 = vadd.f32 %v17216_v14, %v11067_v25  ;;  %v11069_v30 = vpop.f32.mrb[175].mxu1  ;;  %v11317_v60 = vmax.f32 %v11065_v43, 0.0 }
 0x7f1   :  { %v11318_v35 = vmax.f32 %v11068_v15, 0.0 }
 0x7f2   :  { %12141 = vmatpush3.bf16.xpose.msra.mxu1 %v17093_v48 }
 0x7f3   :  { %v12158_v2 = vpack.c.bf16 %v11318_v35, %v11317_v60  ;;  %12143 = vmatprep.subr.bf16.mxu1 %v17199_v27 }
 0x7f4   :  { %v11072_v3 = vpop.f32.mrb[176].mxu1 }
 0x7f5   :  { %v11073_v9 = vadd.f32 %v17216_v14, %v11072_v3  ;;  %v11074_v41 = vpop.f32.mrb[177].mxu1 }
 0x7f6   :  { %v11075_v26 = vpop.f32.mrb[178].mxu1 }
 0x7f7   :  { %v11076_v34 = vadd.f32 %v17216_v14, %v11075_v26  ;;  %v11077_v54 = vpop.f32.mrb[179].mxu1  ;;  %v11319_v51 = vmax.f32 %v11073_v9, 0.0 }
 0x7f9   :  { %v11320_v61 = vmax.f32 %v11076_v34, 0.0 }
 0x7fa   :  { %12145 = vmatpush3.bf16.xpose.msra.mxu1 %v17105_v45 }
 0x7fb   :  { %v12162_v0 = vpack.c.bf16 %v11320_v61, %v11319_v51  ;;  %12147 = vmatprep.subr.bf16.mxu1 %v12146_v40 }
 0x7fc   :  { %v11080_v28 = vpop.f32.mrb[180].mxu1 }
 0x7fd   :  { %v11081_v48 = vadd.f32 %v17216_v14, %v11080_v28  ;;  %v11082_v57 = vpop.f32.mrb[181].mxu1 }
 0x7fe   :  { %v11083_v33 = vpop.f32.mrb[182].mxu1 }
 0x7ff   :  { %v11084_v27 = vadd.f32 %v17216_v14, %v11083_v33  ;;  %v11085_v18 = vpop.f32.mrb[183].mxu1  ;;  %v11321_v4 = vmax.f32 %v11081_v48, 0.0 }
 0x801   :  { %v11322_v7 = vmax.f32 %v11084_v27, 0.0  ;;  %12013 = vmatmul.mubr.f32.vlgmr.msra.gmra.mrb[2].mxu1 %v17259_v47 }
 0x802   :  { %12149 = vmatpush3.bf16.xpose.msra.mxu1 %v17211_v13  ;;  %12046 = vmatprep.mubr.f32.mxu1 %v17259_v47 }
 0x803   :  { %v12166_v63 = vpack.c.bf16 %v11322_v7, %v11321_v4  ;;  %12151 = vmatprep.subr.bf16.mxu1 %v12150_v16 }
 0x804   :  { %v11088_v45 = vpop.f32.mrb[184].mxu1 }
 0x805   :  { %v11089_v56 = vadd.f32 %v17216_v14, %v11088_v45  ;;  %v11090_v24 = vpop.f32.mrb[185].mxu1 }
 0x806   :  { %v11091_v1 = vpop.f32.mrb[186].mxu1 }
 0x807   :  { %v11092_v55 = vadd.f32 %v17216_v14, %v11091_v1  ;;  %v11093_v5 = vpop.f32.mrb[187].mxu1  ;;  %v11323_v17 = vmax.f32 %v11089_v56, 0.0 }
 0x809   :  { %v11324_v59 = vmax.f32 %v11092_v55, 0.0 }
 0x80a   :  { %12153 = vmatpush3.bf16.xpose.msra.mxu1 %v17228_v39 }
 0x80b   :  { %v12170_v40 = vpack.c.bf16 %v11324_v59, %v11323_v17  ;;  %12155 = vmatprep.subr.bf16.mxu1 %v12154_v50 }
 0x80c   :  { %v11096_v44 = vpop.f32.mrb[188].mxu1 }
 0x80d   :  { %v11097_v13 = vadd.f32 %v17216_v14, %v11096_v44  ;;  %v11098_v58 = vpop.f32.mrb[189].mxu1 }
 0x80e   :  { %v11099_v20 = vpop.f32.mrb[190].mxu1 }
 0x80f   :  { %v11100_v38 = vadd.f32 %v17216_v14, %v11099_v20  ;;  %v11101_v37 = vpop.f32.mrb[191].mxu1  ;;  %v11325_v49 = vmax.f32 %v11097_v13, 0.0 }
 0x811   :  { %v11326_v6 = vmax.f32 %v11100_v38, 0.0 }
 0x812   :  { %12157 = vmatpush3.bf16.xpose.msra.mxu1 %v17240_v36 }
 0x813   :  { %v12174_v53 = vpack.c.bf16 %v11326_v6, %v11325_v49  ;;  %12159 = vmatprep.subr.bf16.mxu1 %v12158_v2 }
 0x814   :  { %v11104_v16 = vpop.f32.mrb[192].mxu1 }
 0x815   :  { %v11105_v19 = vadd.f32 %v17216_v14, %v11104_v16  ;;  %v11106_v39 = vpop.f32.mrb[193].mxu1 }
 0x816   :  { %v11107_v32 = vpop.f32.mrb[194].mxu1 }
 0x817   :  { %v11108_v22 = vadd.f32 %v17216_v14, %v11107_v32  ;;  %v11109_v8 = vpop.f32.mrb[195].mxu1  ;;  %v11327_v12 = vmax.f32 %v11105_v19, 0.0 }
 0x819   :  { %v11328_v21 = vmax.f32 %v11108_v22, 0.0 }
 0x81a   :  { %12161 = vmatpush3.bf16.xpose.msra.mxu1 %v17252_v62 }
 0x81b   :  { %v17317_v11 = vpack.c.bf16 %v11328_v21, %v11327_v12  ;;  %12163 = vmatprep.subr.bf16.mxu1 %v12162_v0 }
 0x81c   :  { %v11112_v52 = vpop.f32.mrb[196].mxu1 }
 0x81d   :  { %v11113_v36 = vadd.f32 %v17216_v14, %v11112_v52  ;;  %v11114_v50 = vpop.f32.mrb[197].mxu1 }
 0x81e   :  { %v11115_v29 = vpop.f32.mrb[198].mxu1 }
 0x81f   :  { %v11116_v43 = vadd.f32 %v17216_v14, %v11115_v29  ;;  %v11117_v46 = vpop.f32.mrb[199].mxu1  ;;  %v11329_v25 = vmax.f32 %v11113_v36, 0.0 }
 0x821   :  { %v11330_v15 = vmax.f32 %v11116_v43, 0.0 }
 0x822   :  { %12165 = vmatpush3.bf16.xpose.msra.mxu1 %v17262_v10 }
 0x823   :  { %v17322_v30 = vpack.c.bf16 %v11330_v15, %v11329_v25  ;;  %12167 = vmatprep.subr.bf16.mxu1 %v12166_v63 }
 0x824   :  { %v11120_v60 = vpop.f32.mrb[200].mxu1 }
 0x825   :  { %v11121_v62 = vadd.f32 %v17216_v14, %v11120_v60  ;;  %v11122_v35 = vpop.f32.mrb[201].mxu1 }
 0x826   :  { %v11123_v2 = vpop.f32.mrb[202].mxu1 }
 0x827   :  { %v11124_v3 = vadd.f32 %v17216_v14, %v11123_v2  ;;  %v11125_v9 = vpop.f32.mrb[203].mxu1  ;;  %v11331_v41 = vmax.f32 %v11121_v62, 0.0 }
 0x829   :  { %v11332_v26 = vmax.f32 %v11124_v3, 0.0 }
 0x82a   :  { %12169 = vmatpush3.bf16.xpose.msra.mxu1 %v17269_v31 }
 0x82b   :  { %v17327_v34 = vpack.c.bf16 %v11332_v26, %v11331_v41  ;;  %12171 = vmatprep.subr.bf16.mxu1 %v12170_v40 }
 0x82c   :  { %v11128_v54 = vpop.f32.mrb[204].mxu1 }
 0x82d   :  { %v11129_v10 = vadd.f32 %v17216_v14, %v11128_v54  ;;  %v11130_v51 = vpop.f32.mrb[205].mxu1 }
 0x82e   :  { %v11131_v61 = vpop.f32.mrb[206].mxu1 }
 0x82f   :  { %v11132_v0 = vadd.f32 %v17216_v14, %v11131_v61  ;;  %v11133_v28 = vpop.f32.mrb[207].mxu1  ;;  %v11333_v48 = vmax.f32 %v11129_v10, 0.0 }
 0x831   :  { %v11334_v57 = vmax.f32 %v11132_v0, 0.0 }
 0x832   :  { %12173 = vmatpush3.bf16.xpose.msra.mxu1 %v17275_v42 }
 0x833   :  { %v17332_v33 = vpack.c.bf16 %v11334_v57, %v11333_v48  ;;  %12175 = vmatprep.subr.bf16.mxu1 %v12174_v53 }
 0x834   :  { %v11136_v27 = vpop.f32.mrb[208].mxu1 }
 0x835   :  { %v11137_v31 = vadd.f32 %v17216_v14, %v11136_v27  ;;  %v11138_v18 = vpop.f32.mrb[209].mxu1 }
 0x836   :  { %v11139_v4 = vpop.f32.mrb[210].mxu1 }
 0x837   :  { %v11140_v7 = vadd.f32 %v17216_v14, %v11139_v4  ;;  %v11141_v63 = vpop.f32.mrb[211].mxu1  ;;  %v11335_v45 = vmax.f32 %v11137_v31, 0.0 }
 0x839   :  { %v11336_v56 = vmax.f32 %v11140_v7, 0.0 }
 0x83a   :  { %12177 = vmatpush3.bf16.xpose.msra.mxu1 %v17281_v23 }
 0x83b   :  { %v17337_v24 = vpack.c.bf16 %v11336_v56, %v11335_v45 }
 0x83c   :  { %v11144_v1 = vpop.f32.mrb[212].mxu1 }
 0x83d   :  { %v11145_v42 = vadd.f32 %v17216_v14, %v11144_v1  ;;  %v11146_v55 = vpop.f32.mrb[213].mxu1 }
 0x83e   :  { %v11147_v5 = vpop.f32.mrb[214].mxu1 }
 0x83f   :  { %v11148_v17 = vadd.f32 %v17216_v14, %v11147_v5  ;;  %v11149_v59 = vpop.f32.mrb[215].mxu1  ;;  %v11337_v40 = vmax.f32 %v11145_v42, 0.0 }
 0x841   :  { %v11338_v44 = vmax.f32 %v11148_v17, 0.0  ;;  %12047 = vmatmul.mubr.f32.vlgmr.msra.gmra.mrb[4].mxu1 %v17259_v47 }
 0x842   :  { %12080 = vmatprep.mubr.f32.mxu1 %v17259_v47 }
 0x843   :  { %v17343_v13 = vpack.c.bf16 %v11338_v44, %v11337_v40 }
 0x844   :  { %v11152_v58 = vpop.f32.mrb[216].mxu1 }
 0x845   :  { %v11153_v23 = vadd.f32 %v17216_v14, %v11152_v58  ;;  %v11154_v20 = vpop.f32.mrb[217].mxu1 }
 0x846   :  { %v11155_v38 = vpop.f32.mrb[218].mxu1 }
 0x847   :  { %v11156_v37 = vadd.f32 %v17216_v14, %v11155_v38  ;;  %v11157_v49 = vpop.f32.mrb[219].mxu1  ;;  %v11339_v6 = vmax.f32 %v11153_v23, 0.0 }
 0x849   :  { %v11340_v53 = vmax.f32 %v11156_v37, 0.0 }
 0x84b   :  { %v17347_v16 = vpack.c.bf16 %v11340_v53, %v11339_v6 }
 0x84c   :  { %v11160_v19 = vpop.f32.mrb[220].mxu1 }
 0x84d   :  { %v11161_v39 = vadd.f32 %v17216_v14, %v11160_v19  ;;  %v11162_v32 = vpop.f32.mrb[221].mxu1 }
 0x84e   :  { %v11163_v22 = vpop.f32.mrb[222].mxu1 }
 0x84f   :  { %v11164_v8 = vadd.f32 %v17216_v14, %v11163_v22  ;;  %v11165_v12 = vpop.f32.mrb[223].mxu1  ;;  %v11341_v21 = vmax.f32 %v11161_v39, 0.0 }
 0x851   :  { %v11342_v52 = vmax.f32 %v11164_v8, 0.0 }
 0x853   :  { %v17351_v36 = vpack.c.bf16 %v11342_v52, %v11341_v21 }
 0x854   :  { %v11168_v50 = vpop.f32.mrb[224].mxu1 }
 0x855   :  { %v11169_v29 = vadd.f32 %v17216_v14, %v11168_v50  ;;  %v11170_v43 = vpop.f32.mrb[225].mxu1 }
 0x856   :  { %v11171_v46 = vpop.f32.mrb[226].mxu1 }
 0x857   :  { %v11172_v25 = vadd.f32 %v17216_v14, %v11171_v46  ;;  %v11173_v15 = vpop.f32.mrb[227].mxu1  ;;  %v11343_v60 = vmax.f32 %v11169_v29, 0.0 }
 0x859   :  { %v11344_v62 = vmax.f32 %v11172_v25, 0.0 }
 0x85b   :  { %v12178_v35 = vpack.c.bf16 %v11344_v62, %v11343_v60 }
 0x85c   :  { %v11176_v2 = vpop.f32.mrb[228].mxu1 }
 0x85d   :  { %v11177_v3 = vadd.f32 %v17216_v14, %v11176_v2  ;;  %v11178_v9 = vpop.f32.mrb[229].mxu1  ;;  %12179 = vmatprep.subr.bf16.mxu1 %v12178_v35 }
 0x85e   :  { %v11179_v41 = vpop.f32.mrb[230].mxu1  ;;  %12181 = vmatpush3.bf16.xpose.msra.mxu1 %v17317_v11 }
 0x85f   :  { %v11180_v26 = vadd.f32 %v17216_v14, %v11179_v41  ;;  %v11181_v54 = vpop.f32.mrb[231].mxu1  ;;  %v11345_v10 = vmax.f32 %v11177_v3, 0.0 }
 0x861   :  { %v11346_v51 = vmax.f32 %v11180_v26, 0.0 }
 0x863   :  { %v12182_v61 = vpack.c.bf16 %v11346_v51, %v11345_v10 }
 0x864   :  { %v11184_v0 = vpop.f32.mrb[232].mxu1 }
 0x865   :  { %v11185_v28 = vadd.f32 %v17216_v14, %v11184_v0  ;;  %v11186_v48 = vpop.f32.mrb[233].mxu1  ;;  %12183 = vmatprep.subr.bf16.mxu1 %v12182_v61 }
 0x866   :  { %v11187_v57 = vpop.f32.mrb[234].mxu1  ;;  %12185 = vmatpush3.bf16.xpose.msra.mxu1 %v17322_v30 }
 0x867   :  { %v11188_v27 = vadd.f32 %v17216_v14, %v11187_v57  ;;  %v11189_v31 = vpop.f32.mrb[235].mxu1  ;;  %v11347_v18 = vmax.f32 %v11185_v28, 0.0 }
 0x869   :  { %v11348_v4 = vmax.f32 %v11188_v27, 0.0 }
 0x86b   :  { %v12186_v11 = vpack.c.bf16 %v11348_v4, %v11347_v18 }
 0x86c   :  { %v11192_v7 = vpop.f32.mrb[236].mxu1 }
 0x86d   :  { %v11193_v63 = vadd.f32 %v17216_v14, %v11192_v7  ;;  %v11194_v45 = vpop.f32.mrb[237].mxu1  ;;  %12187 = vmatprep.subr.bf16.mxu1 %v12186_v11 }
 0x86e   :  { %v11195_v56 = vpop.f32.mrb[238].mxu1  ;;  %12189 = vmatpush3.bf16.xpose.msra.mxu1 %v17327_v34 }
 0x86f   :  { %v11196_v1 = vadd.f32 %v17216_v14, %v11195_v56  ;;  %v11197_v42 = vpop.f32.mrb[239].mxu1  ;;  %v11349_v55 = vmax.f32 %v11193_v63, 0.0 }
 0x871   :  { %v11350_v5 = vmax.f32 %v11196_v1, 0.0 }
 0x873   :  { %v12190_v30 = vpack.c.bf16 %v11350_v5, %v11349_v55 }
 0x874   :  { %v11200_v17 = vpop.f32.mrb[240].mxu1 }
 0x875   :  { %v11201_v59 = vadd.f32 %v17216_v14, %v11200_v17  ;;  %v11202_v40 = vpop.f32.mrb[241].mxu1  ;;  %12191 = vmatprep.subr.bf16.mxu1 %v12190_v30  ;;  %v15848_v17 = vmov 1966171168  }
 0x876   :  { %v11203_v44 = vpop.f32.mrb[242].mxu1  ;;  %12193 = vmatpush3.bf16.xpose.msra.mxu1 %v17332_v33 }
 0x877   :  { %v11204_v58 = vadd.f32 %v17216_v14, %v11203_v44  ;;  %v11205_v23 = vpop.f32.mrb[243].mxu1  ;;  %v11351_v20 = vmax.f32 %v11201_v59, 0.0  ;;  %v11707_v59 = vunpack.c.l.s4 %v15848_v17 }
 0x879   :  { %v11352_v38 = vmax.f32 %v11204_v58, 0.0  ;;  %v11708_v40 = vunpack.c.0.s8 %v11707_v59  ;;  %v17847_v58 = vld [vmem:[#allocation228_spill] sm:$0xff] }
 0x87b   :  { %v12194_v34 = vpack.c.bf16 %v11352_v38, %v11351_v20  ;;  %v11711_v23 = vsub.s32 %v11708_v40, %v17847_v58 }
 0x87c   :  { %v11208_v37 = vpop.f32.mrb[244].mxu1 }
 0x87d   :  { %v11209_v49 = vadd.f32 %v17216_v14, %v11208_v37  ;;  %v11210_v6 = vpop.f32.mrb[245].mxu1  ;;  %12195 = vmatprep.subr.bf16.mxu1 %v12194_v34 }
 0x87e   :  { %v11211_v53 = vpop.f32.mrb[246].mxu1  ;;  %12197 = vmatpush3.bf16.xpose.msra.mxu1 %v17337_v24 }
 0x87f   :  { %v11212_v19 = vadd.f32 %v17216_v14, %v11211_v53  ;;  %v11213_v39 = vpop.f32.mrb[247].mxu1  ;;  %v11353_v32 = vmax.f32 %v11209_v49, 0.0 }
 0x881   :  { %v11354_v22 = vmax.f32 %v11212_v19, 0.0 }
 0x883   :  { %v12198_v33 = vpack.c.bf16 %v11354_v22, %v11353_v32 }
 0x884   :  { %v11216_v8 = vpop.f32.mrb[248].mxu1 }
 0x885   :  { %v11217_v12 = vadd.f32 %v17216_v14, %v11216_v8  ;;  %v11218_v21 = vpop.f32.mrb[249].mxu1  ;;  %12199 = vmatprep.subr.bf16.mxu1 %v12198_v33 }
 0x886   :  { %v11219_v52 = vpop.f32.mrb[250].mxu1  ;;  %12201 = vmatpush3.bf16.xpose.msra.mxu1 %v17343_v13  ;;  %v17379_v13 = vstv %s17410_s6 }
 0x887   :  { %v11220_v50 = vadd.f32 %v17216_v14, %v11219_v52  ;;  %v11221_v29 = vpop.f32.mrb[251].mxu1  ;;  %v11355_v43 = vmax.f32 %v11217_v12, 0.0 }
 0x889   :  { %v11356_v46 = vmax.f32 %v11220_v50, 0.0 }
 0x88b   :  { %v12202_v24 = vpack.c.bf16 %v11356_v46, %v11355_v43 }
 0x88c   :  { %v11224_v25 = vpop.f32.mrb[252].mxu1 }
 0x88d   :  { %v11225_v15 = vadd.f32 %v17216_v14, %v11224_v25  ;;  %v11226_v60 = vpop.f32.mrb[253].mxu1  ;;  %12203 = vmatprep.subr.bf16.mxu1 %v12202_v24 }
 0x88e   :  { %v11227_v62 = vpop.f32.mrb[254].mxu1  ;;  %12205 = vmatpush3.bf16.xpose.msra.mxu1 %v17347_v16 }
 0x88f   :  { %v11228_v35 = vadd.f32 %v17216_v14, %v11227_v62  ;;  %v11229_v2 = vpop.f32.mrb[255].mxu1  ;;  %v11357_v3 = vmax.f32 %v11225_v15, 0.0 }
 0x891   :  { %v11358_v9 = vmax.f32 %v11228_v35, 0.0 }
 0x893   :  { %v12206_v41 = vpack.c.bf16 %v11358_v9, %v11357_v3 }
 0x894   :  { %v11428_v26 = vpop.f32.mrb[0].mxu1 }
 0x895   :  { %12207 = vmatprep.subr.bf16.mxu1 %v12206_v41  ;;  %v11429_v54 = vadd.f32 %v11428_v26, %v17379_v13  ;;  %v11430_v10 = vpop.f32.mrb[1].mxu1 }
 0x896   :  { %12209 = vmatpush3.bf16.xpose.msra.mxu1 %v17351_v36  ;;  %v11431_v16 = vadd.f32 %v11430_v10, %v17379_v13 }
 0x897   :  { %v11646_v51 = vsub.f32 0.0, %v11429_v54 }
 0x898   :  { %v11647_v14 = vsub.f32 0.0, %v11431_v16 }
 0x899   :  { %v11654_v61 = vmul.f32 1.442695, %v11646_v51 }
 0x89a   :  { %v11656_v0 = vmul.f32 1.442695, %v11647_v14 }
 0x89b   :  { %15710 = vpow2.f32 %v11654_v61 }
 0x89c   :  { %15712 = vpow2.f32 %v11656_v0 }
 0x89d   :  { %12081 = vmatmul.mubr.f32.vlgmr.msra.gmra.mrb[6].mxu1 %v17259_v47 }
 0x8a5   :  { %v15711_v28 = vpop.eup %15710 }
 0x8a6   :  { %v15713_v48 = vpop.eup %15712  ;;  %v11670_v57 = vadd.f32 1.0, %v15711_v28 }
 0x8a7   :  { %v11671_v27 = vadd.f32 1.0, %v15713_v48 }
 0x8a8   :  { %15714 = vrcp.f32 %v11670_v57 }
 0x8a9   :  { %15716 = vrcp.f32 %v11671_v27 }
 0x8b2   :  { %v15715_v31 = vpop.eup %15714 }
 0x8b3   :  { %v15717_v18 = vpop.eup %15716 }
 0x8b4   :  { %v11702_v4 = vcombine.low %v15715_v31, %v15717_v18 }
 0x8b6   :  { %v11712_v34 = vrot.slane %v11702_v4, %v11711_v23 }
 0x8d4   :  { %v11499_v36 = vpop.f32.mrb[2].mxu1 }
 0x8d5   :  { %v11500_v11 = vadd.f32 %v11499_v36, %v17379_v13  ;;  %v11501_v7 = vpop.f32.mrb[3].mxu1 }
 0x8d6   :  { %v11502_v63 = vadd.f32 %v11501_v7, %v17379_v13 }
 0x8d7   :  { %v11648_v45 = vsub.f32 0.0, %v11500_v11 }
 0x8d8   :  { %v11649_v56 = vsub.f32 0.0, %v11502_v63 }
 0x8d9   :  { %v11658_v1 = vmul.f32 1.442695, %v11648_v45 }
 0x8da   :  { %v11660_v42 = vmul.f32 1.442695, %v11649_v56 }
 0x8db   :  { %15718 = vpow2.f32 %v11658_v1 }
 0x8dc   :  { %15720 = vpow2.f32 %v11660_v42 }
 0x8e5   :  { %v15719_v47 = vpop.eup %15718 }
 0x8e6   :  { %v15721_v55 = vpop.eup %15720  ;;  %v11672_v5 = vadd.f32 1.0, %v15719_v47 }
 0x8e7   :  { %v11673_v30 = vadd.f32 1.0, %v15721_v55 }
 0x8e8   :  { %15722 = vrcp.f32 %v11672_v5 }
 0x8e9   :  { %15724 = vrcp.f32 %v11673_v30 }
 0x8f2   :  { %v15723_v44 = vpop.eup %15722 }
 0x8f3   :  { %v15725_v20 = vpop.eup %15724 }
 0x8f4   :  { %v11703_v38 = vcombine.low %v15723_v44, %v15725_v20 }
 0x8f6   :  { %v11719_v37 = vrot.slane %v11703_v38, %v11711_v23 }
 0x8f8   :  { %v11734_v49 = vcombine.low %v11712_v34, %v11719_v37 }
 0x8fa   :  { %v11742_v28 = vrot.slane %v11734_v49, %v11711_v23 }
 0x914   :  { %v11570_v6 = vpop.f32.mrb[4].mxu1 }
 0x915   :  { %v11571_v53 = vadd.f32 %v11570_v6, %v17379_v13  ;;  %v11572_v19 = vpop.f32.mrb[5].mxu1 }
 0x916   :  { %v11573_v39 = vadd.f32 %v11572_v19, %v17379_v13 }
 0x917   :  { %v11650_v32 = vsub.f32 0.0, %v11571_v53 }
 0x918   :  { %v11651_v22 = vsub.f32 0.0, %v11573_v39 }
 0x919   :  { %v11662_v33 = vmul.f32 1.442695, %v11650_v32 }
 0x91a   :  { %v11664_v8 = vmul.f32 1.442695, %v11651_v22 }
 0x91b   :  { %15726 = vpow2.f32 %v11662_v33 }
 0x91c   :  { %15728 = vpow2.f32 %v11664_v8 }
 0x925   :  { %v15727_v12 = vpop.eup %15726 }
 0x926   :  { %v15729_v21 = vpop.eup %15728  ;;  %v11674_v52 = vadd.f32 1.0, %v15727_v12 }
 0x927   :  { %v11675_v50 = vadd.f32 1.0, %v15729_v21 }
 0x928   :  { %15730 = vrcp.f32 %v11674_v52 }
 0x929   :  { %15732 = vrcp.f32 %v11675_v50 }
 0x932   :  { %v15731_v29 = vpop.eup %15730 }
 0x933   :  { %v15733_v43 = vpop.eup %15732 }
 0x934   :  { %v11704_v46 = vcombine.low %v15731_v29, %v15733_v43 }
 0x936   :  { %v11726_v14 = vrot.slane %v11704_v46, %v11711_v23 }
 0x970   :  { %v11641_v24 = vpop.f32.mrb[6].mxu1 }
 0x971   :  { %v11642_v25 = vadd.f32 %v11641_v24, %v17379_v13  ;;  %v11643_v15 = vpop.f32.mrb[7].mxu1 }
 0x972   :  { %v11644_v60 = vadd.f32 %v11643_v15, %v17379_v13 }
 0x973   :  { %v11652_v62 = vsub.f32 0.0, %v11642_v25 }
 0x974   :  { %v11653_v35 = vsub.f32 0.0, %v11644_v60 }
 0x975   :  { %v11666_v2 = vmul.f32 1.442695, %v11652_v62 }
 0x976   :  { %v11668_v3 = vmul.f32 1.442695, %v11653_v35 }
 0x977   :  { %15734 = vpow2.f32 %v11666_v2 }
 0x978   :  { %15736 = vpow2.f32 %v11668_v3 }
 0x981   :  { %v15735_v9 = vpop.eup %15734 }
 0x982   :  { %v15737_v41 = vpop.eup %15736  ;;  %v11676_v26 = vadd.f32 1.0, %v15735_v9 }
 0x983   :  { %v11677_v54 = vadd.f32 1.0, %v15737_v41 }
 0x984   :  { %15738 = vrcp.f32 %v11676_v26 }
 0x985   :  { %15740 = vrcp.f32 %v11677_v54 }
 0x98e   :  { %v15739_v10 = vpop.eup %15738 }
 0x98f   :  { %v15741_v16 = vpop.eup %15740 }
 0x990   :  { %v11705_v51 = vcombine.low %v15739_v10, %v15741_v16 }
 0x992   :  { %v11733_v61 = vrot.slane %v11705_v51, %v11711_v23 }
 0x994   :  { %v11735_v0 = vcombine.low %v11726_v14, %v11733_v61 }
 0x996   :  { %v11749_v13 = vrot.slane %v11735_v0, %v11711_v23 }
 0x998   :  { %v11750_v48 = vcombine.low %v11742_v28, %v11749_v13 }
 0x99a   :  { %11752 = vst [vmem:[#allocation9] sm:$0xff] %v11750_v48 }
 0x99b   :  { %11757 = vsyncadd [#allocation5], 112  ;;  %s15849_s6 = smov [#allocation9]  }
 0x99c   :  { %s11759_s26 = sshll.u32 %s15849_s6, 4  ;;  %s11760_s26 = int_to_ptr.vmem [resolvable:$true] %s11759_s26 }
 0x99d   :  { %s15810_s27 = scalar_lea.vmem %s11760_s26, 16  ;;  %s15814_s28 = scalar_lea.vmem %s11760_s26, 128 }
 0x99e   :  { %p15811_p10 = scmp.ne.s32.totalorder %s11760_s26, %s15810_s27  ;;  %p15815_p11 = scmp.lt.s32.totalorder %s11760_s26, %s11760_s26 }
 0x99f   :  { %p15816_p12 = scmp.lt.s32.totalorder %s15814_s28, %s15810_s27 }
 0x9a1   :  { %p15817_p13 = por %p15816_p12, %p15815_p11 }
 0x9a3   :  { %p15818_p0 = pnand %p15817_p13, %p15811_p10 }
 0x9a5   :  { %15821 = shalt.err (!%p15818_p0)
}
 0x9a6   :  { %s15822_s8 = scalar_lea.hbm %s17411_s7, 16 }
 0x9a7   :  { %p15823_p1 = scmp.ne.s32.totalorder %s17411_s7, %s15822_s8  ;;  %p15826_p2 = scmp.lt.u32.totalorder %s15822_s8, %s17411_s7 }
 0x9a9   :  { %p15828_p3 = pnand %p15826_p2, %p15823_p1 }
 0x9ab   :  { %15831 = shalt.err (!%p15828_p3)
}
 0x9ac   :  { %11762 = dma.vmem_to_hbm [thread:$0]  %s11760_s26, 16, %s17411_s7, [#allocation5]  }
 0x9ad   :  { %15836 = dma.done.wait [#allocation5], 128  }
 0x9ae   :  { %15837 = vsyncadd [#allocation5], 4294967168 }
 0x9af   :  { %11766 = vsyncpa [#allocation4], 1 }
 0x9b0   :  { %11767 = vsyncpa [#allocation7], 1 }
 0x9b1   :  { %11768 = vsyncpa [#allocation5], 1 }

</bundles_post_ra>
